<compile_context>
chip_gen: v5e
topology: v5e:2x2
jax: 0.10.0
libtpu: 0.0.40
codegen_flags: <defaults>
</compile_context>

<pallas_src>
import functools

import jax
import jax.numpy as jnp
from jax.experimental import pallas as pl
from jax.experimental.pallas import tpu as pltpu

_BN_EPS = 1e-5
_CIN_PAD = 8      # start-conv input channels (3) padded to a full sublane
_HEAD_C = 128     # merged policy(32)+value(3) head-conv channels, lane-padded


# ----------------------------- Pallas kernels ------------------------------ #

def _fused_resnet_kernel(x_ref, w0_ref, s0_ref, wb_ref, sb_ref, wh_ref, sh_ref,
                         o_ref, pad_ref, *, n, h, w, ch, num_blocks):
    """startBlock + all ResBlocks + merged head convs, fully resident in VMEM.

    x_ref   : (n, h+2, w+2, _CIN_PAD) f32   zero-padded NHWC input
    w0_ref  : (9, _CIN_PAD, ch)       bf16  start conv (BN scale folded)
    s0_ref  : (1, ch)                 f32   folded conv-bias/BN shift
    wb_ref  : (2*num_blocks, 9, ch, ch) bf16  ResBlock convs (stacked)
    sb_ref  : (2*num_blocks, 1, ch)     f32
    wh_ref  : (9, ch, _HEAD_C)        bf16  merged policy+value head conv
    sh_ref  : (1, _HEAD_C)            f32
    o_ref   : (n*h*w, _HEAD_C)        f32   lane-dense (128) output
    pad_ref : (n, h+2, w+2, ch)       f32   scratch: zero-haloed activation
    """
    m = n * h * w

    def conv3x3(src_ref, w_of_tap, cout):
        # 3x3 "same" conv as 9 shifted matmuls accumulating in f32 (no im2col
        # matrix is ever materialized; only the NHWC tile + halo lives in VMEM).
        acc = jnp.zeros((m, cout), jnp.float32)
        for t in range(9):
            kh, kw = divmod(t, 3)
            xs = src_ref[:, kh:kh + h, kw:kw + w, :]
            xs = xs.reshape(m, src_ref.shape[-1]).astype(jnp.bfloat16)
            acc = acc + jnp.dot(xs, w_of_tap(t),
                                preferred_element_type=jnp.float32)
        return acc

    def stash(act):
        # place the (m, ch) activation into the interior of the haloed buffer
        pad_ref[:, 1:1 + h, 1:1 + w, :] = act.reshape(n, h, w, ch)

    # zero the halo border once; only the interior is rewritten afterwards
    pad_ref[...] = jnp.zeros_like(pad_ref)

    # startBlock: conv + folded-BN shift + ReLU (reads the pre-padded input)
    act = conv3x3(x_ref, lambda t: w0_ref[t, :, :], ch) + s0_ref[...]
    act = jnp.maximum(act, 0.0)

    # backBone: ResBlocks (residual kept as a live VMEM value, never hits HBM)
    for blk in range(num_blocks):
        stash(act)
        y = conv3x3(pad_ref, lambda t, i=2 * blk: wb_ref[i, t, :, :], ch)
        y = jnp.maximum(y + sb_ref[2 * blk, :, :], 0.0)
        stash(y)
        y = conv3x3(pad_ref, lambda t, i=2 * blk + 1: wb_ref[i, t, :, :], ch)
        act = jnp.maximum(y + sb_ref[2 * blk + 1, :, :] + act, 0.0)

    # merged policy+value head convs -> single lane-dense (m, 128) store
    stash(act)
    head_c = o_ref.shape[-1]
    yh = conv3x3(pad_ref, lambda t: wh_ref[t, :, :], head_c) + sh_ref[...]
    o_ref[...] = jnp.maximum(yh, 0.0)


def _heads_fc_kernel(x_ref, w_ref, b_ref, o_ref, *, value_col):
    """Merged policy+value Linear heads; tanh applied only to the value lane."""
    x = x_ref[...].astype(jnp.bfloat16)
    y = jnp.dot(x, w_ref[...], preferred_element_type=jnp.float32) + b_ref[...]
    col = jax.lax.broadcasted_iota(jnp.int32, y.shape, 1)
    o_ref[...] = jnp.where(col == value_col, jnp.tanh(y), y)


# ------------------------------ wrappers (glue) ----------------------------- #

def _vmem_spec():
    return pl.BlockSpec(memory_space=pltpu.MemorySpace.VMEM)


def resnet_forward(params, x_nchw, *, action_size):
    n, cin, h, w = x_nchw.shape
    ch = params["w0"].shape[-1]
    num_blocks = params["wb"].shape[0] // 2
    m = n * h * w

    # NCHW -> NHWC, spatial halo pad for the 3x3 convs, channel pad 3 -> 8
    x = jnp.transpose(x_nchw, (0, 2, 3, 1)).astype(jnp.float32)
    x = jnp.pad(x, ((0, 0), (1, 1), (1, 1), (0, _CIN_PAD - cin)))

    head_act = pl.pallas_call(
        functools.partial(_fused_resnet_kernel, n=n, h=h, w=w, ch=ch,
                          num_blocks=num_blocks),
        out_shape=jax.ShapeDtypeStruct((m, _HEAD_C), jnp.float32),
        in_specs=[_vmem_spec() for _ in range(7)],
        out_specs=_vmem_spec(),
        scratch_shapes=[pltpu.VMEM((n, h + 2, w + 2, ch), jnp.float32)],
    )(x, params["w0"], params["s0"], params["wb"], params["sb"],
      params["wh"], params["sh"])

    # free row-major reshape: (n*h*w, 128) -> (n, h*w*128). The FC weight rows
    # were permuted at init to this NHWC-flat order, so no transpose is needed.
    fc_in = head_act.reshape(n, h * w * _HEAD_C)
    out_pad = params["wfc"].shape[-1]

    heads = pl.pallas_call(
        functools.partial(_heads_fc_kernel, value_col=action_size),
        out_shape=jax.ShapeDtypeStruct((n, out_pad), jnp.float32),
        in_specs=[_vmem_spec() for _ in range(3)],
        out_specs=_vmem_spec(),
    )(fc_in, params["wfc"], params["bfc"])

    policy = heads[:, :action_size]
    value = heads[:, action_size:action_size + 1]
    return policy, value


# --------------------------- parameter construction ------------------------- #

def _fold_conv_bn(key, cin, cout, cin_pad=None):
    """Random Conv2d(3x3)+BatchNorm2d(eval) params with the BN scale folded into
    the conv weight and conv-bias/BN-shift folded into one per-channel shift."""
    cin_pad = cin if cin_pad is None else cin_pad
    k1, k2, k3, k4, k5, k6 = jax.random.split(key, 6)
    wconv = jax.random.normal(k1, (3, 3, cin, cout), jnp.float32) * 0.1
    conv_b = jax.random.normal(k2, (cout,), jnp.float32) * 0.1
    gamma = jax.random.uniform(k3, (cout,), jnp.float32, 0.5, 1.5)
    beta = jax.random.normal(k4, (cout,), jnp.float32) * 0.1
    run_mean = jax.random.normal(k5, (cout,), jnp.float32) * 0.1
    run_var = jax.random.uniform(k6, (cout,), jnp.float32, 0.5, 1.5)
    scale = gamma / jnp.sqrt(run_var + _BN_EPS)
    w_folded = (wconv * scale).reshape(9, cin, cout)       # tap = kh*3 + kw
    shift = (beta + scale * (conv_b - run_mean)).reshape(1, cout)
    if cin_pad > cin:
        w_folded = jnp.pad(w_folded, ((0, 0), (0, cin_pad - cin), (0, 0)))
    return w_folded.astype(jnp.bfloat16), shift


def init_params(key, num_res_blocks, num_hidden, row_count, column_count, action_size):
    hw = row_count * column_count
    out_pad = 128 * pl.cdiv(action_size + 1, 128)
    keys = jax.random.split(key, 1 + 2 * num_res_blocks + 4)
    kit = iter(keys)

    # startBlock
    w0, s0 = _fold_conv_bn(next(kit), 3, num_hidden, cin_pad=_CIN_PAD)

    # backBone (stacked so the fused kernel takes 2 operands for all blocks)
    wb_list, sb_list = [], []
    for _ in range(num_res_blocks):
        for _ in range(2):
            wi, si = _fold_conv_bn(next(kit), num_hidden, num_hidden)
            wb_list.append(wi)
            sb_list.append(si)
    wb = jnp.stack(wb_list)                       # (2*nb, 9, ch, ch) bf16
    sb = jnp.stack(sb_list)                       # (2*nb, 1, ch)     f32

    # heads: policy conv (32ch) + value conv (3ch) merged, lane-padded to 128
    wp, sp = _fold_conv_bn(next(kit), num_hidden, 32)
    wv, sv = _fold_conv_bn(next(kit), num_hidden, 3)
    wh = jnp.zeros((9, num_hidden, _HEAD_C), jnp.bfloat16)
    wh = wh.at[:, :, :32].set(wp).at[:, :, 32:35].set(wv)
    sh = jnp.zeros((1, _HEAD_C), jnp.float32)
    sh = sh.at[:, :32].set(sp).at[:, 32:35].set(sv)

    # merged FC heads; rows permuted from PyTorch NCHW-flatten (c*HW + s) to the
    # kernel's NHWC-flat order (s*_HEAD_C + c); output cols lane-padded.
    kp1, kp2 = jax.random.split(next(kit))
    kv1, kv2 = jax.random.split(next(kit))
    wfc_p = jax.random.normal(kp1, (action_size, 32 * hw), jnp.float32) / jnp.sqrt(32.0 * hw)
    bfc_p = jax.random.normal(kp2, (action_size,), jnp.float32) * 0.05
    wfc_v = jax.random.normal(kv1, (1, 3 * hw), jnp.float32) / jnp.sqrt(3.0 * hw)
    bfc_v = jax.random.normal(kv2, (1,), jnp.float32) * 0.05

    w2 = jnp.zeros((hw, _HEAD_C, out_pad), jnp.float32)
    w2 = w2.at[:, :32, :action_size].set(
        jnp.transpose(wfc_p.reshape(action_size, 32, hw), (2, 1, 0)))
    w2 = w2.at[:, 32:35, action_size:action_size + 1].set(
        jnp.transpose(wfc_v.reshape(1, 3, hw), (2, 1, 0)))
    wfc = w2.reshape(hw * _HEAD_C, out_pad).astype(jnp.bfloat16)
    bfc = jnp.zeros((1, out_pad), jnp.float32)
    bfc = bfc.at[0, :action_size].set(bfc_p).at[0, action_size].set(bfc_v[0])

    return {"w0": w0, "s0": s0, "wb": wb, "sb": sb,
            "wh": wh, "sh": sh, "wfc": wfc, "bfc": bfc}


# ----------------------------------- main ----------------------------------- #

if __name__ == "__main__":
    num_res_blocks = 2
    num_hidden = 32
    row_count, column_count = 8, 8
    action_size = 65
    batch = 2

    key = jax.random.PRNGKey(0)
    pkey, xkey = jax.random.split(key)
    params = init_params(pkey, num_res_blocks, num_hidden,
                         row_count, column_count, action_size)
    x = jax.random.normal(xkey, (batch, 3, row_count, column_count), jnp.float32)

    fwd = jax.jit(functools.partial(resnet_forward, action_size=action_size))
    policy, value = fwd(params, x)
    jax.block_until_ready((policy, value))

    assert policy.shape == (batch, action_size), policy.shape
    assert value.shape == (batch, 1), value.shape
    assert policy.dtype == jnp.float32 and value.dtype == jnp.float32
    assert bool(jnp.all(jnp.isfinite(policy)))
    assert bool(jnp.all(jnp.abs(value) <= 1.0))   # tanh range sanity
    print("KERNEL_OK")
</pallas_src>

<mosaic_0001>
module attributes {stable_mosaic.version = 11 : i64} {
  func.func @_fused_resnet_kernel(%arg0: memref<2x10x10x8xf32, #tpu.memory_space<vmem>>, %arg1: memref<9x8x32xbf16, #tpu.memory_space<vmem>>, %arg2: memref<1x32xf32, #tpu.memory_space<vmem>>, %arg3: memref<4x9x32x32xbf16, #tpu.memory_space<vmem>>, %arg4: memref<4x1x32xf32, #tpu.memory_space<vmem>>, %arg5: memref<9x32x128xbf16, #tpu.memory_space<vmem>>, %arg6: memref<1x128xf32, #tpu.memory_space<vmem>>, %arg7: memref<128x128xf32, #tpu.memory_space<vmem>>, %arg8: memref<2x10x10x32xf32, #tpu.memory_space<vmem>>) attributes {dimension_semantics = [], scalar_prefetch = 0 : i64, scratch_operands = 1 : i64, tpu.core_type = #tpu.core_type<tc>} {
    %cst = arith.constant 0.000000e+00 : f32
    %0 = vector.broadcast %cst : f32 to vector<2x10x10x32xf32>
    %c0 = arith.constant 0 : index
    %c0_0 = arith.constant 0 : index
    %c0_1 = arith.constant 0 : index
    %c0_2 = arith.constant 0 : index
    %1 = vector.load %arg8[%c0, %c0_0, %c0_1, %c0_2] : memref<2x10x10x32xf32, #tpu.memory_space<vmem>>, vector<2x10x10x32xf32>
    tpu.vector_store %arg8[%c0, %c0_0, %c0_1, %c0_2], %0 {strides = array<i32>} : memref<2x10x10x32xf32, #tpu.memory_space<vmem>>, vector<2x10x10x32xf32>,
    %cst_3 = arith.constant 0.000000e+00 : f32
    %2 = vector.broadcast %cst_3 : f32 to vector<128x32xf32>
    %c0_4 = arith.constant 0 : index
    %c0_5 = arith.constant 0 : index
    %c0_6 = arith.constant 0 : index
    %c0_7 = arith.constant 0 : index
    %3 = vector.load %arg0[%c0_4, %c0_5, %c0_6, %c0_7] : memref<2x10x10x8xf32, #tpu.memory_space<vmem>>, vector<2x8x8x8xf32>
    %4 = vector.shape_cast %3 : vector<2x8x8x8xf32> to vector<128x8xf32>
    %5 = arith.truncf %4 : vector<128x8xf32> to vector<128x8xbf16>
    %c0_8 = arith.constant 0 : index
    %c0_9 = arith.constant 0 : index
    %c0_10 = arith.constant 0 : index
    %6 = vector.load %arg1[%c0_8, %c0_9, %c0_10] : memref<9x8x32xbf16, #tpu.memory_space<vmem>>, vector<1x8x32xbf16>
    %7 = vector.shape_cast %6 : vector<1x8x32xbf16> to vector<8x32xbf16>
    %cst_11 = arith.constant dense<0.000000e+00> : vector<128x32xf32>
    %8 = tpu.matmul %5, %7, %cst_11 {dimension_numbers = #tpu.dot_dimension_numbers<[1], [0], [0], [1], [0, 0, 1, 1], [], []>} : vector<128x8xbf16>, vector<8x32xbf16>, vector<128x32xf32> -> vector<128x32xf32>
    %9 = arith.addf %2, %8 : vector<128x32xf32>
    %c0_12 = arith.constant 0 : index
    %c0_13 = arith.constant 0 : index
    %c1 = arith.constant 1 : index
    %c0_14 = arith.constant 0 : index
    %10 = vector.load %arg0[%c0_12, %c0_13, %c1, %c0_14] : memref<2x10x10x8xf32, #tpu.memory_space<vmem>>, vector<2x8x8x8xf32>
    %11 = vector.shape_cast %10 : vector<2x8x8x8xf32> to vector<128x8xf32>
    %12 = arith.truncf %11 : vector<128x8xf32> to vector<128x8xbf16>
    %c1_15 = arith.constant 1 : index
    %c0_16 = arith.constant 0 : index
    %c0_17 = arith.constant 0 : index
    %13 = vector.load %arg1[%c1_15, %c0_16, %c0_17] : memref<9x8x32xbf16, #tpu.memory_space<vmem>>, vector<1x8x32xbf16>
    %14 = vector.shape_cast %13 : vector<1x8x32xbf16> to vector<8x32xbf16>
    %cst_18 = arith.constant dense<0.000000e+00> : vector<128x32xf32>
    %15 = tpu.matmul %12, %14, %cst_18 {dimension_numbers = #tpu.dot_dimension_numbers<[1], [0], [0], [1], [0, 0, 1, 1], [], []>} : vector<128x8xbf16>, vector<8x32xbf16>, vector<128x32xf32> -> vector<128x32xf32>
    %16 = arith.addf %9, %15 : vector<128x32xf32>
    %c0_19 = arith.constant 0 : index
    %c0_20 = arith.constant 0 : index
    %c2 = arith.constant 2 : index
    %c0_21 = arith.constant 0 : index
    %17 = vector.load %arg0[%c0_19, %c0_20, %c2, %c0_21] : memref<2x10x10x8xf32, #tpu.memory_space<vmem>>, vector<2x8x8x8xf32>
    %18 = vector.shape_cast %17 : vector<2x8x8x8xf32> to vector<128x8xf32>
    %19 = arith.truncf %18 : vector<128x8xf32> to vector<128x8xbf16>
    %c2_22 = arith.constant 2 : index
    %c0_23 = arith.constant 0 : index
    %c0_24 = arith.constant 0 : index
    %20 = vector.load %arg1[%c2_22, %c0_23, %c0_24] : memref<9x8x32xbf16, #tpu.memory_space<vmem>>, vector<1x8x32xbf16>
    %21 = vector.shape_cast %20 : vector<1x8x32xbf16> to vector<8x32xbf16>
    %cst_25 = arith.constant dense<0.000000e+00> : vector<128x32xf32>
    %22 = tpu.matmul %19, %21, %cst_25 {dimension_numbers = #tpu.dot_dimension_numbers<[1], [0], [0], [1], [0, 0, 1, 1], [], []>} : vector<128x8xbf16>, vector<8x32xbf16>, vector<128x32xf32> -> vector<128x32xf32>
    %23 = arith.addf %16, %22 : vector<128x32xf32>
    %c0_26 = arith.constant 0 : index
    %c1_27 = arith.constant 1 : index
    %c0_28 = arith.constant 0 : index
    %c0_29 = arith.constant 0 : index
    %24 = vector.load %arg0[%c0_26, %c1_27, %c0_28, %c0_29] : memref<2x10x10x8xf32, #tpu.memory_space<vmem>>, vector<2x8x8x8xf32>
    %25 = vector.shape_cast %24 : vector<2x8x8x8xf32> to vector<128x8xf32>
    %26 = arith.truncf %25 : vector<128x8xf32> to vector<128x8xbf16>
    %c3 = arith.constant 3 : index
    %c0_30 = arith.constant 0 : index
    %c0_31 = arith.constant 0 : index
    %27 = vector.load %arg1[%c3, %c0_30, %c0_31] : memref<9x8x32xbf16, #tpu.memory_space<vmem>>, vector<1x8x32xbf16>
    %28 = vector.shape_cast %27 : vector<1x8x32xbf16> to vector<8x32xbf16>
    %cst_32 = arith.constant dense<0.000000e+00> : vector<128x32xf32>
    %29 = tpu.matmul %26, %28, %cst_32 {dimension_numbers = #tpu.dot_dimension_numbers<[1], [0], [0], [1], [0, 0, 1, 1], [], []>} : vector<128x8xbf16>, vector<8x32xbf16>, vector<128x32xf32> -> vector<128x32xf32>
    %30 = arith.addf %23, %29 : vector<128x32xf32>
    %c0_33 = arith.constant 0 : index
    %c1_34 = arith.constant 1 : index
    %c1_35 = arith.constant 1 : index
    %c0_36 = arith.constant 0 : index
    %31 = vector.load %arg0[%c0_33, %c1_34, %c1_35, %c0_36] : memref<2x10x10x8xf32, #tpu.memory_space<vmem>>, vector<2x8x8x8xf32>
    %32 = vector.shape_cast %31 : vector<2x8x8x8xf32> to vector<128x8xf32>
    %33 = arith.truncf %32 : vector<128x8xf32> to vector<128x8xbf16>
    %c4 = arith.constant 4 : index
    %c0_37 = arith.constant 0 : index
    %c0_38 = arith.constant 0 : index
    %34 = vector.load %arg1[%c4, %c0_37, %c0_38] : memref<9x8x32xbf16, #tpu.memory_space<vmem>>, vector<1x8x32xbf16>
    %35 = vector.shape_cast %34 : vector<1x8x32xbf16> to vector<8x32xbf16>
    %cst_39 = arith.constant dense<0.000000e+00> : vector<128x32xf32>
    %36 = tpu.matmul %33, %35, %cst_39 {dimension_numbers = #tpu.dot_dimension_numbers<[1], [0], [0], [1], [0, 0, 1, 1], [], []>} : vector<128x8xbf16>, vector<8x32xbf16>, vector<128x32xf32> -> vector<128x32xf32>
    %37 = arith.addf %30, %36 : vector<128x32xf32>
    %c0_40 = arith.constant 0 : index
    %c1_41 = arith.constant 1 : index
    %c2_42 = arith.constant 2 : index
    %c0_43 = arith.constant 0 : index
    %38 = vector.load %arg0[%c0_40, %c1_41, %c2_42, %c0_43] : memref<2x10x10x8xf32, #tpu.memory_space<vmem>>, vector<2x8x8x8xf32>
    %39 = vector.shape_cast %38 : vector<2x8x8x8xf32> to vector<128x8xf32>
    %40 = arith.truncf %39 : vector<128x8xf32> to vector<128x8xbf16>
    %c5 = arith.constant 5 : index
    %c0_44 = arith.constant 0 : index
    %c0_45 = arith.constant 0 : index
    %41 = vector.load %arg1[%c5, %c0_44, %c0_45] : memref<9x8x32xbf16, #tpu.memory_space<vmem>>, vector<1x8x32xbf16>
    %42 = vector.shape_cast %41 : vector<1x8x32xbf16> to vector<8x32xbf16>
    %cst_46 = arith.constant dense<0.000000e+00> : vector<128x32xf32>
    %43 = tpu.matmul %40, %42, %cst_46 {dimension_numbers = #tpu.dot_dimension_numbers<[1], [0], [0], [1], [0, 0, 1, 1], [], []>} : vector<128x8xbf16>, vector<8x32xbf16>, vector<128x32xf32> -> vector<128x32xf32>
    %44 = arith.addf %37, %43 : vector<128x32xf32>
    %c0_47 = arith.constant 0 : index
    %c2_48 = arith.constant 2 : index
    %c0_49 = arith.constant 0 : index
    %c0_50 = arith.constant 0 : index
    %45 = vector.load %arg0[%c0_47, %c2_48, %c0_49, %c0_50] : memref<2x10x10x8xf32, #tpu.memory_space<vmem>>, vector<2x8x8x8xf32>
    %46 = vector.shape_cast %45 : vector<2x8x8x8xf32> to vector<128x8xf32>
    %47 = arith.truncf %46 : vector<128x8xf32> to vector<128x8xbf16>
    %c6 = arith.constant 6 : index
    %c0_51 = arith.constant 0 : index
    %c0_52 = arith.constant 0 : index
    %48 = vector.load %arg1[%c6, %c0_51, %c0_52] : memref<9x8x32xbf16, #tpu.memory_space<vmem>>, vector<1x8x32xbf16>
    %49 = vector.shape_cast %48 : vector<1x8x32xbf16> to vector<8x32xbf16>
    %cst_53 = arith.constant dense<0.000000e+00> : vector<128x32xf32>
    %50 = tpu.matmul %47, %49, %cst_53 {dimension_numbers = #tpu.dot_dimension_numbers<[1], [0], [0], [1], [0, 0, 1, 1], [], []>} : vector<128x8xbf16>, vector<8x32xbf16>, vector<128x32xf32> -> vector<128x32xf32>
    %51 = arith.addf %44, %50 : vector<128x32xf32>
    %c0_54 = arith.constant 0 : index
    %c2_55 = arith.constant 2 : index
    %c1_56 = arith.constant 1 : index
    %c0_57 = arith.constant 0 : index
    %52 = vector.load %arg0[%c0_54, %c2_55, %c1_56, %c0_57] : memref<2x10x10x8xf32, #tpu.memory_space<vmem>>, vector<2x8x8x8xf32>
    %53 = vector.shape_cast %52 : vector<2x8x8x8xf32> to vector<128x8xf32>
    %54 = arith.truncf %53 : vector<128x8xf32> to vector<128x8xbf16>
    %c7 = arith.constant 7 : index
    %c0_58 = arith.constant 0 : index
    %c0_59 = arith.constant 0 : index
    %55 = vector.load %arg1[%c7, %c0_58, %c0_59] : memref<9x8x32xbf16, #tpu.memory_space<vmem>>, vector<1x8x32xbf16>
    %56 = vector.shape_cast %55 : vector<1x8x32xbf16> to vector<8x32xbf16>
    %cst_60 = arith.constant dense<0.000000e+00> : vector<128x32xf32>
    %57 = tpu.matmul %54, %56, %cst_60 {dimension_numbers = #tpu.dot_dimension_numbers<[1], [0], [0], [1], [0, 0, 1, 1], [], []>} : vector<128x8xbf16>, vector<8x32xbf16>, vector<128x32xf32> -> vector<128x32xf32>
    %58 = arith.addf %51, %57 : vector<128x32xf32>
    %c0_61 = arith.constant 0 : index
    %c2_62 = arith.constant 2 : index
    %c2_63 = arith.constant 2 : index
    %c0_64 = arith.constant 0 : index
    %59 = vector.load %arg0[%c0_61, %c2_62, %c2_63, %c0_64] : memref<2x10x10x8xf32, #tpu.memory_space<vmem>>, vector<2x8x8x8xf32>
    %60 = vector.shape_cast %59 : vector<2x8x8x8xf32> to vector<128x8xf32>
    %61 = arith.truncf %60 : vector<128x8xf32> to vector<128x8xbf16>
    %c8 = arith.constant 8 : index
    %c0_65 = arith.constant 0 : index
    %c0_66 = arith.constant 0 : index
    %62 = vector.load %arg1[%c8, %c0_65, %c0_66] : memref<9x8x32xbf16, #tpu.memory_space<vmem>>, vector<1x8x32xbf16>
    %63 = vector.shape_cast %62 : vector<1x8x32xbf16> to vector<8x32xbf16>
    %cst_67 = arith.constant dense<0.000000e+00> : vector<128x32xf32>
    %64 = tpu.matmul %61, %63, %cst_67 {dimension_numbers = #tpu.dot_dimension_numbers<[1], [0], [0], [1], [0, 0, 1, 1], [], []>} : vector<128x8xbf16>, vector<8x32xbf16>, vector<128x32xf32> -> vector<128x32xf32>
    %65 = arith.addf %58, %64 : vector<128x32xf32>
    %c0_68 = arith.constant 0 : index
    %c0_69 = arith.constant 0 : index
    %66 = vector.load %arg2[%c0_68, %c0_69] : memref<1x32xf32, #tpu.memory_space<vmem>>, vector<1x32xf32>
    %67 = vector.broadcast %66 : vector<1x32xf32> to vector<128x32xf32>
    %68 = arith.addf %65, %67 : vector<128x32xf32>
    %cst_70 = arith.constant 0.000000e+00 : f32
    %69 = vector.broadcast %cst_70 : f32 to vector<128x32xf32>
    %70 = arith.maximumf %68, %69 : vector<128x32xf32>
    %71 = vector.shape_cast %70 : vector<128x32xf32> to vector<2x8x8x32xf32>
    %c0_71 = arith.constant 0 : index
    %c1_72 = arith.constant 1 : index
    %c1_73 = arith.constant 1 : index
    %c0_74 = arith.constant 0 : index
    %72 = vector.load %arg8[%c0_71, %c1_72, %c1_73, %c0_74] : memref<2x10x10x32xf32, #tpu.memory_space<vmem>>, vector<2x8x8x32xf32>
    tpu.vector_store %arg8[%c0_71, %c1_72, %c1_73, %c0_74], %71 {strides = array<i32>} : memref<2x10x10x32xf32, #tpu.memory_space<vmem>>, vector<2x8x8x32xf32>,
    %cst_75 = arith.constant 0.000000e+00 : f32
    %73 = vector.broadcast %cst_75 : f32 to vector<128x32xf32>
    %c0_76 = arith.constant 0 : index
    %c0_77 = arith.constant 0 : index
    %c0_78 = arith.constant 0 : index
    %c0_79 = arith.constant 0 : index
    %74 = vector.load %arg8[%c0_76, %c0_77, %c0_78, %c0_79] : memref<2x10x10x32xf32, #tpu.memory_space<vmem>>, vector<2x8x8x32xf32>
    %75 = vector.shape_cast %74 : vector<2x8x8x32xf32> to vector<128x32xf32>
    %76 = arith.truncf %75 : vector<128x32xf32> to vector<128x32xbf16>
    %c0_80 = arith.constant 0 : index
    %c0_81 = arith.constant 0 : index
    %c0_82 = arith.constant 0 : index
    %c0_83 = arith.constant 0 : index
    %77 = vector.load %arg3[%c0_80, %c0_81, %c0_82, %c0_83] : memref<4x9x32x32xbf16, #tpu.memory_space<vmem>>, vector<1x1x32x32xbf16>
    %78 = vector.shape_cast %77 : vector<1x1x32x32xbf16> to vector<32x32xbf16>
    %cst_84 = arith.constant dense<0.000000e+00> : vector<128x32xf32>
    %79 = tpu.matmul %76, %78, %cst_84 {dimension_numbers = #tpu.dot_dimension_numbers<[1], [0], [0], [1], [0, 0, 1, 1], [], []>} : vector<128x32xbf16>, vector<32x32xbf16>, vector<128x32xf32> -> vector<128x32xf32>
    %80 = arith.addf %73, %79 : vector<128x32xf32>
    %c0_85 = arith.constant 0 : index
    %c0_86 = arith.constant 0 : index
    %c1_87 = arith.constant 1 : index
    %c0_88 = arith.constant 0 : index
    %81 = vector.load %arg8[%c0_85, %c0_86, %c1_87, %c0_88] : memref<2x10x10x32xf32, #tpu.memory_space<vmem>>, vector<2x8x8x32xf32>
    %82 = vector.shape_cast %81 : vector<2x8x8x32xf32> to vector<128x32xf32>
    %83 = arith.truncf %82 : vector<128x32xf32> to vector<128x32xbf16>
    %c0_89 = arith.constant 0 : index
    %c1_90 = arith.constant 1 : index
    %c0_91 = arith.constant 0 : index
    %c0_92 = arith.constant 0 : index
    %84 = vector.load %arg3[%c0_89, %c1_90, %c0_91, %c0_92] : memref<4x9x32x32xbf16, #tpu.memory_space<vmem>>, vector<1x1x32x32xbf16>
    %85 = vector.shape_cast %84 : vector<1x1x32x32xbf16> to vector<32x32xbf16>
    %cst_93 = arith.constant dense<0.000000e+00> : vector<128x32xf32>
    %86 = tpu.matmul %83, %85, %cst_93 {dimension_numbers = #tpu.dot_dimension_numbers<[1], [0], [0], [1], [0, 0, 1, 1], [], []>} : vector<128x32xbf16>, vector<32x32xbf16>, vector<128x32xf32> -> vector<128x32xf32>
    %87 = arith.addf %80, %86 : vector<128x32xf32>
    %c0_94 = arith.constant 0 : index
    %c0_95 = arith.constant 0 : index
    %c2_96 = arith.constant 2 : index
    %c0_97 = arith.constant 0 : index
    %88 = vector.load %arg8[%c0_94, %c0_95, %c2_96, %c0_97] : memref<2x10x10x32xf32, #tpu.memory_space<vmem>>, vector<2x8x8x32xf32>
    %89 = vector.shape_cast %88 : vector<2x8x8x32xf32> to vector<128x32xf32>
    %90 = arith.truncf %89 : vector<128x32xf32> to vector<128x32xbf16>
    %c0_98 = arith.constant 0 : index
    %c2_99 = arith.constant 2 : index
    %c0_100 = arith.constant 0 : index
    %c0_101 = arith.constant 0 : index
    %91 = vector.load %arg3[%c0_98, %c2_99, %c0_100, %c0_101] : memref<4x9x32x32xbf16, #tpu.memory_space<vmem>>, vector<1x1x32x32xbf16>
    %92 = vector.shape_cast %91 : vector<1x1x32x32xbf16> to vector<32x32xbf16>
    %cst_102 = arith.constant dense<0.000000e+00> : vector<128x32xf32>
    %93 = tpu.matmul %90, %92, %cst_102 {dimension_numbers = #tpu.dot_dimension_numbers<[1], [0], [0], [1], [0, 0, 1, 1], [], []>} : vector<128x32xbf16>, vector<32x32xbf16>, vector<128x32xf32> -> vector<128x32xf32>
    %94 = arith.addf %87, %93 : vector<128x32xf32>
    %c0_103 = arith.constant 0 : index
    %c1_104 = arith.constant 1 : index
    %c0_105 = arith.constant 0 : index
    %c0_106 = arith.constant 0 : index
    %95 = vector.load %arg8[%c0_103, %c1_104, %c0_105, %c0_106] : memref<2x10x10x32xf32, #tpu.memory_space<vmem>>, vector<2x8x8x32xf32>
    %96 = vector.shape_cast %95 : vector<2x8x8x32xf32> to vector<128x32xf32>
    %97 = arith.truncf %96 : vector<128x32xf32> to vector<128x32xbf16>
    %c0_107 = arith.constant 0 : index
    %c3_108 = arith.constant 3 : index
    %c0_109 = arith.constant 0 : index
    %c0_110 = arith.constant 0 : index
    %98 = vector.load %arg3[%c0_107, %c3_108, %c0_109, %c0_110] : memref<4x9x32x32xbf16, #tpu.memory_space<vmem>>, vector<1x1x32x32xbf16>
    %99 = vector.shape_cast %98 : vector<1x1x32x32xbf16> to vector<32x32xbf16>
    %cst_111 = arith.constant dense<0.000000e+00> : vector<128x32xf32>
    %100 = tpu.matmul %97, %99, %cst_111 {dimension_numbers = #tpu.dot_dimension_numbers<[1], [0], [0], [1], [0, 0, 1, 1], [], []>} : vector<128x32xbf16>, vector<32x32xbf16>, vector<128x32xf32> -> vector<128x32xf32>
    %101 = arith.addf %94, %100 : vector<128x32xf32>
    %c0_112 = arith.constant 0 : index
    %c1_113 = arith.constant 1 : index
    %c1_114 = arith.constant 1 : index
    %c0_115 = arith.constant 0 : index
    %102 = vector.load %arg8[%c0_112, %c1_113, %c1_114, %c0_115] : memref<2x10x10x32xf32, #tpu.memory_space<vmem>>, vector<2x8x8x32xf32>
    %103 = vector.shape_cast %102 : vector<2x8x8x32xf32> to vector<128x32xf32>
    %104 = arith.truncf %103 : vector<128x32xf32> to vector<128x32xbf16>
    %c0_116 = arith.constant 0 : index
    %c4_117 = arith.constant 4 : index
    %c0_118 = arith.constant 0 : index
    %c0_119 = arith.constant 0 : index
    %105 = vector.load %arg3[%c0_116, %c4_117, %c0_118, %c0_119] : memref<4x9x32x32xbf16, #tpu.memory_space<vmem>>, vector<1x1x32x32xbf16>
    %106 = vector.shape_cast %105 : vector<1x1x32x32xbf16> to vector<32x32xbf16>
    %cst_120 = arith.constant dense<0.000000e+00> : vector<128x32xf32>
    %107 = tpu.matmul %104, %106, %cst_120 {dimension_numbers = #tpu.dot_dimension_numbers<[1], [0], [0], [1], [0, 0, 1, 1], [], []>} : vector<128x32xbf16>, vector<32x32xbf16>, vector<128x32xf32> -> vector<128x32xf32>
    %108 = arith.addf %101, %107 : vector<128x32xf32>
    %c0_121 = arith.constant 0 : index
    %c1_122 = arith.constant 1 : index
    %c2_123 = arith.constant 2 : index
    %c0_124 = arith.constant 0 : index
    %109 = vector.load %arg8[%c0_121, %c1_122, %c2_123, %c0_124] : memref<2x10x10x32xf32, #tpu.memory_space<vmem>>, vector<2x8x8x32xf32>
    %110 = vector.shape_cast %109 : vector<2x8x8x32xf32> to vector<128x32xf32>
    %111 = arith.truncf %110 : vector<128x32xf32> to vector<128x32xbf16>
    %c0_125 = arith.constant 0 : index
    %c5_126 = arith.constant 5 : index
    %c0_127 = arith.constant 0 : index
    %c0_128 = arith.constant 0 : index
    %112 = vector.load %arg3[%c0_125, %c5_126, %c0_127, %c0_128] : memref<4x9x32x32xbf16, #tpu.memory_space<vmem>>, vector<1x1x32x32xbf16>
    %113 = vector.shape_cast %112 : vector<1x1x32x32xbf16> to vector<32x32xbf16>
    %cst_129 = arith.constant dense<0.000000e+00> : vector<128x32xf32>
    %114 = tpu.matmul %111, %113, %cst_129 {dimension_numbers = #tpu.dot_dimension_numbers<[1], [0], [0], [1], [0, 0, 1, 1], [], []>} : vector<128x32xbf16>, vector<32x32xbf16>, vector<128x32xf32> -> vector<128x32xf32>
    %115 = arith.addf %108, %114 : vector<128x32xf32>
    %c0_130 = arith.constant 0 : index
    %c2_131 = arith.constant 2 : index
    %c0_132 = arith.constant 0 : index
    %c0_133 = arith.constant 0 : index
    %116 = vector.load %arg8[%c0_130, %c2_131, %c0_132, %c0_133] : memref<2x10x10x32xf32, #tpu.memory_space<vmem>>, vector<2x8x8x32xf32>
    %117 = vector.shape_cast %116 : vector<2x8x8x32xf32> to vector<128x32xf32>
    %118 = arith.truncf %117 : vector<128x32xf32> to vector<128x32xbf16>
    %c0_134 = arith.constant 0 : index
    %c6_135 = arith.constant 6 : index
    %c0_136 = arith.constant 0 : index
    %c0_137 = arith.constant 0 : index
    %119 = vector.load %arg3[%c0_134, %c6_135, %c0_136, %c0_137] : memref<4x9x32x32xbf16, #tpu.memory_space<vmem>>, vector<1x1x32x32xbf16>
    %120 = vector.shape_cast %119 : vector<1x1x32x32xbf16> to vector<32x32xbf16>
    %cst_138 = arith.constant dense<0.000000e+00> : vector<128x32xf32>
    %121 = tpu.matmul %118, %120, %cst_138 {dimension_numbers = #tpu.dot_dimension_numbers<[1], [0], [0], [1], [0, 0, 1, 1], [], []>} : vector<128x32xbf16>, vector<32x32xbf16>, vector<128x32xf32> -> vector<128x32xf32>
    %122 = arith.addf %115, %121 : vector<128x32xf32>
    %c0_139 = arith.constant 0 : index
    %c2_140 = arith.constant 2 : index
    %c1_141 = arith.constant 1 : index
    %c0_142 = arith.constant 0 : index
    %123 = vector.load %arg8[%c0_139, %c2_140, %c1_141, %c0_142] : memref<2x10x10x32xf32, #tpu.memory_space<vmem>>, vector<2x8x8x32xf32>
    %124 = vector.shape_cast %123 : vector<2x8x8x32xf32> to vector<128x32xf32>
    %125 = arith.truncf %124 : vector<128x32xf32> to vector<128x32xbf16>
    %c0_143 = arith.constant 0 : index
    %c7_144 = arith.constant 7 : index
    %c0_145 = arith.constant 0 : index
    %c0_146 = arith.constant 0 : index
    %126 = vector.load %arg3[%c0_143, %c7_144, %c0_145, %c0_146] : memref<4x9x32x32xbf16, #tpu.memory_space<vmem>>, vector<1x1x32x32xbf16>
    %127 = vector.shape_cast %126 : vector<1x1x32x32xbf16> to vector<32x32xbf16>
    %cst_147 = arith.constant dense<0.000000e+00> : vector<128x32xf32>
    %128 = tpu.matmul %125, %127, %cst_147 {dimension_numbers = #tpu.dot_dimension_numbers<[1], [0], [0], [1], [0, 0, 1, 1], [], []>} : vector<128x32xbf16>, vector<32x32xbf16>, vector<128x32xf32> -> vector<128x32xf32>
    %129 = arith.addf %122, %128 : vector<128x32xf32>
    %c0_148 = arith.constant 0 : index
    %c2_149 = arith.constant 2 : index
    %c2_150 = arith.constant 2 : index
    %c0_151 = arith.constant 0 : index
    %130 = vector.load %arg8[%c0_148, %c2_149, %c2_150, %c0_151] : memref<2x10x10x32xf32, #tpu.memory_space<vmem>>, vector<2x8x8x32xf32>
    %131 = vector.shape_cast %130 : vector<2x8x8x32xf32> to vector<128x32xf32>
    %132 = arith.truncf %131 : vector<128x32xf32> to vector<128x32xbf16>
    %c0_152 = arith.constant 0 : index
    %c8_153 = arith.constant 8 : index
    %c0_154 = arith.constant 0 : index
    %c0_155 = arith.constant 0 : index
    %133 = vector.load %arg3[%c0_152, %c8_153, %c0_154, %c0_155] : memref<4x9x32x32xbf16, #tpu.memory_space<vmem>>, vector<1x1x32x32xbf16>
    %134 = vector.shape_cast %133 : vector<1x1x32x32xbf16> to vector<32x32xbf16>
    %cst_156 = arith.constant dense<0.000000e+00> : vector<128x32xf32>
    %135 = tpu.matmul %132, %134, %cst_156 {dimension_numbers = #tpu.dot_dimension_numbers<[1], [0], [0], [1], [0, 0, 1, 1], [], []>} : vector<128x32xbf16>, vector<32x32xbf16>, vector<128x32xf32> -> vector<128x32xf32>
    %136 = arith.addf %129, %135 : vector<128x32xf32>
    %c0_157 = arith.constant 0 : index
    %c0_158 = arith.constant 0 : index
    %c0_159 = arith.constant 0 : index
    %137 = vector.load %arg4[%c0_157, %c0_158, %c0_159] : memref<4x1x32xf32, #tpu.memory_space<vmem>>, vector<1x1x32xf32>
    %138 = vector.shape_cast %137 : vector<1x1x32xf32> to vector<1x32xf32>
    %139 = vector.broadcast %138 : vector<1x32xf32> to vector<128x32xf32>
    %140 = arith.addf %136, %139 : vector<128x32xf32>
    %cst_160 = arith.constant 0.000000e+00 : f32
    %141 = vector.broadcast %cst_160 : f32 to vector<128x32xf32>
    %142 = arith.maximumf %140, %141 : vector<128x32xf32>
    %143 = vector.shape_cast %142 : vector<128x32xf32> to vector<2x8x8x32xf32>
    %c0_161 = arith.constant 0 : index
    %c1_162 = arith.constant 1 : index
    %c1_163 = arith.constant 1 : index
    %c0_164 = arith.constant 0 : index
    %144 = vector.load %arg8[%c0_161, %c1_162, %c1_163, %c0_164] : memref<2x10x10x32xf32, #tpu.memory_space<vmem>>, vector<2x8x8x32xf32>
    tpu.vector_store %arg8[%c0_161, %c1_162, %c1_163, %c0_164], %143 {strides = array<i32>} : memref<2x10x10x32xf32, #tpu.memory_space<vmem>>, vector<2x8x8x32xf32>,
    %cst_165 = arith.constant 0.000000e+00 : f32
    %145 = vector.broadcast %cst_165 : f32 to vector<128x32xf32>
    %c0_166 = arith.constant 0 : index
    %c0_167 = arith.constant 0 : index
    %c0_168 = arith.constant 0 : index
    %c0_169 = arith.constant 0 : index
    %146 = vector.load %arg8[%c0_166, %c0_167, %c0_168, %c0_169] : memref<2x10x10x32xf32, #tpu.memory_space<vmem>>, vector<2x8x8x32xf32>
    %147 = vector.shape_cast %146 : vector<2x8x8x32xf32> to vector<128x32xf32>
    %148 = arith.truncf %147 : vector<128x32xf32> to vector<128x32xbf16>
    %c1_170 = arith.constant 1 : index
    %c0_171 = arith.constant 0 : index
    %c0_172 = arith.constant 0 : index
    %c0_173 = arith.constant 0 : index
    %149 = vector.load %arg3[%c1_170, %c0_171, %c0_172, %c0_173] : memref<4x9x32x32xbf16, #tpu.memory_space<vmem>>, vector<1x1x32x32xbf16>
    %150 = vector.shape_cast %149 : vector<1x1x32x32xbf16> to vector<32x32xbf16>
    %cst_174 = arith.constant dense<0.000000e+00> : vector<128x32xf32>
    %151 = tpu.matmul %148, %150, %cst_174 {dimension_numbers = #tpu.dot_dimension_numbers<[1], [0], [0], [1], [0, 0, 1, 1], [], []>} : vector<128x32xbf16>, vector<32x32xbf16>, vector<128x32xf32> -> vector<128x32xf32>
    %152 = arith.addf %145, %151 : vector<128x32xf32>
    %c0_175 = arith.constant 0 : index
    %c0_176 = arith.constant 0 : index
    %c1_177 = arith.constant 1 : index
    %c0_178 = arith.constant 0 : index
    %153 = vector.load %arg8[%c0_175, %c0_176, %c1_177, %c0_178] : memref<2x10x10x32xf32, #tpu.memory_space<vmem>>, vector<2x8x8x32xf32>
    %154 = vector.shape_cast %153 : vector<2x8x8x32xf32> to vector<128x32xf32>
    %155 = arith.truncf %154 : vector<128x32xf32> to vector<128x32xbf16>
    %c1_179 = arith.constant 1 : index
    %c1_180 = arith.constant 1 : index
    %c0_181 = arith.constant 0 : index
    %c0_182 = arith.constant 0 : index
    %156 = vector.load %arg3[%c1_179, %c1_180, %c0_181, %c0_182] : memref<4x9x32x32xbf16, #tpu.memory_space<vmem>>, vector<1x1x32x32xbf16>
    %157 = vector.shape_cast %156 : vector<1x1x32x32xbf16> to vector<32x32xbf16>
    %cst_183 = arith.constant dense<0.000000e+00> : vector<128x32xf32>
    %158 = tpu.matmul %155, %157, %cst_183 {dimension_numbers = #tpu.dot_dimension_numbers<[1], [0], [0], [1], [0, 0, 1, 1], [], []>} : vector<128x32xbf16>, vector<32x32xbf16>, vector<128x32xf32> -> vector<128x32xf32>
    %159 = arith.addf %152, %158 : vector<128x32xf32>
    %c0_184 = arith.constant 0 : index
    %c0_185 = arith.constant 0 : index
    %c2_186 = arith.constant 2 : index
    %c0_187 = arith.constant 0 : index
    %160 = vector.load %arg8[%c0_184, %c0_185, %c2_186, %c0_187] : memref<2x10x10x32xf32, #tpu.memory_space<vmem>>, vector<2x8x8x32xf32>
    %161 = vector.shape_cast %160 : vector<2x8x8x32xf32> to vector<128x32xf32>
    %162 = arith.truncf %161 : vector<128x32xf32> to vector<128x32xbf16>
    %c1_188 = arith.constant 1 : index
    %c2_189 = arith.constant 2 : index
    %c0_190 = arith.constant 0 : index
    %c0_191 = arith.constant 0 : index
    %163 = vector.load %arg3[%c1_188, %c2_189, %c0_190, %c0_191] : memref<4x9x32x32xbf16, #tpu.memory_space<vmem>>, vector<1x1x32x32xbf16>
    %164 = vector.shape_cast %163 : vector<1x1x32x32xbf16> to vector<32x32xbf16>
    %cst_192 = arith.constant dense<0.000000e+00> : vector<128x32xf32>
    %165 = tpu.matmul %162, %164, %cst_192 {dimension_numbers = #tpu.dot_dimension_numbers<[1], [0], [0], [1], [0, 0, 1, 1], [], []>} : vector<128x32xbf16>, vector<32x32xbf16>, vector<128x32xf32> -> vector<128x32xf32>
    %166 = arith.addf %159, %165 : vector<128x32xf32>
    %c0_193 = arith.constant 0 : index
    %c1_194 = arith.constant 1 : index
    %c0_195 = arith.constant 0 : index
    %c0_196 = arith.constant 0 : index
    %167 = vector.load %arg8[%c0_193, %c1_194, %c0_195, %c0_196] : memref<2x10x10x32xf32, #tpu.memory_space<vmem>>, vector<2x8x8x32xf32>
    %168 = vector.shape_cast %167 : vector<2x8x8x32xf32> to vector<128x32xf32>
    %169 = arith.truncf %168 : vector<128x32xf32> to vector<128x32xbf16>
    %c1_197 = arith.constant 1 : index
    %c3_198 = arith.constant 3 : index
    %c0_199 = arith.constant 0 : index
    %c0_200 = arith.constant 0 : index
    %170 = vector.load %arg3[%c1_197, %c3_198, %c0_199, %c0_200] : memref<4x9x32x32xbf16, #tpu.memory_space<vmem>>, vector<1x1x32x32xbf16>
    %171 = vector.shape_cast %170 : vector<1x1x32x32xbf16> to vector<32x32xbf16>
    %cst_201 = arith.constant dense<0.000000e+00> : vector<128x32xf32>
    %172 = tpu.matmul %169, %171, %cst_201 {dimension_numbers = #tpu.dot_dimension_numbers<[1], [0], [0], [1], [0, 0, 1, 1], [], []>} : vector<128x32xbf16>, vector<32x32xbf16>, vector<128x32xf32> -> vector<128x32xf32>
    %173 = arith.addf %166, %172 : vector<128x32xf32>
    %c0_202 = arith.constant 0 : index
    %c1_203 = arith.constant 1 : index
    %c1_204 = arith.constant 1 : index
    %c0_205 = arith.constant 0 : index
    %174 = vector.load %arg8[%c0_202, %c1_203, %c1_204, %c0_205] : memref<2x10x10x32xf32, #tpu.memory_space<vmem>>, vector<2x8x8x32xf32>
    %175 = vector.shape_cast %174 : vector<2x8x8x32xf32> to vector<128x32xf32>
    %176 = arith.truncf %175 : vector<128x32xf32> to vector<128x32xbf16>
    %c1_206 = arith.constant 1 : index
    %c4_207 = arith.constant 4 : index
    %c0_208 = arith.constant 0 : index
    %c0_209 = arith.constant 0 : index
    %177 = vector.load %arg3[%c1_206, %c4_207, %c0_208, %c0_209] : memref<4x9x32x32xbf16, #tpu.memory_space<vmem>>, vector<1x1x32x32xbf16>
    %178 = vector.shape_cast %177 : vector<1x1x32x32xbf16> to vector<32x32xbf16>
    %cst_210 = arith.constant dense<0.000000e+00> : vector<128x32xf32>
    %179 = tpu.matmul %176, %178, %cst_210 {dimension_numbers = #tpu.dot_dimension_numbers<[1], [0], [0], [1], [0, 0, 1, 1], [], []>} : vector<128x32xbf16>, vector<32x32xbf16>, vector<128x32xf32> -> vector<128x32xf32>
    %180 = arith.addf %173, %179 : vector<128x32xf32>
    %c0_211 = arith.constant 0 : index
    %c1_212 = arith.constant 1 : index
    %c2_213 = arith.constant 2 : index
    %c0_214 = arith.constant 0 : index
    %181 = vector.load %arg8[%c0_211, %c1_212, %c2_213, %c0_214] : memref<2x10x10x32xf32, #tpu.memory_space<vmem>>, vector<2x8x8x32xf32>
    %182 = vector.shape_cast %181 : vector<2x8x8x32xf32> to vector<128x32xf32>
    %183 = arith.truncf %182 : vector<128x32xf32> to vector<128x32xbf16>
    %c1_215 = arith.constant 1 : index
    %c5_216 = arith.constant 5 : index
    %c0_217 = arith.constant 0 : index
    %c0_218 = arith.constant 0 : index
    %184 = vector.load %arg3[%c1_215, %c5_216, %c0_217, %c0_218] : memref<4x9x32x32xbf16, #tpu.memory_space<vmem>>, vector<1x1x32x32xbf16>
    %185 = vector.shape_cast %184 : vector<1x1x32x32xbf16> to vector<32x32xbf16>
    %cst_219 = arith.constant dense<0.000000e+00> : vector<128x32xf32>
    %186 = tpu.matmul %183, %185, %cst_219 {dimension_numbers = #tpu.dot_dimension_numbers<[1], [0], [0], [1], [0, 0, 1, 1], [], []>} : vector<128x32xbf16>, vector<32x32xbf16>, vector<128x32xf32> -> vector<128x32xf32>
    %187 = arith.addf %180, %186 : vector<128x32xf32>
    %c0_220 = arith.constant 0 : index
    %c2_221 = arith.constant 2 : index
    %c0_222 = arith.constant 0 : index
    %c0_223 = arith.constant 0 : index
    %188 = vector.load %arg8[%c0_220, %c2_221, %c0_222, %c0_223] : memref<2x10x10x32xf32, #tpu.memory_space<vmem>>, vector<2x8x8x32xf32>
    %189 = vector.shape_cast %188 : vector<2x8x8x32xf32> to vector<128x32xf32>
    %190 = arith.truncf %189 : vector<128x32xf32> to vector<128x32xbf16>
    %c1_224 = arith.constant 1 : index
    %c6_225 = arith.constant 6 : index
    %c0_226 = arith.constant 0 : index
    %c0_227 = arith.constant 0 : index
    %191 = vector.load %arg3[%c1_224, %c6_225, %c0_226, %c0_227] : memref<4x9x32x32xbf16, #tpu.memory_space<vmem>>, vector<1x1x32x32xbf16>
    %192 = vector.shape_cast %191 : vector<1x1x32x32xbf16> to vector<32x32xbf16>
    %cst_228 = arith.constant dense<0.000000e+00> : vector<128x32xf32>
    %193 = tpu.matmul %190, %192, %cst_228 {dimension_numbers = #tpu.dot_dimension_numbers<[1], [0], [0], [1], [0, 0, 1, 1], [], []>} : vector<128x32xbf16>, vector<32x32xbf16>, vector<128x32xf32> -> vector<128x32xf32>
    %194 = arith.addf %187, %193 : vector<128x32xf32>
    %c0_229 = arith.constant 0 : index
    %c2_230 = arith.constant 2 : index
    %c1_231 = arith.constant 1 : index
    %c0_232 = arith.constant 0 : index
    %195 = vector.load %arg8[%c0_229, %c2_230, %c1_231, %c0_232] : memref<2x10x10x32xf32, #tpu.memory_space<vmem>>, vector<2x8x8x32xf32>
    %196 = vector.shape_cast %195 : vector<2x8x8x32xf32> to vector<128x32xf32>
    %197 = arith.truncf %196 : vector<128x32xf32> to vector<128x32xbf16>
    %c1_233 = arith.constant 1 : index
    %c7_234 = arith.constant 7 : index
    %c0_235 = arith.constant 0 : index
    %c0_236 = arith.constant 0 : index
    %198 = vector.load %arg3[%c1_233, %c7_234, %c0_235, %c0_236] : memref<4x9x32x32xbf16, #tpu.memory_space<vmem>>, vector<1x1x32x32xbf16>
    %199 = vector.shape_cast %198 : vector<1x1x32x32xbf16> to vector<32x32xbf16>
    %cst_237 = arith.constant dense<0.000000e+00> : vector<128x32xf32>
    %200 = tpu.matmul %197, %199, %cst_237 {dimension_numbers = #tpu.dot_dimension_numbers<[1], [0], [0], [1], [0, 0, 1, 1], [], []>} : vector<128x32xbf16>, vector<32x32xbf16>, vector<128x32xf32> -> vector<128x32xf32>
    %201 = arith.addf %194, %200 : vector<128x32xf32>
    %c0_238 = arith.constant 0 : index
    %c2_239 = arith.constant 2 : index
    %c2_240 = arith.constant 2 : index
    %c0_241 = arith.constant 0 : index
    %202 = vector.load %arg8[%c0_238, %c2_239, %c2_240, %c0_241] : memref<2x10x10x32xf32, #tpu.memory_space<vmem>>, vector<2x8x8x32xf32>
    %203 = vector.shape_cast %202 : vector<2x8x8x32xf32> to vector<128x32xf32>
    %204 = arith.truncf %203 : vector<128x32xf32> to vector<128x32xbf16>
    %c1_242 = arith.constant 1 : index
    %c8_243 = arith.constant 8 : index
    %c0_244 = arith.constant 0 : index
    %c0_245 = arith.constant 0 : index
    %205 = vector.load %arg3[%c1_242, %c8_243, %c0_244, %c0_245] : memref<4x9x32x32xbf16, #tpu.memory_space<vmem>>, vector<1x1x32x32xbf16>
    %206 = vector.shape_cast %205 : vector<1x1x32x32xbf16> to vector<32x32xbf16>
    %cst_246 = arith.constant dense<0.000000e+00> : vector<128x32xf32>
    %207 = tpu.matmul %204, %206, %cst_246 {dimension_numbers = #tpu.dot_dimension_numbers<[1], [0], [0], [1], [0, 0, 1, 1], [], []>} : vector<128x32xbf16>, vector<32x32xbf16>, vector<128x32xf32> -> vector<128x32xf32>
    %208 = arith.addf %201, %207 : vector<128x32xf32>
    %c1_247 = arith.constant 1 : index
    %c0_248 = arith.constant 0 : index
    %c0_249 = arith.constant 0 : index
    %209 = vector.load %arg4[%c1_247, %c0_248, %c0_249] : memref<4x1x32xf32, #tpu.memory_space<vmem>>, vector<1x1x32xf32>
    %210 = vector.shape_cast %209 : vector<1x1x32xf32> to vector<1x32xf32>
    %211 = vector.broadcast %210 : vector<1x32xf32> to vector<128x32xf32>
    %212 = arith.addf %208, %211 : vector<128x32xf32>
    %213 = arith.addf %212, %70 : vector<128x32xf32>
    %cst_250 = arith.constant 0.000000e+00 : f32
    %214 = vector.broadcast %cst_250 : f32 to vector<128x32xf32>
    %215 = arith.maximumf %213, %214 : vector<128x32xf32>
    %216 = vector.shape_cast %215 : vector<128x32xf32> to vector<2x8x8x32xf32>
    %c0_251 = arith.constant 0 : index
    %c1_252 = arith.constant 1 : index
    %c1_253 = arith.constant 1 : index
    %c0_254 = arith.constant 0 : index
    %217 = vector.load %arg8[%c0_251, %c1_252, %c1_253, %c0_254] : memref<2x10x10x32xf32, #tpu.memory_space<vmem>>, vector<2x8x8x32xf32>
    tpu.vector_store %arg8[%c0_251, %c1_252, %c1_253, %c0_254], %216 {strides = array<i32>} : memref<2x10x10x32xf32, #tpu.memory_space<vmem>>, vector<2x8x8x32xf32>,
    %cst_255 = arith.constant 0.000000e+00 : f32
    %218 = vector.broadcast %cst_255 : f32 to vector<128x32xf32>
    %c0_256 = arith.constant 0 : index
    %c0_257 = arith.constant 0 : index
    %c0_258 = arith.constant 0 : index
    %c0_259 = arith.constant 0 : index
    %219 = vector.load %arg8[%c0_256, %c0_257, %c0_258, %c0_259] : memref<2x10x10x32xf32, #tpu.memory_space<vmem>>, vector<2x8x8x32xf32>
    %220 = vector.shape_cast %219 : vector<2x8x8x32xf32> to vector<128x32xf32>
    %221 = arith.truncf %220 : vector<128x32xf32> to vector<128x32xbf16>
    %c2_260 = arith.constant 2 : index
    %c0_261 = arith.constant 0 : index
    %c0_262 = arith.constant 0 : index
    %c0_263 = arith.constant 0 : index
    %222 = vector.load %arg3[%c2_260, %c0_261, %c0_262, %c0_263] : memref<4x9x32x32xbf16, #tpu.memory_space<vmem>>, vector<1x1x32x32xbf16>
    %223 = vector.shape_cast %222 : vector<1x1x32x32xbf16> to vector<32x32xbf16>
    %cst_264 = arith.constant dense<0.000000e+00> : vector<128x32xf32>
    %224 = tpu.matmul %221, %223, %cst_264 {dimension_numbers = #tpu.dot_dimension_numbers<[1], [0], [0], [1], [0, 0, 1, 1], [], []>} : vector<128x32xbf16>, vector<32x32xbf16>, vector<128x32xf32> -> vector<128x32xf32>
    %225 = arith.addf %218, %224 : vector<128x32xf32>
    %c0_265 = arith.constant 0 : index
    %c0_266 = arith.constant 0 : index
    %c1_267 = arith.constant 1 : index
    %c0_268 = arith.constant 0 : index
    %226 = vector.load %arg8[%c0_265, %c0_266, %c1_267, %c0_268] : memref<2x10x10x32xf32, #tpu.memory_space<vmem>>, vector<2x8x8x32xf32>
    %227 = vector.shape_cast %226 : vector<2x8x8x32xf32> to vector<128x32xf32>
    %228 = arith.truncf %227 : vector<128x32xf32> to vector<128x32xbf16>
    %c2_269 = arith.constant 2 : index
    %c1_270 = arith.constant 1 : index
    %c0_271 = arith.constant 0 : index
    %c0_272 = arith.constant 0 : index
    %229 = vector.load %arg3[%c2_269, %c1_270, %c0_271, %c0_272] : memref<4x9x32x32xbf16, #tpu.memory_space<vmem>>, vector<1x1x32x32xbf16>
    %230 = vector.shape_cast %229 : vector<1x1x32x32xbf16> to vector<32x32xbf16>
    %cst_273 = arith.constant dense<0.000000e+00> : vector<128x32xf32>
    %231 = tpu.matmul %228, %230, %cst_273 {dimension_numbers = #tpu.dot_dimension_numbers<[1], [0], [0], [1], [0, 0, 1, 1], [], []>} : vector<128x32xbf16>, vector<32x32xbf16>, vector<128x32xf32> -> vector<128x32xf32>
    %232 = arith.addf %225, %231 : vector<128x32xf32>
    %c0_274 = arith.constant 0 : index
    %c0_275 = arith.constant 0 : index
    %c2_276 = arith.constant 2 : index
    %c0_277 = arith.constant 0 : index
    %233 = vector.load %arg8[%c0_274, %c0_275, %c2_276, %c0_277] : memref<2x10x10x32xf32, #tpu.memory_space<vmem>>, vector<2x8x8x32xf32>
    %234 = vector.shape_cast %233 : vector<2x8x8x32xf32> to vector<128x32xf32>
    %235 = arith.truncf %234 : vector<128x32xf32> to vector<128x32xbf16>
    %c2_278 = arith.constant 2 : index
    %c2_279 = arith.constant 2 : index
    %c0_280 = arith.constant 0 : index
    %c0_281 = arith.constant 0 : index
    %236 = vector.load %arg3[%c2_278, %c2_279, %c0_280, %c0_281] : memref<4x9x32x32xbf16, #tpu.memory_space<vmem>>, vector<1x1x32x32xbf16>
    %237 = vector.shape_cast %236 : vector<1x1x32x32xbf16> to vector<32x32xbf16>
    %cst_282 = arith.constant dense<0.000000e+00> : vector<128x32xf32>
    %238 = tpu.matmul %235, %237, %cst_282 {dimension_numbers = #tpu.dot_dimension_numbers<[1], [0], [0], [1], [0, 0, 1, 1], [], []>} : vector<128x32xbf16>, vector<32x32xbf16>, vector<128x32xf32> -> vector<128x32xf32>
    %239 = arith.addf %232, %238 : vector<128x32xf32>
    %c0_283 = arith.constant 0 : index
    %c1_284 = arith.constant 1 : index
    %c0_285 = arith.constant 0 : index
    %c0_286 = arith.constant 0 : index
    %240 = vector.load %arg8[%c0_283, %c1_284, %c0_285, %c0_286] : memref<2x10x10x32xf32, #tpu.memory_space<vmem>>, vector<2x8x8x32xf32>
    %241 = vector.shape_cast %240 : vector<2x8x8x32xf32> to vector<128x32xf32>
    %242 = arith.truncf %241 : vector<128x32xf32> to vector<128x32xbf16>
    %c2_287 = arith.constant 2 : index
    %c3_288 = arith.constant 3 : index
    %c0_289 = arith.constant 0 : index
    %c0_290 = arith.constant 0 : index
    %243 = vector.load %arg3[%c2_287, %c3_288, %c0_289, %c0_290] : memref<4x9x32x32xbf16, #tpu.memory_space<vmem>>, vector<1x1x32x32xbf16>
    %244 = vector.shape_cast %243 : vector<1x1x32x32xbf16> to vector<32x32xbf16>
    %cst_291 = arith.constant dense<0.000000e+00> : vector<128x32xf32>
    %245 = tpu.matmul %242, %244, %cst_291 {dimension_numbers = #tpu.dot_dimension_numbers<[1], [0], [0], [1], [0, 0, 1, 1], [], []>} : vector<128x32xbf16>, vector<32x32xbf16>, vector<128x32xf32> -> vector<128x32xf32>
    %246 = arith.addf %239, %245 : vector<128x32xf32>
    %c0_292 = arith.constant 0 : index
    %c1_293 = arith.constant 1 : index
    %c1_294 = arith.constant 1 : index
    %c0_295 = arith.constant 0 : index
    %247 = vector.load %arg8[%c0_292, %c1_293, %c1_294, %c0_295] : memref<2x10x10x32xf32, #tpu.memory_space<vmem>>, vector<2x8x8x32xf32>
    %248 = vector.shape_cast %247 : vector<2x8x8x32xf32> to vector<128x32xf32>
    %249 = arith.truncf %248 : vector<128x32xf32> to vector<128x32xbf16>
    %c2_296 = arith.constant 2 : index
    %c4_297 = arith.constant 4 : index
    %c0_298 = arith.constant 0 : index
    %c0_299 = arith.constant 0 : index
    %250 = vector.load %arg3[%c2_296, %c4_297, %c0_298, %c0_299] : memref<4x9x32x32xbf16, #tpu.memory_space<vmem>>, vector<1x1x32x32xbf16>
    %251 = vector.shape_cast %250 : vector<1x1x32x32xbf16> to vector<32x32xbf16>
    %cst_300 = arith.constant dense<0.000000e+00> : vector<128x32xf32>
    %252 = tpu.matmul %249, %251, %cst_300 {dimension_numbers = #tpu.dot_dimension_numbers<[1], [0], [0], [1], [0, 0, 1, 1], [], []>} : vector<128x32xbf16>, vector<32x32xbf16>, vector<128x32xf32> -> vector<128x32xf32>
    %253 = arith.addf %246, %252 : vector<128x32xf32>
    %c0_301 = arith.constant 0 : index
    %c1_302 = arith.constant 1 : index
    %c2_303 = arith.constant 2 : index
    %c0_304 = arith.constant 0 : index
    %254 = vector.load %arg8[%c0_301, %c1_302, %c2_303, %c0_304] : memref<2x10x10x32xf32, #tpu.memory_space<vmem>>, vector<2x8x8x32xf32>
    %255 = vector.shape_cast %254 : vector<2x8x8x32xf32> to vector<128x32xf32>
    %256 = arith.truncf %255 : vector<128x32xf32> to vector<128x32xbf16>
    %c2_305 = arith.constant 2 : index
    %c5_306 = arith.constant 5 : index
    %c0_307 = arith.constant 0 : index
    %c0_308 = arith.constant 0 : index
    %257 = vector.load %arg3[%c2_305, %c5_306, %c0_307, %c0_308] : memref<4x9x32x32xbf16, #tpu.memory_space<vmem>>, vector<1x1x32x32xbf16>
    %258 = vector.shape_cast %257 : vector<1x1x32x32xbf16> to vector<32x32xbf16>
    %cst_309 = arith.constant dense<0.000000e+00> : vector<128x32xf32>
    %259 = tpu.matmul %256, %258, %cst_309 {dimension_numbers = #tpu.dot_dimension_numbers<[1], [0], [0], [1], [0, 0, 1, 1], [], []>} : vector<128x32xbf16>, vector<32x32xbf16>, vector<128x32xf32> -> vector<128x32xf32>
    %260 = arith.addf %253, %259 : vector<128x32xf32>
    %c0_310 = arith.constant 0 : index
    %c2_311 = arith.constant 2 : index
    %c0_312 = arith.constant 0 : index
    %c0_313 = arith.constant 0 : index
    %261 = vector.load %arg8[%c0_310, %c2_311, %c0_312, %c0_313] : memref<2x10x10x32xf32, #tpu.memory_space<vmem>>, vector<2x8x8x32xf32>
    %262 = vector.shape_cast %261 : vector<2x8x8x32xf32> to vector<128x32xf32>
    %263 = arith.truncf %262 : vector<128x32xf32> to vector<128x32xbf16>
    %c2_314 = arith.constant 2 : index
    %c6_315 = arith.constant 6 : index
    %c0_316 = arith.constant 0 : index
    %c0_317 = arith.constant 0 : index
    %264 = vector.load %arg3[%c2_314, %c6_315, %c0_316, %c0_317] : memref<4x9x32x32xbf16, #tpu.memory_space<vmem>>, vector<1x1x32x32xbf16>
    %265 = vector.shape_cast %264 : vector<1x1x32x32xbf16> to vector<32x32xbf16>
    %cst_318 = arith.constant dense<0.000000e+00> : vector<128x32xf32>
    %266 = tpu.matmul %263, %265, %cst_318 {dimension_numbers = #tpu.dot_dimension_numbers<[1], [0], [0], [1], [0, 0, 1, 1], [], []>} : vector<128x32xbf16>, vector<32x32xbf16>, vector<128x32xf32> -> vector<128x32xf32>
    %267 = arith.addf %260, %266 : vector<128x32xf32>
    %c0_319 = arith.constant 0 : index
    %c2_320 = arith.constant 2 : index
    %c1_321 = arith.constant 1 : index
    %c0_322 = arith.constant 0 : index
    %268 = vector.load %arg8[%c0_319, %c2_320, %c1_321, %c0_322] : memref<2x10x10x32xf32, #tpu.memory_space<vmem>>, vector<2x8x8x32xf32>
    %269 = vector.shape_cast %268 : vector<2x8x8x32xf32> to vector<128x32xf32>
    %270 = arith.truncf %269 : vector<128x32xf32> to vector<128x32xbf16>
    %c2_323 = arith.constant 2 : index
    %c7_324 = arith.constant 7 : index
    %c0_325 = arith.constant 0 : index
    %c0_326 = arith.constant 0 : index
    %271 = vector.load %arg3[%c2_323, %c7_324, %c0_325, %c0_326] : memref<4x9x32x32xbf16, #tpu.memory_space<vmem>>, vector<1x1x32x32xbf16>
    %272 = vector.shape_cast %271 : vector<1x1x32x32xbf16> to vector<32x32xbf16>
    %cst_327 = arith.constant dense<0.000000e+00> : vector<128x32xf32>
    %273 = tpu.matmul %270, %272, %cst_327 {dimension_numbers = #tpu.dot_dimension_numbers<[1], [0], [0], [1], [0, 0, 1, 1], [], []>} : vector<128x32xbf16>, vector<32x32xbf16>, vector<128x32xf32> -> vector<128x32xf32>
    %274 = arith.addf %267, %273 : vector<128x32xf32>
    %c0_328 = arith.constant 0 : index
    %c2_329 = arith.constant 2 : index
    %c2_330 = arith.constant 2 : index
    %c0_331 = arith.constant 0 : index
    %275 = vector.load %arg8[%c0_328, %c2_329, %c2_330, %c0_331] : memref<2x10x10x32xf32, #tpu.memory_space<vmem>>, vector<2x8x8x32xf32>
    %276 = vector.shape_cast %275 : vector<2x8x8x32xf32> to vector<128x32xf32>
    %277 = arith.truncf %276 : vector<128x32xf32> to vector<128x32xbf16>
    %c2_332 = arith.constant 2 : index
    %c8_333 = arith.constant 8 : index
    %c0_334 = arith.constant 0 : index
    %c0_335 = arith.constant 0 : index
    %278 = vector.load %arg3[%c2_332, %c8_333, %c0_334, %c0_335] : memref<4x9x32x32xbf16, #tpu.memory_space<vmem>>, vector<1x1x32x32xbf16>
    %279 = vector.shape_cast %278 : vector<1x1x32x32xbf16> to vector<32x32xbf16>
    %cst_336 = arith.constant dense<0.000000e+00> : vector<128x32xf32>
    %280 = tpu.matmul %277, %279, %cst_336 {dimension_numbers = #tpu.dot_dimension_numbers<[1], [0], [0], [1], [0, 0, 1, 1], [], []>} : vector<128x32xbf16>, vector<32x32xbf16>, vector<128x32xf32> -> vector<128x32xf32>
    %281 = arith.addf %274, %280 : vector<128x32xf32>
    %c2_337 = arith.constant 2 : index
    %c0_338 = arith.constant 0 : index
    %c0_339 = arith.constant 0 : index
    %282 = vector.load %arg4[%c2_337, %c0_338, %c0_339] : memref<4x1x32xf32, #tpu.memory_space<vmem>>, vector<1x1x32xf32>
    %283 = vector.shape_cast %282 : vector<1x1x32xf32> to vector<1x32xf32>
    %284 = vector.broadcast %283 : vector<1x32xf32> to vector<128x32xf32>
    %285 = arith.addf %281, %284 : vector<128x32xf32>
    %cst_340 = arith.constant 0.000000e+00 : f32
    %286 = vector.broadcast %cst_340 : f32 to vector<128x32xf32>
    %287 = arith.maximumf %285, %286 : vector<128x32xf32>
    %288 = vector.shape_cast %287 : vector<128x32xf32> to vector<2x8x8x32xf32>
    %c0_341 = arith.constant 0 : index
    %c1_342 = arith.constant 1 : index
    %c1_343 = arith.constant 1 : index
    %c0_344 = arith.constant 0 : index
    %289 = vector.load %arg8[%c0_341, %c1_342, %c1_343, %c0_344] : memref<2x10x10x32xf32, #tpu.memory_space<vmem>>, vector<2x8x8x32xf32>
    tpu.vector_store %arg8[%c0_341, %c1_342, %c1_343, %c0_344], %288 {strides = array<i32>} : memref<2x10x10x32xf32, #tpu.memory_space<vmem>>, vector<2x8x8x32xf32>,
    %cst_345 = arith.constant 0.000000e+00 : f32
    %290 = vector.broadcast %cst_345 : f32 to vector<128x32xf32>
    %c0_346 = arith.constant 0 : index
    %c0_347 = arith.constant 0 : index
    %c0_348 = arith.constant 0 : index
    %c0_349 = arith.constant 0 : index
    %291 = vector.load %arg8[%c0_346, %c0_347, %c0_348, %c0_349] : memref<2x10x10x32xf32, #tpu.memory_space<vmem>>, vector<2x8x8x32xf32>
    %292 = vector.shape_cast %291 : vector<2x8x8x32xf32> to vector<128x32xf32>
    %293 = arith.truncf %292 : vector<128x32xf32> to vector<128x32xbf16>
    %c3_350 = arith.constant 3 : index
    %c0_351 = arith.constant 0 : index
    %c0_352 = arith.constant 0 : index
    %c0_353 = arith.constant 0 : index
    %294 = vector.load %arg3[%c3_350, %c0_351, %c0_352, %c0_353] : memref<4x9x32x32xbf16, #tpu.memory_space<vmem>>, vector<1x1x32x32xbf16>
    %295 = vector.shape_cast %294 : vector<1x1x32x32xbf16> to vector<32x32xbf16>
    %cst_354 = arith.constant dense<0.000000e+00> : vector<128x32xf32>
    %296 = tpu.matmul %293, %295, %cst_354 {dimension_numbers = #tpu.dot_dimension_numbers<[1], [0], [0], [1], [0, 0, 1, 1], [], []>} : vector<128x32xbf16>, vector<32x32xbf16>, vector<128x32xf32> -> vector<128x32xf32>
    %297 = arith.addf %290, %296 : vector<128x32xf32>
    %c0_355 = arith.constant 0 : index
    %c0_356 = arith.constant 0 : index
    %c1_357 = arith.constant 1 : index
    %c0_358 = arith.constant 0 : index
    %298 = vector.load %arg8[%c0_355, %c0_356, %c1_357, %c0_358] : memref<2x10x10x32xf32, #tpu.memory_space<vmem>>, vector<2x8x8x32xf32>
    %299 = vector.shape_cast %298 : vector<2x8x8x32xf32> to vector<128x32xf32>
    %300 = arith.truncf %299 : vector<128x32xf32> to vector<128x32xbf16>
    %c3_359 = arith.constant 3 : index
    %c1_360 = arith.constant 1 : index
    %c0_361 = arith.constant 0 : index
    %c0_362 = arith.constant 0 : index
    %301 = vector.load %arg3[%c3_359, %c1_360, %c0_361, %c0_362] : memref<4x9x32x32xbf16, #tpu.memory_space<vmem>>, vector<1x1x32x32xbf16>
    %302 = vector.shape_cast %301 : vector<1x1x32x32xbf16> to vector<32x32xbf16>
    %cst_363 = arith.constant dense<0.000000e+00> : vector<128x32xf32>
    %303 = tpu.matmul %300, %302, %cst_363 {dimension_numbers = #tpu.dot_dimension_numbers<[1], [0], [0], [1], [0, 0, 1, 1], [], []>} : vector<128x32xbf16>, vector<32x32xbf16>, vector<128x32xf32> -> vector<128x32xf32>
    %304 = arith.addf %297, %303 : vector<128x32xf32>
    %c0_364 = arith.constant 0 : index
    %c0_365 = arith.constant 0 : index
    %c2_366 = arith.constant 2 : index
    %c0_367 = arith.constant 0 : index
    %305 = vector.load %arg8[%c0_364, %c0_365, %c2_366, %c0_367] : memref<2x10x10x32xf32, #tpu.memory_space<vmem>>, vector<2x8x8x32xf32>
    %306 = vector.shape_cast %305 : vector<2x8x8x32xf32> to vector<128x32xf32>
    %307 = arith.truncf %306 : vector<128x32xf32> to vector<128x32xbf16>
    %c3_368 = arith.constant 3 : index
    %c2_369 = arith.constant 2 : index
    %c0_370 = arith.constant 0 : index
    %c0_371 = arith.constant 0 : index
    %308 = vector.load %arg3[%c3_368, %c2_369, %c0_370, %c0_371] : memref<4x9x32x32xbf16, #tpu.memory_space<vmem>>, vector<1x1x32x32xbf16>
    %309 = vector.shape_cast %308 : vector<1x1x32x32xbf16> to vector<32x32xbf16>
    %cst_372 = arith.constant dense<0.000000e+00> : vector<128x32xf32>
    %310 = tpu.matmul %307, %309, %cst_372 {dimension_numbers = #tpu.dot_dimension_numbers<[1], [0], [0], [1], [0, 0, 1, 1], [], []>} : vector<128x32xbf16>, vector<32x32xbf16>, vector<128x32xf32> -> vector<128x32xf32>
    %311 = arith.addf %304, %310 : vector<128x32xf32>
    %c0_373 = arith.constant 0 : index
    %c1_374 = arith.constant 1 : index
    %c0_375 = arith.constant 0 : index
    %c0_376 = arith.constant 0 : index
    %312 = vector.load %arg8[%c0_373, %c1_374, %c0_375, %c0_376] : memref<2x10x10x32xf32, #tpu.memory_space<vmem>>, vector<2x8x8x32xf32>
    %313 = vector.shape_cast %312 : vector<2x8x8x32xf32> to vector<128x32xf32>
    %314 = arith.truncf %313 : vector<128x32xf32> to vector<128x32xbf16>
    %c3_377 = arith.constant 3 : index
    %c3_378 = arith.constant 3 : index
    %c0_379 = arith.constant 0 : index
    %c0_380 = arith.constant 0 : index
    %315 = vector.load %arg3[%c3_377, %c3_378, %c0_379, %c0_380] : memref<4x9x32x32xbf16, #tpu.memory_space<vmem>>, vector<1x1x32x32xbf16>
    %316 = vector.shape_cast %315 : vector<1x1x32x32xbf16> to vector<32x32xbf16>
    %cst_381 = arith.constant dense<0.000000e+00> : vector<128x32xf32>
    %317 = tpu.matmul %314, %316, %cst_381 {dimension_numbers = #tpu.dot_dimension_numbers<[1], [0], [0], [1], [0, 0, 1, 1], [], []>} : vector<128x32xbf16>, vector<32x32xbf16>, vector<128x32xf32> -> vector<128x32xf32>
    %318 = arith.addf %311, %317 : vector<128x32xf32>
    %c0_382 = arith.constant 0 : index
    %c1_383 = arith.constant 1 : index
    %c1_384 = arith.constant 1 : index
    %c0_385 = arith.constant 0 : index
    %319 = vector.load %arg8[%c0_382, %c1_383, %c1_384, %c0_385] : memref<2x10x10x32xf32, #tpu.memory_space<vmem>>, vector<2x8x8x32xf32>
    %320 = vector.shape_cast %319 : vector<2x8x8x32xf32> to vector<128x32xf32>
    %321 = arith.truncf %320 : vector<128x32xf32> to vector<128x32xbf16>
    %c3_386 = arith.constant 3 : index
    %c4_387 = arith.constant 4 : index
    %c0_388 = arith.constant 0 : index
    %c0_389 = arith.constant 0 : index
    %322 = vector.load %arg3[%c3_386, %c4_387, %c0_388, %c0_389] : memref<4x9x32x32xbf16, #tpu.memory_space<vmem>>, vector<1x1x32x32xbf16>
    %323 = vector.shape_cast %322 : vector<1x1x32x32xbf16> to vector<32x32xbf16>
    %cst_390 = arith.constant dense<0.000000e+00> : vector<128x32xf32>
    %324 = tpu.matmul %321, %323, %cst_390 {dimension_numbers = #tpu.dot_dimension_numbers<[1], [0], [0], [1], [0, 0, 1, 1], [], []>} : vector<128x32xbf16>, vector<32x32xbf16>, vector<128x32xf32> -> vector<128x32xf32>
    %325 = arith.addf %318, %324 : vector<128x32xf32>
    %c0_391 = arith.constant 0 : index
    %c1_392 = arith.constant 1 : index
    %c2_393 = arith.constant 2 : index
    %c0_394 = arith.constant 0 : index
    %326 = vector.load %arg8[%c0_391, %c1_392, %c2_393, %c0_394] : memref<2x10x10x32xf32, #tpu.memory_space<vmem>>, vector<2x8x8x32xf32>
    %327 = vector.shape_cast %326 : vector<2x8x8x32xf32> to vector<128x32xf32>
    %328 = arith.truncf %327 : vector<128x32xf32> to vector<128x32xbf16>
    %c3_395 = arith.constant 3 : index
    %c5_396 = arith.constant 5 : index
    %c0_397 = arith.constant 0 : index
    %c0_398 = arith.constant 0 : index
    %329 = vector.load %arg3[%c3_395, %c5_396, %c0_397, %c0_398] : memref<4x9x32x32xbf16, #tpu.memory_space<vmem>>, vector<1x1x32x32xbf16>
    %330 = vector.shape_cast %329 : vector<1x1x32x32xbf16> to vector<32x32xbf16>
    %cst_399 = arith.constant dense<0.000000e+00> : vector<128x32xf32>
    %331 = tpu.matmul %328, %330, %cst_399 {dimension_numbers = #tpu.dot_dimension_numbers<[1], [0], [0], [1], [0, 0, 1, 1], [], []>} : vector<128x32xbf16>, vector<32x32xbf16>, vector<128x32xf32> -> vector<128x32xf32>
    %332 = arith.addf %325, %331 : vector<128x32xf32>
    %c0_400 = arith.constant 0 : index
    %c2_401 = arith.constant 2 : index
    %c0_402 = arith.constant 0 : index
    %c0_403 = arith.constant 0 : index
    %333 = vector.load %arg8[%c0_400, %c2_401, %c0_402, %c0_403] : memref<2x10x10x32xf32, #tpu.memory_space<vmem>>, vector<2x8x8x32xf32>
    %334 = vector.shape_cast %333 : vector<2x8x8x32xf32> to vector<128x32xf32>
    %335 = arith.truncf %334 : vector<128x32xf32> to vector<128x32xbf16>
    %c3_404 = arith.constant 3 : index
    %c6_405 = arith.constant 6 : index
    %c0_406 = arith.constant 0 : index
    %c0_407 = arith.constant 0 : index
    %336 = vector.load %arg3[%c3_404, %c6_405, %c0_406, %c0_407] : memref<4x9x32x32xbf16, #tpu.memory_space<vmem>>, vector<1x1x32x32xbf16>
    %337 = vector.shape_cast %336 : vector<1x1x32x32xbf16> to vector<32x32xbf16>
    %cst_408 = arith.constant dense<0.000000e+00> : vector<128x32xf32>
    %338 = tpu.matmul %335, %337, %cst_408 {dimension_numbers = #tpu.dot_dimension_numbers<[1], [0], [0], [1], [0, 0, 1, 1], [], []>} : vector<128x32xbf16>, vector<32x32xbf16>, vector<128x32xf32> -> vector<128x32xf32>
    %339 = arith.addf %332, %338 : vector<128x32xf32>
    %c0_409 = arith.constant 0 : index
    %c2_410 = arith.constant 2 : index
    %c1_411 = arith.constant 1 : index
    %c0_412 = arith.constant 0 : index
    %340 = vector.load %arg8[%c0_409, %c2_410, %c1_411, %c0_412] : memref<2x10x10x32xf32, #tpu.memory_space<vmem>>, vector<2x8x8x32xf32>
    %341 = vector.shape_cast %340 : vector<2x8x8x32xf32> to vector<128x32xf32>
    %342 = arith.truncf %341 : vector<128x32xf32> to vector<128x32xbf16>
    %c3_413 = arith.constant 3 : index
    %c7_414 = arith.constant 7 : index
    %c0_415 = arith.constant 0 : index
    %c0_416 = arith.constant 0 : index
    %343 = vector.load %arg3[%c3_413, %c7_414, %c0_415, %c0_416] : memref<4x9x32x32xbf16, #tpu.memory_space<vmem>>, vector<1x1x32x32xbf16>
    %344 = vector.shape_cast %343 : vector<1x1x32x32xbf16> to vector<32x32xbf16>
    %cst_417 = arith.constant dense<0.000000e+00> : vector<128x32xf32>
    %345 = tpu.matmul %342, %344, %cst_417 {dimension_numbers = #tpu.dot_dimension_numbers<[1], [0], [0], [1], [0, 0, 1, 1], [], []>} : vector<128x32xbf16>, vector<32x32xbf16>, vector<128x32xf32> -> vector<128x32xf32>
    %346 = arith.addf %339, %345 : vector<128x32xf32>
    %c0_418 = arith.constant 0 : index
    %c2_419 = arith.constant 2 : index
    %c2_420 = arith.constant 2 : index
    %c0_421 = arith.constant 0 : index
    %347 = vector.load %arg8[%c0_418, %c2_419, %c2_420, %c0_421] : memref<2x10x10x32xf32, #tpu.memory_space<vmem>>, vector<2x8x8x32xf32>
    %348 = vector.shape_cast %347 : vector<2x8x8x32xf32> to vector<128x32xf32>
    %349 = arith.truncf %348 : vector<128x32xf32> to vector<128x32xbf16>
    %c3_422 = arith.constant 3 : index
    %c8_423 = arith.constant 8 : index
    %c0_424 = arith.constant 0 : index
    %c0_425 = arith.constant 0 : index
    %350 = vector.load %arg3[%c3_422, %c8_423, %c0_424, %c0_425] : memref<4x9x32x32xbf16, #tpu.memory_space<vmem>>, vector<1x1x32x32xbf16>
    %351 = vector.shape_cast %350 : vector<1x1x32x32xbf16> to vector<32x32xbf16>
    %cst_426 = arith.constant dense<0.000000e+00> : vector<128x32xf32>
    %352 = tpu.matmul %349, %351, %cst_426 {dimension_numbers = #tpu.dot_dimension_numbers<[1], [0], [0], [1], [0, 0, 1, 1], [], []>} : vector<128x32xbf16>, vector<32x32xbf16>, vector<128x32xf32> -> vector<128x32xf32>
    %353 = arith.addf %346, %352 : vector<128x32xf32>
    %c3_427 = arith.constant 3 : index
    %c0_428 = arith.constant 0 : index
    %c0_429 = arith.constant 0 : index
    %354 = vector.load %arg4[%c3_427, %c0_428, %c0_429] : memref<4x1x32xf32, #tpu.memory_space<vmem>>, vector<1x1x32xf32>
    %355 = vector.shape_cast %354 : vector<1x1x32xf32> to vector<1x32xf32>
    %356 = vector.broadcast %355 : vector<1x32xf32> to vector<128x32xf32>
    %357 = arith.addf %353, %356 : vector<128x32xf32>
    %358 = arith.addf %357, %215 : vector<128x32xf32>
    %cst_430 = arith.constant 0.000000e+00 : f32
    %359 = vector.broadcast %cst_430 : f32 to vector<128x32xf32>
    %360 = arith.maximumf %358, %359 : vector<128x32xf32>
    %361 = vector.shape_cast %360 : vector<128x32xf32> to vector<2x8x8x32xf32>
    %c0_431 = arith.constant 0 : index
    %c1_432 = arith.constant 1 : index
    %c1_433 = arith.constant 1 : index
    %c0_434 = arith.constant 0 : index
    %362 = vector.load %arg8[%c0_431, %c1_432, %c1_433, %c0_434] : memref<2x10x10x32xf32, #tpu.memory_space<vmem>>, vector<2x8x8x32xf32>
    tpu.vector_store %arg8[%c0_431, %c1_432, %c1_433, %c0_434], %361 {strides = array<i32>} : memref<2x10x10x32xf32, #tpu.memory_space<vmem>>, vector<2x8x8x32xf32>,
    %cst_435 = arith.constant 0.000000e+00 : f32
    %363 = vector.broadcast %cst_435 : f32 to vector<128x128xf32>
    %c0_436 = arith.constant 0 : index
    %c0_437 = arith.constant 0 : index
    %c0_438 = arith.constant 0 : index
    %c0_439 = arith.constant 0 : index
    %364 = vector.load %arg8[%c0_436, %c0_437, %c0_438, %c0_439] : memref<2x10x10x32xf32, #tpu.memory_space<vmem>>, vector<2x8x8x32xf32>
    %365 = vector.shape_cast %364 : vector<2x8x8x32xf32> to vector<128x32xf32>
    %366 = arith.truncf %365 : vector<128x32xf32> to vector<128x32xbf16>
    %c0_440 = arith.constant 0 : index
    %c0_441 = arith.constant 0 : index
    %c0_442 = arith.constant 0 : index
    %367 = vector.load %arg5[%c0_440, %c0_441, %c0_442] : memref<9x32x128xbf16, #tpu.memory_space<vmem>>, vector<1x32x128xbf16>
    %368 = vector.shape_cast %367 : vector<1x32x128xbf16> to vector<32x128xbf16>
    %cst_443 = arith.constant dense<0.000000e+00> : vector<128x128xf32>
    %369 = tpu.matmul %366, %368, %cst_443 {dimension_numbers = #tpu.dot_dimension_numbers<[1], [0], [0], [1], [0, 0, 1, 1], [], []>} : vector<128x32xbf16>, vector<32x128xbf16>, vector<128x128xf32> -> vector<128x128xf32>
    %370 = arith.addf %363, %369 : vector<128x128xf32>
    %c0_444 = arith.constant 0 : index
    %c0_445 = arith.constant 0 : index
    %c1_446 = arith.constant 1 : index
    %c0_447 = arith.constant 0 : index
    %371 = vector.load %arg8[%c0_444, %c0_445, %c1_446, %c0_447] : memref<2x10x10x32xf32, #tpu.memory_space<vmem>>, vector<2x8x8x32xf32>
    %372 = vector.shape_cast %371 : vector<2x8x8x32xf32> to vector<128x32xf32>
    %373 = arith.truncf %372 : vector<128x32xf32> to vector<128x32xbf16>
    %c1_448 = arith.constant 1 : index
    %c0_449 = arith.constant 0 : index
    %c0_450 = arith.constant 0 : index
    %374 = vector.load %arg5[%c1_448, %c0_449, %c0_450] : memref<9x32x128xbf16, #tpu.memory_space<vmem>>, vector<1x32x128xbf16>
    %375 = vector.shape_cast %374 : vector<1x32x128xbf16> to vector<32x128xbf16>
    %cst_451 = arith.constant dense<0.000000e+00> : vector<128x128xf32>
    %376 = tpu.matmul %373, %375, %cst_451 {dimension_numbers = #tpu.dot_dimension_numbers<[1], [0], [0], [1], [0, 0, 1, 1], [], []>} : vector<128x32xbf16>, vector<32x128xbf16>, vector<128x128xf32> -> vector<128x128xf32>
    %377 = arith.addf %370, %376 : vector<128x128xf32>
    %c0_452 = arith.constant 0 : index
    %c0_453 = arith.constant 0 : index
    %c2_454 = arith.constant 2 : index
    %c0_455 = arith.constant 0 : index
    %378 = vector.load %arg8[%c0_452, %c0_453, %c2_454, %c0_455] : memref<2x10x10x32xf32, #tpu.memory_space<vmem>>, vector<2x8x8x32xf32>
    %379 = vector.shape_cast %378 : vector<2x8x8x32xf32> to vector<128x32xf32>
    %380 = arith.truncf %379 : vector<128x32xf32> to vector<128x32xbf16>
    %c2_456 = arith.constant 2 : index
    %c0_457 = arith.constant 0 : index
    %c0_458 = arith.constant 0 : index
    %381 = vector.load %arg5[%c2_456, %c0_457, %c0_458] : memref<9x32x128xbf16, #tpu.memory_space<vmem>>, vector<1x32x128xbf16>
    %382 = vector.shape_cast %381 : vector<1x32x128xbf16> to vector<32x128xbf16>
    %cst_459 = arith.constant dense<0.000000e+00> : vector<128x128xf32>
    %383 = tpu.matmul %380, %382, %cst_459 {dimension_numbers = #tpu.dot_dimension_numbers<[1], [0], [0], [1], [0, 0, 1, 1], [], []>} : vector<128x32xbf16>, vector<32x128xbf16>, vector<128x128xf32> -> vector<128x128xf32>
    %384 = arith.addf %377, %383 : vector<128x128xf32>
    %c0_460 = arith.constant 0 : index
    %c1_461 = arith.constant 1 : index
    %c0_462 = arith.constant 0 : index
    %c0_463 = arith.constant 0 : index
    %385 = vector.load %arg8[%c0_460, %c1_461, %c0_462, %c0_463] : memref<2x10x10x32xf32, #tpu.memory_space<vmem>>, vector<2x8x8x32xf32>
    %386 = vector.shape_cast %385 : vector<2x8x8x32xf32> to vector<128x32xf32>
    %387 = arith.truncf %386 : vector<128x32xf32> to vector<128x32xbf16>
    %c3_464 = arith.constant 3 : index
    %c0_465 = arith.constant 0 : index
    %c0_466 = arith.constant 0 : index
    %388 = vector.load %arg5[%c3_464, %c0_465, %c0_466] : memref<9x32x128xbf16, #tpu.memory_space<vmem>>, vector<1x32x128xbf16>
    %389 = vector.shape_cast %388 : vector<1x32x128xbf16> to vector<32x128xbf16>
    %cst_467 = arith.constant dense<0.000000e+00> : vector<128x128xf32>
    %390 = tpu.matmul %387, %389, %cst_467 {dimension_numbers = #tpu.dot_dimension_numbers<[1], [0], [0], [1], [0, 0, 1, 1], [], []>} : vector<128x32xbf16>, vector<32x128xbf16>, vector<128x128xf32> -> vector<128x128xf32>
    %391 = arith.addf %384, %390 : vector<128x128xf32>
    %c0_468 = arith.constant 0 : index
    %c1_469 = arith.constant 1 : index
    %c1_470 = arith.constant 1 : index
    %c0_471 = arith.constant 0 : index
    %392 = vector.load %arg8[%c0_468, %c1_469, %c1_470, %c0_471] : memref<2x10x10x32xf32, #tpu.memory_space<vmem>>, vector<2x8x8x32xf32>
    %393 = vector.shape_cast %392 : vector<2x8x8x32xf32> to vector<128x32xf32>
    %394 = arith.truncf %393 : vector<128x32xf32> to vector<128x32xbf16>
    %c4_472 = arith.constant 4 : index
    %c0_473 = arith.constant 0 : index
    %c0_474 = arith.constant 0 : index
    %395 = vector.load %arg5[%c4_472, %c0_473, %c0_474] : memref<9x32x128xbf16, #tpu.memory_space<vmem>>, vector<1x32x128xbf16>
    %396 = vector.shape_cast %395 : vector<1x32x128xbf16> to vector<32x128xbf16>
    %cst_475 = arith.constant dense<0.000000e+00> : vector<128x128xf32>
    %397 = tpu.matmul %394, %396, %cst_475 {dimension_numbers = #tpu.dot_dimension_numbers<[1], [0], [0], [1], [0, 0, 1, 1], [], []>} : vector<128x32xbf16>, vector<32x128xbf16>, vector<128x128xf32> -> vector<128x128xf32>
    %398 = arith.addf %391, %397 : vector<128x128xf32>
    %c0_476 = arith.constant 0 : index
    %c1_477 = arith.constant 1 : index
    %c2_478 = arith.constant 2 : index
    %c0_479 = arith.constant 0 : index
    %399 = vector.load %arg8[%c0_476, %c1_477, %c2_478, %c0_479] : memref<2x10x10x32xf32, #tpu.memory_space<vmem>>, vector<2x8x8x32xf32>
    %400 = vector.shape_cast %399 : vector<2x8x8x32xf32> to vector<128x32xf32>
    %401 = arith.truncf %400 : vector<128x32xf32> to vector<128x32xbf16>
    %c5_480 = arith.constant 5 : index
    %c0_481 = arith.constant 0 : index
    %c0_482 = arith.constant 0 : index
    %402 = vector.load %arg5[%c5_480, %c0_481, %c0_482] : memref<9x32x128xbf16, #tpu.memory_space<vmem>>, vector<1x32x128xbf16>
    %403 = vector.shape_cast %402 : vector<1x32x128xbf16> to vector<32x128xbf16>
    %cst_483 = arith.constant dense<0.000000e+00> : vector<128x128xf32>
    %404 = tpu.matmul %401, %403, %cst_483 {dimension_numbers = #tpu.dot_dimension_numbers<[1], [0], [0], [1], [0, 0, 1, 1], [], []>} : vector<128x32xbf16>, vector<32x128xbf16>, vector<128x128xf32> -> vector<128x128xf32>
    %405 = arith.addf %398, %404 : vector<128x128xf32>
    %c0_484 = arith.constant 0 : index
    %c2_485 = arith.constant 2 : index
    %c0_486 = arith.constant 0 : index
    %c0_487 = arith.constant 0 : index
    %406 = vector.load %arg8[%c0_484, %c2_485, %c0_486, %c0_487] : memref<2x10x10x32xf32, #tpu.memory_space<vmem>>, vector<2x8x8x32xf32>
    %407 = vector.shape_cast %406 : vector<2x8x8x32xf32> to vector<128x32xf32>
    %408 = arith.truncf %407 : vector<128x32xf32> to vector<128x32xbf16>
    %c6_488 = arith.constant 6 : index
    %c0_489 = arith.constant 0 : index
    %c0_490 = arith.constant 0 : index
    %409 = vector.load %arg5[%c6_488, %c0_489, %c0_490] : memref<9x32x128xbf16, #tpu.memory_space<vmem>>, vector<1x32x128xbf16>
    %410 = vector.shape_cast %409 : vector<1x32x128xbf16> to vector<32x128xbf16>
    %cst_491 = arith.constant dense<0.000000e+00> : vector<128x128xf32>
    %411 = tpu.matmul %408, %410, %cst_491 {dimension_numbers = #tpu.dot_dimension_numbers<[1], [0], [0], [1], [0, 0, 1, 1], [], []>} : vector<128x32xbf16>, vector<32x128xbf16>, vector<128x128xf32> -> vector<128x128xf32>
    %412 = arith.addf %405, %411 : vector<128x128xf32>
    %c0_492 = arith.constant 0 : index
    %c2_493 = arith.constant 2 : index
    %c1_494 = arith.constant 1 : index
    %c0_495 = arith.constant 0 : index
    %413 = vector.load %arg8[%c0_492, %c2_493, %c1_494, %c0_495] : memref<2x10x10x32xf32, #tpu.memory_space<vmem>>, vector<2x8x8x32xf32>
    %414 = vector.shape_cast %413 : vector<2x8x8x32xf32> to vector<128x32xf32>
    %415 = arith.truncf %414 : vector<128x32xf32> to vector<128x32xbf16>
    %c7_496 = arith.constant 7 : index
    %c0_497 = arith.constant 0 : index
    %c0_498 = arith.constant 0 : index
    %416 = vector.load %arg5[%c7_496, %c0_497, %c0_498] : memref<9x32x128xbf16, #tpu.memory_space<vmem>>, vector<1x32x128xbf16>
    %417 = vector.shape_cast %416 : vector<1x32x128xbf16> to vector<32x128xbf16>
    %cst_499 = arith.constant dense<0.000000e+00> : vector<128x128xf32>
    %418 = tpu.matmul %415, %417, %cst_499 {dimension_numbers = #tpu.dot_dimension_numbers<[1], [0], [0], [1], [0, 0, 1, 1], [], []>} : vector<128x32xbf16>, vector<32x128xbf16>, vector<128x128xf32> -> vector<128x128xf32>
    %419 = arith.addf %412, %418 : vector<128x128xf32>
    %c0_500 = arith.constant 0 : index
    %c2_501 = arith.constant 2 : index
    %c2_502 = arith.constant 2 : index
    %c0_503 = arith.constant 0 : index
    %420 = vector.load %arg8[%c0_500, %c2_501, %c2_502, %c0_503] : memref<2x10x10x32xf32, #tpu.memory_space<vmem>>, vector<2x8x8x32xf32>
    %421 = vector.shape_cast %420 : vector<2x8x8x32xf32> to vector<128x32xf32>
    %422 = arith.truncf %421 : vector<128x32xf32> to vector<128x32xbf16>
    %c8_504 = arith.constant 8 : index
    %c0_505 = arith.constant 0 : index
    %c0_506 = arith.constant 0 : index
    %423 = vector.load %arg5[%c8_504, %c0_505, %c0_506] : memref<9x32x128xbf16, #tpu.memory_space<vmem>>, vector<1x32x128xbf16>
    %424 = vector.shape_cast %423 : vector<1x32x128xbf16> to vector<32x128xbf16>
    %cst_507 = arith.constant dense<0.000000e+00> : vector<128x128xf32>
    %425 = tpu.matmul %422, %424, %cst_507 {dimension_numbers = #tpu.dot_dimension_numbers<[1], [0], [0], [1], [0, 0, 1, 1], [], []>} : vector<128x32xbf16>, vector<32x128xbf16>, vector<128x128xf32> -> vector<128x128xf32>
    %426 = arith.addf %419, %425 : vector<128x128xf32>
    %c0_508 = arith.constant 0 : index
    %c0_509 = arith.constant 0 : index
    %427 = vector.load %arg6[%c0_508, %c0_509] : memref<1x128xf32, #tpu.memory_space<vmem>>, vector<1x128xf32>
    %428 = vector.broadcast %427 : vector<1x128xf32> to vector<128x128xf32>
    %429 = arith.addf %426, %428 : vector<128x128xf32>
    %cst_510 = arith.constant 0.000000e+00 : f32
    %430 = vector.broadcast %cst_510 : f32 to vector<128x128xf32>
    %431 = arith.maximumf %429, %430 : vector<128x128xf32>
    %c0_511 = arith.constant 0 : index
    %c0_512 = arith.constant 0 : index
    %432 = vector.load %arg7[%c0_511, %c0_512] : memref<128x128xf32, #tpu.memory_space<vmem>>, vector<128x128xf32>
    tpu.vector_store %arg7[%c0_511, %c0_512], %431 {strides = array<i32>} : memref<128x128xf32, #tpu.memory_space<vmem>>, vector<128x128xf32>,
    return
  }
}

module attributes {stable_mosaic.version = 11 : i64} {
  func.func @_heads_fc_kernel(%arg0: memref<2x8192xf32, #tpu.memory_space<vmem>>, %arg1: memref<8192x128xbf16, #tpu.memory_space<vmem>>, %arg2: memref<1x128xf32, #tpu.memory_space<vmem>>, %arg3: memref<2x128xf32, #tpu.memory_space<vmem>>) attributes {dimension_semantics = [], scalar_prefetch = 0 : i64, scratch_operands = 0 : i64, tpu.core_type = #tpu.core_type<tc>} {
    %c0 = arith.constant 0 : index
    %c0_0 = arith.constant 0 : index
    %0 = vector.load %arg0[%c0, %c0_0] : memref<2x8192xf32, #tpu.memory_space<vmem>>, vector<2x8192xf32>
    %1 = arith.truncf %0 : vector<2x8192xf32> to vector<2x8192xbf16>
    %c0_1 = arith.constant 0 : index
    %c0_2 = arith.constant 0 : index
    %2 = vector.load %arg1[%c0_1, %c0_2] : memref<8192x128xbf16, #tpu.memory_space<vmem>>, vector<8192x128xbf16>
    %cst = arith.constant dense<0.000000e+00> : vector<2x128xf32>
    %3 = tpu.matmul %1, %2, %cst {dimension_numbers = #tpu.dot_dimension_numbers<[1], [0], [0], [1], [0, 0, 1, 1], [], []>} : vector<2x8192xbf16>, vector<8192x128xbf16>, vector<2x128xf32> -> vector<2x128xf32>
    %c0_3 = arith.constant 0 : index
    %c0_4 = arith.constant 0 : index
    %4 = vector.load %arg2[%c0_3, %c0_4] : memref<1x128xf32, #tpu.memory_space<vmem>>, vector<1x128xf32>
    %5 = vector.broadcast %4 : vector<1x128xf32> to vector<2x128xf32>
    %6 = arith.addf %3, %5 : vector<2x128xf32>
    %7 = tpu.iota {dimensions = array<i32: 1>} : vector<2x128xi32>
    %c65_i32 = arith.constant 65 : i32
    %8 = vector.broadcast %c65_i32 : i32 to vector<2x128xi32>
    %9 = arith.cmpi eq, %7, %8 : vector<2x128xi32>
    %10 = math.tanh %6 : vector<2x128xf32>
    %11 = arith.select %9, %10, %6 : vector<2x128xi1>, vector<2x128xf32>
    %c0_5 = arith.constant 0 : index
    %c0_6 = arith.constant 0 : index
    %12 = vector.load %arg3[%c0_5, %c0_6] : memref<2x128xf32, #tpu.memory_space<vmem>>, vector<2x128xf32>
    tpu.vector_store %arg3[%c0_5, %c0_6], %11 {strides = array<i32>} : memref<2x128xf32, #tpu.memory_space<vmem>>, vector<2x128xf32>,
    return
  }
}

</mosaic_0001>

<bundles_post_ra>
// kernel: resnet_forward.3
= control target key start
LH: loop header
LB: loop body
LE: loop exit
PB: predicated region body
PF: predicated region fallthrough
CT: control target
= control target key end

     0   :  { %8 = vsyncpa [#allocation3], 0  ;;  %s7967_s0 = inlined_call_operand.vmem [shape: f32[2,8192], index: 0, kind: input, shape index: {}]   ;;  %s7968_s1 = inlined_call_operand.hbm [shape: bf16[8192,128], index: 1, kind: input, shape index: {}]   ;;  %s7969_s2 = inlined_call_operand.hbm [shape: f32[1,128], index: 2, kind: input, shape index: {}]   ;;  %s7970_s3 = inlined_call_operand.vmem [shape: f32[2,128], index: 3, kind: output, shape index: {}]  }
   0x1   :  { %s16_s14 = sshll.u32 %s7968_s1, 4  ;;  %s17_s14 = int_to_ptr.hbm [resolvable:$true] %s16_s14 }
   0x2   :  { %9 = vsyncpa [#allocation5], 0  ;;  %s7848_s15 = smov [#allocation2]   ;;  %s30_s19 = sshll.u32 %s7969_s2, 4  ;;  %s31_s19 = int_to_ptr.hbm [resolvable:$true] %s30_s19 }
   0x3   :  { %s18_s16 = sshll.u32 %s7848_s15, 4  ;;  %s7849_s20 = smov 64   ;;  %s19_s16 = int_to_ptr.vmem [resolvable:$true] %s18_s16 }
   0x4   :  { %s7850_s21 = smov 4   ;;  %s7851_s22 = smov [#allocation4]  }
   0x5   :  { %24 = dma.hbm_to_vmem [thread:$0]  %s17_s14, 65536, %s19_s16, [#allocation3], %s7849_s20, %s7849_s20, %s7850_s21  }
   0x6   :  { %s32_s23 = sshll.u32 %s7851_s22, 4  ;;  %s33_s23 = int_to_ptr.vmem [resolvable:$true] %s32_s23 }
   0x7   :  { %35 = dma.hbm_to_vmem [thread:$0]  %s31_s19, 16, %s33_s23, [#allocation5]  }
   0x8   :  { %7844 = dma.done.wait [#allocation3], 65536  }
   0x9   :  { %7845 = vsyncadd [#allocation3], 4294901760 }
   0xa   :  { %7846 = dma.done.wait [#allocation5], 16  }
   0xb   :  { %7847 = vsyncadd [#allocation5], 4294967280  ;;  %v7284_v0 = vld [vmem:[#allocation2 + $0x38] sm:$0xff]  ;;  %v7283_v4 = vld [vmem:[#allocation2 + $0x30] sm:$0xff] }
   0xc   :  { %v7292_v1 = vld [vmem:[#allocation2 + $0x78] sm:$0xff]  ;;  %4385 = vmatpush.bf16.msra.mxu0 %v7284_v0  ;;  %v7291_v5 = vld [vmem:[#allocation2 + $0x70] sm:$0xff]  ;;  %v7282_v8 = vld [vmem:[#allocation2 + $0x28] sm:$0xff] }
   0xd   :  { %v7300_v2 = vld [vmem:[#allocation2 + $0xb8] sm:$0xff]  ;;  %4398 = vmatpush.bf16.msra.mxu1 %v7292_v1  ;;  %v7299_v6 = vld [vmem:[#allocation2 + $0xb0] sm:$0xff]  ;;  %v7290_v9 = vld [vmem:[#allocation2 + $0x68] sm:$0xff] }
   0xe   :  { %v7308_v3 = vld [vmem:[#allocation2 + $0xf8] sm:$0xff]  ;;  %4411 = vmatpush.bf16.msra.mxu2 %v7300_v2  ;;  %v7307_v7 = vld [vmem:[#allocation2 + $0xf0] sm:$0xff]  ;;  %v7298_v10 = vld [vmem:[#allocation2 + $0xa8] sm:$0xff] }
   0xf   :  { %4424 = vmatpush.bf16.msra.mxu3 %v7308_v3  ;;  %v7306_v11 = vld [vmem:[#allocation2 + $0xe8] sm:$0xff]  ;;  %v7281_v12 = vld [vmem:[#allocation2 + $0x20] sm:$0xff]  ;;  %v7280_v16 = vld [vmem:[#allocation2 + $0x18] sm:$0xff] }
  0x10   :  { %4386 = vmatpush.bf16.msra.mxu0 %v7283_v4  ;;  %v7289_v13 = vld [vmem:[#allocation2 + $0x60] sm:$0xff]  ;;  %v7288_v17 = vld [vmem:[#allocation2 + $0x58] sm:$0xff]  ;;  %v7279_v21 = vld [vmem:[#allocation2 + $0x10] sm:$0xff] }
  0x11   :  { %4399 = vmatpush.bf16.msra.mxu1 %v7291_v5  ;;  %v7297_v14 = vld [vmem:[#allocation2 + $0xa0] sm:$0xff]  ;;  %v7296_v18 = vld [vmem:[#allocation2 + $0x98] sm:$0xff]  ;;  %v7287_v22 = vld [vmem:[#allocation2 + $0x50] sm:$0xff] }
  0x12   :  { %4412 = vmatpush.bf16.msra.mxu2 %v7299_v6  ;;  %v7305_v15 = vld [vmem:[#allocation2 + $0xe0] sm:$0xff]  ;;  %v7304_v19 = vld [vmem:[#allocation2 + $0xd8] sm:$0xff]  ;;  %v7295_v23 = vld [vmem:[#allocation2 + $0x90] sm:$0xff] }
  0x13   :  { %4425 = vmatpush.bf16.msra.mxu3 %v7307_v7  ;;  %v44_v20 = vld [vmem:[%s7967_s0] sm:$0xff]  ;;  %v7303_v24 = vld [vmem:[#allocation2 + $0xd0] sm:$0xff]  ;;  %v7278_v25 = vld [vmem:[#allocation2 + $0x8] sm:$0xff] }
  0x14   :  { %4387 = vmatpush.bf16.msra.mxu0 %v7282_v8  ;;  %76 = vst [vmem:[#allocation1] ss:$4 sm:$0xff] %v44_v20  ;;  %v7286_v26 = vld [vmem:[#allocation2 + $0x48] sm:$0xff]  ;;  %v7277_v29 = vld [vmem:[#allocation2] sm:$0xff]  ;;  %v7316_v38 = vld [vmem:[#allocation2 + $0x138] sm:$0xff] }
  0x15   :  { %4400 = vmatpush.bf16.msra.mxu1 %v7290_v9  ;;  %v7294_v27 = vld [vmem:[#allocation2 + $0x88] sm:$0xff]  ;;  %v7285_v30 = vld [vmem:[#allocation2 + $0x40] sm:$0xff]  ;;  %v7324_v39 = vld [vmem:[#allocation2 + $0x178] sm:$0xff] }
  0x16   :  { %4413 = vmatpush.bf16.msra.mxu2 %v7298_v10  ;;  %v7302_v28 = vld [vmem:[#allocation2 + $0xc8] sm:$0xff]  ;;  %v7293_v31 = vld [vmem:[#allocation2 + $0x80] sm:$0xff]  ;;  %v7332_v40 = vld [vmem:[#allocation2 + $0x1b8] sm:$0xff] }
  0x17   :  { %4426 = vmatpush.bf16.msra.mxu3 %v7306_v11  ;;  %v7301_v33 = vld [vmem:[#allocation2 + $0xc0] sm:$0xff]  ;;  %v46_v35 = vld [vmem:[%s7967_s0 + $0x10] sm:$0xff]  ;;  %v7340_v41 = vld [vmem:[#allocation2 + $0x1f8] sm:$0xff] }
  0x18   :  { %4388 = vmatpush.bf16.msra.mxu0 %v7281_v12  ;;  %v45_v42 = vld [vmem:[%s7967_s0 + $0x8] sm:$0xff]  ;;  %v7315_v47 = vld [vmem:[#allocation2 + $0x130] sm:$0xff]  ;;  %v7314_v51 = vld [vmem:[#allocation2 + $0x128] sm:$0xff] }
  0x19   :  { %4401 = vmatpush.bf16.msra.mxu1 %v7289_v13  ;;  %78 = vst [vmem:[#allocation1 + $0x20] ss:$4 sm:$0xff] %v45_v42  ;;  %v7323_v48 = vld [vmem:[#allocation2 + $0x170] sm:$0xff]  ;;  %v7322_v52 = vld [vmem:[#allocation2 + $0x168] sm:$0xff]  ;;  %v7313_v55 = vld [vmem:[#allocation2 + $0x120] sm:$0xff] }
  0x1a   :  { %4414 = vmatpush.bf16.msra.mxu2 %v7297_v14  ;;  %v7331_v49 = vld [vmem:[#allocation2 + $0x1b0] sm:$0xff]  ;;  %v7330_v53 = vld [vmem:[#allocation2 + $0x1a8] sm:$0xff]  ;;  %v7321_v57 = vld [vmem:[#allocation2 + $0x160] sm:$0xff] }
  0x1b   :  { %4427 = vmatpush.bf16.msra.mxu3 %v7305_v15  ;;  %v81_v32 = vld.sshfl [vmem:[#allocation1 + $0x10] sm:$0xff pattern:$0x73625140]  ;;  %v79_v34 = vld.sshfl [vmem:[#allocation1] sm:$0xff pattern:$0x73625140] }
  0x1c   :  { %4389 = vmatpush.bf16.msra.mxu0 %v7280_v16  ;;  %v82_v36 = vld.sshfl [vmem:[#allocation1 + $0x18] sm:$0xff pattern:$0x73625140]  ;;  %v80_v37 = vld.sshfl [vmem:[#allocation1 + $0x8] sm:$0xff pattern:$0x73625140]  ;;  %v223_v43 = vpack.c.bf16 %v81_v32, %v81_v32  ;;  %v221_v44 = vpack.c.bf16 %v79_v34, %v79_v34 }
  0x1d   :  { %4402 = vmatpush.bf16.msra.mxu1 %v7288_v17  ;;  %87 = vst [vmem:[#allocation1] ss:$4 sm:$0xff] %v46_v35  ;;  %v224_v45 = vpack.c.bf16 %v82_v36, %v82_v36  ;;  %v222_v46 = vpack.c.bf16 %v80_v37, %v80_v37  ;;  %v7339_v50 = vld [vmem:[#allocation2 + $0x1f0] sm:$0xff]  ;;  %v7338_v54 = vld [vmem:[#allocation2 + $0x1e8] sm:$0xff]  ;;  %v7329_v62 = vld [vmem:[#allocation2 + $0x1a0] sm:$0xff] }
  0x1e   :  { %4415 = vmatpush.bf16.msra.mxu2 %v7296_v18  ;;  %v47_v59 = vld [vmem:[%s7967_s0 + $0x18] sm:$0xff]  ;;  %v7337_v63 = vld [vmem:[#allocation2 + $0x1e0] sm:$0xff]  ;;  %v7312_v0 = vld [vmem:[#allocation2 + $0x118] sm:$0xff] }
  0x1f   :  { %4428 = vmatpush.bf16.msra.mxu3 %v7304_v19  ;;  %v7320_v1 = vld [vmem:[#allocation2 + $0x158] sm:$0xff]  ;;  %v7311_v4 = vld [vmem:[#allocation2 + $0x110] sm:$0xff]  ;;  %v7310_v8 = vld [vmem:[#allocation2 + $0x108] sm:$0xff] }
  0x20   :  { %4390 = vmatpush.bf16.msra.mxu0 %v7279_v21  ;;  %v7887_v56 = vld.sshfl [vmem:[#allocation1 + $0x30] sm:$0xff pattern:$0x73625140]  ;;  %v7889_v58 = vld.sshfl [vmem:[#allocation1 + $0x20] sm:$0xff pattern:$0x73625140] }
  0x21   :  { %4403 = vmatpush.bf16.msra.mxu1 %v7287_v22  ;;  %v86_v60 = vld.sshfl [vmem:[#allocation1 + $0x38] sm:$0xff pattern:$0x73625140]  ;;  %v84_v61 = vld.sshfl [vmem:[#allocation1 + $0x28] sm:$0xff pattern:$0x73625140]  ;;  %v227_v20 = vpack.c.bf16 %v7887_v56, %v7887_v56  ;;  %v225_v21 = vpack.c.bf16 %v7889_v58, %v7889_v58 }
  0x22   :  { %4416 = vmatpush.bf16.msra.mxu2 %v7295_v23  ;;  %88 = vst [vmem:[#allocation1 + $0x20] ss:$4 sm:$0xff] %v47_v59  ;;  %v7328_v2 = vld [vmem:[#allocation2 + $0x198] sm:$0xff]  ;;  %v7319_v5 = vld [vmem:[#allocation2 + $0x150] sm:$0xff]  ;;  %v7318_v9 = vld [vmem:[#allocation2 + $0x148] sm:$0xff]  ;;  %v228_v22 = vpack.c.bf16 %v86_v60, %v86_v60  ;;  %v226_v23 = vpack.c.bf16 %v84_v61, %v84_v61 }
  0x23   :  { %4429 = vmatpush.bf16.msra.mxu3 %v7303_v24  ;;  %v7336_v3 = vld [vmem:[#allocation2 + $0x1d8] sm:$0xff]  ;;  %v7327_v6 = vld [vmem:[#allocation2 + $0x190] sm:$0xff]  ;;  %v7326_v10 = vld [vmem:[#allocation2 + $0x188] sm:$0xff] }
  0x24   :  { %4391 = vmatpush.bf16.msra.mxu0 %v7278_v25  ;;  %v7335_v7 = vld [vmem:[#allocation2 + $0x1d0] sm:$0xff]  ;;  %v7334_v11 = vld [vmem:[#allocation2 + $0x1c8] sm:$0xff]  ;;  %v7309_v12 = vld [vmem:[#allocation2 + $0x100] sm:$0xff] }
  0x25   :  { %4404 = vmatpush.bf16.msra.mxu1 %v7286_v26  ;;  %v7317_v13 = vld [vmem:[#allocation2 + $0x140] sm:$0xff]  ;;  %v7348_v16 = vld [vmem:[#allocation2 + $0x238] sm:$0xff]  ;;  %v7347_v24 = vld [vmem:[#allocation2 + $0x230] sm:$0xff] }
  0x26   :  { %4417 = vmatpush.bf16.msra.mxu2 %v7294_v27  ;;  %v7325_v14 = vld [vmem:[#allocation2 + $0x180] sm:$0xff]  ;;  %v7356_v17 = vld [vmem:[#allocation2 + $0x278] sm:$0xff]  ;;  %v7355_v25 = vld [vmem:[#allocation2 + $0x270] sm:$0xff] }
  0x27   :  { %4430 = vmatpush.bf16.msra.mxu3 %v7302_v28  ;;  %v7333_v15 = vld [vmem:[#allocation2 + $0x1c0] sm:$0xff]  ;;  %v7364_v18 = vld [vmem:[#allocation2 + $0x2b8] sm:$0xff]  ;;  %v7363_v26 = vld [vmem:[#allocation2 + $0x2b0] sm:$0xff] }
  0x28   :  { %4392 = vmatpush.bf16.msra.mxu0 %v7277_v29  ;;  %v7372_v19 = vld [vmem:[#allocation2 + $0x2f8] sm:$0xff]  ;;  %v7371_v27 = vld [vmem:[#allocation2 + $0x2f0] sm:$0xff]  ;;  %v7346_v28 = vld [vmem:[#allocation2 + $0x228] sm:$0xff] }
  0x29   :  { %4405 = vmatpush.bf16.msra.mxu1 %v7285_v30  ;;  %v7354_v29 = vld [vmem:[#allocation2 + $0x268] sm:$0xff]  ;;  %v7345_v32 = vld [vmem:[#allocation2 + $0x220] sm:$0xff]  ;;  %v7344_v36 = vld [vmem:[#allocation2 + $0x218] sm:$0xff] }
  0x2a   :  { %4418 = vmatpush.bf16.msra.mxu2 %v7293_v31  ;;  %v7362_v30 = vld [vmem:[#allocation2 + $0x2a8] sm:$0xff]  ;;  %v7361_v34 = vld [vmem:[#allocation2 + $0x2a0] sm:$0xff]  ;;  %v7352_v37 = vld [vmem:[#allocation2 + $0x258] sm:$0xff] }
  0x2b   :  { %4431 = vmatpush.bf16.msra.mxu3 %v7301_v33  ;;  %4393 = vmatmul.bf16.vlgmr.msra.gmra.mxu0 %v221_v44  ;;  %v7370_v31 = vld [vmem:[#allocation2 + $0x2e8] sm:$0xff]  ;;  %v7353_v33 = vld [vmem:[#allocation2 + $0x260] sm:$0xff]  ;;  %v7359_v42 = vld [vmem:[#allocation2 + $0x290] sm:$0xff] }
  0x2c   :  { %4437 = vmatpush.bf16.msrb.mxu0 %v7316_v38  ;;  %4406 = vmatmul.bf16.vlgmr.msra.gmra.mxu1 %v222_v46  ;;  %v7369_v35 = vld [vmem:[#allocation2 + $0x2e0] sm:$0xff]  ;;  %v7360_v38 = vld [vmem:[#allocation2 + $0x298] sm:$0xff]  ;;  %v7342_v44 = vld [vmem:[#allocation2 + $0x208] sm:$0xff] }
  0x2d   :  { %4450 = vmatpush.bf16.msrb.mxu1 %v7324_v39  ;;  %4419 = vmatmul.bf16.vlgmr.msra.gmra.mxu2 %v223_v43  ;;  %v7368_v39 = vld [vmem:[#allocation2 + $0x2d8] sm:$0xff]  ;;  %v7367_v43 = vld [vmem:[#allocation2 + $0x2d0] sm:$0xff]  ;;  %v7358_v46 = vld [vmem:[#allocation2 + $0x288] sm:$0xff] }
  0x2e   :  { %4463 = vmatpush.bf16.msrb.mxu2 %v7332_v40  ;;  %4432 = vmatmul.bf16.vlgmr.msra.gmra.mxu3 %v224_v45  ;;  %v7343_v40 = vld [vmem:[#allocation2 + $0x210] sm:$0xff]  ;;  %v7350_v45 = vld [vmem:[#allocation2 + $0x248] sm:$0xff]  ;;  %v90_v56 = vld.sshfl [vmem:[#allocation1 + $0x8] sm:$0xff pattern:$0x73625140] }
  0x2f   :  { %4476 = vmatpush.bf16.msrb.mxu3 %v7340_v41  ;;  %v7351_v41 = vld [vmem:[#allocation2 + $0x250] sm:$0xff]  ;;  %v7396_v58 = vld [vmem:[#allocation2 + $0x3b8] sm:$0xff] }
  0x30   :  { %4438 = vmatpush.bf16.msrb.mxu0 %v7315_v47  ;;  %v7366_v47 = vld [vmem:[#allocation2 + $0x2c8] sm:$0xff]  ;;  %v7404_v59 = vld [vmem:[#allocation2 + $0x3f8] sm:$0xff] }
  0x31   :  { %4451 = vmatpush.bf16.msrb.mxu1 %v7323_v48  ;;  %v7341_v48 = vld [vmem:[#allocation2 + $0x200] sm:$0xff] }
  0x32   :  { %4464 = vmatpush.bf16.msrb.mxu2 %v7331_v49  ;;  %v7349_v49 = vld [vmem:[#allocation2 + $0x240] sm:$0xff] }
  0x33   :  { %4477 = vmatpush.bf16.msrb.mxu3 %v7339_v50  ;;  %v7357_v50 = vld [vmem:[#allocation2 + $0x280] sm:$0xff] }
  0x34   :  { %4439 = vmatpush.bf16.msrb.mxu0 %v7314_v51  ;;  %v7365_v51 = vld [vmem:[#allocation2 + $0x2c0] sm:$0xff] }
  0x35   :  { %4452 = vmatpush.bf16.msrb.mxu1 %v7322_v52  ;;  %v7380_v52 = vld [vmem:[#allocation2 + $0x338] sm:$0xff] }
  0x36   :  { %4465 = vmatpush.bf16.msrb.mxu2 %v7330_v53  ;;  %v7388_v53 = vld [vmem:[#allocation2 + $0x378] sm:$0xff] }
  0x37   :  { %4478 = vmatpush.bf16.msrb.mxu3 %v7338_v54  ;;  %v89_v54 = vld.sshfl [vmem:[#allocation1] sm:$0xff pattern:$0x73625140] }
  0x38   :  { %4440 = vmatpush.bf16.msrb.mxu0 %v7313_v55  ;;  %v91_v55 = vld.sshfl [vmem:[#allocation1 + $0x10] sm:$0xff pattern:$0x73625140]  ;;  %v229_v60 = vpack.c.bf16 %v89_v54, %v89_v54  ;;  %v7416_v54 = vld [vmem:[#allocation2 + $0x458] sm:$0xff] }
  0x39   :  { %4453 = vmatpush.bf16.msrb.mxu1 %v7321_v57  ;;  %v92_v57 = vld.sshfl [vmem:[#allocation1 + $0x18] sm:$0xff pattern:$0x73625140]  ;;  %v231_v61 = vpack.c.bf16 %v91_v55, %v91_v55  ;;  %v7424_v55 = vld [vmem:[#allocation2 + $0x498] sm:$0xff] }
  0x3a   :  { %4466 = vmatpush.bf16.msrb.mxu2 %v7329_v62  ;;  %v230_v62 = vpack.c.bf16 %v90_v56, %v90_v56  ;;  %v7432_v56 = vld [vmem:[#allocation2 + $0x4d8] sm:$0xff] }
  0x3b   :  { %4479 = vmatpush.bf16.msrb.mxu3 %v7337_v63  ;;  %v232_v63 = vpack.c.bf16 %v92_v57, %v92_v57  ;;  %v7407_v57 = vld [vmem:[#allocation2 + $0x410] sm:$0xff] }
  0x3c   :  { %4441 = vmatpush.bf16.msrb.mxu0 %v7312_v0  ;;  %v7379_v0 = vld [vmem:[#allocation2 + $0x330] sm:$0xff] }
  0x3d   :  { %4454 = vmatpush.bf16.msrb.mxu1 %v7320_v1  ;;  %v7387_v1 = vld [vmem:[#allocation2 + $0x370] sm:$0xff] }
  0x3e   :  { %4467 = vmatpush.bf16.msrb.mxu2 %v7328_v2  ;;  %v7395_v2 = vld [vmem:[#allocation2 + $0x3b0] sm:$0xff] }
  0x3f   :  { %4480 = vmatpush.bf16.msrb.mxu3 %v7336_v3  ;;  %v7403_v3 = vld [vmem:[#allocation2 + $0x3f0] sm:$0xff] }
  0x40   :  { %4442 = vmatpush.bf16.msrb.mxu0 %v7311_v4  ;;  %v7378_v4 = vld [vmem:[#allocation2 + $0x328] sm:$0xff] }
  0x41   :  { %4455 = vmatpush.bf16.msrb.mxu1 %v7319_v5  ;;  %v7386_v5 = vld [vmem:[#allocation2 + $0x368] sm:$0xff] }
  0x42   :  { %4468 = vmatpush.bf16.msrb.mxu2 %v7327_v6  ;;  %v7394_v6 = vld [vmem:[#allocation2 + $0x3a8] sm:$0xff] }
  0x43   :  { %4481 = vmatpush.bf16.msrb.mxu3 %v7335_v7  ;;  %v7402_v7 = vld [vmem:[#allocation2 + $0x3e8] sm:$0xff] }
  0x44   :  { %4443 = vmatpush.bf16.msrb.mxu0 %v7310_v8  ;;  %v7377_v8 = vld [vmem:[#allocation2 + $0x320] sm:$0xff] }
  0x45   :  { %4456 = vmatpush.bf16.msrb.mxu1 %v7318_v9  ;;  %v7385_v9 = vld [vmem:[#allocation2 + $0x360] sm:$0xff] }
  0x46   :  { %4469 = vmatpush.bf16.msrb.mxu2 %v7326_v10  ;;  %v7393_v10 = vld [vmem:[#allocation2 + $0x3a0] sm:$0xff] }
  0x47   :  { %4482 = vmatpush.bf16.msrb.mxu3 %v7334_v11  ;;  %v7401_v11 = vld [vmem:[#allocation2 + $0x3e0] sm:$0xff] }
  0x48   :  { %4444 = vmatpush.bf16.msrb.mxu0 %v7309_v12  ;;  %v7376_v12 = vld [vmem:[#allocation2 + $0x318] sm:$0xff] }
  0x49   :  { %4457 = vmatpush.bf16.msrb.mxu1 %v7317_v13  ;;  %v7384_v13 = vld [vmem:[#allocation2 + $0x358] sm:$0xff] }
  0x4a   :  { %4470 = vmatpush.bf16.msrb.mxu2 %v7325_v14  ;;  %v7392_v14 = vld [vmem:[#allocation2 + $0x398] sm:$0xff] }
  0x4b   :  { %4483 = vmatpush.bf16.msrb.mxu3 %v7333_v15  ;;  %4445 = vmatmul.bf16.vlgmr.msrb.gmra.mxu0 %v225_v21  ;;  %v7400_v15 = vld [vmem:[#allocation2 + $0x3d8] sm:$0xff]  ;;  %v7382_v21 = vld [vmem:[#allocation2 + $0x348] sm:$0xff] }
  0x4c   :  { %4489 = vmatpush.bf16.msra.mxu0 %v7348_v16  ;;  %4458 = vmatmul.bf16.vlgmr.msrb.gmra.mxu1 %v226_v23  ;;  %v7375_v16 = vld [vmem:[#allocation2 + $0x310] sm:$0xff]  ;;  %v7390_v23 = vld [vmem:[#allocation2 + $0x388] sm:$0xff] }
  0x4d   :  { %4502 = vmatpush.bf16.msra.mxu1 %v7356_v17  ;;  %4471 = vmatmul.bf16.vlgmr.msrb.gmra.mxu2 %v227_v20  ;;  %v7383_v17 = vld [vmem:[#allocation2 + $0x350] sm:$0xff]  ;;  %v7374_v20 = vld [vmem:[#allocation2 + $0x308] sm:$0xff] }
  0x4e   :  { %4515 = vmatpush.bf16.msra.mxu2 %v7364_v18  ;;  %4484 = vmatmul.bf16.vlgmr.msrb.gmra.mxu3 %v228_v22  ;;  %v7391_v18 = vld [vmem:[#allocation2 + $0x390] sm:$0xff]  ;;  %v48_v22 = vld [vmem:[%s7967_s0 + $0x20] sm:$0xff] }
  0x4f   :  { %4528 = vmatpush.bf16.msra.mxu3 %v7372_v19  ;;  %v7399_v19 = vld [vmem:[#allocation2 + $0x3d0] sm:$0xff]  ;;  %97 = vst [vmem:[#allocation1] ss:$4 sm:$0xff] %v48_v22  ;;  %v7442_v22 = vld [vmem:[#allocation2 + $0x528] sm:$0xff] }
  0x50   :  { %4490 = vmatpush.bf16.msra.mxu0 %v7347_v24  ;;  %v7398_v24 = vld [vmem:[#allocation2 + $0x3c8] sm:$0xff] }
  0x51   :  { %4503 = vmatpush.bf16.msra.mxu1 %v7355_v25  ;;  %v7373_v25 = vld [vmem:[#allocation2 + $0x300] sm:$0xff] }
  0x52   :  { %4516 = vmatpush.bf16.msra.mxu2 %v7363_v26  ;;  %v7381_v26 = vld [vmem:[#allocation2 + $0x340] sm:$0xff] }
  0x53   :  { %4529 = vmatpush.bf16.msra.mxu3 %v7371_v27  ;;  %v7389_v27 = vld [vmem:[#allocation2 + $0x380] sm:$0xff] }
  0x54   :  { %4491 = vmatpush.bf16.msra.mxu0 %v7346_v28  ;;  %v7397_v28 = vld [vmem:[#allocation2 + $0x3c0] sm:$0xff] }
  0x55   :  { %4504 = vmatpush.bf16.msra.mxu1 %v7354_v29  ;;  %v7412_v29 = vld [vmem:[#allocation2 + $0x438] sm:$0xff] }
  0x56   :  { %4517 = vmatpush.bf16.msra.mxu2 %v7362_v30  ;;  %v7420_v30 = vld [vmem:[#allocation2 + $0x478] sm:$0xff] }
  0x57   :  { %4530 = vmatpush.bf16.msra.mxu3 %v7370_v31  ;;  %v93_v31 = vld.sshfl [vmem:[#allocation1 + $0x20] sm:$0xff pattern:$0x73625140] }
  0x58   :  { %4492 = vmatpush.bf16.msra.mxu0 %v7345_v32  ;;  %v95_v32 = vld.sshfl [vmem:[#allocation1 + $0x30] sm:$0xff pattern:$0x73625140] }
  0x59   :  { %4505 = vmatpush.bf16.msra.mxu1 %v7353_v33  ;;  %v94_v33 = vld.sshfl [vmem:[#allocation1 + $0x28] sm:$0xff pattern:$0x73625140] }
  0x5a   :  { %4518 = vmatpush.bf16.msra.mxu2 %v7361_v34  ;;  %v96_v34 = vld.sshfl [vmem:[#allocation1 + $0x38] sm:$0xff pattern:$0x73625140] }
  0x5b   :  { %4531 = vmatpush.bf16.msra.mxu3 %v7369_v35  ;;  %v7428_v35 = vld [vmem:[#allocation2 + $0x4b8] sm:$0xff] }
  0x5c   :  { %4493 = vmatpush.bf16.msra.mxu0 %v7344_v36  ;;  %v7436_v36 = vld [vmem:[#allocation2 + $0x4f8] sm:$0xff] }
  0x5d   :  { %4506 = vmatpush.bf16.msra.mxu1 %v7352_v37  ;;  %v233_v37 = vpack.c.bf16 %v93_v31, %v93_v31 }
  0x5e   :  { %4519 = vmatpush.bf16.msra.mxu2 %v7360_v38  ;;  %v235_v38 = vpack.c.bf16 %v95_v32, %v95_v32  ;;  %v7457_v32 = vld [vmem:[#allocation2 + $0x5a0] sm:$0xff] }
  0x5f   :  { %4532 = vmatpush.bf16.msra.mxu3 %v7368_v39  ;;  %v234_v39 = vpack.c.bf16 %v94_v33, %v94_v33  ;;  %v7465_v33 = vld [vmem:[#allocation2 + $0x5e0] sm:$0xff] }
  0x60   :  { %4494 = vmatpush.bf16.msra.mxu0 %v7343_v40  ;;  %v236_v40 = vpack.c.bf16 %v96_v34, %v96_v34 }
  0x61   :  { %4507 = vmatpush.bf16.msra.mxu1 %v7351_v41  ;;  %v7411_v41 = vld [vmem:[#allocation2 + $0x430] sm:$0xff] }
  0x62   :  { %4520 = vmatpush.bf16.msra.mxu2 %v7359_v42  ;;  %v7419_v42 = vld [vmem:[#allocation2 + $0x470] sm:$0xff] }
  0x63   :  { %4533 = vmatpush.bf16.msra.mxu3 %v7367_v43  ;;  %v7427_v43 = vld [vmem:[#allocation2 + $0x4b0] sm:$0xff] }
  0x64   :  { %4495 = vmatpush.bf16.msra.mxu0 %v7342_v44  ;;  %v7435_v44 = vld [vmem:[#allocation2 + $0x4f0] sm:$0xff] }
  0x65   :  { %4508 = vmatpush.bf16.msra.mxu1 %v7350_v45  ;;  %v7410_v45 = vld [vmem:[#allocation2 + $0x428] sm:$0xff] }
  0x66   :  { %4521 = vmatpush.bf16.msra.mxu2 %v7358_v46  ;;  %v7418_v46 = vld [vmem:[#allocation2 + $0x468] sm:$0xff] }
  0x67   :  { %4534 = vmatpush.bf16.msra.mxu3 %v7366_v47  ;;  %v7426_v47 = vld [vmem:[#allocation2 + $0x4a8] sm:$0xff] }
  0x68   :  { %4496 = vmatpush.bf16.msra.mxu0 %v7341_v48  ;;  %v7434_v48 = vld [vmem:[#allocation2 + $0x4e8] sm:$0xff] }
  0x69   :  { %4509 = vmatpush.bf16.msra.mxu1 %v7349_v49  ;;  %v7409_v49 = vld [vmem:[#allocation2 + $0x420] sm:$0xff] }
  0x6a   :  { %4522 = vmatpush.bf16.msra.mxu2 %v7357_v50  ;;  %v7417_v50 = vld [vmem:[#allocation2 + $0x460] sm:$0xff] }
  0x6b   :  { %4535 = vmatpush.bf16.msra.mxu3 %v7365_v51  ;;  %4497 = vmatmul.bf16.vlgmr.msra.gmra.mxu0 %v229_v60  ;;  %v7425_v51 = vld [vmem:[#allocation2 + $0x4a0] sm:$0xff]  ;;  %v7431_v60 = vld [vmem:[#allocation2 + $0x4d0] sm:$0xff] }
  0x6c   :  { %4541 = vmatpush.bf16.msrb.mxu0 %v7380_v52  ;;  %4510 = vmatmul.bf16.vlgmr.msra.gmra.mxu1 %v230_v62  ;;  %v7433_v52 = vld [vmem:[#allocation2 + $0x4e0] sm:$0xff]  ;;  %v7414_v62 = vld [vmem:[#allocation2 + $0x448] sm:$0xff] }
  0x6d   :  { %4554 = vmatpush.bf16.msrb.mxu1 %v7388_v53  ;;  %4523 = vmatmul.bf16.vlgmr.msra.gmra.mxu2 %v231_v61  ;;  %v7408_v53 = vld [vmem:[#allocation2 + $0x418] sm:$0xff]  ;;  %v7406_v61 = vld [vmem:[#allocation2 + $0x408] sm:$0xff] }
  0x6e   :  { %4567 = vmatpush.bf16.msrb.mxu2 %v7396_v58  ;;  %4536 = vmatmul.bf16.vlgmr.msra.gmra.mxu3 %v232_v63  ;;  %v7415_v58 = vld [vmem:[#allocation2 + $0x450] sm:$0xff]  ;;  %v49_v63 = vld [vmem:[%s7967_s0 + $0x28] sm:$0xff] }
  0x6f   :  { %4580 = vmatpush.bf16.msrb.mxu3 %v7404_v59  ;;  %v7423_v59 = vld [vmem:[#allocation2 + $0x490] sm:$0xff]  ;;  %98 = vst [vmem:[#allocation1 + $0x20] ss:$4 sm:$0xff] %v49_v63 }
  0x70   :  { %4542 = vmatpush.bf16.msrb.mxu0 %v7379_v0  ;;  %v7422_v0 = vld [vmem:[#allocation2 + $0x488] sm:$0xff] }
  0x71   :  { %4555 = vmatpush.bf16.msrb.mxu1 %v7387_v1  ;;  %v7430_v1 = vld [vmem:[#allocation2 + $0x4c8] sm:$0xff] }
  0x72   :  { %4568 = vmatpush.bf16.msrb.mxu2 %v7395_v2  ;;  %v7405_v2 = vld [vmem:[#allocation2 + $0x400] sm:$0xff] }
  0x73   :  { %4581 = vmatpush.bf16.msrb.mxu3 %v7403_v3  ;;  %v7413_v3 = vld [vmem:[#allocation2 + $0x440] sm:$0xff] }
  0x74   :  { %4543 = vmatpush.bf16.msrb.mxu0 %v7378_v4  ;;  %v7421_v4 = vld [vmem:[#allocation2 + $0x480] sm:$0xff] }
  0x75   :  { %4556 = vmatpush.bf16.msrb.mxu1 %v7386_v5  ;;  %v7429_v5 = vld [vmem:[#allocation2 + $0x4c0] sm:$0xff] }
  0x76   :  { %4569 = vmatpush.bf16.msrb.mxu2 %v7394_v6  ;;  %v7444_v6 = vld [vmem:[#allocation2 + $0x538] sm:$0xff]  ;;  %v105_v63 = vld.sshfl [vmem:[#allocation1 + $0x30] sm:$0xff pattern:$0x73625140] }
  0x77   :  { %4582 = vmatpush.bf16.msrb.mxu3 %v7402_v7  ;;  %v7452_v7 = vld [vmem:[#allocation2 + $0x578] sm:$0xff] }
  0x78   :  { %4544 = vmatpush.bf16.msrb.mxu0 %v7377_v8  ;;  %v99_v8 = vld.sshfl [vmem:[#allocation1] sm:$0xff pattern:$0x73625140] }
  0x79   :  { %4557 = vmatpush.bf16.msrb.mxu1 %v7385_v9  ;;  %v101_v9 = vld.sshfl [vmem:[#allocation1 + $0x10] sm:$0xff pattern:$0x73625140] }
  0x7a   :  { %4570 = vmatpush.bf16.msrb.mxu2 %v7393_v10  ;;  %v100_v10 = vld.sshfl [vmem:[#allocation1 + $0x8] sm:$0xff pattern:$0x73625140] }
  0x7b   :  { %4583 = vmatpush.bf16.msrb.mxu3 %v7401_v11  ;;  %v102_v11 = vld.sshfl [vmem:[#allocation1 + $0x18] sm:$0xff pattern:$0x73625140] }
  0x7c   :  { %4545 = vmatpush.bf16.msrb.mxu0 %v7376_v12  ;;  %v7460_v12 = vld [vmem:[#allocation2 + $0x5b8] sm:$0xff] }
  0x7d   :  { %4558 = vmatpush.bf16.msrb.mxu1 %v7384_v13  ;;  %v7468_v13 = vld [vmem:[#allocation2 + $0x5f8] sm:$0xff] }
  0x7e   :  { %4571 = vmatpush.bf16.msrb.mxu2 %v7392_v14  ;;  %v237_v14 = vpack.c.bf16 %v99_v8, %v99_v8  ;;  %v7475_v8 = vld [vmem:[#allocation2 + $0x630] sm:$0xff] }
  0x7f   :  { %4584 = vmatpush.bf16.msrb.mxu3 %v7400_v15  ;;  %v239_v15 = vpack.c.bf16 %v101_v9, %v101_v9  ;;  %v7483_v9 = vld [vmem:[#allocation2 + $0x670] sm:$0xff] }
  0x80   :  { %4546 = vmatpush.bf16.msrb.mxu0 %v7375_v16  ;;  %v238_v16 = vpack.c.bf16 %v100_v10, %v100_v10  ;;  %v7491_v10 = vld [vmem:[#allocation2 + $0x6b0] sm:$0xff] }
  0x81   :  { %4559 = vmatpush.bf16.msrb.mxu1 %v7383_v17  ;;  %v240_v17 = vpack.c.bf16 %v102_v11, %v102_v11  ;;  %v7499_v11 = vld [vmem:[#allocation2 + $0x6f0] sm:$0xff] }
  0x82   :  { %4572 = vmatpush.bf16.msrb.mxu2 %v7391_v18  ;;  %v7443_v18 = vld [vmem:[#allocation2 + $0x530] sm:$0xff] }
  0x83   :  { %4585 = vmatpush.bf16.msrb.mxu3 %v7399_v19  ;;  %v7451_v19 = vld [vmem:[#allocation2 + $0x570] sm:$0xff] }
  0x84   :  { %4547 = vmatpush.bf16.msrb.mxu0 %v7374_v20  ;;  %v7459_v20 = vld [vmem:[#allocation2 + $0x5b0] sm:$0xff] }
  0x85   :  { %4560 = vmatpush.bf16.msrb.mxu1 %v7382_v21  ;;  %v7467_v21 = vld [vmem:[#allocation2 + $0x5f0] sm:$0xff] }
  0x86   :  { %4573 = vmatpush.bf16.msrb.mxu2 %v7390_v23  ;;  %v7450_v23 = vld [vmem:[#allocation2 + $0x568] sm:$0xff] }
  0x87   :  { %4586 = vmatpush.bf16.msrb.mxu3 %v7398_v24  ;;  %v7793_v24 = vld [vmem:[#allocation4] ss:$0 sm:$0xff] }
  0x88   :  { %4548 = vmatpush.bf16.msrb.mxu0 %v7373_v25  ;;  %v7458_v25 = vld [vmem:[#allocation2 + $0x5a8] sm:$0xff] }
  0x89   :  { %4561 = vmatpush.bf16.msrb.mxu1 %v7381_v26  ;;  %v7466_v26 = vld [vmem:[#allocation2 + $0x5e8] sm:$0xff] }
  0x8a   :  { %4574 = vmatpush.bf16.msrb.mxu2 %v7389_v27 }
  0x8b   :  { %4587 = vmatpush.bf16.msrb.mxu3 %v7397_v28  ;;  %4549 = vmatmul.bf16.vlgmr.msrb.gmra.mxu0 %v233_v37  ;;  %v7441_v28 = vld [vmem:[#allocation2 + $0x520] sm:$0xff]  ;;  %v7456_v37 = vld [vmem:[#allocation2 + $0x598] sm:$0xff] }
  0x8c   :  { %4593 = vmatpush.bf16.msra.mxu0 %v7412_v29  ;;  %4562 = vmatmul.bf16.vlgmr.msrb.gmra.mxu1 %v234_v39  ;;  %v7449_v29 = vld [vmem:[#allocation2 + $0x560] sm:$0xff] }
  0x8d   :  { %4606 = vmatpush.bf16.msra.mxu1 %v7420_v30  ;;  %4575 = vmatmul.bf16.vlgmr.msrb.gmra.mxu2 %v235_v38  ;;  %v7464_v38 = vld [vmem:[#allocation2 + $0x5d8] sm:$0xff] }
  0x8e   :  { %4619 = vmatpush.bf16.msra.mxu2 %v7428_v35  ;;  %4588 = vmatmul.bf16.vlgmr.msrb.gmra.mxu3 %v236_v40  ;;  %v7440_v35 = vld [vmem:[#allocation2 + $0x518] sm:$0xff] }
  0x8f   :  { %4632 = vmatpush.bf16.msra.mxu3 %v7436_v36  ;;  %v7448_v36 = vld [vmem:[#allocation2 + $0x558] sm:$0xff] }
  0x90   :  { %4594 = vmatpush.bf16.msra.mxu0 %v7411_v41 }
  0x91   :  { %4607 = vmatpush.bf16.msra.mxu1 %v7419_v42 }
  0x92   :  { %4620 = vmatpush.bf16.msra.mxu2 %v7427_v43  ;;  %v7439_v43 = vld [vmem:[#allocation2 + $0x510] sm:$0xff] }
  0x93   :  { %4633 = vmatpush.bf16.msra.mxu3 %v7435_v44  ;;  %v7447_v44 = vld [vmem:[#allocation2 + $0x550] sm:$0xff] }
  0x94   :  { %4595 = vmatpush.bf16.msra.mxu0 %v7410_v45 }
  0x95   :  { %4608 = vmatpush.bf16.msra.mxu1 %v7418_v46 }
  0x96   :  { %4621 = vmatpush.bf16.msra.mxu2 %v7426_v47  ;;  %v7455_v47 = vld [vmem:[#allocation2 + $0x590] sm:$0xff] }
  0x97   :  { %4634 = vmatpush.bf16.msra.mxu3 %v7434_v48  ;;  %v7463_v48 = vld [vmem:[#allocation2 + $0x5d0] sm:$0xff] }
  0x98   :  { %4596 = vmatpush.bf16.msra.mxu0 %v7409_v49  ;;  %v7438_v49 = vld [vmem:[#allocation2 + $0x508] sm:$0xff] }
  0x99   :  { %4609 = vmatpush.bf16.msra.mxu1 %v7417_v50  ;;  %v7446_v50 = vld [vmem:[#allocation2 + $0x548] sm:$0xff] }
  0x9a   :  { %4622 = vmatpush.bf16.msra.mxu2 %v7425_v51  ;;  %v50_v51 = vld [vmem:[%s7967_s0 + $0x30] sm:$0xff] }
  0x9b   :  { %4635 = vmatpush.bf16.msra.mxu3 %v7433_v52  ;;  %v7454_v52 = vld [vmem:[#allocation2 + $0x588] sm:$0xff]  ;;  %107 = vst [vmem:[#allocation1] ss:$4 sm:$0xff] %v50_v51 }
  0x9c   :  { %4597 = vmatpush.bf16.msra.mxu0 %v7408_v53  ;;  %v7462_v53 = vld [vmem:[#allocation2 + $0x5c8] sm:$0xff] }
  0x9d   :  { %4610 = vmatpush.bf16.msra.mxu1 %v7416_v54 }
  0x9e   :  { %4623 = vmatpush.bf16.msra.mxu2 %v7424_v55 }
  0x9f   :  { %4636 = vmatpush.bf16.msra.mxu3 %v7432_v56  ;;  %v7437_v56 = vld [vmem:[#allocation2 + $0x500] sm:$0xff] }
  0xa0   :  { %4598 = vmatpush.bf16.msra.mxu0 %v7407_v57  ;;  %v7445_v57 = vld [vmem:[#allocation2 + $0x540] sm:$0xff] }
  0xa1   :  { %4611 = vmatpush.bf16.msra.mxu1 %v7415_v58  ;;  %v7453_v58 = vld [vmem:[#allocation2 + $0x580] sm:$0xff] }
  0xa2   :  { %4624 = vmatpush.bf16.msra.mxu2 %v7423_v59  ;;  %v7461_v59 = vld [vmem:[#allocation2 + $0x5c0] sm:$0xff]  ;;  %v109_v51 = vld.sshfl [vmem:[#allocation1] sm:$0xff pattern:$0x73625140] }
  0xa3   :  { %4637 = vmatpush.bf16.msra.mxu3 %v7431_v60  ;;  %v7476_v60 = vld [vmem:[#allocation2 + $0x638] sm:$0xff] }
  0xa4   :  { %4599 = vmatpush.bf16.msra.mxu0 %v7406_v61  ;;  %v7484_v61 = vld [vmem:[#allocation2 + $0x678] sm:$0xff] }
  0xa5   :  { %4612 = vmatpush.bf16.msra.mxu1 %v7414_v62  ;;  %v103_v62 = vld.sshfl [vmem:[#allocation1 + $0x20] sm:$0xff pattern:$0x73625140] }
  0xa6   :  { %4625 = vmatpush.bf16.msra.mxu2 %v7422_v0  ;;  %v104_v0 = vld.sshfl [vmem:[#allocation1 + $0x28] sm:$0xff pattern:$0x73625140] }
  0xa7   :  { %4638 = vmatpush.bf16.msra.mxu3 %v7430_v1  ;;  %v106_v1 = vld.sshfl [vmem:[#allocation1 + $0x38] sm:$0xff pattern:$0x73625140] }
  0xa8   :  { %4600 = vmatpush.bf16.msra.mxu0 %v7405_v2  ;;  %v4394_v27 = vpop.f32.mrf.mxu0  ;;  %v7492_v2 = vld [vmem:[#allocation2 + $0x6b8] sm:$0xff] }
  0xa9   :  { %4613 = vmatpush.bf16.msra.mxu1 %v7413_v3  ;;  %v4395_v30 = vadd.f32 %v7793_v24, %v4394_v27  ;;  %v4407_v31 = vpop.f32.mrf.mxu1  ;;  %v7500_v3 = vld [vmem:[#allocation2 + $0x6f8] sm:$0xff] }
  0xaa   :  { %4626 = vmatpush.bf16.msra.mxu2 %v7421_v4  ;;  %v241_v4 = vpack.c.bf16 %v103_v62, %v103_v62  ;;  %v7472_v24 = vld [vmem:[#allocation2 + $0x618] sm:$0xff]  ;;  %v7515_v62 = vld [vmem:[#allocation2 + $0x770] sm:$0xff] }
  0xab   :  { %4639 = vmatpush.bf16.msra.mxu3 %v7429_v5  ;;  %4601 = vmatmul.bf16.vlgmr.msra.gmra.mxu0 %v237_v14  ;;  %v4408_v34 = vadd.f32 %v4407_v31, %v4395_v30  ;;  %v243_v5 = vpack.c.bf16 %v105_v63, %v105_v63  ;;  %v7490_v14 = vld [vmem:[#allocation2 + $0x6a8] sm:$0xff]  ;;  %v7496_v27 = vld [vmem:[#allocation2 + $0x6d8] sm:$0xff]  ;;  %v7523_v63 = vld [vmem:[#allocation2 + $0x7b0] sm:$0xff] }
  0xac   :  { %4645 = vmatpush.bf16.msrb.mxu0 %v7444_v6  ;;  %4614 = vmatmul.bf16.vlgmr.msra.gmra.mxu1 %v238_v16  ;;  %v242_v6 = vpack.c.bf16 %v104_v0, %v104_v0  ;;  %v7531_v0 = vld [vmem:[#allocation2 + $0x7f0] sm:$0xff] }
  0xad   :  { %4658 = vmatpush.bf16.msrb.mxu1 %v7452_v7  ;;  %4627 = vmatmul.bf16.vlgmr.msra.gmra.mxu2 %v239_v15  ;;  %v244_v7 = vpack.c.bf16 %v106_v1, %v106_v1  ;;  %v7498_v15 = vld [vmem:[#allocation2 + $0x6e8] sm:$0xff] }
  0xae   :  { %4671 = vmatpush.bf16.msrb.mxu2 %v7460_v12  ;;  %4640 = vmatmul.bf16.vlgmr.msra.gmra.mxu3 %v240_v17  ;;  %v7474_v12 = vld [vmem:[#allocation2 + $0x628] sm:$0xff]  ;;  %v7473_v17 = vld [vmem:[#allocation2 + $0x620] sm:$0xff] }
  0xaf   :  { %4684 = vmatpush.bf16.msrb.mxu3 %v7468_v13  ;;  %v7482_v13 = vld [vmem:[#allocation2 + $0x668] sm:$0xff] }
  0xb0   :  { %4646 = vmatpush.bf16.msrb.mxu0 %v7443_v18  ;;  %v4420_v39 = vpop.f32.mrf.mxu2  ;;  %v4396_v42 = vpop.f32.mrf.mxu0  ;;  %v7481_v18 = vld [vmem:[#allocation2 + $0x660] sm:$0xff]  ;;  %v7506_v1 = vld [vmem:[#allocation2 + $0x728] sm:$0xff] }
  0xb1   :  { %4659 = vmatpush.bf16.msrb.mxu1 %v7451_v19  ;;  %v4421_v40 = vadd.f32 %v4420_v39, %v4408_v34  ;;  %v4433_v41 = vpop.f32.mrf.mxu3  ;;  %v4409_v46 = vpop.f32.mrf.mxu1  ;;  %v7478_v39 = vld [vmem:[#allocation2 + $0x648] sm:$0xff] }
  0xb2   :  { %4672 = vmatpush.bf16.msrb.mxu2 %v7459_v20  ;;  %v7494_v42 = vld [vmem:[#allocation2 + $0x6c8] sm:$0xff]  ;;  %v7477_v46 = vld [vmem:[#allocation2 + $0x640] sm:$0xff] }
  0xb3   :  { %4685 = vmatpush.bf16.msrb.mxu3 %v7467_v21  ;;  %v7904_v45 = vadd.f32 %v4433_v41, %v4421_v40  ;;  %v7489_v21 = vld [vmem:[#allocation2 + $0x6a0] sm:$0xff]  ;;  %v51_v40 = vld [vmem:[%s7967_s0 + $0x38] sm:$0xff]  ;;  %v7486_v41 = vld [vmem:[#allocation2 + $0x688] sm:$0xff] }
  0xb4   :  { %4647 = vmatpush.bf16.msrb.mxu0 %v7442_v22  ;;  %v7497_v22 = vld [vmem:[#allocation2 + $0x6e0] sm:$0xff]  ;;  %108 = vst [vmem:[#allocation1 + $0x20] ss:$4 sm:$0xff] %v51_v40 }
  0xb5   :  { %4660 = vmatpush.bf16.msrb.mxu1 %v7450_v23 }
  0xb6   :  { %4673 = vmatpush.bf16.msrb.mxu2 %v7458_v25  ;;  %v7480_v25 = vld [vmem:[#allocation2 + $0x658] sm:$0xff] }
  0xb7   :  { %4686 = vmatpush.bf16.msrb.mxu3 %v7466_v26  ;;  %v7488_v26 = vld [vmem:[#allocation2 + $0x698] sm:$0xff] }
  0xb8   :  { %4648 = vmatpush.bf16.msrb.mxu0 %v7441_v28  ;;  %v4422_v54 = vpop.f32.mrf.mxu2 }
  0xb9   :  { %4661 = vmatpush.bf16.msrb.mxu1 %v7449_v29  ;;  %v4435_v55 = vpop.f32.mrf.mxu3  ;;  %v112_v54 = vld.sshfl [vmem:[#allocation1 + $0x18] sm:$0xff pattern:$0x73625140] }
  0xba   :  { %4674 = vmatpush.bf16.msrb.mxu2 %v7457_v32  ;;  %v7471_v32 = vld [vmem:[#allocation2 + $0x610] sm:$0xff]  ;;  %v7524_v55 = vld [vmem:[#allocation2 + $0x7b8] sm:$0xff] }
  0xbb   :  { %4687 = vmatpush.bf16.msrb.mxu3 %v7465_v33  ;;  %v7479_v33 = vld [vmem:[#allocation2 + $0x650] sm:$0xff]  ;;  %v113_v40 = vld.sshfl [vmem:[#allocation1 + $0x20] sm:$0xff pattern:$0x73625140] }
  0xbc   :  { %4649 = vmatpush.bf16.msrb.mxu0 %v7440_v35 }
  0xbd   :  { %4662 = vmatpush.bf16.msrb.mxu1 %v7448_v36  ;;  %v7487_v36 = vld [vmem:[#allocation2 + $0x690] sm:$0xff] }
  0xbe   :  { %4675 = vmatpush.bf16.msrb.mxu2 %v7456_v37  ;;  %v7495_v37 = vld [vmem:[#allocation2 + $0x6d0] sm:$0xff] }
  0xbf   :  { %4688 = vmatpush.bf16.msrb.mxu3 %v7464_v38  ;;  %v7470_v38 = vld [vmem:[#allocation2 + $0x608] sm:$0xff] }
  0xc0   :  { %4650 = vmatpush.bf16.msrb.mxu0 %v7439_v43 }
  0xc1   :  { %4663 = vmatpush.bf16.msrb.mxu1 %v7447_v44 }
  0xc2   :  { %4676 = vmatpush.bf16.msrb.mxu2 %v7455_v47  ;;  %v7485_v47 = vld [vmem:[#allocation2 + $0x680] sm:$0xff] }
  0xc3   :  { %4689 = vmatpush.bf16.msrb.mxu3 %v7463_v48  ;;  %v7493_v48 = vld [vmem:[#allocation2 + $0x6c0] sm:$0xff] }
  0xc4   :  { %4651 = vmatpush.bf16.msrb.mxu0 %v7438_v49  ;;  %v7508_v49 = vld [vmem:[#allocation2 + $0x738] sm:$0xff] }
  0xc5   :  { %4664 = vmatpush.bf16.msrb.mxu1 %v7446_v50  ;;  %v7516_v50 = vld [vmem:[#allocation2 + $0x778] sm:$0xff] }
  0xc6   :  { %4677 = vmatpush.bf16.msrb.mxu2 %v7454_v52  ;;  %v111_v52 = vld.sshfl [vmem:[#allocation1 + $0x10] sm:$0xff pattern:$0x73625140] }
  0xc7   :  { %4690 = vmatpush.bf16.msrb.mxu3 %v7462_v53  ;;  %v110_v53 = vld.sshfl [vmem:[#allocation1 + $0x8] sm:$0xff pattern:$0x73625140] }
  0xc8   :  { %4652 = vmatpush.bf16.msrb.mxu0 %v7437_v56  ;;  %v4446_v16 = vpop.f32.mrf.mxu0  ;;  %v7532_v56 = vld [vmem:[#allocation2 + $0x7f8] sm:$0xff] }
  0xc9   :  { %4665 = vmatpush.bf16.msrb.mxu1 %v7445_v57  ;;  %v4447_v19 = vadd.f32 %v4446_v16, %v7904_v45  ;;  %v4459_v20 = vpop.f32.mrf.mxu1  ;;  %v7469_v45 = vld [vmem:[#allocation2 + $0x600] sm:$0xff]  ;;  %v245_v57 = vpack.c.bf16 %v109_v51, %v109_v51  ;;  %v7528_v16 = vld [vmem:[#allocation2 + $0x7d8] sm:$0xff]  ;;  %v7547_v51 = vld [vmem:[#allocation2 + $0x870] sm:$0xff] }
  0xca   :  { %4678 = vmatpush.bf16.msrb.mxu2 %v7453_v58  ;;  %v247_v58 = vpack.c.bf16 %v111_v52, %v111_v52  ;;  %v7555_v52 = vld [vmem:[#allocation2 + $0x8b0] sm:$0xff] }
  0xcb   :  { %4691 = vmatpush.bf16.msrb.mxu3 %v7461_v59  ;;  %4653 = vmatmul.bf16.vlgmr.msrb.gmra.mxu0 %v241_v4  ;;  %v4460_v23 = vadd.f32 %v4459_v20, %v4447_v19  ;;  %v246_v59 = vpack.c.bf16 %v110_v53, %v110_v53  ;;  %v7530_v4 = vld [vmem:[#allocation2 + $0x7e8] sm:$0xff]  ;;  %v7563_v53 = vld [vmem:[#allocation2 + $0x8f0] sm:$0xff] }
  0xcc   :  { %4697 = vmatpush.bf16.msra.mxu0 %v7476_v60  ;;  %4666 = vmatmul.bf16.vlgmr.msrb.gmra.mxu1 %v242_v6  ;;  %v248_v60 = vpack.c.bf16 %v112_v54, %v112_v54  ;;  %v7538_v54 = vld [vmem:[#allocation2 + $0x828] sm:$0xff] }
  0xcd   :  { %4710 = vmatpush.bf16.msra.mxu1 %v7484_v61  ;;  %4679 = vmatmul.bf16.vlgmr.msrb.gmra.mxu2 %v243_v5  ;;  %v7507_v61 = vld [vmem:[#allocation2 + $0x730] sm:$0xff] }
  0xce   :  { %4723 = vmatpush.bf16.msra.mxu2 %v7492_v2  ;;  %4692 = vmatmul.bf16.vlgmr.msrb.gmra.mxu3 %v244_v7  ;;  %v7514_v2 = vld [vmem:[#allocation2 + $0x768] sm:$0xff]  ;;  %v7505_v7 = vld [vmem:[#allocation2 + $0x720] sm:$0xff] }
  0xcf   :  { %4736 = vmatpush.bf16.msra.mxu3 %v7500_v3  ;;  %v7522_v3 = vld [vmem:[#allocation2 + $0x7a8] sm:$0xff] }
  0xd0   :  { %4698 = vmatpush.bf16.msra.mxu0 %v7475_v8  ;;  %v4472_v28 = vpop.f32.mrf.mxu2  ;;  %v4448_v31 = vpop.f32.mrf.mxu0  ;;  %v7513_v8 = vld [vmem:[#allocation2 + $0x760] sm:$0xff] }
  0xd1   :  { %4711 = vmatpush.bf16.msra.mxu1 %v7483_v9  ;;  %v4473_v29 = vadd.f32 %v4472_v28, %v4460_v23  ;;  %v4485_v30 = vpop.f32.mrf.mxu3  ;;  %v4461_v35 = vpop.f32.mrf.mxu1  ;;  %v7511_v23 = vld [vmem:[#allocation2 + $0x750] sm:$0xff]  ;;  %v7510_v28 = vld [vmem:[#allocation2 + $0x748] sm:$0xff] }
  0xd2   :  { %4724 = vmatpush.bf16.msra.mxu2 %v7491_v10  ;;  %v7521_v10 = vld [vmem:[#allocation2 + $0x7a0] sm:$0xff]  ;;  %v7526_v31 = vld [vmem:[#allocation2 + $0x7c8] sm:$0xff] }
  0xd3   :  { %4737 = vmatpush.bf16.msra.mxu3 %v7499_v11  ;;  %v7910_v34 = vadd.f32 %v4485_v30, %v4473_v29  ;;  %v7529_v11 = vld [vmem:[#allocation2 + $0x7e0] sm:$0xff]  ;;  %v52_v29 = vld [vmem:[%s7967_s0 + $0x40] sm:$0xff]  ;;  %v7518_v30 = vld [vmem:[#allocation2 + $0x788] sm:$0xff] }
  0xd4   :  { %4699 = vmatpush.bf16.msra.mxu0 %v7474_v12  ;;  %117 = vst [vmem:[#allocation1] ss:$4 sm:$0xff] %v52_v29  ;;  %v7509_v35 = vld [vmem:[#allocation2 + $0x740] sm:$0xff] }
  0xd5   :  { %4712 = vmatpush.bf16.msra.mxu1 %v7482_v13  ;;  %v7504_v13 = vld [vmem:[#allocation2 + $0x718] sm:$0xff] }
  0xd6   :  { %4725 = vmatpush.bf16.msra.mxu2 %v7490_v14  ;;  %v7512_v14 = vld [vmem:[#allocation2 + $0x758] sm:$0xff] }
  0xd7   :  { %4738 = vmatpush.bf16.msra.mxu3 %v7498_v15  ;;  %v7520_v15 = vld [vmem:[#allocation2 + $0x798] sm:$0xff] }
  0xd8   :  { %4700 = vmatpush.bf16.msra.mxu0 %v7473_v17  ;;  %v4474_v43 = vpop.f32.mrf.mxu2 }
  0xd9   :  { %4713 = vmatpush.bf16.msra.mxu1 %v7481_v18  ;;  %v4487_v44 = vpop.f32.mrf.mxu3  ;;  %v116_v43 = vld.sshfl [vmem:[#allocation1 + $0x38] sm:$0xff pattern:$0x73625140] }
  0xda   :  { %4726 = vmatpush.bf16.msra.mxu2 %v7489_v21  ;;  %v7556_v44 = vld [vmem:[#allocation2 + $0x8b8] sm:$0xff] }
  0xdb   :  { %4739 = vmatpush.bf16.msra.mxu3 %v7497_v22  ;;  %v7503_v22 = vld [vmem:[#allocation2 + $0x710] sm:$0xff]  ;;  %v119_v29 = vld.sshfl [vmem:[#allocation1] sm:$0xff pattern:$0x73625140] }
  0xdc   :  { %4701 = vmatpush.bf16.msra.mxu0 %v7472_v24 }
  0xdd   :  { %4714 = vmatpush.bf16.msra.mxu1 %v7480_v25  ;;  %v7519_v25 = vld [vmem:[#allocation2 + $0x790] sm:$0xff] }
  0xde   :  { %4727 = vmatpush.bf16.msra.mxu2 %v7488_v26  ;;  %v7527_v26 = vld [vmem:[#allocation2 + $0x7d0] sm:$0xff] }
  0xdf   :  { %4740 = vmatpush.bf16.msra.mxu3 %v7496_v27  ;;  %v7502_v27 = vld [vmem:[#allocation2 + $0x708] sm:$0xff] }
  0xe0   :  { %4702 = vmatpush.bf16.msra.mxu0 %v7471_v32 }
  0xe1   :  { %4715 = vmatpush.bf16.msra.mxu1 %v7479_v33 }
  0xe2   :  { %4728 = vmatpush.bf16.msra.mxu2 %v7487_v36  ;;  %v7517_v36 = vld [vmem:[#allocation2 + $0x780] sm:$0xff] }
  0xe3   :  { %4741 = vmatpush.bf16.msra.mxu3 %v7495_v37  ;;  %v7525_v37 = vld [vmem:[#allocation2 + $0x7c0] sm:$0xff] }
  0xe4   :  { %4703 = vmatpush.bf16.msra.mxu0 %v7470_v38  ;;  %v7540_v38 = vld [vmem:[#allocation2 + $0x838] sm:$0xff] }
  0xe5   :  { %4716 = vmatpush.bf16.msra.mxu1 %v7478_v39  ;;  %v7548_v39 = vld [vmem:[#allocation2 + $0x878] sm:$0xff] }
  0xe6   :  { %4729 = vmatpush.bf16.msra.mxu2 %v7486_v41  ;;  %v115_v41 = vld.sshfl [vmem:[#allocation1 + $0x30] sm:$0xff pattern:$0x73625140] }
  0xe7   :  { %4742 = vmatpush.bf16.msra.mxu3 %v7494_v42  ;;  %v114_v42 = vld.sshfl [vmem:[#allocation1 + $0x28] sm:$0xff pattern:$0x73625140] }
  0xe8   :  { %4704 = vmatpush.bf16.msra.mxu0 %v7469_v45  ;;  %v4498_v5 = vpop.f32.mrf.mxu0  ;;  %v7564_v45 = vld [vmem:[#allocation2 + $0x8f8] sm:$0xff] }
  0xe9   :  { %4717 = vmatpush.bf16.msra.mxu1 %v7477_v46  ;;  %v4499_v6 = vadd.f32 %v4498_v5, %v7910_v34  ;;  %v4511_v9 = vpop.f32.mrf.mxu1  ;;  %v7501_v34 = vld [vmem:[#allocation2 + $0x700] sm:$0xff]  ;;  %v249_v46 = vpack.c.bf16 %v113_v40, %v113_v40  ;;  %v7560_v5 = vld [vmem:[#allocation2 + $0x8d8] sm:$0xff]  ;;  %v7579_v40 = vld [vmem:[#allocation2 + $0x970] sm:$0xff] }
  0xea   :  { %4730 = vmatpush.bf16.msra.mxu2 %v7485_v47  ;;  %v251_v47 = vpack.c.bf16 %v115_v41, %v115_v41  ;;  %v7587_v41 = vld [vmem:[#allocation2 + $0x9b0] sm:$0xff] }
  0xeb   :  { %4743 = vmatpush.bf16.msra.mxu3 %v7493_v48  ;;  %4705 = vmatmul.bf16.vlgmr.msra.gmra.mxu0 %v245_v57  ;;  %v4512_v12 = vadd.f32 %v4511_v9, %v4499_v6  ;;  %v250_v48 = vpack.c.bf16 %v114_v42, %v114_v42  ;;  %v7562_v57 = vld [vmem:[#allocation2 + $0x8e8] sm:$0xff]  ;;  %v7595_v42 = vld [vmem:[#allocation2 + $0x9f0] sm:$0xff] }
  0xec   :  { %4749 = vmatpush.bf16.msrb.mxu0 %v7508_v49  ;;  %4718 = vmatmul.bf16.vlgmr.msra.gmra.mxu1 %v246_v59  ;;  %v252_v49 = vpack.c.bf16 %v116_v43, %v116_v43  ;;  %v7570_v43 = vld [vmem:[#allocation2 + $0x928] sm:$0xff] }
  0xed   :  { %4762 = vmatpush.bf16.msrb.mxu1 %v7516_v50  ;;  %4731 = vmatmul.bf16.vlgmr.msra.gmra.mxu2 %v247_v58  ;;  %v7539_v50 = vld [vmem:[#allocation2 + $0x830] sm:$0xff] }
  0xee   :  { %4775 = vmatpush.bf16.msrb.mxu2 %v7524_v55  ;;  %4744 = vmatmul.bf16.vlgmr.msra.gmra.mxu3 %v248_v60  ;;  %v7546_v55 = vld [vmem:[#allocation2 + $0x868] sm:$0xff]  ;;  %v7537_v60 = vld [vmem:[#allocation2 + $0x820] sm:$0xff] }
  0xef   :  { %4788 = vmatpush.bf16.msrb.mxu3 %v7532_v56  ;;  %v7554_v56 = vld [vmem:[#allocation2 + $0x8a8] sm:$0xff] }
  0xf0   :  { %4750 = vmatpush.bf16.msrb.mxu0 %v7507_v61  ;;  %v4524_v17 = vpop.f32.mrf.mxu2  ;;  %v4500_v20 = vpop.f32.mrf.mxu0  ;;  %v7545_v61 = vld [vmem:[#allocation2 + $0x860] sm:$0xff] }
  0xf1   :  { %4763 = vmatpush.bf16.msrb.mxu1 %v7515_v62  ;;  %v4525_v18 = vadd.f32 %v4524_v17, %v4512_v12  ;;  %v4537_v19 = vpop.f32.mrf.mxu3  ;;  %v4513_v24 = vpop.f32.mrf.mxu1  ;;  %v7543_v12 = vld [vmem:[#allocation2 + $0x850] sm:$0xff]  ;;  %v7542_v17 = vld [vmem:[#allocation2 + $0x848] sm:$0xff] }
  0xf2   :  { %4776 = vmatpush.bf16.msrb.mxu2 %v7523_v63  ;;  %v7553_v63 = vld [vmem:[#allocation2 + $0x8a0] sm:$0xff]  ;;  %v7558_v20 = vld [vmem:[#allocation2 + $0x8c8] sm:$0xff] }
  0xf3   :  { %4789 = vmatpush.bf16.msrb.mxu3 %v7531_v0  ;;  %v7916_v21 = vadd.f32 %v4537_v19, %v4525_v18  ;;  %v7561_v0 = vld [vmem:[#allocation2 + $0x8e0] sm:$0xff]  ;;  %v7550_v19 = vld [vmem:[#allocation2 + $0x888] sm:$0xff] }
  0xf4   :  { %4751 = vmatpush.bf16.msrb.mxu0 %v7506_v1  ;;  %v53_v18 = vld [vmem:[%s7967_s0 + $0x48] sm:$0xff] }
  0xf5   :  { %4764 = vmatpush.bf16.msrb.mxu1 %v7514_v2  ;;  %v7536_v2 = vld [vmem:[#allocation2 + $0x818] sm:$0xff]  ;;  %118 = vst [vmem:[#allocation1 + $0x20] ss:$4 sm:$0xff] %v53_v18  ;;  %v7541_v24 = vld [vmem:[#allocation2 + $0x840] sm:$0xff] }
  0xf6   :  { %4777 = vmatpush.bf16.msrb.mxu2 %v7522_v3  ;;  %v7544_v3 = vld [vmem:[#allocation2 + $0x858] sm:$0xff] }
  0xf7   :  { %4790 = vmatpush.bf16.msrb.mxu3 %v7530_v4  ;;  %v7552_v4 = vld [vmem:[#allocation2 + $0x898] sm:$0xff] }
  0xf8   :  { %4752 = vmatpush.bf16.msrb.mxu0 %v7505_v7  ;;  %v4526_v32 = vpop.f32.mrf.mxu2 }
  0xf9   :  { %4765 = vmatpush.bf16.msrb.mxu1 %v7513_v8  ;;  %v4539_v33 = vpop.f32.mrf.mxu3  ;;  %v122_v32 = vld.sshfl [vmem:[#allocation1 + $0x18] sm:$0xff pattern:$0x73625140] }
  0xfa   :  { %4778 = vmatpush.bf16.msrb.mxu2 %v7521_v10  ;;  %v7588_v33 = vld [vmem:[#allocation2 + $0x9b8] sm:$0xff] }
  0xfb   :  { %4791 = vmatpush.bf16.msrb.mxu3 %v7529_v11  ;;  %v7535_v11 = vld [vmem:[#allocation2 + $0x810] sm:$0xff] }
  0xfc   :  { %4753 = vmatpush.bf16.msrb.mxu0 %v7504_v13  ;;  %v123_v18 = vld.sshfl [vmem:[#allocation1 + $0x20] sm:$0xff pattern:$0x73625140] }
  0xfd   :  { %4766 = vmatpush.bf16.msrb.mxu1 %v7512_v14  ;;  %v7551_v14 = vld [vmem:[#allocation2 + $0x890] sm:$0xff] }
  0xfe   :  { %4779 = vmatpush.bf16.msrb.mxu2 %v7520_v15  ;;  %v7559_v15 = vld [vmem:[#allocation2 + $0x8d0] sm:$0xff] }
  0xff   :  { %4792 = vmatpush.bf16.msrb.mxu3 %v7528_v16  ;;  %v7534_v16 = vld [vmem:[#allocation2 + $0x808] sm:$0xff] }
 0x100   :  { %4754 = vmatpush.bf16.msrb.mxu0 %v7503_v22 }
 0x101   :  { %4767 = vmatpush.bf16.msrb.mxu1 %v7511_v23  ;;  %v7533_v23 = vld [vmem:[#allocation2 + $0x800] sm:$0xff] }
 0x102   :  { %4780 = vmatpush.bf16.msrb.mxu2 %v7519_v25  ;;  %v7549_v25 = vld [vmem:[#allocation2 + $0x880] sm:$0xff] }
 0x103   :  { %4793 = vmatpush.bf16.msrb.mxu3 %v7527_v26  ;;  %v7557_v26 = vld [vmem:[#allocation2 + $0x8c0] sm:$0xff] }
 0x104   :  { %4755 = vmatpush.bf16.msrb.mxu0 %v7502_v27  ;;  %v7572_v27 = vld [vmem:[#allocation2 + $0x938] sm:$0xff] }
 0x105   :  { %4768 = vmatpush.bf16.msrb.mxu1 %v7510_v28  ;;  %v7580_v28 = vld [vmem:[#allocation2 + $0x978] sm:$0xff] }
 0x106   :  { %4781 = vmatpush.bf16.msrb.mxu2 %v7518_v30  ;;  %v121_v30 = vld.sshfl [vmem:[#allocation1 + $0x10] sm:$0xff pattern:$0x73625140] }
 0x107   :  { %4794 = vmatpush.bf16.msrb.mxu3 %v7526_v31  ;;  %v120_v31 = vld.sshfl [vmem:[#allocation1 + $0x8] sm:$0xff pattern:$0x73625140] }
 0x108   :  { %4756 = vmatpush.bf16.msrb.mxu0 %v7501_v34  ;;  %v4550_v58 = vpop.f32.mrf.mxu0  ;;  %v7596_v34 = vld [vmem:[#allocation2 + $0x9f8] sm:$0xff] }
 0x109   :  { %4769 = vmatpush.bf16.msrb.mxu1 %v7509_v35  ;;  %v4551_v59 = vadd.f32 %v4550_v58, %v7916_v21  ;;  %v4563_v62 = vpop.f32.mrf.mxu1  ;;  %v253_v35 = vpack.c.bf16 %v119_v29, %v119_v29  ;;  %v7592_v58 = vld [vmem:[#allocation2 + $0x9d8] sm:$0xff]  ;;  %v7611_v29 = vld [vmem:[#allocation2 + $0xa70] sm:$0xff] }
 0x10a   :  { %4782 = vmatpush.bf16.msrb.mxu2 %v7517_v36  ;;  %v255_v36 = vpack.c.bf16 %v121_v30, %v121_v30  ;;  %v7619_v30 = vld [vmem:[#allocation2 + $0xab0] sm:$0xff] }
 0x10b   :  { %4795 = vmatpush.bf16.msrb.mxu3 %v7525_v37  ;;  %4757 = vmatmul.bf16.vlgmr.msrb.gmra.mxu0 %v249_v46  ;;  %v4564_v1 = vadd.f32 %v4563_v62, %v4551_v59  ;;  %v254_v37 = vpack.c.bf16 %v120_v31, %v120_v31  ;;  %v7594_v46 = vld [vmem:[#allocation2 + $0x9e8] sm:$0xff]  ;;  %v7627_v31 = vld [vmem:[#allocation2 + $0xaf0] sm:$0xff] }
 0x10c   :  { %4801 = vmatpush.bf16.msra.mxu0 %v7540_v38  ;;  %4770 = vmatmul.bf16.vlgmr.msrb.gmra.mxu1 %v250_v48  ;;  %v256_v38 = vpack.c.bf16 %v122_v32, %v122_v32  ;;  %v7602_v32 = vld [vmem:[#allocation2 + $0xa28] sm:$0xff] }
 0x10d   :  { %4814 = vmatpush.bf16.msra.mxu1 %v7548_v39  ;;  %4783 = vmatmul.bf16.vlgmr.msrb.gmra.mxu2 %v251_v47  ;;  %v7571_v39 = vld [vmem:[#allocation2 + $0x930] sm:$0xff] }
 0x10e   :  { %4827 = vmatpush.bf16.msra.mxu2 %v7556_v44  ;;  %4796 = vmatmul.bf16.vlgmr.msrb.gmra.mxu3 %v252_v49  ;;  %v7578_v44 = vld [vmem:[#allocation2 + $0x968] sm:$0xff]  ;;  %v7569_v49 = vld [vmem:[#allocation2 + $0x920] sm:$0xff] }
 0x10f   :  { %4840 = vmatpush.bf16.msra.mxu3 %v7564_v45  ;;  %v7586_v45 = vld [vmem:[#allocation2 + $0x9a8] sm:$0xff] }
 0x110   :  { %4802 = vmatpush.bf16.msra.mxu0 %v7539_v50  ;;  %v4576_v6 = vpop.f32.mrf.mxu2  ;;  %v4552_v9 = vpop.f32.mrf.mxu0  ;;  %v7577_v50 = vld [vmem:[#allocation2 + $0x960] sm:$0xff] }
 0x111   :  { %4815 = vmatpush.bf16.msra.mxu1 %v7547_v51  ;;  %v4577_v7 = vadd.f32 %v4576_v6, %v4564_v1  ;;  %v4589_v8 = vpop.f32.mrf.mxu3  ;;  %v4565_v13 = vpop.f32.mrf.mxu1  ;;  %v7575_v1 = vld [vmem:[#allocation2 + $0x950] sm:$0xff]  ;;  %v7574_v6 = vld [vmem:[#allocation2 + $0x948] sm:$0xff] }
 0x112   :  { %4828 = vmatpush.bf16.msra.mxu2 %v7555_v52  ;;  %v7585_v52 = vld [vmem:[#allocation2 + $0x9a0] sm:$0xff]  ;;  %v7590_v9 = vld [vmem:[#allocation2 + $0x9c8] sm:$0xff] }
 0x113   :  { %4841 = vmatpush.bf16.msra.mxu3 %v7563_v53  ;;  %v7922_v10 = vadd.f32 %v4589_v8, %v4577_v7  ;;  %v7593_v53 = vld [vmem:[#allocation2 + $0x9e0] sm:$0xff]  ;;  %v54_v7 = vld [vmem:[%s7967_s0 + $0x50] sm:$0xff] }
 0x114   :  { %4803 = vmatpush.bf16.msra.mxu0 %v7538_v54  ;;  %v7582_v8 = vld [vmem:[#allocation2 + $0x988] sm:$0xff]  ;;  %127 = vst [vmem:[#allocation1] ss:$4 sm:$0xff] %v54_v7  ;;  %v7573_v13 = vld [vmem:[#allocation2 + $0x940] sm:$0xff] }
 0x115   :  { %4816 = vmatpush.bf16.msra.mxu1 %v7546_v55  ;;  %v7568_v55 = vld [vmem:[#allocation2 + $0x918] sm:$0xff] }
 0x116   :  { %4829 = vmatpush.bf16.msra.mxu2 %v7554_v56  ;;  %v7576_v56 = vld [vmem:[#allocation2 + $0x958] sm:$0xff] }
 0x117   :  { %4842 = vmatpush.bf16.msra.mxu3 %v7562_v57  ;;  %v7584_v57 = vld [vmem:[#allocation2 + $0x998] sm:$0xff] }
 0x118   :  { %4804 = vmatpush.bf16.msra.mxu0 %v7537_v60  ;;  %v4578_v21 = vpop.f32.mrf.mxu2 }
 0x119   :  { %4817 = vmatpush.bf16.msra.mxu1 %v7545_v61  ;;  %v4591_v22 = vpop.f32.mrf.mxu3  ;;  %v126_v21 = vld.sshfl [vmem:[#allocation1 + $0x38] sm:$0xff pattern:$0x73625140] }
 0x11a   :  { %4830 = vmatpush.bf16.msra.mxu2 %v7553_v63  ;;  %v7620_v22 = vld [vmem:[#allocation2 + $0xab8] sm:$0xff] }
 0x11b   :  { %4843 = vmatpush.bf16.msra.mxu3 %v7561_v0  ;;  %v7567_v0 = vld [vmem:[#allocation2 + $0x910] sm:$0xff]  ;;  %v129_v7 = vld.sshfl [vmem:[#allocation1] sm:$0xff pattern:$0x73625140] }
 0x11c   :  { %4805 = vmatpush.bf16.msra.mxu0 %v7536_v2 }
 0x11d   :  { %4818 = vmatpush.bf16.msra.mxu1 %v7544_v3  ;;  %v7583_v3 = vld [vmem:[#allocation2 + $0x990] sm:$0xff] }
 0x11e   :  { %4831 = vmatpush.bf16.msra.mxu2 %v7552_v4  ;;  %v7591_v4 = vld [vmem:[#allocation2 + $0x9d0] sm:$0xff] }
 0x11f   :  { %4844 = vmatpush.bf16.msra.mxu3 %v7560_v5  ;;  %v7566_v5 = vld [vmem:[#allocation2 + $0x908] sm:$0xff] }
 0x120   :  { %4806 = vmatpush.bf16.msra.mxu0 %v7535_v11 }
 0x121   :  { %4819 = vmatpush.bf16.msra.mxu1 %v7543_v12  ;;  %v7565_v12 = vld [vmem:[#allocation2 + $0x900] sm:$0xff] }
 0x122   :  { %4832 = vmatpush.bf16.msra.mxu2 %v7551_v14  ;;  %v7581_v14 = vld [vmem:[#allocation2 + $0x980] sm:$0xff] }
 0x123   :  { %4845 = vmatpush.bf16.msra.mxu3 %v7559_v15  ;;  %v7589_v15 = vld [vmem:[#allocation2 + $0x9c0] sm:$0xff] }
 0x124   :  { %4807 = vmatpush.bf16.msra.mxu0 %v7534_v16  ;;  %v7604_v16 = vld [vmem:[#allocation2 + $0xa38] sm:$0xff] }
 0x125   :  { %4820 = vmatpush.bf16.msra.mxu1 %v7542_v17  ;;  %v7612_v17 = vld [vmem:[#allocation2 + $0xa78] sm:$0xff] }
 0x126   :  { %4833 = vmatpush.bf16.msra.mxu2 %v7550_v19  ;;  %v125_v19 = vld.sshfl [vmem:[#allocation1 + $0x30] sm:$0xff pattern:$0x73625140] }
 0x127   :  { %4846 = vmatpush.bf16.msra.mxu3 %v7558_v20  ;;  %v124_v20 = vld.sshfl [vmem:[#allocation1 + $0x28] sm:$0xff pattern:$0x73625140] }
 0x128   :  { %4808 = vmatpush.bf16.msra.mxu0 %v7533_v23  ;;  %v4602_v47 = vpop.f32.mrf.mxu0  ;;  %v7628_v23 = vld [vmem:[#allocation2 + $0xaf8] sm:$0xff] }
 0x129   :  { %4821 = vmatpush.bf16.msra.mxu1 %v7541_v24  ;;  %v4603_v48 = vadd.f32 %v4602_v47, %v7922_v10  ;;  %v4615_v51 = vpop.f32.mrf.mxu1  ;;  %v257_v24 = vpack.c.bf16 %v123_v18, %v123_v18  ;;  %v7624_v47 = vld [vmem:[#allocation2 + $0xad8] sm:$0xff]  ;;  %v7643_v18 = vld [vmem:[#allocation2 + $0xb70] sm:$0xff] }
 0x12a   :  { %4834 = vmatpush.bf16.msra.mxu2 %v7549_v25  ;;  %v259_v25 = vpack.c.bf16 %v125_v19, %v125_v19  ;;  %v7651_v19 = vld [vmem:[#allocation2 + $0xbb0] sm:$0xff] }
 0x12b   :  { %4847 = vmatpush.bf16.msra.mxu3 %v7557_v26  ;;  %4809 = vmatmul.bf16.vlgmr.msra.gmra.mxu0 %v253_v35  ;;  %v4616_v54 = vadd.f32 %v4615_v51, %v4603_v48  ;;  %v258_v26 = vpack.c.bf16 %v124_v20, %v124_v20  ;;  %v7626_v35 = vld [vmem:[#allocation2 + $0xae8] sm:$0xff]  ;;  %v7659_v20 = vld [vmem:[#allocation2 + $0xbf0] sm:$0xff] }
 0x12c   :  { %4853 = vmatpush.bf16.msrb.mxu0 %v7572_v27  ;;  %4822 = vmatmul.bf16.vlgmr.msra.gmra.mxu1 %v254_v37  ;;  %v260_v27 = vpack.c.bf16 %v126_v21, %v126_v21  ;;  %v7634_v21 = vld [vmem:[#allocation2 + $0xb28] sm:$0xff] }
 0x12d   :  { %4866 = vmatpush.bf16.msrb.mxu1 %v7580_v28  ;;  %4835 = vmatmul.bf16.vlgmr.msra.gmra.mxu2 %v255_v36  ;;  %v7603_v28 = vld [vmem:[#allocation2 + $0xa30] sm:$0xff] }
 0x12e   :  { %4879 = vmatpush.bf16.msrb.mxu2 %v7588_v33  ;;  %4848 = vmatmul.bf16.vlgmr.msra.gmra.mxu3 %v256_v38  ;;  %v7610_v33 = vld [vmem:[#allocation2 + $0xa68] sm:$0xff]  ;;  %v7601_v38 = vld [vmem:[#allocation2 + $0xa20] sm:$0xff] }
 0x12f   :  { %4892 = vmatpush.bf16.msrb.mxu3 %v7596_v34  ;;  %v7618_v34 = vld [vmem:[#allocation2 + $0xaa8] sm:$0xff] }
 0x130   :  { %4854 = vmatpush.bf16.msrb.mxu0 %v7571_v39  ;;  %v4628_v59 = vpop.f32.mrf.mxu2  ;;  %v4604_v62 = vpop.f32.mrf.mxu0  ;;  %v7609_v39 = vld [vmem:[#allocation2 + $0xa60] sm:$0xff] }
 0x131   :  { %4867 = vmatpush.bf16.msrb.mxu1 %v7579_v40  ;;  %v4629_v60 = vadd.f32 %v4628_v59, %v4616_v54  ;;  %v4641_v61 = vpop.f32.mrf.mxu3  ;;  %v4617_v2 = vpop.f32.mrf.mxu1  ;;  %v7607_v54 = vld [vmem:[#allocation2 + $0xa50] sm:$0xff]  ;;  %v7606_v59 = vld [vmem:[#allocation2 + $0xa48] sm:$0xff] }
 0x132   :  { %4880 = vmatpush.bf16.msrb.mxu2 %v7587_v41  ;;  %v7617_v41 = vld [vmem:[#allocation2 + $0xaa0] sm:$0xff]  ;;  %v7622_v62 = vld [vmem:[#allocation2 + $0xac8] sm:$0xff] }
 0x133   :  { %4893 = vmatpush.bf16.msrb.mxu3 %v7595_v42  ;;  %v7928_v63 = vadd.f32 %v4641_v61, %v4629_v60  ;;  %v7625_v42 = vld [vmem:[#allocation2 + $0xae0] sm:$0xff]  ;;  %v55_v60 = vld [vmem:[%s7967_s0 + $0x58] sm:$0xff]  ;;  %v7614_v61 = vld [vmem:[#allocation2 + $0xa88] sm:$0xff] }
 0x134   :  { %4855 = vmatpush.bf16.msrb.mxu0 %v7570_v43  ;;  %128 = vst [vmem:[#allocation1 + $0x20] ss:$4 sm:$0xff] %v55_v60  ;;  %v7605_v2 = vld [vmem:[#allocation2 + $0xa40] sm:$0xff] }
 0x135   :  { %4868 = vmatpush.bf16.msrb.mxu1 %v7578_v44  ;;  %v7600_v44 = vld [vmem:[#allocation2 + $0xa18] sm:$0xff] }
 0x136   :  { %4881 = vmatpush.bf16.msrb.mxu2 %v7586_v45  ;;  %v7608_v45 = vld [vmem:[#allocation2 + $0xa58] sm:$0xff] }
 0x137   :  { %4894 = vmatpush.bf16.msrb.mxu3 %v7594_v46  ;;  %v7616_v46 = vld [vmem:[#allocation2 + $0xa98] sm:$0xff] }
 0x138   :  { %4856 = vmatpush.bf16.msrb.mxu0 %v7569_v49  ;;  %v4630_v10 = vpop.f32.mrf.mxu2 }
 0x139   :  { %4869 = vmatpush.bf16.msrb.mxu1 %v7577_v50  ;;  %v4643_v11 = vpop.f32.mrf.mxu3  ;;  %v132_v10 = vld.sshfl [vmem:[#allocation1 + $0x18] sm:$0xff pattern:$0x73625140] }
 0x13a   :  { %4882 = vmatpush.bf16.msrb.mxu2 %v7585_v52  ;;  %v7652_v11 = vld [vmem:[#allocation2 + $0xbb8] sm:$0xff] }
 0x13b   :  { %4895 = vmatpush.bf16.msrb.mxu3 %v7593_v53  ;;  %v7599_v53 = vld [vmem:[#allocation2 + $0xa10] sm:$0xff]  ;;  %v133_v60 = vld.sshfl [vmem:[#allocation1 + $0x20] sm:$0xff pattern:$0x73625140] }
 0x13c   :  { %4857 = vmatpush.bf16.msrb.mxu0 %v7568_v55 }
 0x13d   :  { %4870 = vmatpush.bf16.msrb.mxu1 %v7576_v56  ;;  %v7615_v56 = vld [vmem:[#allocation2 + $0xa90] sm:$0xff] }
 0x13e   :  { %4883 = vmatpush.bf16.msrb.mxu2 %v7584_v57  ;;  %v7623_v57 = vld [vmem:[#allocation2 + $0xad0] sm:$0xff] }
 0x13f   :  { %4896 = vmatpush.bf16.msrb.mxu3 %v7592_v58  ;;  %v7598_v58 = vld [vmem:[#allocation2 + $0xa08] sm:$0xff] }
 0x140   :  { %4858 = vmatpush.bf16.msrb.mxu0 %v7567_v0 }
 0x141   :  { %4871 = vmatpush.bf16.msrb.mxu1 %v7575_v1  ;;  %v7597_v1 = vld [vmem:[#allocation2 + $0xa00] sm:$0xff] }
 0x142   :  { %4884 = vmatpush.bf16.msrb.mxu2 %v7583_v3  ;;  %v7613_v3 = vld [vmem:[#allocation2 + $0xa80] sm:$0xff] }
 0x143   :  { %4897 = vmatpush.bf16.msrb.mxu3 %v7591_v4  ;;  %v7621_v4 = vld [vmem:[#allocation2 + $0xac0] sm:$0xff] }
 0x144   :  { %4859 = vmatpush.bf16.msrb.mxu0 %v7566_v5  ;;  %v7636_v5 = vld [vmem:[#allocation2 + $0xb38] sm:$0xff] }
 0x145   :  { %4872 = vmatpush.bf16.msrb.mxu1 %v7574_v6  ;;  %v7644_v6 = vld [vmem:[#allocation2 + $0xb78] sm:$0xff] }
 0x146   :  { %4885 = vmatpush.bf16.msrb.mxu2 %v7582_v8  ;;  %v131_v8 = vld.sshfl [vmem:[#allocation1 + $0x10] sm:$0xff pattern:$0x73625140] }
 0x147   :  { %4898 = vmatpush.bf16.msrb.mxu3 %v7590_v9  ;;  %v130_v9 = vld.sshfl [vmem:[#allocation1 + $0x8] sm:$0xff pattern:$0x73625140] }
 0x148   :  { %4860 = vmatpush.bf16.msrb.mxu0 %v7565_v12  ;;  %v4654_v36 = vpop.f32.mrf.mxu0  ;;  %v7660_v12 = vld [vmem:[#allocation2 + $0xbf8] sm:$0xff] }
 0x149   :  { %4873 = vmatpush.bf16.msrb.mxu1 %v7573_v13  ;;  %v4655_v37 = vadd.f32 %v4654_v36, %v7928_v63  ;;  %v4667_v40 = vpop.f32.mrf.mxu1  ;;  %v261_v13 = vpack.c.bf16 %v129_v7, %v129_v7  ;;  %v7656_v36 = vld [vmem:[#allocation2 + $0xbd8] sm:$0xff]  ;;  %v7675_v7 = vld [vmem:[#allocation2 + $0xc70] sm:$0xff] }
 0x14a   :  { %4886 = vmatpush.bf16.msrb.mxu2 %v7581_v14  ;;  %v263_v14 = vpack.c.bf16 %v131_v8, %v131_v8  ;;  %v7683_v8 = vld [vmem:[#allocation2 + $0xcb0] sm:$0xff] }
 0x14b   :  { %4899 = vmatpush.bf16.msrb.mxu3 %v7589_v15  ;;  %4861 = vmatmul.bf16.vlgmr.msrb.gmra.mxu0 %v257_v24  ;;  %v4668_v43 = vadd.f32 %v4667_v40, %v4655_v37  ;;  %v262_v15 = vpack.c.bf16 %v130_v9, %v130_v9  ;;  %v7658_v24 = vld [vmem:[#allocation2 + $0xbe8] sm:$0xff]  ;;  %v7691_v9 = vld [vmem:[#allocation2 + $0xcf0] sm:$0xff] }
 0x14c   :  { %4905 = vmatpush.bf16.msra.mxu0 %v7604_v16  ;;  %4874 = vmatmul.bf16.vlgmr.msrb.gmra.mxu1 %v258_v26  ;;  %v264_v16 = vpack.c.bf16 %v132_v10, %v132_v10  ;;  %v7666_v10 = vld [vmem:[#allocation2 + $0xc28] sm:$0xff] }
 0x14d   :  { %4918 = vmatpush.bf16.msra.mxu1 %v7612_v17  ;;  %4887 = vmatmul.bf16.vlgmr.msrb.gmra.mxu2 %v259_v25  ;;  %v7635_v17 = vld [vmem:[#allocation2 + $0xb30] sm:$0xff] }
 0x14e   :  { %4931 = vmatpush.bf16.msra.mxu2 %v7620_v22  ;;  %4900 = vmatmul.bf16.vlgmr.msrb.gmra.mxu3 %v260_v27  ;;  %v7642_v22 = vld [vmem:[#allocation2 + $0xb68] sm:$0xff]  ;;  %v7633_v27 = vld [vmem:[#allocation2 + $0xb20] sm:$0xff] }
 0x14f   :  { %4944 = vmatpush.bf16.msra.mxu3 %v7628_v23  ;;  %v7650_v23 = vld [vmem:[#allocation2 + $0xba8] sm:$0xff] }
 0x150   :  { %4906 = vmatpush.bf16.msra.mxu0 %v7603_v28  ;;  %v4680_v48 = vpop.f32.mrf.mxu2  ;;  %v4656_v51 = vpop.f32.mrf.mxu0  ;;  %v7641_v28 = vld [vmem:[#allocation2 + $0xb60] sm:$0xff] }
 0x151   :  { %4919 = vmatpush.bf16.msra.mxu1 %v7611_v29  ;;  %v4681_v49 = vadd.f32 %v4680_v48, %v4668_v43  ;;  %v4693_v50 = vpop.f32.mrf.mxu3  ;;  %v4669_v55 = vpop.f32.mrf.mxu1  ;;  %v7639_v43 = vld [vmem:[#allocation2 + $0xb50] sm:$0xff]  ;;  %v7638_v48 = vld [vmem:[#allocation2 + $0xb48] sm:$0xff] }
 0x152   :  { %4932 = vmatpush.bf16.msra.mxu2 %v7619_v30  ;;  %v7649_v30 = vld [vmem:[#allocation2 + $0xba0] sm:$0xff]  ;;  %v7654_v51 = vld [vmem:[#allocation2 + $0xbc8] sm:$0xff] }
 0x153   :  { %4945 = vmatpush.bf16.msra.mxu3 %v7627_v31  ;;  %v7934_v52 = vadd.f32 %v4693_v50, %v4681_v49  ;;  %v7657_v31 = vld [vmem:[#allocation2 + $0xbe0] sm:$0xff]  ;;  %v56_v49 = vld [vmem:[%s7967_s0 + $0x60] sm:$0xff]  ;;  %v7646_v50 = vld [vmem:[#allocation2 + $0xb88] sm:$0xff] }
 0x154   :  { %4907 = vmatpush.bf16.msra.mxu0 %v7602_v32  ;;  %137 = vst [vmem:[#allocation1] ss:$4 sm:$0xff] %v56_v49  ;;  %v7637_v55 = vld [vmem:[#allocation2 + $0xb40] sm:$0xff] }
 0x155   :  { %4920 = vmatpush.bf16.msra.mxu1 %v7610_v33  ;;  %v7632_v33 = vld [vmem:[#allocation2 + $0xb18] sm:$0xff] }
 0x156   :  { %4933 = vmatpush.bf16.msra.mxu2 %v7618_v34  ;;  %v7640_v34 = vld [vmem:[#allocation2 + $0xb58] sm:$0xff] }
 0x157   :  { %4946 = vmatpush.bf16.msra.mxu3 %v7626_v35  ;;  %v7648_v35 = vld [vmem:[#allocation2 + $0xb98] sm:$0xff] }
 0x158   :  { %4908 = vmatpush.bf16.msra.mxu0 %v7601_v38  ;;  %v4682_v63 = vpop.f32.mrf.mxu2 }
 0x159   :  { %4921 = vmatpush.bf16.msra.mxu1 %v7609_v39  ;;  %v4695_v0 = vpop.f32.mrf.mxu3  ;;  %v136_v63 = vld.sshfl [vmem:[#allocation1 + $0x38] sm:$0xff pattern:$0x73625140] }
 0x15a   :  { %4934 = vmatpush.bf16.msra.mxu2 %v7617_v41  ;;  %v7684_v0 = vld [vmem:[#allocation2 + $0xcb8] sm:$0xff] }
 0x15b   :  { %4947 = vmatpush.bf16.msra.mxu3 %v7625_v42  ;;  %v7631_v42 = vld [vmem:[#allocation2 + $0xb10] sm:$0xff]  ;;  %v139_v49 = vld.sshfl [vmem:[#allocation1] sm:$0xff pattern:$0x73625140] }
 0x15c   :  { %4909 = vmatpush.bf16.msra.mxu0 %v7600_v44 }
 0x15d   :  { %4922 = vmatpush.bf16.msra.mxu1 %v7608_v45  ;;  %v7647_v45 = vld [vmem:[#allocation2 + $0xb90] sm:$0xff] }
 0x15e   :  { %4935 = vmatpush.bf16.msra.mxu2 %v7616_v46  ;;  %v7655_v46 = vld [vmem:[#allocation2 + $0xbd0] sm:$0xff] }
 0x15f   :  { %4948 = vmatpush.bf16.msra.mxu3 %v7624_v47  ;;  %v7630_v47 = vld [vmem:[#allocation2 + $0xb08] sm:$0xff] }
 0x160   :  { %4910 = vmatpush.bf16.msra.mxu0 %v7599_v53 }
 0x161   :  { %4923 = vmatpush.bf16.msra.mxu1 %v7607_v54  ;;  %v7629_v54 = vld [vmem:[#allocation2 + $0xb00] sm:$0xff] }
 0x162   :  { %4936 = vmatpush.bf16.msra.mxu2 %v7615_v56  ;;  %v7645_v56 = vld [vmem:[#allocation2 + $0xb80] sm:$0xff] }
 0x163   :  { %4949 = vmatpush.bf16.msra.mxu3 %v7623_v57  ;;  %v7653_v57 = vld [vmem:[#allocation2 + $0xbc0] sm:$0xff] }
 0x164   :  { %4911 = vmatpush.bf16.msra.mxu0 %v7598_v58  ;;  %v7668_v58 = vld [vmem:[#allocation2 + $0xc38] sm:$0xff] }
 0x165   :  { %4924 = vmatpush.bf16.msra.mxu1 %v7606_v59  ;;  %v7676_v59 = vld [vmem:[#allocation2 + $0xc78] sm:$0xff] }
 0x166   :  { %4937 = vmatpush.bf16.msra.mxu2 %v7614_v61  ;;  %v135_v61 = vld.sshfl [vmem:[#allocation1 + $0x30] sm:$0xff pattern:$0x73625140] }
 0x167   :  { %4950 = vmatpush.bf16.msra.mxu3 %v7622_v62  ;;  %v134_v62 = vld.sshfl [vmem:[#allocation1 + $0x28] sm:$0xff pattern:$0x73625140] }
 0x168   :  { %4912 = vmatpush.bf16.msra.mxu0 %v7597_v1  ;;  %v4706_v25 = vpop.f32.mrf.mxu0  ;;  %v7692_v1 = vld [vmem:[#allocation2 + $0xcf8] sm:$0xff] }
 0x169   :  { %4925 = vmatpush.bf16.msra.mxu1 %v7605_v2  ;;  %v4707_v26 = vadd.f32 %v4706_v25, %v7934_v52  ;;  %v4719_v29 = vpop.f32.mrf.mxu1  ;;  %v265_v2 = vpack.c.bf16 %v133_v60, %v133_v60  ;;  %v7688_v25 = vld [vmem:[#allocation2 + $0xcd8] sm:$0xff]  ;;  %v7707_v60 = vld [vmem:[#allocation2 + $0xd70] sm:$0xff] }
 0x16a   :  { %4938 = vmatpush.bf16.msra.mxu2 %v7613_v3  ;;  %v267_v3 = vpack.c.bf16 %v135_v61, %v135_v61  ;;  %v7715_v61 = vld [vmem:[#allocation2 + $0xdb0] sm:$0xff] }
 0x16b   :  { %4951 = vmatpush.bf16.msra.mxu3 %v7621_v4  ;;  %4913 = vmatmul.bf16.vlgmr.msra.gmra.mxu0 %v261_v13  ;;  %v4720_v32 = vadd.f32 %v4719_v29, %v4707_v26  ;;  %v266_v4 = vpack.c.bf16 %v134_v62, %v134_v62  ;;  %v7690_v13 = vld [vmem:[#allocation2 + $0xce8] sm:$0xff]  ;;  %v7723_v62 = vld [vmem:[#allocation2 + $0xdf0] sm:$0xff] }
 0x16c   :  { %4957 = vmatpush.bf16.msrb.mxu0 %v7636_v5  ;;  %4926 = vmatmul.bf16.vlgmr.msra.gmra.mxu1 %v262_v15  ;;  %v268_v5 = vpack.c.bf16 %v136_v63, %v136_v63  ;;  %v7698_v63 = vld [vmem:[#allocation2 + $0xd28] sm:$0xff] }
 0x16d   :  { %4970 = vmatpush.bf16.msrb.mxu1 %v7644_v6  ;;  %4939 = vmatmul.bf16.vlgmr.msra.gmra.mxu2 %v263_v14  ;;  %v7667_v6 = vld [vmem:[#allocation2 + $0xc30] sm:$0xff] }
 0x16e   :  { %4983 = vmatpush.bf16.msrb.mxu2 %v7652_v11  ;;  %4952 = vmatmul.bf16.vlgmr.msra.gmra.mxu3 %v264_v16  ;;  %v7674_v11 = vld [vmem:[#allocation2 + $0xc68] sm:$0xff]  ;;  %v7665_v16 = vld [vmem:[#allocation2 + $0xc20] sm:$0xff] }
 0x16f   :  { %4996 = vmatpush.bf16.msrb.mxu3 %v7660_v12  ;;  %v7682_v12 = vld [vmem:[#allocation2 + $0xca8] sm:$0xff] }
 0x170   :  { %4958 = vmatpush.bf16.msrb.mxu0 %v7635_v17  ;;  %v4732_v37 = vpop.f32.mrf.mxu2  ;;  %v4708_v40 = vpop.f32.mrf.mxu0  ;;  %v7673_v17 = vld [vmem:[#allocation2 + $0xc60] sm:$0xff] }
 0x171   :  { %4971 = vmatpush.bf16.msrb.mxu1 %v7643_v18  ;;  %v4733_v38 = vadd.f32 %v4732_v37, %v4720_v32  ;;  %v4745_v39 = vpop.f32.mrf.mxu3  ;;  %v4721_v44 = vpop.f32.mrf.mxu1  ;;  %v7671_v32 = vld [vmem:[#allocation2 + $0xc50] sm:$0xff]  ;;  %v7670_v37 = vld [vmem:[#allocation2 + $0xc48] sm:$0xff] }
 0x172   :  { %4984 = vmatpush.bf16.msrb.mxu2 %v7651_v19  ;;  %v7681_v19 = vld [vmem:[#allocation2 + $0xca0] sm:$0xff]  ;;  %v7686_v40 = vld [vmem:[#allocation2 + $0xcc8] sm:$0xff] }
 0x173   :  { %4997 = vmatpush.bf16.msrb.mxu3 %v7659_v20  ;;  %v7940_v41 = vadd.f32 %v4745_v39, %v4733_v38  ;;  %v7689_v20 = vld [vmem:[#allocation2 + $0xce0] sm:$0xff]  ;;  %v7678_v39 = vld [vmem:[#allocation2 + $0xc88] sm:$0xff] }
 0x174   :  { %4959 = vmatpush.bf16.msrb.mxu0 %v7634_v21  ;;  %v57_v38 = vld [vmem:[%s7967_s0 + $0x68] sm:$0xff] }
 0x175   :  { %4972 = vmatpush.bf16.msrb.mxu1 %v7642_v22  ;;  %v7664_v22 = vld [vmem:[#allocation2 + $0xc18] sm:$0xff]  ;;  %138 = vst [vmem:[#allocation1 + $0x20] ss:$4 sm:$0xff] %v57_v38  ;;  %v7669_v44 = vld [vmem:[#allocation2 + $0xc40] sm:$0xff] }
 0x176   :  { %4985 = vmatpush.bf16.msrb.mxu2 %v7650_v23  ;;  %v7672_v23 = vld [vmem:[#allocation2 + $0xc58] sm:$0xff] }
 0x177   :  { %4998 = vmatpush.bf16.msrb.mxu3 %v7658_v24  ;;  %v7680_v24 = vld [vmem:[#allocation2 + $0xc98] sm:$0xff] }
 0x178   :  { %4960 = vmatpush.bf16.msrb.mxu0 %v7633_v27  ;;  %v4734_v52 = vpop.f32.mrf.mxu2 }
 0x179   :  { %4973 = vmatpush.bf16.msrb.mxu1 %v7641_v28  ;;  %v4747_v53 = vpop.f32.mrf.mxu3  ;;  %v142_v52 = vld.sshfl [vmem:[#allocation1 + $0x18] sm:$0xff pattern:$0x73625140] }
 0x17a   :  { %4986 = vmatpush.bf16.msrb.mxu2 %v7649_v30  ;;  %v7716_v53 = vld [vmem:[#allocation2 + $0xdb8] sm:$0xff] }
 0x17b   :  { %4999 = vmatpush.bf16.msrb.mxu3 %v7657_v31  ;;  %v7663_v31 = vld [vmem:[#allocation2 + $0xc10] sm:$0xff] }
 0x17c   :  { %4961 = vmatpush.bf16.msrb.mxu0 %v7632_v33  ;;  %v143_v38 = vld.sshfl [vmem:[#allocation1 + $0x20] sm:$0xff pattern:$0x73625140] }
 0x17d   :  { %4974 = vmatpush.bf16.msrb.mxu1 %v7640_v34  ;;  %v7679_v34 = vld [vmem:[#allocation2 + $0xc90] sm:$0xff] }
 0x17e   :  { %4987 = vmatpush.bf16.msrb.mxu2 %v7648_v35  ;;  %v7687_v35 = vld [vmem:[#allocation2 + $0xcd0] sm:$0xff] }
 0x17f   :  { %5000 = vmatpush.bf16.msrb.mxu3 %v7656_v36  ;;  %v7662_v36 = vld [vmem:[#allocation2 + $0xc08] sm:$0xff] }
 0x180   :  { %4962 = vmatpush.bf16.msrb.mxu0 %v7631_v42 }
 0x181   :  { %4975 = vmatpush.bf16.msrb.mxu1 %v7639_v43  ;;  %v7661_v43 = vld [vmem:[#allocation2 + $0xc00] sm:$0xff] }
 0x182   :  { %4988 = vmatpush.bf16.msrb.mxu2 %v7647_v45  ;;  %v7677_v45 = vld [vmem:[#allocation2 + $0xc80] sm:$0xff] }
 0x183   :  { %5001 = vmatpush.bf16.msrb.mxu3 %v7655_v46  ;;  %v7685_v46 = vld [vmem:[#allocation2 + $0xcc0] sm:$0xff] }
 0x184   :  { %4963 = vmatpush.bf16.msrb.mxu0 %v7630_v47  ;;  %v7700_v47 = vld [vmem:[#allocation2 + $0xd38] sm:$0xff] }
 0x185   :  { %4976 = vmatpush.bf16.msrb.mxu1 %v7638_v48  ;;  %v7708_v48 = vld [vmem:[#allocation2 + $0xd78] sm:$0xff] }
 0x186   :  { %4989 = vmatpush.bf16.msrb.mxu2 %v7646_v50  ;;  %v141_v50 = vld.sshfl [vmem:[#allocation1 + $0x10] sm:$0xff pattern:$0x73625140] }
 0x187   :  { %5002 = vmatpush.bf16.msrb.mxu3 %v7654_v51  ;;  %v140_v51 = vld.sshfl [vmem:[#allocation1 + $0x8] sm:$0xff pattern:$0x73625140] }
 0x188   :  { %4964 = vmatpush.bf16.msrb.mxu0 %v7629_v54  ;;  %v4758_v14 = vpop.f32.mrf.mxu0  ;;  %v7724_v54 = vld [vmem:[#allocation2 + $0xdf8] sm:$0xff] }
 0x189   :  { %4977 = vmatpush.bf16.msrb.mxu1 %v7637_v55  ;;  %v4759_v15 = vadd.f32 %v4758_v14, %v7940_v41  ;;  %v4771_v18 = vpop.f32.mrf.mxu1  ;;  %v269_v55 = vpack.c.bf16 %v139_v49, %v139_v49  ;;  %v7720_v14 = vld [vmem:[#allocation2 + $0xdd8] sm:$0xff]  ;;  %v7739_v49 = vld [vmem:[#allocation2 + $0xe70] sm:$0xff] }
 0x18a   :  { %4990 = vmatpush.bf16.msrb.mxu2 %v7645_v56  ;;  %v271_v56 = vpack.c.bf16 %v141_v50, %v141_v50  ;;  %v7747_v50 = vld [vmem:[#allocation2 + $0xeb0] sm:$0xff] }
 0x18b   :  { %5003 = vmatpush.bf16.msrb.mxu3 %v7653_v57  ;;  %4965 = vmatmul.bf16.vlgmr.msrb.gmra.mxu0 %v265_v2  ;;  %v4772_v21 = vadd.f32 %v4771_v18, %v4759_v15  ;;  %v270_v57 = vpack.c.bf16 %v140_v51, %v140_v51  ;;  %v7722_v2 = vld [vmem:[#allocation2 + $0xde8] sm:$0xff]  ;;  %v7755_v51 = vld [vmem:[#allocation2 + $0xef0] sm:$0xff] }
 0x18c   :  { %5009 = vmatpush.bf16.msra.mxu0 %v7668_v58  ;;  %4978 = vmatmul.bf16.vlgmr.msrb.gmra.mxu1 %v266_v4  ;;  %v272_v58 = vpack.c.bf16 %v142_v52, %v142_v52  ;;  %v7730_v52 = vld [vmem:[#allocation2 + $0xe28] sm:$0xff] }
 0x18d   :  { %5022 = vmatpush.bf16.msra.mxu1 %v7676_v59  ;;  %4991 = vmatmul.bf16.vlgmr.msrb.gmra.mxu2 %v267_v3  ;;  %v7699_v59 = vld [vmem:[#allocation2 + $0xd30] sm:$0xff] }
 0x18e   :  { %5035 = vmatpush.bf16.msra.mxu2 %v7684_v0  ;;  %5004 = vmatmul.bf16.vlgmr.msrb.gmra.mxu3 %v268_v5  ;;  %v7706_v0 = vld [vmem:[#allocation2 + $0xd68] sm:$0xff]  ;;  %v7697_v5 = vld [vmem:[#allocation2 + $0xd20] sm:$0xff] }
 0x18f   :  { %5048 = vmatpush.bf16.msra.mxu3 %v7692_v1  ;;  %v7714_v1 = vld [vmem:[#allocation2 + $0xda8] sm:$0xff] }
 0x190   :  { %5010 = vmatpush.bf16.msra.mxu0 %v7667_v6  ;;  %v4784_v26 = vpop.f32.mrf.mxu2  ;;  %v4760_v29 = vpop.f32.mrf.mxu0  ;;  %v7705_v6 = vld [vmem:[#allocation2 + $0xd60] sm:$0xff] }
 0x191   :  { %5023 = vmatpush.bf16.msra.mxu1 %v7675_v7  ;;  %v4785_v27 = vadd.f32 %v4784_v26, %v4772_v21  ;;  %v4797_v28 = vpop.f32.mrf.mxu3  ;;  %v4773_v33 = vpop.f32.mrf.mxu1  ;;  %v7703_v21 = vld [vmem:[#allocation2 + $0xd50] sm:$0xff]  ;;  %v7702_v26 = vld [vmem:[#allocation2 + $0xd48] sm:$0xff] }
 0x192   :  { %5036 = vmatpush.bf16.msra.mxu2 %v7683_v8  ;;  %v7713_v8 = vld [vmem:[#allocation2 + $0xda0] sm:$0xff]  ;;  %v7718_v29 = vld [vmem:[#allocation2 + $0xdc8] sm:$0xff] }
 0x193   :  { %5049 = vmatpush.bf16.msra.mxu3 %v7691_v9  ;;  %v7946_v30 = vadd.f32 %v4797_v28, %v4785_v27  ;;  %v7721_v9 = vld [vmem:[#allocation2 + $0xde0] sm:$0xff]  ;;  %v58_v27 = vld [vmem:[%s7967_s0 + $0x70] sm:$0xff] }
 0x194   :  { %5011 = vmatpush.bf16.msra.mxu0 %v7666_v10  ;;  %v7710_v28 = vld [vmem:[#allocation2 + $0xd88] sm:$0xff]  ;;  %147 = vst [vmem:[#allocation1] ss:$4 sm:$0xff] %v58_v27  ;;  %v7701_v33 = vld [vmem:[#allocation2 + $0xd40] sm:$0xff] }
 0x195   :  { %5024 = vmatpush.bf16.msra.mxu1 %v7674_v11  ;;  %v7696_v11 = vld [vmem:[#allocation2 + $0xd18] sm:$0xff] }
 0x196   :  { %5037 = vmatpush.bf16.msra.mxu2 %v7682_v12  ;;  %v7704_v12 = vld [vmem:[#allocation2 + $0xd58] sm:$0xff] }
 0x197   :  { %5050 = vmatpush.bf16.msra.mxu3 %v7690_v13  ;;  %v7712_v13 = vld [vmem:[#allocation2 + $0xd98] sm:$0xff] }
 0x198   :  { %5012 = vmatpush.bf16.msra.mxu0 %v7665_v16  ;;  %v4786_v41 = vpop.f32.mrf.mxu2 }
 0x199   :  { %5025 = vmatpush.bf16.msra.mxu1 %v7673_v17  ;;  %v4799_v42 = vpop.f32.mrf.mxu3  ;;  %v146_v41 = vld.sshfl [vmem:[#allocation1 + $0x38] sm:$0xff pattern:$0x73625140] }
 0x19a   :  { %5038 = vmatpush.bf16.msra.mxu2 %v7681_v19  ;;  %v7748_v42 = vld [vmem:[#allocation2 + $0xeb8] sm:$0xff] }
 0x19b   :  { %5051 = vmatpush.bf16.msra.mxu3 %v7689_v20  ;;  %v7695_v20 = vld [vmem:[#allocation2 + $0xd10] sm:$0xff]  ;;  %v149_v27 = vld.sshfl [vmem:[#allocation1] sm:$0xff pattern:$0x73625140] }
 0x19c   :  { %5013 = vmatpush.bf16.msra.mxu0 %v7664_v22 }
 0x19d   :  { %5026 = vmatpush.bf16.msra.mxu1 %v7672_v23  ;;  %v7711_v23 = vld [vmem:[#allocation2 + $0xd90] sm:$0xff] }
 0x19e   :  { %5039 = vmatpush.bf16.msra.mxu2 %v7680_v24  ;;  %v7719_v24 = vld [vmem:[#allocation2 + $0xdd0] sm:$0xff] }
 0x19f   :  { %5052 = vmatpush.bf16.msra.mxu3 %v7688_v25  ;;  %v7694_v25 = vld [vmem:[#allocation2 + $0xd08] sm:$0xff] }
 0x1a0   :  { %5014 = vmatpush.bf16.msra.mxu0 %v7663_v31 }
 0x1a1   :  { %5027 = vmatpush.bf16.msra.mxu1 %v7671_v32  ;;  %v7693_v32 = vld [vmem:[#allocation2 + $0xd00] sm:$0xff] }
 0x1a2   :  { %5040 = vmatpush.bf16.msra.mxu2 %v7679_v34  ;;  %v7709_v34 = vld [vmem:[#allocation2 + $0xd80] sm:$0xff] }
 0x1a3   :  { %5053 = vmatpush.bf16.msra.mxu3 %v7687_v35  ;;  %v7717_v35 = vld [vmem:[#allocation2 + $0xdc0] sm:$0xff] }
 0x1a4   :  { %5015 = vmatpush.bf16.msra.mxu0 %v7662_v36  ;;  %v7732_v36 = vld [vmem:[#allocation2 + $0xe38] sm:$0xff] }
 0x1a5   :  { %5028 = vmatpush.bf16.msra.mxu1 %v7670_v37  ;;  %v7740_v37 = vld [vmem:[#allocation2 + $0xe78] sm:$0xff] }
 0x1a6   :  { %5041 = vmatpush.bf16.msra.mxu2 %v7678_v39  ;;  %v145_v39 = vld.sshfl [vmem:[#allocation1 + $0x30] sm:$0xff pattern:$0x73625140] }
 0x1a7   :  { %5054 = vmatpush.bf16.msra.mxu3 %v7686_v40  ;;  %v144_v40 = vld.sshfl [vmem:[#allocation1 + $0x28] sm:$0xff pattern:$0x73625140] }
 0x1a8   :  { %5016 = vmatpush.bf16.msra.mxu0 %v7661_v43  ;;  %v4810_v3 = vpop.f32.mrf.mxu0  ;;  %v7756_v43 = vld [vmem:[#allocation2 + $0xef8] sm:$0xff] }
 0x1a9   :  { %5029 = vmatpush.bf16.msra.mxu1 %v7669_v44  ;;  %v4811_v4 = vadd.f32 %v4810_v3, %v7946_v30  ;;  %v4823_v7 = vpop.f32.mrf.mxu1  ;;  %v273_v44 = vpack.c.bf16 %v143_v38, %v143_v38  ;;  %v7752_v3 = vld [vmem:[#allocation2 + $0xed8] sm:$0xff]  ;;  %v7771_v38 = vld [vmem:[#allocation2 + $0xf70] sm:$0xff] }
 0x1aa   :  { %5042 = vmatpush.bf16.msra.mxu2 %v7677_v45  ;;  %v275_v45 = vpack.c.bf16 %v145_v39, %v145_v39  ;;  %v7779_v39 = vld [vmem:[#allocation2 + $0xfb0] sm:$0xff] }
 0x1ab   :  { %5055 = vmatpush.bf16.msra.mxu3 %v7685_v46  ;;  %5017 = vmatmul.bf16.vlgmr.msra.gmra.mxu0 %v269_v55  ;;  %v4824_v10 = vadd.f32 %v4823_v7, %v4811_v4  ;;  %v274_v46 = vpack.c.bf16 %v144_v40, %v144_v40  ;;  %v7754_v55 = vld [vmem:[#allocation2 + $0xee8] sm:$0xff]  ;;  %v7787_v40 = vld [vmem:[#allocation2 + $0xff0] sm:$0xff] }
 0x1ac   :  { %5061 = vmatpush.bf16.msrb.mxu0 %v7700_v47  ;;  %5030 = vmatmul.bf16.vlgmr.msra.gmra.mxu1 %v270_v57  ;;  %v276_v47 = vpack.c.bf16 %v146_v41, %v146_v41  ;;  %v7762_v41 = vld [vmem:[#allocation2 + $0xf28] sm:$0xff] }
 0x1ad   :  { %5074 = vmatpush.bf16.msrb.mxu1 %v7708_v48  ;;  %5043 = vmatmul.bf16.vlgmr.msra.gmra.mxu2 %v271_v56  ;;  %v7731_v48 = vld [vmem:[#allocation2 + $0xe30] sm:$0xff] }
 0x1ae   :  { %5087 = vmatpush.bf16.msrb.mxu2 %v7716_v53  ;;  %5056 = vmatmul.bf16.vlgmr.msra.gmra.mxu3 %v272_v58  ;;  %v7738_v53 = vld [vmem:[#allocation2 + $0xe68] sm:$0xff]  ;;  %v7729_v58 = vld [vmem:[#allocation2 + $0xe20] sm:$0xff] }
 0x1af   :  { %5100 = vmatpush.bf16.msrb.mxu3 %v7724_v54  ;;  %v7746_v54 = vld [vmem:[#allocation2 + $0xea8] sm:$0xff] }
 0x1b0   :  { %5062 = vmatpush.bf16.msrb.mxu0 %v7699_v59  ;;  %v4836_v15 = vpop.f32.mrf.mxu2  ;;  %v4812_v18 = vpop.f32.mrf.mxu0  ;;  %v7737_v59 = vld [vmem:[#allocation2 + $0xe60] sm:$0xff] }
 0x1b1   :  { %5075 = vmatpush.bf16.msrb.mxu1 %v7707_v60  ;;  %v4837_v16 = vadd.f32 %v4836_v15, %v4824_v10  ;;  %v4849_v17 = vpop.f32.mrf.mxu3  ;;  %v4825_v22 = vpop.f32.mrf.mxu1  ;;  %v7735_v10 = vld [vmem:[#allocation2 + $0xe50] sm:$0xff]  ;;  %v7726_v15 = vld [vmem:[#allocation2 + $0xe08] sm:$0xff] }
 0x1b2   :  { %5088 = vmatpush.bf16.msrb.mxu2 %v7715_v61  ;;  %v7745_v61 = vld [vmem:[#allocation2 + $0xea0] sm:$0xff]  ;;  %v7750_v18 = vld [vmem:[#allocation2 + $0xec8] sm:$0xff] }
 0x1b3   :  { %5101 = vmatpush.bf16.msrb.mxu3 %v7723_v62  ;;  %v7952_v19 = vadd.f32 %v4849_v17, %v4837_v16  ;;  %v7753_v62 = vld [vmem:[#allocation2 + $0xee0] sm:$0xff]  ;;  %v7734_v16 = vld [vmem:[#allocation2 + $0xe48] sm:$0xff] }
 0x1b4   :  { %5063 = vmatpush.bf16.msrb.mxu0 %v7698_v63  ;;  %v7742_v17 = vld [vmem:[#allocation2 + $0xe88] sm:$0xff]  ;;  %v7733_v22 = vld [vmem:[#allocation2 + $0xe40] sm:$0xff] }
 0x1b5   :  { %5076 = vmatpush.bf16.msrb.mxu1 %v7706_v0  ;;  %v7728_v0 = vld [vmem:[#allocation2 + $0xe18] sm:$0xff] }
 0x1b6   :  { %5089 = vmatpush.bf16.msrb.mxu2 %v7714_v1  ;;  %v7736_v1 = vld [vmem:[#allocation2 + $0xe58] sm:$0xff] }
 0x1b7   :  { %5102 = vmatpush.bf16.msrb.mxu3 %v7722_v2  ;;  %v7744_v2 = vld [vmem:[#allocation2 + $0xe98] sm:$0xff] }
 0x1b8   :  { %5064 = vmatpush.bf16.msrb.mxu0 %v7697_v5  ;;  %v4838_v30 = vpop.f32.mrf.mxu2 }
 0x1b9   :  { %5077 = vmatpush.bf16.msrb.mxu1 %v7705_v6  ;;  %v4851_v31 = vpop.f32.mrf.mxu3  ;;  %v152_v30 = vld.sshfl [vmem:[#allocation1 + $0x18] sm:$0xff pattern:$0x73625140] }
 0x1ba   :  { %5090 = vmatpush.bf16.msrb.mxu2 %v7713_v8  ;;  %v7780_v31 = vld [vmem:[#allocation2 + $0xfb8] sm:$0xff] }
 0x1bb   :  { %5103 = vmatpush.bf16.msrb.mxu3 %v7721_v9  ;;  %v7727_v9 = vld [vmem:[#allocation2 + $0xe10] sm:$0xff] }
 0x1bc   :  { %5065 = vmatpush.bf16.msrb.mxu0 %v7696_v11 }
 0x1bd   :  { %5078 = vmatpush.bf16.msrb.mxu1 %v7704_v12  ;;  %v7743_v12 = vld [vmem:[#allocation2 + $0xe90] sm:$0xff] }
 0x1be   :  { %5091 = vmatpush.bf16.msrb.mxu2 %v7712_v13  ;;  %v7751_v13 = vld [vmem:[#allocation2 + $0xed0] sm:$0xff] }
 0x1bf   :  { %5104 = vmatpush.bf16.msrb.mxu3 %v7720_v14  ;;  %v59_v14 = vld [vmem:[%s7967_s0 + $0x78] sm:$0xff] }
 0x1c0   :  { %5066 = vmatpush.bf16.msrb.mxu0 %v7695_v20  ;;  %148 = vst [vmem:[#allocation1 + $0x20] ss:$4 sm:$0xff] %v59_v14 }
 0x1c1   :  { %5079 = vmatpush.bf16.msrb.mxu1 %v7703_v21  ;;  %v7725_v21 = vld [vmem:[#allocation2 + $0xe00] sm:$0xff] }
 0x1c2   :  { %5092 = vmatpush.bf16.msrb.mxu2 %v7711_v23  ;;  %v7741_v23 = vld [vmem:[#allocation2 + $0xe80] sm:$0xff] }
 0x1c3   :  { %5105 = vmatpush.bf16.msrb.mxu3 %v7719_v24  ;;  %v7749_v24 = vld [vmem:[#allocation2 + $0xec0] sm:$0xff] }
 0x1c4   :  { %5067 = vmatpush.bf16.msrb.mxu0 %v7694_v25  ;;  %v7764_v25 = vld [vmem:[#allocation2 + $0xf38] sm:$0xff] }
 0x1c5   :  { %5080 = vmatpush.bf16.msrb.mxu1 %v7702_v26  ;;  %v7772_v26 = vld [vmem:[#allocation2 + $0xf78] sm:$0xff] }
 0x1c6   :  { %5093 = vmatpush.bf16.msrb.mxu2 %v7710_v28  ;;  %v151_v28 = vld.sshfl [vmem:[#allocation1 + $0x10] sm:$0xff pattern:$0x73625140] }
 0x1c7   :  { %5106 = vmatpush.bf16.msrb.mxu3 %v7718_v29  ;;  %v150_v29 = vld.sshfl [vmem:[#allocation1 + $0x8] sm:$0xff pattern:$0x73625140] }
 0x1c8   :  { %5068 = vmatpush.bf16.msrb.mxu0 %v7693_v32  ;;  %v4862_v56 = vpop.f32.mrf.mxu0  ;;  %v7788_v32 = vld [vmem:[#allocation2 + $0xff8] sm:$0xff]  ;;  %v154_v14 = vld.sshfl [vmem:[#allocation1 + $0x28] sm:$0xff pattern:$0x73625140] }
 0x1c9   :  { %5081 = vmatpush.bf16.msrb.mxu1 %v7701_v33  ;;  %v4863_v57 = vadd.f32 %v4862_v56, %v7952_v19  ;;  %v4875_v60 = vpop.f32.mrf.mxu1  ;;  %v277_v33 = vpack.c.bf16 %v149_v27, %v149_v27  ;;  %v7784_v56 = vld [vmem:[#allocation2 + $0xfd8] sm:$0xff] }
 0x1ca   :  { %5094 = vmatpush.bf16.msrb.mxu2 %v7709_v34  ;;  %v279_v34 = vpack.c.bf16 %v151_v28, %v151_v28 }
 0x1cb   :  { %5107 = vmatpush.bf16.msrb.mxu3 %v7717_v35  ;;  %5069 = vmatmul.bf16.vlgmr.msrb.gmra.mxu0 %v273_v44  ;;  %v4876_v63 = vadd.f32 %v4875_v60, %v4863_v57  ;;  %v278_v35 = vpack.c.bf16 %v150_v29, %v150_v29  ;;  %v7786_v44 = vld [vmem:[#allocation2 + $0xfe8] sm:$0xff] }
 0x1cc   :  { %5113 = vmatpush.bf16.msra.mxu0 %v7732_v36  ;;  %5082 = vmatmul.bf16.vlgmr.msrb.gmra.mxu1 %v274_v46  ;;  %v280_v36 = vpack.c.bf16 %v152_v30, %v152_v30 }
 0x1cd   :  { %5126 = vmatpush.bf16.msra.mxu1 %v7740_v37  ;;  %5095 = vmatmul.bf16.vlgmr.msrb.gmra.mxu2 %v275_v45  ;;  %v7763_v37 = vld [vmem:[#allocation2 + $0xf30] sm:$0xff] }
 0x1ce   :  { %5139 = vmatpush.bf16.msra.mxu2 %v7748_v42  ;;  %5108 = vmatmul.bf16.vlgmr.msrb.gmra.mxu3 %v276_v47  ;;  %v7770_v42 = vld [vmem:[#allocation2 + $0xf68] sm:$0xff]  ;;  %v7761_v47 = vld [vmem:[#allocation2 + $0xf20] sm:$0xff] }
 0x1cf   :  { %5152 = vmatpush.bf16.msra.mxu3 %v7756_v43  ;;  %v7778_v43 = vld [vmem:[#allocation2 + $0xfa8] sm:$0xff] }
 0x1d0   :  { %5114 = vmatpush.bf16.msra.mxu0 %v7731_v48  ;;  %v4888_v4 = vpop.f32.mrf.mxu2  ;;  %v4864_v7 = vpop.f32.mrf.mxu0  ;;  %v7769_v48 = vld [vmem:[#allocation2 + $0xf60] sm:$0xff] }
 0x1d1   :  { %5127 = vmatpush.bf16.msra.mxu1 %v7739_v49  ;;  %v4889_v5 = vadd.f32 %v4888_v4, %v4876_v63  ;;  %v4901_v6 = vpop.f32.mrf.mxu3  ;;  %v4877_v11 = vpop.f32.mrf.mxu1  ;;  %v7767_v63 = vld [vmem:[#allocation2 + $0xf50] sm:$0xff]  ;;  %v7766_v4 = vld [vmem:[#allocation2 + $0xf48] sm:$0xff] }
 0x1d2   :  { %5140 = vmatpush.bf16.msra.mxu2 %v7747_v50  ;;  %v7777_v50 = vld [vmem:[#allocation2 + $0xfa0] sm:$0xff] }
 0x1d3   :  { %5153 = vmatpush.bf16.msra.mxu3 %v7755_v51  ;;  %v7958_v8 = vadd.f32 %v4901_v6, %v4889_v5  ;;  %v7785_v51 = vld [vmem:[#allocation2 + $0xfe0] sm:$0xff]  ;;  %v7774_v5 = vld [vmem:[#allocation2 + $0xf88] sm:$0xff] }
 0x1d4   :  { %5115 = vmatpush.bf16.msra.mxu0 %v7730_v52  ;;  %v7782_v6 = vld [vmem:[#allocation2 + $0xfc8] sm:$0xff]  ;;  %v7773_v11 = vld [vmem:[#allocation2 + $0xf80] sm:$0xff] }
 0x1d5   :  { %5128 = vmatpush.bf16.msra.mxu1 %v7738_v53  ;;  %v7760_v53 = vld [vmem:[#allocation2 + $0xf18] sm:$0xff] }
 0x1d6   :  { %5141 = vmatpush.bf16.msra.mxu2 %v7746_v54  ;;  %v7768_v54 = vld [vmem:[#allocation2 + $0xf58] sm:$0xff] }
 0x1d7   :  { %5154 = vmatpush.bf16.msra.mxu3 %v7754_v55  ;;  %v7776_v55 = vld [vmem:[#allocation2 + $0xf98] sm:$0xff] }
 0x1d8   :  { %5116 = vmatpush.bf16.msra.mxu0 %v7729_v58  ;;  %v4890_v19 = vpop.f32.mrf.mxu2 }
 0x1d9   :  { %5129 = vmatpush.bf16.msra.mxu1 %v7737_v59  ;;  %v4903_v20 = vpop.f32.mrf.mxu3 }
 0x1da   :  { %5142 = vmatpush.bf16.msra.mxu2 %v7745_v61 }
 0x1db   :  { %5155 = vmatpush.bf16.msra.mxu3 %v7753_v62  ;;  %v7759_v62 = vld [vmem:[#allocation2 + $0xf10] sm:$0xff] }
 0x1dc   :  { %5117 = vmatpush.bf16.msra.mxu0 %v7728_v0 }
 0x1dd   :  { %5130 = vmatpush.bf16.msra.mxu1 %v7736_v1  ;;  %v7775_v1 = vld [vmem:[#allocation2 + $0xf90] sm:$0xff] }
 0x1de   :  { %5143 = vmatpush.bf16.msra.mxu2 %v7744_v2  ;;  %v7783_v2 = vld [vmem:[#allocation2 + $0xfd0] sm:$0xff] }
 0x1df   :  { %5156 = vmatpush.bf16.msra.mxu3 %v7752_v3  ;;  %v7758_v3 = vld [vmem:[#allocation2 + $0xf08] sm:$0xff] }
 0x1e0   :  { %5118 = vmatpush.bf16.msra.mxu0 %v7727_v9 }
 0x1e1   :  { %5131 = vmatpush.bf16.msra.mxu1 %v7735_v10  ;;  %v7765_v10 = vld [vmem:[#allocation2 + $0xf40] sm:$0xff] }
 0x1e2   :  { %5144 = vmatpush.bf16.msra.mxu2 %v7743_v12  ;;  %v7781_v12 = vld [vmem:[#allocation2 + $0xfc0] sm:$0xff] }
 0x1e3   :  { %5157 = vmatpush.bf16.msra.mxu3 %v7751_v13  ;;  %v153_v13 = vld.sshfl [vmem:[#allocation1 + $0x20] sm:$0xff pattern:$0x73625140] }
 0x1e4   :  { %5119 = vmatpush.bf16.msra.mxu0 %v7726_v15  ;;  %v155_v15 = vld.sshfl [vmem:[#allocation1 + $0x30] sm:$0xff pattern:$0x73625140] }
 0x1e5   :  { %5132 = vmatpush.bf16.msra.mxu1 %v7734_v16  ;;  %v156_v16 = vld.sshfl [vmem:[#allocation1 + $0x38] sm:$0xff pattern:$0x73625140]  ;;  %v283_v19 = vpack.c.bf16 %v155_v15, %v155_v15 }
 0x1e6   :  { %5145 = vmatpush.bf16.msra.mxu2 %v7742_v17  ;;  %v281_v17 = vpack.c.bf16 %v153_v13, %v153_v13  ;;  %v284_v20 = vpack.c.bf16 %v156_v16, %v156_v16 }
 0x1e7   :  { %5158 = vmatpush.bf16.msra.mxu3 %v7750_v18  ;;  %v282_v18 = vpack.c.bf16 %v154_v14, %v154_v14 }
 0x1e8   :  { %5120 = vmatpush.bf16.msra.mxu0 %v7725_v21  ;;  %v4914_v45 = vpop.f32.mrf.mxu0 }
 0x1e9   :  { %5133 = vmatpush.bf16.msra.mxu1 %v7733_v22  ;;  %v4915_v46 = vadd.f32 %v4914_v45, %v7958_v8  ;;  %v4927_v49 = vpop.f32.mrf.mxu1  ;;  %v7757_v8 = vld [vmem:[#allocation2 + $0xf00] sm:$0xff] }
 0x1ea   :  { %5146 = vmatpush.bf16.msra.mxu2 %v7741_v23 }
 0x1eb   :  { %5159 = vmatpush.bf16.msra.mxu3 %v7749_v24  ;;  %5121 = vmatmul.bf16.vlgmr.msra.gmra.mxu0 %v277_v33  ;;  %v4928_v52 = vadd.f32 %v4927_v49, %v4915_v46 }
 0x1ec   :  { %5165 = vmatpush.bf16.msrb.mxu0 %v7764_v25  ;;  %5134 = vmatmul.bf16.vlgmr.msra.gmra.mxu1 %v278_v35 }
 0x1ed   :  { %5178 = vmatpush.bf16.msrb.mxu1 %v7772_v26  ;;  %5147 = vmatmul.bf16.vlgmr.msra.gmra.mxu2 %v279_v34 }
 0x1ee   :  { %5191 = vmatpush.bf16.msrb.mxu2 %v7780_v31  ;;  %5160 = vmatmul.bf16.vlgmr.msra.gmra.mxu3 %v280_v36 }
 0x1ef   :  { %5204 = vmatpush.bf16.msrb.mxu3 %v7788_v32 }
 0x1f0   :  { %5166 = vmatpush.bf16.msrb.mxu0 %v7763_v37  ;;  %v4940_v57 = vpop.f32.mrf.mxu2  ;;  %v4916_v60 = vpop.f32.mrf.mxu0 }
 0x1f1   :  { %5179 = vmatpush.bf16.msrb.mxu1 %v7771_v38  ;;  %v4941_v58 = vadd.f32 %v4940_v57, %v4928_v52  ;;  %v4953_v59 = vpop.f32.mrf.mxu3  ;;  %v4929_v0 = vpop.f32.mrf.mxu1 }
 0x1f2   :  { %5192 = vmatpush.bf16.msrb.mxu2 %v7779_v39 }
 0x1f3   :  { %5205 = vmatpush.bf16.msrb.mxu3 %v7787_v40  ;;  %v4954_v61 = vadd.f32 %v4953_v59, %v4941_v58 }
 0x1f4   :  { %5167 = vmatpush.bf16.msrb.mxu0 %v7762_v41 }
 0x1f5   :  { %5180 = vmatpush.bf16.msrb.mxu1 %v7770_v42 }
 0x1f6   :  { %5193 = vmatpush.bf16.msrb.mxu2 %v7778_v43 }
 0x1f7   :  { %5206 = vmatpush.bf16.msrb.mxu3 %v7786_v44 }
 0x1f8   :  { %5168 = vmatpush.bf16.msrb.mxu0 %v7761_v47  ;;  %v4942_v7 = vpop.f32.mrf.mxu2 }
 0x1f9   :  { %5181 = vmatpush.bf16.msrb.mxu1 %v7769_v48  ;;  %v4955_v9 = vpop.f32.mrf.mxu3 }
 0x1fa   :  { %5194 = vmatpush.bf16.msrb.mxu2 %v7777_v50 }
 0x1fb   :  { %5207 = vmatpush.bf16.msrb.mxu3 %v7785_v51 }
 0x1fc   :  { %5169 = vmatpush.bf16.msrb.mxu0 %v7760_v53 }
 0x1fd   :  { %5182 = vmatpush.bf16.msrb.mxu1 %v7768_v54 }
 0x1fe   :  { %5195 = vmatpush.bf16.msrb.mxu2 %v7776_v55 }
 0x1ff   :  { %5208 = vmatpush.bf16.msrb.mxu3 %v7784_v56 }
 0x200   :  { %5170 = vmatpush.bf16.msrb.mxu0 %v7759_v62 }
 0x201   :  { %5183 = vmatpush.bf16.msrb.mxu1 %v7767_v63 }
 0x202   :  { %5196 = vmatpush.bf16.msrb.mxu2 %v7775_v1 }
 0x203   :  { %5209 = vmatpush.bf16.msrb.mxu3 %v7783_v2 }
 0x204   :  { %5171 = vmatpush.bf16.msrb.mxu0 %v7758_v3 }
 0x205   :  { %5184 = vmatpush.bf16.msrb.mxu1 %v7766_v4 }
 0x206   :  { %5197 = vmatpush.bf16.msrb.mxu2 %v7774_v5 }
 0x207   :  { %5210 = vmatpush.bf16.msrb.mxu3 %v7782_v6 }
 0x208   :  { %5172 = vmatpush.bf16.msrb.mxu0 %v7757_v8  ;;  %v4966_v21 = vpop.f32.mrf.mxu0 }
 0x209   :  { %5185 = vmatpush.bf16.msrb.mxu1 %v7765_v10  ;;  %v4967_v22 = vadd.f32 %v4966_v21, %v4954_v61  ;;  %v4979_v23 = vpop.f32.mrf.mxu1 }
 0x20a   :  { %5198 = vmatpush.bf16.msrb.mxu2 %v7773_v11 }
 0x20b   :  { %5211 = vmatpush.bf16.msrb.mxu3 %v7781_v12  ;;  %5173 = vmatmul.bf16.vlgmr.msrb.gmra.mxu0 %v281_v17  ;;  %v4980_v24 = vadd.f32 %v4979_v23, %v4967_v22  ;;  %v5217_v12 = vlaneseq }
 0x20c   :  { %5186 = vmatmul.bf16.vlgmr.msrb.gmra.mxu1 %v282_v18 }
 0x20d   :  { %5199 = vmatmul.bf16.vlgmr.msrb.gmra.mxu2 %v283_v19  ;;  %v5218_v16 = vand.u32 127, %v5217_v12 }
 0x20e   :  { %5212 = vmatmul.bf16.vlgmr.msrb.gmra.mxu3 %v284_v20 }
 0x20f   :  { %vm5219_vm0 = vcmp.eq.s32.totalorder %v5218_v16, 65 }
 0x210   :  { %v4992_v25 = vpop.f32.mrf.mxu2  ;;  %v4968_v28 = vpop.f32.mrf.mxu0 }
 0x211   :  { %v4993_v26 = vadd.f32 %v4992_v25, %v4980_v24  ;;  %v5005_v27 = vpop.f32.mrf.mxu3  ;;  %v4981_v30 = vpop.f32.mrf.mxu1 }
 0x213   :  { %v5006_v29 = vadd.f32 %v5005_v27, %v4993_v26 }
 0x218   :  { %v4994_v31 = vpop.f32.mrf.mxu2 }
 0x219   :  { %v5007_v32 = vpop.f32.mrf.mxu3 }
 0x228   :  { %v5018_v33 = vpop.f32.mrf.mxu0 }
 0x229   :  { %v5019_v34 = vadd.f32 %v5018_v33, %v5006_v29  ;;  %v5031_v35 = vpop.f32.mrf.mxu1 }
 0x22b   :  { %v5032_v36 = vadd.f32 %v5031_v35, %v5019_v34 }
 0x230   :  { %v5044_v37 = vpop.f32.mrf.mxu2  ;;  %v5020_v40 = vpop.f32.mrf.mxu0 }
 0x231   :  { %v5045_v38 = vadd.f32 %v5044_v37, %v5032_v36  ;;  %v5057_v39 = vpop.f32.mrf.mxu3  ;;  %v5033_v42 = vpop.f32.mrf.mxu1 }
 0x233   :  { %v5058_v41 = vadd.f32 %v5057_v39, %v5045_v38 }
 0x238   :  { %v5046_v43 = vpop.f32.mrf.mxu2 }
 0x239   :  { %v5059_v44 = vpop.f32.mrf.mxu3 }
 0x248   :  { %v5070_v45 = vpop.f32.mrf.mxu0 }
 0x249   :  { %v5083_v46 = vpop.f32.mrf.mxu1  ;;  %v5071_v56 = vadd.f32 %v5070_v45, %v5058_v41 }
 0x24b   :  { %v5084_v60 = vadd.f32 %v5083_v46, %v5071_v56 }
 0x250   :  { %v5096_v47 = vpop.f32.mrf.mxu2  ;;  %v5072_v49 = vpop.f32.mrf.mxu0 }
 0x251   :  { %v5109_v48 = vpop.f32.mrf.mxu3  ;;  %v5085_v50 = vpop.f32.mrf.mxu1  ;;  %v5097_v61 = vadd.f32 %v5096_v47, %v5084_v60 }
 0x253   :  { %v5110_v0 = vadd.f32 %v5109_v48, %v5097_v61 }
 0x258   :  { %v5098_v51 = vpop.f32.mrf.mxu2 }
 0x259   :  { %v5111_v52 = vpop.f32.mrf.mxu3 }
 0x268   :  { %v5122_v53 = vpop.f32.mrf.mxu0 }
 0x269   :  { %v5135_v54 = vpop.f32.mrf.mxu1  ;;  %v5123_v1 = vadd.f32 %v5122_v53, %v5110_v0 }
 0x26b   :  { %v5136_v2 = vadd.f32 %v5135_v54, %v5123_v1 }
 0x270   :  { %v5148_v55 = vpop.f32.mrf.mxu2  ;;  %v5124_v58 = vpop.f32.mrf.mxu0 }
 0x271   :  { %v5161_v57 = vpop.f32.mrf.mxu3  ;;  %v5137_v59 = vpop.f32.mrf.mxu1  ;;  %v5149_v3 = vadd.f32 %v5148_v55, %v5136_v2 }
 0x273   :  { %v5162_v4 = vadd.f32 %v5161_v57, %v5149_v3 }
 0x278   :  { %v5150_v62 = vpop.f32.mrf.mxu2 }
 0x279   :  { %v5163_v63 = vpop.f32.mrf.mxu3 }
 0x288   :  { %v5174_v5 = vpop.f32.mrf.mxu0 }
 0x289   :  { %v5187_v6 = vpop.f32.mrf.mxu1  ;;  %v5175_v7 = vadd.f32 %v5174_v5, %v5162_v4 }
 0x28b   :  { %v5188_v8 = vadd.f32 %v5187_v6, %v5175_v7 }
 0x290   :  { %v5200_v9 = vpop.f32.mrf.mxu2  ;;  %v5176_v13 = vpop.f32.mrf.mxu0 }
 0x291   :  { %v5213_v10 = vpop.f32.mrf.mxu3  ;;  %v5201_v11 = vadd.f32 %v5200_v9, %v5188_v8  ;;  %v5189_v14 = vpop.f32.mrf.mxu1 }
 0x293   :  { %v5214_v15 = vadd.f32 %v5213_v10, %v5201_v11 }
 0x295   :  { %7794 = vtanh.f32 %v5214_v15 }
 0x298   :  { %v5202_v17 = vpop.f32.mrf.mxu2 }
 0x299   :  { %v5215_v18 = vpop.f32.mrf.mxu3 }
 0x29b   :  { %v7795_v19 = vpop.eup %7794 }
 0x29c   :  { %v5221_v20 = vsel %vm5219_vm0, %v7795_v19, %v5214_v15 }
 0x29d   :  { %5222 = vst [vmem:[%s7970_s3] sm:$0x3] %v5221_v20 }
 0x29e   :  { %5227 = vsyncpa [#allocation3], 1 }
 0x29f   :  { %5228 = vsyncpa [#allocation5], 1 }

// kernel: resnet_forward.2
= control target key start
LH: loop header
LB: loop body
LE: loop exit
PB: predicated region body
PF: predicated region fallthrough
CT: control target
= control target key end

     0   :  { %12 = vsyncpa [#allocation4], 0  ;;  %s11550_s0 = inlined_call_operand.vmem [shape: f32[2,10,10,8], index: 0, kind: input, shape index: {}]   ;;  %s11551_s1 = inlined_call_operand.hbm [shape: bf16[9,8,32], index: 1, kind: input, shape index: {}]   ;;  %s11552_s2 = inlined_call_operand.hbm [shape: f32[1,32], index: 2, kind: input, shape index: {}]   ;;  %s11553_s3 = inlined_call_operand.hbm [shape: bf16[4,9,32,32], index: 3, kind: input, shape index: {}]   ;;  %s11554_s4 = inlined_call_operand.hbm [shape: f32[4,1,32], index: 4, kind: input, shape index: {}]   ;;  %s11555_s5 = inlined_call_operand.hbm [shape: bf16[9,32,128], index: 5, kind: input, shape index: {}]   ;;  %s11556_s6 = inlined_call_operand.hbm [shape: f32[1,128], index: 6, kind: input, shape index: {}]   ;;  %s11557_s7 = inlined_call_operand.vmem [shape: f32[128,128], index: 7, kind: output, shape index: {}]  }
   0x1   :  { %13 = vsyncpa [#allocation6], 0 }
   0x2   :  { %14 = vsyncpa [#allocation9], 0  ;;  %s36_s26 = sshll.u32 %s11552_s2, 4  ;;  %s37_s26 = int_to_ptr.hbm [resolvable:$true] %s36_s26 }
   0x3   :  { %15 = vsyncpa [#allocation12], 0  ;;  %s8386_s27 = smov [#allocation5]   ;;  %s59_s8 = sshll.u32 %s11554_s4, 4  ;;  %s60_s8 = int_to_ptr.hbm [resolvable:$true] %s59_s8 }
   0x4   :  { %s38_s28 = sshll.u32 %s8386_s27, 4  ;;  %s8387_s9 = smov [#allocation8]   ;;  %s39_s28 = int_to_ptr.vmem [resolvable:$true] %s38_s28 }
   0x5   :  { %41 = dma.hbm_to_vmem [thread:$0]  %s37_s26, 16, %s39_s28, [#allocation6]  }
   0x6   :  { %s61_s10 = sshll.u32 %s8387_s9, 4  ;;  %s8388_s11 = smov 16   ;;  %s62_s10 = int_to_ptr.vmem [resolvable:$true] %s61_s10 }
   0x7   :  { %s8389_s12 = smov 1   ;;  %s22_s2 = sshll.u32 %s11551_s1, 4  ;;  %s23_s2 = int_to_ptr.hbm [resolvable:$true] %s22_s2 }
   0x8   :  { %67 = dma.hbm_to_vmem [thread:$0]  %s60_s8, 64, %s62_s10, [#allocation9], %s8388_s11, %s8388_s11, %s8389_s12  }
   0x9   :  { %s8390_s15 = smov [#allocation3]   ;;  %s46_s4 = sshll.u32 %s11553_s3, 4  ;;  %s47_s4 = int_to_ptr.hbm [resolvable:$true] %s46_s4 }
   0xa   :  { %s24_s16 = sshll.u32 %s8390_s15, 4  ;;  %s8391_s19 = smov 64   ;;  %s25_s16 = int_to_ptr.vmem [resolvable:$true] %s24_s16 }
   0xb   :  { %s8392_s20 = smov 4   ;;  %s8393_s21 = smov [#allocation7]  }
   0xc   :  { %30 = dma.hbm_to_vmem [thread:$0]  %s23_s2, 576, %s25_s16, [#allocation4], %s8391_s19, %s8391_s19, %s8392_s20  }
   0xd   :  { %s48_s22 = sshll.u32 %s8393_s21, 4  ;;  %s72_s25 = sshll.u32 %s11555_s5, 4  ;;  %s49_s22 = int_to_ptr.vmem [resolvable:$true] %s48_s22  ;;  %s73_s25 = int_to_ptr.hbm [resolvable:$true] %s72_s25 }
   0xe   :  { %54 = dma.hbm_to_vmem [thread:$0]  %s47_s4, 9216, %s49_s22, [#allocation6], %s8391_s19, %s8391_s19, %s8392_s20  }
   0xf   :  { %s86_s27 = sshll.u32 %s11556_s6, 4  ;;  %s8394_s28 = smov [#allocation10]   ;;  %s87_s27 = int_to_ptr.hbm [resolvable:$true] %s86_s27 }
  0x10   :  { %s74_s29 = sshll.u32 %s8394_s28, 4  ;;  %s8395_s3 = smov [#allocation11]   ;;  %s75_s29 = int_to_ptr.vmem [resolvable:$true] %s74_s29 }
  0x11   :  { %80 = dma.hbm_to_vmem [thread:$0]  %s73_s25, 2304, %s75_s29, [#allocation9], %s8391_s19, %s8391_s19, %s8392_s20  }
  0x12   :  { %s88_s30 = sshll.u32 %s8395_s3, 4  ;;  %s89_s30 = int_to_ptr.vmem [resolvable:$true] %s88_s30 }
  0x13   :  { %91 = dma.hbm_to_vmem [thread:$0]  %s87_s27, 16, %s89_s30, [#allocation12]  }
  0x14   :  { %8378 = dma.done.wait [#allocation4], 576  }
  0x15   :  { %8379 = vsyncadd [#allocation4], 4294966720 }
  0x16   :  { %8380 = dma.done.wait [#allocation6], 9232  }
  0x17   :  { %8381 = vsyncadd [#allocation6], 4294958064 }
  0x18   :  { %8382 = dma.done.wait [#allocation9], 2368  }
  0x19   :  { %8383 = vsyncadd [#allocation9], 4294964928 }
  0x1a   :  { %8384 = dma.done.wait [#allocation12], 16  }
  0x1b   :  { %8385 = vsyncadd [#allocation12], 4294967280  ;;  %vm235_vm0 = vcmask 1043456   ;;  %v209_v0 = vld [vmem:[#allocation3 + $0x4] sm:$0xf]  ;;  %v8463_v5 = vld [vmem:[%s11550_s0 + $0xb1] sm:$0xff] }
  0x1c   :  { %v183_v1 = vld [vmem:[#allocation3] sm:$0xf]  ;;  %v237_v3 = vsel %vm235_vm0, %v209_v0, 0  ;;  %v8471_v7 = vld [vmem:[%s11550_s0 + $0xb0] sm:$0xff]  ;;  %vm210_vm1 = vcmask 64512   ;;  %vm117_vm2 = vcmask 261120  }
  0x1d   :  { %v192_v2 = vld [vmem:[%s11550_s0 + $0xa1] sm:$0xff]  ;;  %v313_v4 = vsel %vm235_vm0, %v183_v1, 0  ;;  %8215 = vmatpush.bf16.msra.mxu2 %v237_v3  ;;  %v8481_v12 = vld [vmem:[%s11550_s0 + $0x11] sm:$0xff]  ;;  %246 = vmatpush.bf16.msra.mxu0 %v237_v3  ;;  %v508_v17 = vld [vmem:[#allocation3 + $0xc] sm:$0xf]  ;;  %vm119_vm3 = vcmask 254976  }
  0x1e   :  { %v167_v6 = vld [vmem:[%s11550_s0 + $0xa0] sm:$0xff]  ;;  %8216 = vmatpush.bf16.msra.mxu3 %v313_v4  ;;  %v204_v8 = vpack.c.bf16 %v8463_v5, %v192_v2  ;;  %v389_v10 = vld [vmem:[#allocation3 + $0x8] sm:$0xf]  ;;  %322 = vmatpush.bf16.msra.mxu1 %v313_v4  ;;  %v8491_v16 = vld [vmem:[%s11550_s0 + $0x10] sm:$0xff]  ;;  %v534_v19 = vsel %vm235_vm0, %v508_v17, 0 }
  0x1f   :  { %v179_v9 = vpack.c.bf16 %v8471_v7, %v167_v6  ;;  %v184_v11 = vld [vmem:[%s11550_s0 + $0x1] sm:$0xff]  ;;  %v415_v13 = vsel %vm235_vm0, %v389_v10, 0  ;;  %v626_v20 = vld [vmem:[#allocation3 + $0x10] sm:$0xf]  ;;  %v863_v46 = vld [vmem:[#allocation3 + $0x18] sm:$0xf] }
  0x20   :  { %v200_v14 = vpack.c.bf16 %v8481_v12, %v184_v11  ;;  %v159_v15 = vld [vmem:[%s11550_s0] sm:$0xff]  ;;  %7241 = vmatmul.msk.bf16.vlgmr.msra.gmra.mxu2 %vm210_vm1, %v204_v8  ;;  %v652_v21 = vsel %vm235_vm0, %v626_v20, 0  ;;  %v8508_v23 = vld [vmem:[%s11550_s0 + $0xd1] sm:$0xff]  ;;  %v889_v47 = vsel %vm235_vm0, %v863_v46, 0  ;;  %v981_v48 = vld [vmem:[#allocation3 + $0x1c] sm:$0xf] }
  0x21   :  { %424 = vmatpush.bf16.msrb.mxu2 %v415_v13  ;;  %v175_v18 = vpack.c.bf16 %v8491_v16, %v159_v15  ;;  %7249 = vmatmul.msk.bf16.vlgmr.msra.gmra.mxu3 %vm210_vm1, %v179_v9  ;;  %v8503_v22 = vld [vmem:[%s11550_s0 + $0xc1] sm:$0xff]  ;;  %v8518_v25 = vld [vmem:[%s11550_s0 + $0xd0] sm:$0xff]  ;;  %v1007_v50 = vsel %vm235_vm0, %v981_v48, 0 }
  0x22   :  { %7237 = vmatmul.msk.bf16.vlgmr.msra.gmra.mxu0 %vm210_vm1, %v200_v14  ;;  %543 = vmatpush.bf16.msrb.mxu3 %v534_v19  ;;  %v8513_v24 = vld [vmem:[%s11550_s0 + $0xc0] sm:$0xff]  ;;  %v8528_v27 = vld [vmem:[%s11550_s0 + $0x31] sm:$0xff]  ;;  %v8542_v30 = vpack.c.bf16 %v8508_v23, %v8503_v22 }
  0x23   :  { %7245 = vmatmul.msk.bf16.vlgmr.msra.gmra.mxu1 %vm210_vm1, %v175_v18  ;;  %661 = vmatpush.bf16.msrb.mxu0 %v652_v21  ;;  %v8523_v26 = vld [vmem:[%s11550_s0 + $0x21] sm:$0xff]  ;;  %v8538_v29 = vld [vmem:[%s11550_s0 + $0x30] sm:$0xff]  ;;  %v8546_v31 = vpack.c.bf16 %v8518_v25, %v8513_v24 }
  0x24   :  { %v8533_v28 = vld [vmem:[%s11550_s0 + $0x20] sm:$0xff]  ;;  %v8550_v32 = vpack.c.bf16 %v8528_v27, %v8523_v26  ;;  %v8572_v35 = vld [vmem:[%s11550_s0 + $0xf1] sm:$0xff]  ;;  %v617_v9 = vpack.c.bf16 %v8523_v26, %v8481_v12 }
  0x25   :  { %v8554_v33 = vpack.c.bf16 %v8538_v29, %v8533_v28  ;;  %v8567_v34 = vld [vmem:[%s11550_s0 + $0xe1] sm:$0xff]  ;;  %v8582_v37 = vld [vmem:[%s11550_s0 + $0xf0] sm:$0xff]  ;;  %898 = vmatpush.bf16.msra.mxu2 %v889_v47  ;;  %v499_v8 = vpack.c.bf16 %v8533_v28, %v8491_v16 }
  0x26   :  { %v8577_v36 = vld [vmem:[%s11550_s0 + $0xe0] sm:$0xff]  ;;  %v8590_v39 = vld [vmem:[%s11550_s0 + $0x51] sm:$0xff]  ;;  %v8602_v42 = vpack.c.bf16 %v8572_v35, %v8567_v34  ;;  %1016 = vmatpush.bf16.msra.mxu3 %v1007_v50 }
  0x27   :  { %v188_v38 = vld [vmem:[%s11550_s0 + $0x41] sm:$0xff]  ;;  %v8598_v41 = vld [vmem:[%s11550_s0 + $0x50] sm:$0xff]  ;;  %v8606_v43 = vpack.c.bf16 %v8582_v37, %v8577_v36 }
  0x28   :  { %v163_v40 = vld [vmem:[%s11550_s0 + $0x40] sm:$0xff]  ;;  %v8609_v44 = vpack.c.bf16 %v8590_v39, %v188_v38  ;;  %v744_v49 = vld [vmem:[#allocation3 + $0x14] sm:$0xf]  ;;  %v618_v15 = vpack.c.bf16 %v188_v38, %v8528_v27 }
  0x29   :  { %v8612_v45 = vpack.c.bf16 %v8598_v41, %v163_v40  ;;  %v770_v51 = vsel %vm235_vm0, %v744_v49, 0  ;;  %v1099_v52 = vld [vmem:[#allocation3 + $0x20] sm:$0xf]  ;;  %v8634_v55 = vld [vmem:[%s11550_s0 + $0x111] sm:$0xff]  ;;  %v500_v12 = vpack.c.bf16 %v163_v40, %v8538_v29 }
  0x2a   :  { %779 = vmatpush.bf16.msrb.mxu1 %v770_v51  ;;  %v1125_v53 = vsel %vm235_vm0, %v1099_v52, 0  ;;  %v8629_v54 = vld [vmem:[%s11550_s0 + $0x101] sm:$0xff]  ;;  %v8644_v57 = vld [vmem:[%s11550_s0 + $0x110] sm:$0xff]  ;;  %v503_v51 = vpack.c.bf16 %v8513_v24, %v8471_v7  ;;  %v621_v52 = vpack.c.bf16 %v8503_v22, %v8463_v5 }
  0x2b   :  { %1134 = vmatpush.bf16.msra.mxu0 %v1125_v53  ;;  %v8639_v56 = vld [vmem:[%s11550_s0 + $0x100] sm:$0xff]  ;;  %v191_v59 = vld [vmem:[%s11550_s0 + $0x71] sm:$0xff]  ;;  %v8660_v62 = vpack.c.bf16 %v8634_v55, %v8629_v54 }
  0x2c   :  { %v190_v58 = vld [vmem:[%s11550_s0 + $0x61] sm:$0xff]  ;;  %v166_v61 = vld [vmem:[%s11550_s0 + $0x70] sm:$0xff]  ;;  %v8664_v63 = vpack.c.bf16 %v8644_v57, %v8639_v56 }
  0x2d   :  { %v165_v60 = vld [vmem:[%s11550_s0 + $0x60] sm:$0xff]  ;;  %v8666_v0 = vpack.c.bf16 %v191_v59, %v190_v58  ;;  %v365_v3 = vld [vmem:[%s11550_s0 + $0x12] sm:$0xff]  ;;  %v619_v21 = vpack.c.bf16 %v190_v58, %v8590_v39 }
  0x2e   :  { %v8668_v1 = vpack.c.bf16 %v166_v61, %v165_v60  ;;  %v364_v2 = vld [vmem:[%s11550_s0 + $0x2] sm:$0xff]  ;;  %v367_v11 = vld [vmem:[%s11550_s0 + $0x32] sm:$0xff]  ;;  %v501_v20 = vpack.c.bf16 %v165_v60, %v8598_v41 }
  0x2f   :  { %v7310_v4 = vld [vmem:[%s11550_s0 + $0x22] sm:$0xff]  ;;  %v380_v6 = vpack.c.bf16 %v365_v3, %v364_v2  ;;  %v369_v17 = vld [vmem:[%s11550_s0 + $0x52] sm:$0xff] }
  0x30   :  { %7242 = vmatmul.msk.bf16.gmra.mxu2 %vm210_vm1, %v8542_v30  ;;  %v735_v10 = vpack.c.bf16 %v7310_v4, %v365_v3  ;;  %v7312_v13 = vld [vmem:[%s11550_s0 + $0x42] sm:$0xff]  ;;  %v8701_v14 = vpack.c.bf16 %v367_v11, %v7310_v4  ;;  %v371_v27 = vld [vmem:[%s11550_s0 + $0x72] sm:$0xff] }
  0x31   :  { %7250 = vmatmul.msk.bf16.gmra.mxu3 %vm210_vm1, %v8546_v31  ;;  %v736_v16 = vpack.c.bf16 %v7312_v13, %v367_v11  ;;  %v7314_v18 = vld [vmem:[%s11550_s0 + $0x62] sm:$0xff]  ;;  %v8716_v19 = vpack.c.bf16 %v369_v17, %v7312_v13  ;;  %v373_v48 = vld [vmem:[%s11550_s0 + $0xb2] sm:$0xff] }
  0x32   :  { %7238 = vmatmul.msk.bf16.gmra.mxu0 %vm210_vm1, %v8550_v32  ;;  %v737_v26 = vpack.c.bf16 %v7314_v18, %v369_v17  ;;  %v8731_v28 = vld [vmem:[%s11550_s0 + $0x80] sm:$0xff]  ;;  %v8743_v39 = vpack.c.bf16 %v371_v27, %v7314_v18  ;;  %v375_v5 = vld [vmem:[%s11550_s0 + $0xd2] sm:$0xff]  ;;  %v505_v18 = vpack.c.bf16 %v8639_v56, %v8582_v37 }
  0x33   :  { %7246 = vmatmul.msk.bf16.gmra.mxu1 %vm210_vm1, %v8554_v33  ;;  %v8736_v29 = vld [vmem:[%s11550_s0 + $0x81] sm:$0xff]  ;;  %v502_v40 = vpack.c.bf16 %v8731_v28, %v166_v61 }
  0x34   :  { %v8741_v38 = vld [vmem:[%s11550_s0 + $0x82] sm:$0xff]  ;;  %v620_v41 = vpack.c.bf16 %v8736_v29, %v191_v59 }
  0x35   :  { %v738_v46 = vpack.c.bf16 %v8741_v38, %v371_v27  ;;  %v372_v47 = vld [vmem:[%s11550_s0 + $0xa2] sm:$0xff] }
  0x36   :  { %v7318_v49 = vld [vmem:[%s11550_s0 + $0xc2] sm:$0xff]  ;;  %v384_v50 = vpack.c.bf16 %v373_v48, %v372_v47 }
  0x37   :  { %v739_v53 = vpack.c.bf16 %v7318_v49, %v373_v48  ;;  %v7320_v7 = vld [vmem:[%s11550_s0 + $0xe2] sm:$0xff]  ;;  %v8784_v4 = vpack.c.bf16 %v375_v5, %v7318_v49 }
  0x38   :  { %v8837_v56 = vld [vmem:[%s11550_s0 + $0x121] sm:$0xff] }
  0x40   :  { %7243 = vmatmul.msk.bf16.gmra.mxu2 %vm210_vm1, %v8602_v42 }
  0x41   :  { %7251 = vmatmul.msk.bf16.gmra.mxu3 %vm210_vm1, %v8606_v43 }
  0x42   :  { %7239 = vmatmul.msk.bf16.gmra.mxu0 %vm210_vm1, %v8609_v44 }
  0x43   :  { %7247 = vmatmul.msk.bf16.gmra.mxu1 %vm210_vm1, %v8612_v45 }
  0x50   :  { %7244 = vmatmul.msk.bf16.gmra.mxu2 %vm210_vm1, %v8660_v62 }
  0x51   :  { %7252 = vmatmul.msk.bf16.gmra.mxu3 %vm210_vm1, %v8664_v63 }
  0x52   :  { %7240 = vmatmul.msk.bf16.gmra.mxu0 %vm210_vm1, %v8666_v0 }
  0x53   :  { %7248 = vmatmul.msk.bf16.gmra.mxu1 %vm210_vm1, %v8668_v1 }
  0x60   :  { %7253 = vmatmul.msk.bf16.vlgmr.msrb.gmra.mxu2 %vm210_vm1, %v380_v6  ;;  %v504_v6 = vpack.c.bf16 %v8577_v36, %v8518_v25 }
  0x61   :  { %7277 = vmatmul.msk.bf16.vlgmr.msrb.gmra.mxu3 %vm210_vm1, %v499_v8  ;;  %v622_v8 = vpack.c.bf16 %v8567_v34, %v8508_v23  ;;  %v377_v23 = vld [vmem:[%s11550_s0 + $0xf2] sm:$0xff]  ;;  %v7322_v34 = vld [vmem:[%s11550_s0 + $0x102] sm:$0xff] }
  0x62   :  { %7301 = vmatmul.msk.bf16.vlgmr.msrb.gmra.mxu0 %vm210_vm1, %v617_v9  ;;  %v740_v9 = vpack.c.bf16 %v7320_v7, %v375_v5  ;;  %v8809_v17 = vpack.c.bf16 %v377_v23, %v7320_v7 }
  0x63   :  { %7325 = vmatmul.msk.bf16.vlgmr.msrb.gmra.mxu1 %vm210_vm1, %v735_v10 }
  0x70   :  { %7254 = vmatmul.msk.bf16.gmra.mxu2 %vm210_vm1, %v8701_v14 }
  0x71   :  { %7278 = vmatmul.msk.bf16.gmra.mxu3 %vm210_vm1, %v500_v12 }
  0x72   :  { %7302 = vmatmul.msk.bf16.gmra.mxu0 %vm210_vm1, %v618_v15 }
  0x73   :  { %7326 = vmatmul.msk.bf16.gmra.mxu1 %vm210_vm1, %v736_v16 }
  0x80   :  { %7255 = vmatmul.msk.bf16.gmra.mxu2 %vm210_vm1, %v8716_v19 }
  0x81   :  { %7279 = vmatmul.msk.bf16.gmra.mxu3 %vm210_vm1, %v501_v20  ;;  %v623_v20 = vpack.c.bf16 %v8629_v54, %v8572_v35  ;;  %v379_v35 = vld [vmem:[%s11550_s0 + $0x112] sm:$0xff]  ;;  %v8832_v54 = vld [vmem:[%s11550_s0 + $0x120] sm:$0xff] }
  0x82   :  { %7303 = vmatmul.msk.bf16.gmra.mxu0 %vm210_vm1, %v619_v21  ;;  %v741_v21 = vpack.c.bf16 %v7322_v34, %v377_v23 }
  0x83   :  { %7327 = vmatmul.msk.bf16.gmra.mxu1 %vm210_vm1, %v737_v26 }
  0x90   :  { %7256 = vmatmul.msk.bf16.gmra.mxu2 %vm210_vm1, %v8743_v39 }
  0x91   :  { %7280 = vmatmul.msk.bf16.gmra.mxu3 %vm210_vm1, %v502_v40 }
  0x92   :  { %7304 = vmatmul.msk.bf16.gmra.mxu0 %vm210_vm1, %v620_v41 }
  0x93   :  { %7328 = vmatmul.msk.bf16.gmra.mxu1 %vm210_vm1, %v738_v46  ;;  %v8842_v46 = vld [vmem:[%s11550_s0 + $0x122] sm:$0xff] }
  0x9f   :  { %v8766_v58 = vpop.f32.mrf.mxu0 }
  0xa0   :  { %7257 = vmatmul.msk.bf16.gmra.mxu2 %vm210_vm1, %v384_v50  ;;  %v8846_v50 = vpack.c.bf16 %v379_v35, %v7322_v34 }
  0xa1   :  { %7281 = vmatmul.msk.bf16.gmra.mxu3 %vm210_vm1, %v503_v51  ;;  %v506_v51 = vpack.c.bf16 %v8832_v54, %v8644_v57 }
  0xa2   :  { %7305 = vmatmul.msk.bf16.gmra.mxu0 %vm210_vm1, %v621_v52  ;;  %v624_v52 = vpack.c.bf16 %v8837_v56, %v8634_v55  ;;  %v8128_v55 = vld [vmem:[#allocation7 + $0x18] sm:$0xff] }
  0xa3   :  { %7329 = vmatmul.msk.bf16.gmra.mxu1 %vm210_vm1, %v739_v53  ;;  %v268_v59 = vpop.f32.mrf.mxu2  ;;  %v742_v53 = vpack.c.bf16 %v8842_v46, %v379_v35 }
  0xa4   :  { %v344_v60 = vpop.f32.mrf.mxu3  ;;  %1344 = vmatpush.bf16.msra.mxu1 %v8128_v55 }
  0xa5   :  { %v8772_v61 = vadd.f32 %v344_v60, %v268_v59  ;;  %v324_v60 = vpop.f32.mrf.mxu1 }
  0xa7   :  { %v8774_v2 = vpop.f32.mrf.mxu0 }
  0xab   :  { %v270_v22 = vpop.f32.mrf.mxu2 }
  0xac   :  { %v346_v24 = vpop.f32.mrf.mxu3 }
  0xad   :  { %v8782_v3 = vadd.f32 %v346_v24, %v270_v22  ;;  %v326_v24 = vpop.f32.mrf.mxu1 }
  0xaf   :  { %v8790_v10 = vpop.f32.mrf.mxu0 }
  0xb0   :  { %7258 = vmatmul.msk.bf16.gmra.mxu2 %vm210_vm1, %v8784_v4 }
  0xb1   :  { %7282 = vmatmul.msk.bf16.gmra.mxu3 %vm210_vm1, %v504_v6 }
  0xb2   :  { %7306 = vmatmul.msk.bf16.gmra.mxu0 %vm210_vm1, %v622_v8 }
  0xb3   :  { %7330 = vmatmul.msk.bf16.gmra.mxu1 %vm210_vm1, %v740_v9  ;;  %v273_v11 = vpop.f32.mrf.mxu2 }
  0xb4   :  { %v349_v13 = vpop.f32.mrf.mxu3 }
  0xb5   :  { %v8797_v12 = vadd.f32 %v349_v13, %v273_v11  ;;  %v325_v13 = vadd.f32 %v324_v60, %v8766_v58 }
  0xb7   :  { %v8799_v25 = vpop.f32.mrf.mxu0 }
  0xbb   :  { %v275_v36 = vpop.f32.mrf.mxu2 }
  0xbc   :  { %v351_v15 = vpop.f32.mrf.mxu3 }
  0xbd   :  { %v8807_v16 = vadd.f32 %v351_v15, %v275_v36  ;;  %v329_v36 = vpop.f32.mrf.mxu1 }
  0xbe   :  { %v330_v58 = vadd.f32 %v329_v36, %v8790_v10 }
  0xbf   :  { %v8815_v26 = vpop.f32.mrf.mxu0 }
  0xc0   :  { %7259 = vmatmul.msk.bf16.gmra.mxu2 %vm210_vm1, %v8809_v17 }
  0xc1   :  { %7283 = vmatmul.msk.bf16.gmra.mxu3 %vm210_vm1, %v505_v18 }
  0xc2   :  { %7307 = vmatmul.msk.bf16.gmra.mxu0 %vm210_vm1, %v623_v20 }
  0xc3   :  { %7331 = vmatmul.msk.bf16.gmra.mxu1 %vm210_vm1, %v741_v21  ;;  %v278_v27 = vpop.f32.mrf.mxu2 }
  0xc4   :  { %v354_v40 = vpop.f32.mrf.mxu3 }
  0xc5   :  { %v8822_v41 = vadd.f32 %v354_v40, %v278_v27  ;;  %v327_v27 = vadd.f32 %v326_v24, %v8774_v2 }
  0xc7   :  { %v8824_v37 = vpop.f32.mrf.mxu0 }
  0xcb   :  { %v280_v47 = vpop.f32.mrf.mxu2 }
  0xcc   :  { %v356_v48 = vpop.f32.mrf.mxu3 }
  0xcd   :  { %v8844_v49 = vadd.f32 %v356_v48, %v280_v47  ;;  %v331_v47 = vpop.f32.mrf.mxu1 }
  0xcf   :  { %v8853_v59 = vpop.f32.mrf.mxu0 }
  0xd0   :  { %7260 = vmatmul.msk.bf16.gmra.mxu2 %vm210_vm1, %v8846_v50 }
  0xd1   :  { %7284 = vmatmul.msk.bf16.gmra.mxu3 %vm210_vm1, %v506_v51 }
  0xd2   :  { %7308 = vmatmul.msk.bf16.gmra.mxu0 %vm210_vm1, %v624_v52 }
  0xd3   :  { %7332 = vmatmul.msk.bf16.gmra.mxu1 %vm210_vm1, %v742_v53  ;;  %v283_v5 = vpop.f32.mrf.mxu2 }
  0xd4   :  { %v359_v7 = vpop.f32.mrf.mxu3 }
  0xd5   :  { %v8860_v57 = vadd.f32 %v359_v7, %v283_v5  ;;  %v334_v5 = vpop.f32.mrf.mxu1 }
  0xd6   :  { %v335_v10 = vadd.f32 %v334_v5, %v8815_v26  ;;  %v7388_v26 = vld [vmem:[%s11550_s0 + $0x92] sm:$0xff] }
  0xd7   :  { %v8862_v22 = vpop.f32.mrf.mxu0 }
  0xdb   :  { %v285_v6 = vpop.f32.mrf.mxu2 }
  0xdc   :  { %v361_v8 = vpop.f32.mrf.mxu3 }
  0xdd   :  { %v8864_v9 = vadd.f32 %v361_v8, %v285_v6 }
  0xdf   :  { %v663_v11 = vpop.f32.mrf.mxu0 }
  0xe0   :  { %7349 = vmatmul.msk.bf16.vlgmr.msra.gmra.mxu2 %vm210_vm1, %v8554_v33 }
  0xe1   :  { %7373 = vmatmul.msk.bf16.vlgmr.msra.gmra.mxu3 %vm210_vm1, %v8550_v32 }
  0xe2   :  { %7397 = vmatmul.msk.bf16.vlgmr.msra.gmra.mxu0 %vm210_vm1, %v8701_v14 }
  0xe3   :  { %v426_v23 = vpop.f32.mrf.mxu2 }
  0xe4   :  { %v545_v34 = vpop.f32.mrf.mxu3  ;;  %v466_v15 = vadd.f32 %v426_v23, %v325_v13 }
  0xe6   :  { %v585_v18 = vadd.f32 %v545_v34, %v466_v15 }
  0xe7   :  { %v665_v20 = vpop.f32.mrf.mxu0 }
  0xe8   :  { %v8873_v21 = vadd.f32 %v663_v11, %v585_v18  ;;  %v336_v11 = vpop.f32.mrf.mxu1 }
  0xeb   :  { %v428_v40 = vpop.f32.mrf.mxu2 }
  0xec   :  { %v547_v33 = vpop.f32.mrf.mxu3  ;;  %v467_v35 = vadd.f32 %v428_v40, %v327_v27 }
  0xee   :  { %v586_v32 = vadd.f32 %v547_v33, %v467_v35 }
  0xef   :  { %v668_v48 = vpop.f32.mrf.mxu0 }
  0xf0   :  { %7350 = vmatmul.msk.bf16.gmra.mxu2 %vm210_vm1, %v8612_v45  ;;  %v8880_v14 = vadd.f32 %v665_v20, %v586_v32  ;;  %v332_v45 = vadd.f32 %v331_v47, %v8799_v25  ;;  %v339_v35 = vpop.f32.mrf.mxu1  ;;  %v1093_v47 = vpack.c.bf16 %v7388_v26, %v8741_v38 }
  0xf1   :  { %7374 = vmatmul.msk.bf16.gmra.mxu3 %vm210_vm1, %v8609_v44 }
  0xf2   :  { %7398 = vmatmul.msk.bf16.gmra.mxu0 %vm210_vm1, %v8716_v19 }
  0xf3   :  { %v431_v2 = vpop.f32.mrf.mxu2 }
  0xf4   :  { %v550_v51 = vpop.f32.mrf.mxu3  ;;  %v468_v52 = vadd.f32 %v431_v2, %v330_v58  ;;  %v340_v58 = vadd.f32 %v339_v35, %v8853_v59 }
  0xf6   :  { %v587_v53 = vadd.f32 %v550_v51, %v468_v52 }
  0xf7   :  { %v670_v60 = vpop.f32.mrf.mxu0 }
  0xf8   :  { %v8885_v7 = vadd.f32 %v668_v48, %v587_v53  ;;  %v8127_v53 = vld [vmem:[#allocation7 + $0x10] sm:$0xff] }
  0xf9   :  { %1345 = vmatpush.bf16.msra.mxu1 %v8127_v53 }
  0xfb   :  { %v433_v55 = vpop.f32.mrf.mxu2 }
  0xfc   :  { %v552_v24 = vpop.f32.mrf.mxu3  ;;  %v469_v44 = vadd.f32 %v433_v55, %v332_v45 }
  0xfe   :  { %v588_v6 = vadd.f32 %v552_v24, %v469_v44 }
  0xff   :  { %v673_v8 = vpop.f32.mrf.mxu0 }
 0x100   :  { %7351 = vmatmul.msk.bf16.gmra.mxu2 %vm210_vm1, %v8668_v1  ;;  %v8892_v19 = vadd.f32 %v670_v60, %v588_v6  ;;  %v7340_v1 = vld [vmem:[%s11550_s0 + $0x90] sm:$0xff]  ;;  %v341_v60 = vpop.f32.mrf.mxu1 }
 0x101   :  { %7375 = vmatmul.msk.bf16.gmra.mxu3 %vm210_vm1, %v8666_v0  ;;  %v7364_v0 = vld [vmem:[%s11550_s0 + $0x91] sm:$0xff]  ;;  %v857_v40 = vpack.c.bf16 %v7340_v1, %v8731_v28  ;;  %v342_v5 = vadd.f32 %v341_v60, %v8862_v22 }
 0x102   :  { %7399 = vmatmul.msk.bf16.gmra.mxu0 %vm210_vm1, %v8743_v39  ;;  %v337_v39 = vadd.f32 %v336_v11, %v8824_v37  ;;  %v975_v33 = vpack.c.bf16 %v7364_v0, %v8736_v29 }
 0x103   :  { %v436_v25 = vpop.f32.mrf.mxu2 }
 0x104   :  { %v555_v13 = vpop.f32.mrf.mxu3  ;;  %v470_v23 = vadd.f32 %v436_v25, %v335_v10 }
 0x106   :  { %v589_v34 = vadd.f32 %v555_v13, %v470_v23 }
 0x107   :  { %v675_v36 = vpop.f32.mrf.mxu0 }
 0x108   :  { %v8897_v15 = vadd.f32 %v673_v8, %v589_v34 }
 0x10b   :  { %v438_v18 = vpop.f32.mrf.mxu2 }
 0x10c   :  { %v557_v20 = vpop.f32.mrf.mxu3  ;;  %v471_v27 = vadd.f32 %v438_v18, %v337_v39  ;;  %v8953_v18 = vpop.f32.mrf.mxu1 }
 0x10e   :  { %v590_v32 = vadd.f32 %v557_v20, %v471_v27  ;;  %v8396_v20 = vmov 0.0  }
 0x10f   :  { %v678_v48 = vpop.f32.mrf.mxu0  ;;  %121 = vst.msk [vmem:[#allocation2 + $0x10] sm:$0xff] %vm117_vm2, %v8396_v20 }
 0x110   :  { %7352 = vmatmul.msk.bf16.gmra.mxu2 %vm210_vm1, %v857_v40  ;;  %v8914_v37 = vadd.f32 %v675_v36, %v590_v32  ;;  %122 = vst.msk [vmem:[#allocation2 + $0x18] sm:$0x3] %vm119_vm3, %v8396_v20 }
 0x111   :  { %7376 = vmatmul.msk.bf16.gmra.mxu3 %vm210_vm1, %v975_v33  ;;  %118 = vst.msk [vmem:[#allocation2] sm:$0xff] %vm117_vm2, %v8396_v20  ;;  %v7396_v33 = vld [vmem:[%s11550_s0 + $0x132] sm:$0xff] }
 0x112   :  { %7400 = vmatmul.msk.bf16.gmra.mxu0 %vm210_vm1, %v1093_v47  ;;  %120 = vst.msk [vmem:[#allocation2 + $0x8] sm:$0x3] %vm119_vm3, %v8396_v20 }
 0x113   :  { %v441_v2 = vpop.f32.mrf.mxu2  ;;  %123 = vst.msk [vmem:[#allocation2 + $0x20] sm:$0xff] %vm117_vm2, %v8396_v20 }
 0x114   :  { %v560_v51 = vpop.f32.mrf.mxu3  ;;  %v472_v28 = vadd.f32 %v441_v2, %v340_v58  ;;  %124 = vst.msk [vmem:[#allocation2 + $0x28] sm:$0x3] %vm119_vm3, %v8396_v20  ;;  %v1097_v58 = vpack.c.bf16 %v7396_v33, %v8842_v46  ;;  %v8125_v46 = vld [vmem:[#allocation7] sm:$0xff] }
 0x115   :  { %125 = vst.msk [vmem:[#allocation2 + $0x30] sm:$0xff] %vm117_vm2, %v8396_v20 }
 0x116   :  { %v591_v52 = vadd.f32 %v560_v51, %v472_v28  ;;  %126 = vst.msk [vmem:[#allocation2 + $0x38] sm:$0x3] %vm119_vm3, %v8396_v20  ;;  %v8126_v51 = vld [vmem:[#allocation7 + $0x8] sm:$0xff] }
 0x117   :  { %v680_v29 = vpop.f32.mrf.mxu0  ;;  %127 = vst.msk [vmem:[#allocation2 + $0x40] sm:$0xff] %vm117_vm2, %v8396_v20  ;;  %v8130_v28 = vld [vmem:[#allocation7 + $0x28] sm:$0xff]  ;;  %1429 = vmatpush.bf16.msrb.mxu2 %v8126_v51 }
 0x118   :  { %v8918_v38 = vadd.f32 %v678_v48, %v591_v52  ;;  %128 = vst.msk [vmem:[#allocation2 + $0x48] sm:$0x3] %vm119_vm3, %v8396_v20  ;;  %1543 = vmatpush.bf16.msrb.mxu3 %v8130_v28  ;;  %v8129_v52 = vld [vmem:[#allocation7 + $0x20] sm:$0xff] }
 0x119   :  { %129 = vst.msk [vmem:[#allocation2 + $0x50] sm:$0xff] %vm117_vm2, %v8396_v20  ;;  %v1273_v51 = vld [vmem:[#allocation2 + $0x1] sm:$0xff] }
 0x11a   :  { %130 = vst.msk [vmem:[#allocation2 + $0x58] sm:$0x3] %vm119_vm3, %v8396_v20  ;;  %v1245_v28 = vld [vmem:[#allocation2] sm:$0xff] }
 0x11b   :  { %v443_v45 = vpop.f32.mrf.mxu2  ;;  %131 = vst.msk [vmem:[#allocation2 + $0x60] sm:$0xff] %vm117_vm2, %v8396_v20  ;;  %1430 = vmatpush.bf16.msrb.mxu2 %v8125_v46 }
 0x11c   :  { %v562_v55 = vpop.f32.mrf.mxu3  ;;  %v473_v24 = vadd.f32 %v443_v45, %v342_v5  ;;  %132 = vst.msk [vmem:[#allocation2 + $0x68] sm:$0x3] %vm119_vm3, %v8396_v20  ;;  %1544 = vmatpush.bf16.msrb.mxu3 %v8129_v52  ;;  %v8132_v45 = vld [vmem:[#allocation7 + $0x38] sm:$0xff] }
 0x11d   :  { %133 = vst.msk [vmem:[#allocation2 + $0x70] sm:$0xff] %vm117_vm2, %v8396_v20  ;;  %1673 = vmatpush.bf16.msrb.mxu0 %v8132_v45 }
 0x11e   :  { %v592_v44 = vadd.f32 %v562_v55, %v473_v24  ;;  %134 = vst.msk [vmem:[#allocation2 + $0x78] sm:$0x3] %vm119_vm3, %v8396_v20 }
 0x11f   :  { %v683_v6 = vpop.f32.mrf.mxu0  ;;  %135 = vst.msk [vmem:[#allocation2 + $0x80] sm:$0xff] %vm117_vm2, %v8396_v20 }
 0x120   :  { %7353 = vmatmul.msk.bf16.gmra.mxu2 %vm210_vm1, %v8546_v31  ;;  %v8925_v59 = vadd.f32 %v680_v29, %v592_v44  ;;  %136 = vst.msk [vmem:[#allocation2 + $0x88] sm:$0x3] %vm119_vm3, %v8396_v20  ;;  %v8131_v44 = vld [vmem:[#allocation7 + $0x30] sm:$0xff] }
 0x121   :  { %7377 = vmatmul.msk.bf16.gmra.mxu3 %vm210_vm1, %v8542_v30  ;;  %137 = vst.msk [vmem:[#allocation2 + $0x90] sm:$0xff] %vm117_vm2, %v8396_v20  ;;  %1674 = vmatpush.bf16.msrb.mxu0 %v8131_v44 }
 0x122   :  { %7401 = vmatmul.msk.bf16.gmra.mxu0 %vm210_vm1, %v8784_v4  ;;  %138 = vst.msk [vmem:[#allocation2 + $0x98] sm:$0x3] %vm119_vm3, %v8396_v20 }
 0x123   :  { %v446_v8 = vpop.f32.mrf.mxu2  ;;  %139 = vst.msk [vmem:[#allocation2 + $0xa0] sm:$0xff] %vm117_vm2, %v8396_v20 }
 0x124   :  { %v565_v10 = vpop.f32.mrf.mxu3  ;;  %v474_v22 = vadd.f32 %v446_v8, %v8772_v61  ;;  %140 = vst.msk [vmem:[#allocation2 + $0xa8] sm:$0x3] %vm119_vm3, %v8396_v20 }
 0x125   :  { %141 = vst.msk [vmem:[#allocation2 + $0xb0] sm:$0xff] %vm117_vm2, %v8396_v20 }
 0x126   :  { %v593_v11 = vadd.f32 %v565_v10, %v474_v22  ;;  %142 = vst.msk [vmem:[#allocation2 + $0xb8] sm:$0x3] %vm119_vm3, %v8396_v20  ;;  %v8134_v10 = vld [vmem:[#allocation7 + $0x48] sm:$0xff]  ;;  %v821_v22 = vadd.f32 %v8953_v18, %v8873_v21 }
 0x127   :  { %v8930_v25 = vpop.f32.mrf.mxu0  ;;  %143 = vst.msk [vmem:[#allocation2 + $0xc0] sm:$0xff] %vm117_vm2, %v8396_v20  ;;  %1803 = vmatpush.bf16.msrb.mxu1 %v8134_v10 }
 0x128   :  { %v8932_v13 = vadd.f32 %v683_v6, %v593_v11  ;;  %144 = vst.msk [vmem:[#allocation2 + $0xc8] sm:$0x3] %vm119_vm3, %v8396_v20 }
 0x129   :  { %145 = vst.msk [vmem:[#allocation2 + $0xd0] sm:$0xff] %vm117_vm2, %v8396_v20 }
 0x12a   :  { %146 = vst.msk [vmem:[#allocation2 + $0xd8] sm:$0x3] %vm119_vm3, %v8396_v20 }
 0x12b   :  { %v8934_v23 = vpop.f32.mrf.mxu2  ;;  %147 = vst.msk [vmem:[#allocation2 + $0xe0] sm:$0xff] %vm117_vm2, %v8396_v20 }
 0x12c   :  { %v8936_v31 = vpop.f32.mrf.mxu3  ;;  %148 = vst.msk [vmem:[#allocation2 + $0xe8] sm:$0x3] %vm119_vm3, %v8396_v20 }
 0x12d   :  { %149 = vst.msk [vmem:[#allocation2 + $0xf0] sm:$0xff] %vm117_vm2, %v8396_v20 }
 0x12e   :  { %150 = vst.msk [vmem:[#allocation2 + $0xf8] sm:$0x3] %vm119_vm3, %v8396_v20 }
 0x12f   :  { %v688_v34 = vpop.f32.mrf.mxu0  ;;  %151 = vst.msk [vmem:[#allocation2 + $0x100] sm:$0xff] %vm117_vm2, %v8396_v20 }
 0x130   :  { %7354 = vmatmul.msk.bf16.gmra.mxu2 %vm210_vm1, %v8606_v43  ;;  %152 = vst.msk [vmem:[#allocation2 + $0x108] sm:$0x3] %vm119_vm3, %v8396_v20 }
 0x131   :  { %7378 = vmatmul.msk.bf16.gmra.mxu3 %vm210_vm1, %v8602_v42  ;;  %153 = vst.msk [vmem:[#allocation2 + $0x110] sm:$0xff] %vm117_vm2, %v8396_v20 }
 0x132   :  { %7402 = vmatmul.msk.bf16.gmra.mxu0 %vm210_vm1, %v8809_v17  ;;  %154 = vst.msk [vmem:[#allocation2 + $0x118] sm:$0x3] %vm119_vm3, %v8396_v20 }
 0x133   :  { %v451_v30 = vpop.f32.mrf.mxu2  ;;  %155 = vst.msk [vmem:[#allocation2 + $0x120] sm:$0xff] %vm117_vm2, %v8396_v20 }
 0x134   :  { %v570_v61 = vpop.f32.mrf.mxu3  ;;  %v476_v4 = vadd.f32 %v451_v30, %v8797_v12  ;;  %156 = vst.msk [vmem:[#allocation2 + $0x128] sm:$0x3] %vm119_vm3, %v8396_v20 }
 0x135   :  { %157 = vst.msk [vmem:[#allocation2 + $0x130] sm:$0xff] %vm117_vm2, %v8396_v20 }
 0x136   :  { %v595_v36 = vadd.f32 %v570_v61, %v476_v4  ;;  %v9064_v4 = vld [vmem:[#allocation5] ss:$0 sm:$0xff]  ;;  %158 = vst.msk [vmem:[#allocation2 + $0x138] sm:$0x3] %vm119_vm3, %v8396_v20 }
 0x137   :  { %v8945_v1 = vpop.f32.mrf.mxu0 }
 0x138   :  { %v8947_v0 = vadd.f32 %v688_v34, %v595_v36 }
 0x13b   :  { %v8949_v39 = vpop.f32.mrf.mxu2 }
 0x13c   :  { %v8951_v26 = vpop.f32.mrf.mxu3 }
 0x13f   :  { %v693_v43 = vpop.f32.mrf.mxu0 }
 0x140   :  { %7355 = vmatmul.msk.bf16.gmra.mxu2 %vm210_vm1, %v8664_v63  ;;  %v7348_v63 = vld [vmem:[%s11550_s0 + $0x130] sm:$0xff] }
 0x141   :  { %7379 = vmatmul.msk.bf16.gmra.mxu3 %vm210_vm1, %v8660_v62  ;;  %v861_v32 = vpack.c.bf16 %v7348_v63, %v8832_v54 }
 0x142   :  { %7403 = vmatmul.msk.bf16.gmra.mxu0 %vm210_vm1, %v8846_v50  ;;  %v8982_v50 = vpop.f32.mrf.mxu1 }
 0x143   :  { %v456_v42 = vpop.f32.mrf.mxu2  ;;  %v822_v18 = vadd.f32 %v8982_v50, %v8880_v14 }
 0x144   :  { %v575_v12 = vpop.f32.mrf.mxu3  ;;  %v478_v17 = vadd.f32 %v456_v42, %v8822_v41  ;;  %v7372_v41 = vld [vmem:[%s11550_s0 + $0x131] sm:$0xff] }
 0x145   :  { %v979_v48 = vpack.c.bf16 %v7372_v41, %v8837_v56 }
 0x146   :  { %v597_v27 = vadd.f32 %v575_v12, %v478_v17 }
 0x147   :  { %v8964_v40 = vpop.f32.mrf.mxu0 }
 0x148   :  { %v8970_v62 = vadd.f32 %v693_v43, %v597_v27 }
 0x14a   :  { %v786_v29 = vpop.f32.mrf.mxu1 }
 0x14b   :  { %v8989_v35 = vpop.f32.mrf.mxu2  ;;  %v823_v33 = vadd.f32 %v786_v29, %v8885_v7 }
 0x14c   :  { %v8991_v47 = vpop.f32.mrf.mxu3 }
 0x14f   :  { %v698_v2 = vpop.f32.mrf.mxu0 }
 0x150   :  { %7356 = vmatmul.msk.bf16.gmra.mxu2 %vm210_vm1, %v861_v32 }
 0x151   :  { %7380 = vmatmul.msk.bf16.gmra.mxu3 %vm210_vm1, %v979_v48 }
 0x152   :  { %7404 = vmatmul.msk.bf16.gmra.mxu0 %vm210_vm1, %v1097_v58  ;;  %v788_v6 = vpop.f32.mrf.mxu1 }
 0x153   :  { %v461_v54 = vpop.f32.mrf.mxu2  ;;  %v824_v10 = vadd.f32 %v788_v6, %v8892_v19 }
 0x154   :  { %v580_v56 = vpop.f32.mrf.mxu3  ;;  %v480_v53 = vadd.f32 %v461_v54, %v8860_v57  ;;  %v1472_v54 = vld [vmem:[#allocation2 + $0x2] sm:$0xff] }
 0x156   :  { %v599_v60 = vadd.f32 %v580_v56, %v480_v53 }
 0x157   :  { %v9022_v5 = vpop.f32.mrf.mxu0 }
 0x158   :  { %v9028_v55 = vadd.f32 %v698_v2, %v599_v60 }
 0x15a   :  { %v791_v36 = vpop.f32.mrf.mxu1 }
 0x15b   :  { %v9036_v57 = vpop.f32.mrf.mxu2  ;;  %v825_v19 = vadd.f32 %v791_v36, %v8897_v15 }
 0x15c   :  { %v9038_v24 = vpop.f32.mrf.mxu3 }
 0x15f   :  { %v1136_v8 = vpop.f32.mrf.mxu0 }
 0x162   :  { %v793_v32 = vpop.f32.mrf.mxu1 }
 0x163   :  { %v900_v11 = vpop.f32.mrf.mxu2 }
 0x164   :  { %v1018_v34 = vpop.f32.mrf.mxu3  ;;  %v940_v30 = vadd.f32 %v900_v11, %v821_v22 }
 0x166   :  { %v1058_v61 = vadd.f32 %v1018_v34, %v940_v30 }
 0x167   :  { %v1138_v21 = vpop.f32.mrf.mxu0 }
 0x168   :  { %v1176_v43 = vadd.f32 %v1136_v8, %v1058_v61 }
 0x16a   :  { %v9077_v42 = vadd.f32 %v9064_v4, %v1176_v43  ;;  %v796_v30 = vpop.f32.mrf.mxu1 }
 0x16b   :  { %v902_v12 = vpop.f32.mrf.mxu2 }
 0x16c   :  { %11622 = vst [vmem:[#allocation17_spill] sm:$0xff] %v9077_v42  ;;  %v1020_v17 = vpop.f32.mrf.mxu3  ;;  %v11565_v27 = vmax.f32 %v9077_v42, 0.0  ;;  %v941_v63 = vadd.f32 %v902_v12, %v822_v18 }
 0x16e   :  { %1229 = vst.msk [vmem:[#allocation2 + $0x11] sm:$0xff] %vm117_vm2, %v11565_v27  ;;  %v1059_v14 = vadd.f32 %v1020_v17, %v941_v63 }
 0x16f   :  { %v1141_v41 = vpop.f32.mrf.mxu0 }
 0x170   :  { %v1177_v50 = vadd.f32 %v1138_v21, %v1059_v14 }
 0x172   :  { %v9091_v48 = vadd.f32 %v9064_v4, %v1177_v50 }
 0x173   :  { %v905_v58 = vpop.f32.mrf.mxu2 }
 0x174   :  { %11623 = vst [vmem:[#allocation18_spill] sm:$0xff] %v9091_v48  ;;  %v1023_v2 = vpop.f32.mrf.mxu3  ;;  %v11564_v20 = vmax.f32 %v9091_v48, 0.0  ;;  %v942_v56 = vadd.f32 %v905_v58, %v823_v33 }
 0x175   :  { %v9094_v46 = vld [vmem:[#allocation2 + $0x11] sm:$0xff] }
 0x176   :  { %v1246_v52 = vld [vmem:[#allocation2 + $0x10] sm:$0xff]  ;;  %1230 = vst.msk [vmem:[#allocation2 + $0x21] sm:$0xff] %vm117_vm2, %v11564_v20  ;;  %v1060_v7 = vadd.f32 %v1023_v2, %v942_v56  ;;  %v1289_v60 = vpack.c.bf16 %v9094_v46, %v1273_v51  ;;  %v798_v56 = vpop.f32.mrf.mxu1 }
 0x177   :  { %v9096_v53 = vld [vmem:[#allocation2 + $0x12] sm:$0xff]  ;;  %v1143_v29 = vpop.f32.mrf.mxu0  ;;  %v1261_v45 = vpack.c.bf16 %v1246_v52, %v1245_v28 }
 0x178   :  { %v1488_v44 = vpack.c.bf16 %v9096_v53, %v1472_v54  ;;  %v1178_v8 = vadd.f32 %v1141_v41, %v1060_v7  ;;  %7413 = vmatmul.msk.bf16.vlgmr.msra.gmra.mxu1 %vm117_vm2, %v1289_v60 }
 0x179   :  { %7429 = vmatmul.msk.bf16.vlgmr.msrb.gmra.mxu2 %vm117_vm2, %v1261_v45  ;;  %v826_v45 = vadd.f32 %v793_v32, %v8914_v37  ;;  %v827_v37 = vadd.f32 %v796_v30, %v8918_v38 }
 0x17a   :  { %7445 = vmatmul.msk.bf16.vlgmr.msrb.gmra.mxu3 %vm117_vm2, %v1488_v44  ;;  %v9108_v22 = vadd.f32 %v9064_v4, %v1178_v8 }
 0x17b   :  { %v907_v11 = vpop.f32.mrf.mxu2 }
 0x17c   :  { %11624 = vst [vmem:[#allocation19_spill] sm:$0xff] %v9108_v22  ;;  %v1025_v34 = vpop.f32.mrf.mxu3  ;;  %v11561_v61 = vmax.f32 %v9108_v22, 0.0  ;;  %v943_v21 = vadd.f32 %v907_v11, %v824_v10 }
 0x17d   :  { %v1603_v43 = vld [vmem:[#allocation2 + $0x20] sm:$0xff] }
 0x17e   :  { %1231 = vst.msk [vmem:[#allocation2 + $0x31] sm:$0xff] %vm117_vm2, %v11561_v61  ;;  %v1061_v18 = vadd.f32 %v1025_v34, %v943_v21  ;;  %v1618_v17 = vpack.c.bf16 %v1603_v43, %v1246_v52  ;;  %v9120_v58 = vld [vmem:[#allocation2 + $0x21] sm:$0xff] }
 0x17f   :  { %v1146_v12 = vpop.f32.mrf.mxu0  ;;  %v9122_v2 = vld [vmem:[#allocation2 + $0x22] sm:$0xff] }
 0x180   :  { %v1179_v63 = vadd.f32 %v1143_v29, %v1061_v18  ;;  %7461 = vmatmul.msk.bf16.vlgmr.msrb.gmra.mxu0 %vm117_vm2, %v1618_v17  ;;  %v801_v17 = vpop.f32.mrf.mxu1 }
 0x182   :  { %v9117_v6 = vadd.f32 %v9064_v4, %v1179_v63 }
 0x183   :  { %v910_v14 = vpop.f32.mrf.mxu2 }
 0x184   :  { %11625 = vst [vmem:[#allocation20_spill] sm:$0xff] %v9117_v6  ;;  %v1028_v41 = vpop.f32.mrf.mxu3  ;;  %v11560_v50 = vmax.f32 %v9117_v6, 0.0  ;;  %v944_v33 = vadd.f32 %v910_v14, %v825_v19  ;;  %v8151_v6 = vld [vmem:[#allocation7 + $0xd0] sm:$0xff] }
 0x185   :  { %v9124_v51 = vld [vmem:[#allocation2 + $0x31] sm:$0xff] }
 0x186   :  { %v1248_v28 = vld [vmem:[#allocation2 + $0x30] sm:$0xff]  ;;  %1232 = vst.msk [vmem:[#allocation2 + $0x41] sm:$0xff] %vm117_vm2, %v11560_v50  ;;  %v1062_v15 = vadd.f32 %v1028_v41, %v944_v33  ;;  %v9133_v52 = vpack.c.bf16 %v9124_v51, %v9120_v58 }
 0x187   :  { %v9126_v54 = vld [vmem:[#allocation2 + $0x32] sm:$0xff]  ;;  %v1148_v36 = vpop.f32.mrf.mxu0  ;;  %v9135_v7 = vpack.c.bf16 %v1248_v28, %v1603_v43 }
 0x188   :  { %v9139_v29 = vpack.c.bf16 %v9126_v54, %v9122_v2  ;;  %v1180_v60 = vadd.f32 %v1146_v12, %v1062_v15  ;;  %7414 = vmatmul.msk.bf16.gmra.mxu1 %vm117_vm2, %v9133_v52 }
 0x189   :  { %7430 = vmatmul.msk.bf16.gmra.mxu2 %vm117_vm2, %v9135_v7 }
 0x18a   :  { %7446 = vmatmul.msk.bf16.gmra.mxu3 %vm117_vm2, %v9139_v29  ;;  %v9149_v44 = vadd.f32 %v9064_v4, %v1180_v60 }
 0x18b   :  { %v912_v8 = vpop.f32.mrf.mxu2 }
 0x18c   :  { %11626 = vst [vmem:[#allocation21_spill] sm:$0xff] %v9149_v44  ;;  %v1030_v10 = vpop.f32.mrf.mxu3  ;;  %v11559_v11 = vmax.f32 %v9149_v44, 0.0  ;;  %v945_v34 = vadd.f32 %v912_v8, %v826_v45 }
 0x18d   :  { %v1605_v21 = vld [vmem:[#allocation2 + $0x40] sm:$0xff] }
 0x18e   :  { %1233 = vst.msk [vmem:[#allocation2 + $0x51] sm:$0xff] %vm117_vm2, %v11559_v11  ;;  %v1063_v43 = vadd.f32 %v1030_v10, %v945_v34  ;;  %v1619_v12 = vpack.c.bf16 %v1605_v21, %v1248_v28  ;;  %v9161_v15 = vld [vmem:[#allocation2 + $0x41] sm:$0xff] }
 0x18f   :  { %v1151_v18 = vpop.f32.mrf.mxu0  ;;  %v9163_v60 = vld [vmem:[#allocation2 + $0x42] sm:$0xff] }
 0x190   :  { %v1181_v63 = vadd.f32 %v1148_v36, %v1063_v43  ;;  %7462 = vmatmul.msk.bf16.gmra.mxu0 %vm117_vm2, %v1619_v12  ;;  %v828_v12 = vadd.f32 %v798_v56, %v8925_v59  ;;  %v8133_v56 = vld [vmem:[#allocation7 + $0x40] sm:$0xff] }
 0x191   :  { %1804 = vmatpush.bf16.msrb.mxu1 %v8133_v56 }
 0x192   :  { %v9158_v32 = vadd.f32 %v9064_v4, %v1181_v63  ;;  %v803_v63 = vpop.f32.mrf.mxu1 }
 0x193   :  { %v915_v19 = vpop.f32.mrf.mxu2 }
 0x194   :  { %11627 = vst [vmem:[#allocation22_spill] sm:$0xff] %v9158_v32  ;;  %v1033_v14 = vpop.f32.mrf.mxu3  ;;  %v11558_v41 = vmax.f32 %v9158_v32, 0.0  ;;  %v946_v33 = vadd.f32 %v915_v19, %v827_v37 }
 0x195   :  { %v9165_v45 = vld [vmem:[#allocation2 + $0x51] sm:$0xff] }
 0x196   :  { %v1250_v28 = vld [vmem:[#allocation2 + $0x50] sm:$0xff]  ;;  %1234 = vst.msk [vmem:[#allocation2 + $0x61] sm:$0xff] %vm117_vm2, %v11558_v41  ;;  %v1064_v38 = vadd.f32 %v1033_v14, %v946_v33  ;;  %v9174_v8 = vpack.c.bf16 %v9165_v45, %v9161_v15  ;;  %v475_v33 = vadd.f32 %v8934_v23, %v8782_v3 }
 0x197   :  { %v9167_v36 = vld [vmem:[#allocation2 + $0x52] sm:$0xff]  ;;  %v1153_v30 = vpop.f32.mrf.mxu0  ;;  %v9176_v10 = vpack.c.bf16 %v1250_v28, %v1605_v21 }
 0x198   :  { %v9180_v34 = vpack.c.bf16 %v9167_v36, %v9163_v60  ;;  %v1182_v43 = vadd.f32 %v1151_v18, %v1064_v38  ;;  %7415 = vmatmul.msk.bf16.gmra.mxu1 %vm117_vm2, %v9174_v8 }
 0x199   :  { %7431 = vmatmul.msk.bf16.gmra.mxu2 %vm117_vm2, %v9176_v10 }
 0x19a   :  { %7447 = vmatmul.msk.bf16.gmra.mxu3 %vm117_vm2, %v9180_v34  ;;  %v9190_v21 = vadd.f32 %v9064_v4, %v1182_v43  ;;  %v594_v43 = vadd.f32 %v8936_v31, %v475_v33  ;;  %v806_v61 = vpop.f32.mrf.mxu1 }
 0x19b   :  { %v917_v37 = vpop.f32.mrf.mxu2 }
 0x19c   :  { %11628 = vst [vmem:[#allocation23_spill] sm:$0xff] %v9190_v21  ;;  %v1035_v19 = vpop.f32.mrf.mxu3  ;;  %v11562_v14 = vmax.f32 %v9190_v21, 0.0  ;;  %v947_v18 = vadd.f32 %v917_v37, %v828_v12  ;;  %v829_v12 = vadd.f32 %v801_v17, %v8932_v13  ;;  %v1480_v21 = vld [vmem:[#allocation2 + $0xa2] sm:$0xff] }
 0x19d   :  { %v1607_v38 = vld [vmem:[#allocation2 + $0x60] sm:$0xff] }
 0x19e   :  { %1235 = vst.msk [vmem:[#allocation2 + $0x71] sm:$0xff] %vm117_vm2, %v11562_v14  ;;  %v1065_v41 = vadd.f32 %v1035_v19, %v947_v18  ;;  %v1620_v59 = vpack.c.bf16 %v1607_v38, %v1250_v28  ;;  %v9205_v18 = vld [vmem:[#allocation2 + $0x61] sm:$0xff] }
 0x19f   :  { %v1156_v11 = vpop.f32.mrf.mxu0  ;;  %v9207_v28 = vld [vmem:[#allocation2 + $0x62] sm:$0xff] }
 0x1a0   :  { %v1183_v50 = vadd.f32 %v1153_v30, %v1065_v41  ;;  %7463 = vmatmul.msk.bf16.gmra.mxu0 %vm117_vm2, %v1620_v59  ;;  %v712_v41 = vadd.f32 %v8930_v25, %v594_v43 }
 0x1a2   :  { %v9202_v37 = vadd.f32 %v9064_v4, %v1183_v50  ;;  %v830_v43 = vadd.f32 %v803_v63, %v712_v41 }
 0x1a3   :  { %v920_v3 = vpop.f32.mrf.mxu2 }
 0x1a4   :  { %11629 = vst [vmem:[#allocation24_spill] sm:$0xff] %v9202_v37  ;;  %v1038_v23 = vpop.f32.mrf.mxu3  ;;  %v11563_v14 = vmax.f32 %v9202_v37, 0.0  ;;  %v948_v19 = vadd.f32 %v920_v3, %v829_v12  ;;  %v1281_v37 = vld [vmem:[#allocation2 + $0xa1] sm:$0xff] }
 0x1a5   :  { %v9210_v30 = vld [vmem:[#allocation2 + $0x71] sm:$0xff] }
 0x1a6   :  { %v1252_v31 = vld [vmem:[#allocation2 + $0x70] sm:$0xff]  ;;  %1236 = vst.msk [vmem:[#allocation2 + $0x81] sm:$0xff] %vm117_vm2, %v11563_v14  ;;  %v1066_v13 = vadd.f32 %v1038_v23, %v948_v19  ;;  %v9219_v17 = vpack.c.bf16 %v9210_v30, %v9205_v18  ;;  %v808_v14 = vpop.f32.mrf.mxu1 }
 0x1a7   :  { %v9212_v33 = vld [vmem:[#allocation2 + $0x72] sm:$0xff]  ;;  %v1158_v50 = vpop.f32.mrf.mxu0  ;;  %v9221_v59 = vpack.c.bf16 %v1252_v31, %v1607_v38 }
 0x1a8   :  { %v9225_v25 = vpack.c.bf16 %v9212_v33, %v9207_v28  ;;  %v1184_v56 = vadd.f32 %v1156_v11, %v1066_v13  ;;  %7416 = vmatmul.msk.bf16.gmra.mxu1 %vm117_vm2, %v9219_v17  ;;  %v477_v11 = vadd.f32 %v8949_v39, %v8807_v16 }
 0x1a9   :  { %7432 = vmatmul.msk.bf16.gmra.mxu2 %vm117_vm2, %v9221_v59 }
 0x1aa   :  { %7448 = vmatmul.msk.bf16.gmra.mxu3 %vm117_vm2, %v9225_v25  ;;  %v9234_v12 = vadd.f32 %v9064_v4, %v1184_v56  ;;  %v596_v27 = vadd.f32 %v8951_v26, %v477_v11 }
 0x1ab   :  { %v922_v38 = vpop.f32.mrf.mxu2 }
 0x1ac   :  { %11630 = vst [vmem:[#allocation25_spill] sm:$0xff] %v9234_v12  ;;  %v1040_v3 = vpop.f32.mrf.mxu3  ;;  %v11569_v23 = vmax.f32 %v9234_v12, 0.0  ;;  %v949_v19 = vadd.f32 %v922_v38, %v830_v43  ;;  %v831_v43 = vadd.f32 %v806_v61, %v8947_v0  ;;  %v1253_v12 = vld [vmem:[#allocation2 + $0xa0] sm:$0xff] }
 0x1ad   :  { %v9239_v13 = vld [vmem:[#allocation2 + $0x80] sm:$0xff] }
 0x1ae   :  { %1237 = vst.msk [vmem:[#allocation2 + $0xb1] sm:$0xff] %vm117_vm2, %v11569_v23  ;;  %v1067_v20 = vadd.f32 %v1040_v3, %v949_v19  ;;  %v1621_v41 = vpack.c.bf16 %v9239_v13, %v1252_v31  ;;  %v714_v31 = vadd.f32 %v8945_v1, %v596_v27  ;;  %v811_v23 = vpop.f32.mrf.mxu1 }
 0x1af   :  { %v1161_v63 = vpop.f32.mrf.mxu0 }
 0x1b0   :  { %v1185_v56 = vadd.f32 %v1158_v50, %v1067_v20  ;;  %7464 = vmatmul.msk.bf16.gmra.mxu0 %vm117_vm2, %v1621_v41  ;;  %v832_v1 = vadd.f32 %v808_v14, %v714_v31 }
 0x1b2   :  { %v9249_v16 = vadd.f32 %v9064_v4, %v1185_v56 }
 0x1b3   :  { %v925_v39 = vpop.f32.mrf.mxu2 }
 0x1b4   :  { %11631 = vst [vmem:[#allocation26_spill] sm:$0xff] %v9249_v16  ;;  %v1043_v38 = vpop.f32.mrf.mxu3  ;;  %v11572_v3 = vmax.f32 %v9249_v16, 0.0  ;;  %v950_v19 = vadd.f32 %v925_v39, %v831_v43 }
 0x1b5   :  { %v9253_v20 = vld [vmem:[#allocation2 + $0xb1] sm:$0xff] }
 0x1b6   :  { %v1254_v50 = vld [vmem:[#allocation2 + $0xb0] sm:$0xff]  ;;  %1238 = vst.msk [vmem:[#allocation2 + $0xc1] sm:$0xff] %vm117_vm2, %v11572_v3  ;;  %v1068_v0 = vadd.f32 %v1043_v38, %v950_v19  ;;  %v1293_v61 = vpack.c.bf16 %v9253_v20, %v1281_v37 }
 0x1b7   :  { %v9255_v41 = vld [vmem:[#allocation2 + $0xb2] sm:$0xff]  ;;  %v1163_v26 = vpop.f32.mrf.mxu0  ;;  %v1265_v11 = vpack.c.bf16 %v1254_v50, %v1253_v12 }
 0x1b8   :  { %v1492_v56 = vpack.c.bf16 %v9255_v41, %v1480_v21  ;;  %v1186_v43 = vadd.f32 %v1161_v63, %v1068_v0  ;;  %7417 = vmatmul.msk.bf16.gmra.mxu1 %vm117_vm2, %v1293_v61  ;;  %v479_v21 = vadd.f32 %v8989_v35, %v8844_v49 }
 0x1b9   :  { %7433 = vmatmul.msk.bf16.gmra.mxu2 %vm117_vm2, %v1265_v11  ;;  %v833_v11 = vadd.f32 %v811_v23, %v8970_v62 }
 0x1ba   :  { %7449 = vmatmul.msk.bf16.gmra.mxu3 %vm117_vm2, %v1492_v56  ;;  %v9266_v27 = vadd.f32 %v9064_v4, %v1186_v43  ;;  %v598_v31 = vadd.f32 %v8991_v47, %v479_v21  ;;  %v813_v56 = vpop.f32.mrf.mxu1 }
 0x1bb   :  { %v927_v39 = vpop.f32.mrf.mxu2 }
 0x1bc   :  { %11632 = vst [vmem:[#allocation27_spill] sm:$0xff] %v9266_v27  ;;  %v1045_v38 = vpop.f32.mrf.mxu3  ;;  %v11570_v19 = vmax.f32 %v9266_v27, 0.0  ;;  %v951_v37 = vadd.f32 %v927_v39, %v832_v1 }
 0x1bd   :  { %v1611_v12 = vld [vmem:[#allocation2 + $0xc0] sm:$0xff] }
 0x1be   :  { %1239 = vst.msk [vmem:[#allocation2 + $0xd1] sm:$0xff] %vm117_vm2, %v11570_v19  ;;  %v1069_v63 = vadd.f32 %v1045_v38, %v951_v37  ;;  %v1622_v0 = vpack.c.bf16 %v1611_v12, %v1254_v50  ;;  %v9281_v19 = vld [vmem:[#allocation2 + $0xc1] sm:$0xff] }
 0x1bf   :  { %v1166_v14 = vpop.f32.mrf.mxu0  ;;  %v9283_v50 = vld [vmem:[#allocation2 + $0xc2] sm:$0xff] }
 0x1c0   :  { %v1187_v61 = vadd.f32 %v1163_v26, %v1069_v63  ;;  %7465 = vmatmul.msk.bf16.gmra.mxu0 %vm117_vm2, %v1622_v0  ;;  %v716_v26 = vadd.f32 %v8964_v40, %v598_v31  ;;  %v8136_v0 = vld [vmem:[#allocation7 + $0x58] sm:$0xff] }
 0x1c1   :  { %1933 = vmatpush.bf16.msra.mxu2 %v8136_v0 }
 0x1c2   :  { %v9278_v43 = vadd.f32 %v9064_v4, %v1187_v61  ;;  %v8138_v61 = vld [vmem:[#allocation7 + $0x68] sm:$0xff]  ;;  %v834_v31 = vadd.f32 %v813_v56, %v716_v26 }
 0x1c3   :  { %v930_v49 = vpop.f32.mrf.mxu2  ;;  %2064 = vmatpush.bf16.msra.mxu3 %v8138_v61 }
 0x1c4   :  { %11633 = vst [vmem:[#allocation28_spill] sm:$0xff] %v9278_v43  ;;  %v1048_v35 = vpop.f32.mrf.mxu3  ;;  %v11571_v1 = vmax.f32 %v9278_v43, 0.0  ;;  %v952_v39 = vadd.f32 %v930_v49, %v833_v11 }
 0x1c5   :  { %v9286_v38 = vld [vmem:[#allocation2 + $0xd1] sm:$0xff] }
 0x1c6   :  { %v1256_v47 = vld [vmem:[#allocation2 + $0xd0] sm:$0xff]  ;;  %1240 = vst.msk [vmem:[#allocation2 + $0xe1] sm:$0xff] %vm117_vm2, %v11571_v1  ;;  %v1070_v62 = vadd.f32 %v1048_v35, %v952_v39  ;;  %v9295_v23 = vpack.c.bf16 %v9286_v38, %v9281_v19  ;;  %v481_v1 = vadd.f32 %v9036_v57, %v8864_v9 }
 0x1c7   :  { %v9288_v37 = vld [vmem:[#allocation2 + $0xd2] sm:$0xff]  ;;  %v9297_v21 = vpack.c.bf16 %v1256_v47, %v1611_v12  ;;  %v1168_v11 = vpop.f32.mrf.mxu0 }
 0x1c8   :  { %v9301_v63 = vpack.c.bf16 %v9288_v37, %v9283_v50  ;;  %v1188_v40 = vadd.f32 %v1166_v14, %v1070_v62  ;;  %7418 = vmatmul.msk.bf16.gmra.mxu1 %vm117_vm2, %v9295_v23  ;;  %v816_v62 = vpop.f32.mrf.mxu1  ;;  %v600_v0 = vadd.f32 %v9038_v24, %v481_v1 }
 0x1c9   :  { %7434 = vmatmul.msk.bf16.gmra.mxu2 %vm117_vm2, %v9297_v21  ;;  %v835_v61 = vadd.f32 %v816_v62, %v9028_v55 }
 0x1ca   :  { %7450 = vmatmul.msk.bf16.gmra.mxu3 %vm117_vm2, %v9301_v63  ;;  %v9310_v12 = vadd.f32 %v9064_v4, %v1188_v40 }
 0x1cb   :  { %v932_v49 = vpop.f32.mrf.mxu2 }
 0x1cc   :  { %11634 = vst [vmem:[#allocation29_spill] sm:$0xff] %v9310_v12  ;;  %v1050_v35 = vpop.f32.mrf.mxu3  ;;  %v11575_v14 = vmax.f32 %v9310_v12, 0.0  ;;  %v953_v39 = vadd.f32 %v932_v49, %v834_v31 }
 0x1cd   :  { %v1613_v3 = vld [vmem:[#allocation2 + $0xe0] sm:$0xff] }
 0x1ce   :  { %1241 = vst.msk [vmem:[#allocation2 + $0xf1] sm:$0xff] %vm117_vm2, %v11575_v14  ;;  %v1071_v56 = vadd.f32 %v1050_v35, %v953_v39  ;;  %v1623_v26 = vpack.c.bf16 %v1613_v3, %v1256_v47  ;;  %v9324_v9 = vld [vmem:[#allocation2 + $0xe1] sm:$0xff]  ;;  %v8135_v47 = vld [vmem:[#allocation7 + $0x50] sm:$0xff]  ;;  %v718_v35 = vadd.f32 %v9022_v5, %v600_v0 }
 0x1cf   :  { %v9327_v14 = vld [vmem:[#allocation2 + $0xe2] sm:$0xff]  ;;  %v1171_v39 = vpop.f32.mrf.mxu0  ;;  %1934 = vmatpush.bf16.msra.mxu2 %v8135_v47 }
 0x1d0   :  { %v1189_v40 = vadd.f32 %v1168_v11, %v1071_v56  ;;  %7466 = vmatmul.msk.bf16.gmra.mxu0 %vm117_vm2, %v1623_v26  ;;  %v8137_v11 = vld [vmem:[#allocation7 + $0x60] sm:$0xff]  ;;  %v818_v0 = vpop.f32.mrf.mxu1 }
 0x1d1   :  { %2065 = vmatpush.bf16.msra.mxu3 %v8137_v11 }
 0x1d2   :  { %v9322_v31 = vadd.f32 %v9064_v4, %v1189_v40  ;;  %v8140_v40 = vld [vmem:[#allocation7 + $0x78] sm:$0xff] }
 0x1d3   :  { %v935_v49 = vpop.f32.mrf.mxu2  ;;  %2194 = vmatpush.bf16.msra.mxu0 %v8140_v40 }
 0x1d4   :  { %11635 = vst [vmem:[#allocation30_spill] sm:$0xff] %v9322_v31  ;;  %v1053_v43 = vpop.f32.mrf.mxu3  ;;  %v11576_v57 = vmax.f32 %v9322_v31, 0.0  ;;  %v954_v12 = vadd.f32 %v935_v49, %v835_v61 }
 0x1d5   :  { %v9330_v24 = vld [vmem:[#allocation2 + $0xf1] sm:$0xff] }
 0x1d6   :  { %v1258_v55 = vld [vmem:[#allocation2 + $0xf0] sm:$0xff]  ;;  %1242 = vst.msk [vmem:[#allocation2 + $0x101] sm:$0xff] %vm117_vm2, %v11576_v57  ;;  %v1072_v62 = vadd.f32 %v1053_v43, %v954_v12  ;;  %v9339_v56 = vpack.c.bf16 %v9330_v24, %v9324_v9  ;;  %v836_v43 = vadd.f32 %v818_v0, %v718_v35 }
 0x1d7   :  { %v9332_v1 = vld [vmem:[#allocation2 + $0xf2] sm:$0xff]  ;;  %v9341_v26 = vpack.c.bf16 %v1258_v55, %v1613_v3  ;;  %v1173_v40 = vpop.f32.mrf.mxu0 }
 0x1d8   :  { %v9345_v5 = vpack.c.bf16 %v9332_v1, %v9327_v14  ;;  %v1190_v61 = vadd.f32 %v1171_v39, %v1072_v62  ;;  %7419 = vmatmul.msk.bf16.gmra.mxu1 %vm117_vm2, %v9339_v56  ;;  %v8142_v3 = vld [vmem:[#allocation7 + $0x88] sm:$0xff]  ;;  %v8139_v39 = vld [vmem:[#allocation7 + $0x70] sm:$0xff] }
 0x1d9   :  { %7435 = vmatmul.msk.bf16.gmra.mxu2 %vm117_vm2, %v9341_v26  ;;  %2324 = vmatpush.bf16.msra.mxu1 %v8142_v3 }
 0x1da   :  { %7451 = vmatmul.msk.bf16.gmra.mxu3 %vm117_vm2, %v9345_v5  ;;  %v9354_v12 = vadd.f32 %v9064_v4, %v1190_v61  ;;  %2195 = vmatpush.bf16.msra.mxu0 %v8139_v39  ;;  %v1748_v39 = vpack.c.bf16 %v9120_v58, %v9094_v46 }
 0x1db   :  { %v937_v49 = vpop.f32.mrf.mxu2 }
 0x1dc   :  { %11636 = vst [vmem:[#allocation31_spill] sm:$0xff] %v9354_v12  ;;  %v11580_v47 = vmax.f32 %v9354_v12, 0.0  ;;  %v955_v11 = vadd.f32 %v937_v49, %v836_v43  ;;  %v1055_v62 = vpop.f32.mrf.mxu3 }
 0x1dd   :  { %v1615_v57 = vld [vmem:[#allocation2 + $0x100] sm:$0xff] }
 0x1de   :  { %1243 = vst.msk [vmem:[#allocation2 + $0x111] sm:$0xff] %vm117_vm2, %v11580_v47  ;;  %v1073_v31 = vadd.f32 %v1055_v62, %v955_v11  ;;  %v1624_v27 = vpack.c.bf16 %v1615_v57, %v1258_v55  ;;  %v9365_v3 = vld [vmem:[#allocation2 + $0x101] sm:$0xff]  ;;  %v1878_v62 = vpack.c.bf16 %v9122_v2, %v9096_v53 }
 0x1df   :  { %v9367_v43 = vld [vmem:[#allocation2 + $0x102] sm:$0xff] }
 0x1e0   :  { %v1191_v35 = vadd.f32 %v1173_v40, %v1073_v31  ;;  %7467 = vmatmul.msk.bf16.gmra.mxu0 %vm117_vm2, %v1624_v27 }
 0x1e2   :  { %v9362_v0 = vadd.f32 %v9064_v4, %v1191_v35 }
 0x1e4   :  { %11637 = vst [vmem:[#allocation32_spill] sm:$0xff] %v9362_v0  ;;  %v11581_v61 = vmax.f32 %v9362_v0, 0.0 }
 0x1e5   :  { %v9369_v49 = vld [vmem:[#allocation2 + $0x111] sm:$0xff] }
 0x1e6   :  { %v1260_v12 = vld [vmem:[#allocation2 + $0x110] sm:$0xff]  ;;  %1244 = vst.msk [vmem:[#allocation2 + $0x121] sm:$0xff] %vm117_vm2, %v11581_v61  ;;  %v9378_v27 = vpack.c.bf16 %v9369_v49, %v9365_v3 }
 0x1e7   :  { %v9371_v47 = vld [vmem:[#allocation2 + $0x112] sm:$0xff]  ;;  %v9380_v4 = vpack.c.bf16 %v1260_v12, %v1615_v57 }
 0x1e8   :  { %v9384_v31 = vpack.c.bf16 %v9371_v47, %v9367_v43  ;;  %7420 = vmatmul.msk.bf16.gmra.mxu1 %vm117_vm2, %v9378_v27 }
 0x1e9   :  { %7436 = vmatmul.msk.bf16.gmra.mxu2 %vm117_vm2, %v9380_v4 }
 0x1ea   :  { %7452 = vmatmul.msk.bf16.gmra.mxu3 %vm117_vm2, %v9384_v31 }
 0x1ed   :  { %v9392_v55 = vld [vmem:[#allocation2 + $0x120] sm:$0xff] }
 0x1ee   :  { %v1625_v11 = vpack.c.bf16 %v9392_v55, %v1260_v12 }
 0x1f0   :  { %7468 = vmatmul.msk.bf16.gmra.mxu0 %vm117_vm2, %v1625_v11 }
 0x1f5   :  { %v1347_v57 = vpop.f32.mrf.mxu1 }
 0x1f8   :  { %7477 = vmatmul.msk.bf16.vlgmr.msrb.gmra.mxu1 %vm117_vm2, %v1748_v39 }
 0x1f9   :  { %7493 = vmatmul.msk.bf16.vlgmr.msra.gmra.mxu2 %vm117_vm2, %v1878_v62 }
 0x1fa   :  { %7509 = vmatmul.msk.bf16.vlgmr.msra.gmra.mxu3 %vm117_vm2, %v9135_v7  ;;  %v1749_v7 = vpack.c.bf16 %v9161_v15, %v9124_v51 }
 0x1fc   :  { %v1432_v40 = vpop.f32.mrf.mxu2 }
 0x1fd   :  { %v1433_v35 = vadd.f32 %v1432_v40, %v1347_v57  ;;  %v1546_v61 = vpop.f32.mrf.mxu3  ;;  %v1349_v12 = vpop.f32.mrf.mxu1  ;;  %v1879_v57 = vpack.c.bf16 %v9163_v60, %v9126_v54 }
 0x1fe   :  { %v1676_v0 = vpop.f32.mrf.mxu0 }
 0x1ff   :  { %v1586_v11 = vadd.f32 %v1546_v61, %v1433_v35 }
 0x200   :  { %7525 = vmatmul.msk.bf16.vlgmr.msra.gmra.mxu0 %vm117_vm2, %v9133_v52 }
 0x201   :  { %v9404_v16 = vadd.f32 %v1676_v0, %v1586_v11 }
 0x204   :  { %v1434_v46 = vpop.f32.mrf.mxu2 }
 0x205   :  { %v1435_v53 = vadd.f32 %v1434_v46, %v1349_v12  ;;  %v1548_v58 = vpop.f32.mrf.mxu3  ;;  %v1352_v2 = vpop.f32.mrf.mxu1 }
 0x206   :  { %v1678_v39 = vpop.f32.mrf.mxu0 }
 0x207   :  { %v1587_v62 = vadd.f32 %v1548_v58, %v1435_v53 }
 0x208   :  { %7478 = vmatmul.msk.bf16.gmra.mxu1 %vm117_vm2, %v1749_v7 }
 0x209   :  { %v9412_v40 = vadd.f32 %v1678_v39, %v1587_v62  ;;  %7494 = vmatmul.msk.bf16.gmra.mxu2 %vm117_vm2, %v1879_v57 }
 0x20a   :  { %7510 = vmatmul.msk.bf16.gmra.mxu3 %vm117_vm2, %v9176_v10  ;;  %v1750_v10 = vpack.c.bf16 %v9205_v18, %v9165_v45 }
 0x20c   :  { %v1437_v52 = vpop.f32.mrf.mxu2 }
 0x20d   :  { %v1438_v0 = vadd.f32 %v1437_v52, %v1352_v2  ;;  %v1551_v61 = vpop.f32.mrf.mxu3  ;;  %v1354_v35 = vpop.f32.mrf.mxu1  ;;  %v1880_v2 = vpack.c.bf16 %v9207_v28, %v9167_v36  ;;  %v1739_v28 = vld [vmem:[#allocation2 + $0x81] sm:$0xff] }
 0x20e   :  { %v1681_v12 = vpop.f32.mrf.mxu0 }
 0x20f   :  { %v1588_v11 = vadd.f32 %v1551_v61, %v1438_v0  ;;  %v9436_v61 = vld [vmem:[#allocation2 + $0x82] sm:$0xff] }
 0x210   :  { %7526 = vmatmul.msk.bf16.gmra.mxu0 %vm117_vm2, %v9174_v8  ;;  %v8141_v8 = vld [vmem:[#allocation7 + $0x80] sm:$0xff] }
 0x211   :  { %v9418_v46 = vadd.f32 %v1681_v12, %v1588_v11  ;;  %2325 = vmatpush.bf16.msra.mxu1 %v8141_v8 }
 0x214   :  { %v1439_v51 = vpop.f32.mrf.mxu2 }
 0x215   :  { %v1440_v54 = vadd.f32 %v1439_v51, %v1354_v35  ;;  %v1553_v15 = vpop.f32.mrf.mxu3  ;;  %v1357_v60 = vpop.f32.mrf.mxu1 }
 0x216   :  { %v1683_v53 = vpop.f32.mrf.mxu0 }
 0x217   :  { %v1589_v58 = vadd.f32 %v1553_v15, %v1440_v54  ;;  %v1751_v15 = vpack.c.bf16 %v1739_v28, %v9210_v30 }
 0x218   :  { %7479 = vmatmul.msk.bf16.gmra.mxu1 %vm117_vm2, %v1750_v10  ;;  %v2130_v10 = vld [vmem:[#allocation2 + $0x91] sm:$0xff] }
 0x219   :  { %v9426_v39 = vadd.f32 %v1683_v53, %v1589_v58  ;;  %7495 = vmatmul.msk.bf16.gmra.mxu2 %vm117_vm2, %v1880_v2 }
 0x21a   :  { %7511 = vmatmul.msk.bf16.gmra.mxu3 %vm117_vm2, %v9221_v59  ;;  %v2000_v59 = vld [vmem:[#allocation2 + $0x90] sm:$0xff] }
 0x21b   :  { %v2012_v53 = vpack.c.bf16 %v2000_v59, %v9239_v13  ;;  %v1882_v59 = vpack.c.bf16 %v9283_v50, %v9255_v41 }
 0x21c   :  { %v1442_v62 = vpop.f32.mrf.mxu2 }
 0x21d   :  { %v1443_v7 = vadd.f32 %v1442_v62, %v1357_v60  ;;  %v1556_v57 = vpop.f32.mrf.mxu3  ;;  %v1359_v52 = vpop.f32.mrf.mxu1  ;;  %v1881_v60 = vpack.c.bf16 %v9436_v61, %v9212_v33 }
 0x21e   :  { %v1686_v0 = vpop.f32.mrf.mxu0 }
 0x21f   :  { %v1590_v45 = vadd.f32 %v1556_v57, %v1443_v7  ;;  %v2142_v57 = vpack.c.bf16 %v2130_v10, %v1739_v28  ;;  %v1883_v10 = vpack.c.bf16 %v9327_v14, %v9288_v37 }
 0x220   :  { %7527 = vmatmul.msk.bf16.gmra.mxu0 %vm117_vm2, %v9219_v17 }
 0x221   :  { %v9432_v18 = vadd.f32 %v1686_v0, %v1590_v45 }
 0x224   :  { %v1444_v36 = vpop.f32.mrf.mxu2 }
 0x225   :  { %v1445_v35 = vadd.f32 %v1444_v36, %v1359_v52  ;;  %v1558_v12 = vpop.f32.mrf.mxu3  ;;  %v1362_v11 = vpop.f32.mrf.mxu1 }
 0x226   :  { %v1688_v51 = vpop.f32.mrf.mxu0 }
 0x227   :  { %v1591_v54 = vadd.f32 %v1558_v12, %v1445_v35  ;;  %v1752_v12 = vpack.c.bf16 %v9281_v19, %v9253_v20 }
 0x228   :  { %7480 = vmatmul.msk.bf16.gmra.mxu1 %vm117_vm2, %v1751_v15 }
 0x229   :  { %v9442_v58 = vadd.f32 %v1688_v51, %v1591_v54  ;;  %7496 = vmatmul.msk.bf16.gmra.mxu2 %vm117_vm2, %v1881_v60 }
 0x22a   :  { %7512 = vmatmul.msk.bf16.gmra.mxu3 %vm117_vm2, %v2012_v53 }
 0x22c   :  { %v1447_v17 = vpop.f32.mrf.mxu2 }
 0x22d   :  { %v1448_v2 = vadd.f32 %v1447_v17, %v1362_v11  ;;  %v1561_v8 = vpop.f32.mrf.mxu3  ;;  %v1364_v62 = vpop.f32.mrf.mxu1 }
 0x22e   :  { %v1691_v7 = vpop.f32.mrf.mxu0 }
 0x22f   :  { %v1592_v30 = vadd.f32 %v1561_v8, %v1448_v2 }
 0x230   :  { %7528 = vmatmul.msk.bf16.gmra.mxu0 %vm117_vm2, %v2142_v57 }
 0x231   :  { %v9447_v52 = vadd.f32 %v1691_v7, %v1592_v30 }
 0x234   :  { %v1449_v33 = vpop.f32.mrf.mxu2 }
 0x235   :  { %v1450_v13 = vadd.f32 %v1449_v33, %v1364_v62  ;;  %v1563_v0 = vpop.f32.mrf.mxu3  ;;  %v1367_v45 = vpop.f32.mrf.mxu1  ;;  %v1884_v33 = vpack.c.bf16 %v9367_v43, %v9332_v1  ;;  %v1747_v1 = vld [vmem:[#allocation2 + $0x121] sm:$0xff] }
 0x236   :  { %v1693_v36 = vpop.f32.mrf.mxu0 }
 0x237   :  { %v1593_v35 = vadd.f32 %v1563_v0, %v1450_v13 }
 0x238   :  { %7481 = vmatmul.msk.bf16.gmra.mxu1 %vm117_vm2, %v1752_v12 }
 0x239   :  { %v9454_v11 = vadd.f32 %v1693_v36, %v1593_v35  ;;  %7497 = vmatmul.msk.bf16.gmra.mxu2 %vm117_vm2, %v1882_v59 }
 0x23a   :  { %7513 = vmatmul.msk.bf16.gmra.mxu3 %vm117_vm2, %v9297_v21  ;;  %v1753_v21 = vpack.c.bf16 %v9324_v9, %v9286_v38 }
 0x23c   :  { %v1452_v28 = vpop.f32.mrf.mxu2 }
 0x23d   :  { %v1453_v51 = vadd.f32 %v1452_v28, %v1367_v45  ;;  %v1566_v54 = vpop.f32.mrf.mxu3  ;;  %v9460_v15 = vpop.f32.mrf.mxu1 }
 0x23e   :  { %v1696_v60 = vpop.f32.mrf.mxu0 }
 0x23f   :  { %v1594_v53 = vadd.f32 %v1566_v54, %v1453_v51  ;;  %v1755_v51 = vpack.c.bf16 %v1747_v1, %v9369_v49 }
 0x240   :  { %7529 = vmatmul.msk.bf16.gmra.mxu0 %vm117_vm2, %v9295_v23 }
 0x241   :  { %v9462_v20 = vadd.f32 %v1696_v60, %v1594_v53 }
 0x244   :  { %v9466_v41 = vpop.f32.mrf.mxu2 }
 0x245   :  { %v9468_v19 = vpop.f32.mrf.mxu3  ;;  %v1372_v50 = vpop.f32.mrf.mxu1 }
 0x246   :  { %v9470_v17 = vpop.f32.mrf.mxu0 }
 0x248   :  { %7482 = vmatmul.msk.bf16.gmra.mxu1 %vm117_vm2, %v1753_v21 }
 0x249   :  { %7498 = vmatmul.msk.bf16.gmra.mxu2 %vm117_vm2, %v1883_v10 }
 0x24a   :  { %7514 = vmatmul.msk.bf16.gmra.mxu3 %vm117_vm2, %v9341_v26  ;;  %v1754_v26 = vpack.c.bf16 %v9365_v3, %v9330_v24  ;;  %v9508_v3 = vld [vmem:[#allocation2 + $0x122] sm:$0xff] }
 0x24b   :  { %v1885_v54 = vpack.c.bf16 %v9508_v3, %v9371_v47 }
 0x24c   :  { %v1457_v23 = vpop.f32.mrf.mxu2 }
 0x24d   :  { %v1458_v2 = vadd.f32 %v1457_v23, %v1372_v50  ;;  %v1571_v8 = vpop.f32.mrf.mxu3  ;;  %v9480_v62 = vpop.f32.mrf.mxu1  ;;  %v2138_v50 = vld [vmem:[#allocation2 + $0x131] sm:$0xff] }
 0x24e   :  { %v1701_v7 = vpop.f32.mrf.mxu0 }
 0x24f   :  { %v1596_v30 = vadd.f32 %v1571_v8, %v1458_v2  ;;  %v2146_v2 = vpack.c.bf16 %v2138_v50, %v1747_v1 }
 0x250   :  { %7530 = vmatmul.msk.bf16.gmra.mxu0 %vm117_vm2, %v9339_v56 }
 0x251   :  { %v9482_v57 = vadd.f32 %v1701_v7, %v1596_v30 }
 0x254   :  { %v9486_v38 = vpop.f32.mrf.mxu2 }
 0x255   :  { %v9488_v37 = vpop.f32.mrf.mxu3  ;;  %v1377_v14 = vpop.f32.mrf.mxu1 }
 0x256   :  { %v9490_v9 = vpop.f32.mrf.mxu0 }
 0x258   :  { %7483 = vmatmul.msk.bf16.gmra.mxu1 %vm117_vm2, %v1754_v26 }
 0x259   :  { %7499 = vmatmul.msk.bf16.gmra.mxu2 %vm117_vm2, %v1884_v33 }
 0x25a   :  { %7515 = vmatmul.msk.bf16.gmra.mxu3 %vm117_vm2, %v9380_v4  ;;  %v2008_v4 = vld [vmem:[#allocation2 + $0x130] sm:$0xff] }
 0x25b   :  { %v2016_v60 = vpack.c.bf16 %v2008_v4, %v9392_v55 }
 0x25c   :  { %v1462_v56 = vpop.f32.mrf.mxu2 }
 0x25d   :  { %v1463_v13 = vadd.f32 %v1462_v56, %v1377_v14  ;;  %v1576_v0 = vpop.f32.mrf.mxu3  ;;  %v9500_v45 = vpop.f32.mrf.mxu1 }
 0x25e   :  { %v1706_v36 = vpop.f32.mrf.mxu0 }
 0x25f   :  { %v1598_v35 = vadd.f32 %v1576_v0, %v1463_v13 }
 0x260   :  { %7531 = vmatmul.msk.bf16.gmra.mxu0 %vm117_vm2, %v9378_v27  ;;  %v8146_v27 = vld [vmem:[#allocation7 + $0xa8] sm:$0xff] }
 0x261   :  { %v9502_v12 = vadd.f32 %v1706_v36, %v1598_v35  ;;  %2535 = vmatpush.bf16.msrb.mxu2 %v8146_v27 }
 0x264   :  { %v9506_v24 = vpop.f32.mrf.mxu2 }
 0x265   :  { %v9510_v43 = vpop.f32.mrf.mxu3  ;;  %v1382_v59 = vpop.f32.mrf.mxu1 }
 0x266   :  { %v9512_v28 = vpop.f32.mrf.mxu0 }
 0x268   :  { %7484 = vmatmul.msk.bf16.gmra.mxu1 %vm117_vm2, %v1755_v51 }
 0x269   :  { %7500 = vmatmul.msk.bf16.gmra.mxu2 %vm117_vm2, %v1885_v54 }
 0x26a   :  { %7516 = vmatmul.msk.bf16.gmra.mxu3 %vm117_vm2, %v2016_v60 }
 0x26c   :  { %v1467_v53 = vpop.f32.mrf.mxu2 }
 0x26d   :  { %v1468_v21 = vadd.f32 %v1467_v53, %v1382_v59  ;;  %v1581_v10 = vpop.f32.mrf.mxu3  ;;  %v9521_v23 = vpop.f32.mrf.mxu1 }
 0x26e   :  { %v1711_v8 = vpop.f32.mrf.mxu0 }
 0x26f   :  { %v1600_v49 = vadd.f32 %v1581_v10, %v1468_v21 }
 0x270   :  { %7532 = vmatmul.msk.bf16.gmra.mxu0 %vm117_vm2, %v2146_v2 }
 0x271   :  { %v1730_v47 = vadd.f32 %v1711_v8, %v1600_v49  ;;  %v8148_v49 = vld [vmem:[#allocation7 + $0xb8] sm:$0xff]  ;;  %v8143_v8 = vld [vmem:[#allocation7 + $0x90] sm:$0xff] }
 0x272   :  { %2734 = vmatpush.bf16.msrb.mxu0 %v8148_v49  ;;  %v9591_v49 = vld [vmem:[#allocation8] ss:$0 sm:$0xff] }
 0x275   :  { %v1806_v55 = vpop.f32.mrf.mxu1  ;;  %v9568_v51 = vpop.f32.mrf.mxu3 }
 0x276   :  { %v9525_v7 = vadd.f32 %v1806_v55, %v9404_v16  ;;  %v9572_v54 = vpop.f32.mrf.mxu0  ;;  %v8147_v55 = vld [vmem:[#allocation7 + $0xb0] sm:$0xff] }
 0x277   :  { %2735 = vmatpush.bf16.msrb.mxu0 %v8147_v55 }
 0x278   :  { %7541 = vmatmul.msk.bf16.vlgmr.msra.gmra.mxu1 %vm117_vm2, %v9139_v29 }
 0x27d   :  { %v1808_v30 = vpop.f32.mrf.mxu1  ;;  %v2067_v60 = vpop.f32.mrf.mxu3 }
 0x27e   :  { %v9530_v14 = vadd.f32 %v1808_v30, %v9412_v40  ;;  %v2197_v27 = vpop.f32.mrf.mxu0  ;;  %v2268_v30 = vld [vmem:[#allocation2 + $0x132] sm:$0xff] }
 0x285   :  { %v1811_v26 = vpop.f32.mrf.mxu1 }
 0x286   :  { %v9533_v33 = vadd.f32 %v1811_v26, %v9418_v46  ;;  %v2260_v46 = vld [vmem:[#allocation2 + $0x92] sm:$0xff]  ;;  %v2199_v2 = vpop.f32.mrf.mxu0 }
 0x288   :  { %7542 = vmatmul.msk.bf16.gmra.mxu1 %vm117_vm2, %v9180_v34  ;;  %v2272_v34 = vpack.c.bf16 %v2260_v46, %v9436_v61 }
 0x28d   :  { %v1813_v56 = vpop.f32.mrf.mxu1 }
 0x28e   :  { %v9538_v13 = vadd.f32 %v1813_v56, %v9426_v39  ;;  %v8145_v39 = vld [vmem:[#allocation7 + $0xa0] sm:$0xff]  ;;  %v2202_v46 = vpop.f32.mrf.mxu0 }
 0x28f   :  { %2536 = vmatpush.bf16.msrb.mxu2 %v8145_v39  ;;  %v8152_v39 = vld [vmem:[#allocation7 + $0xd8] sm:$0xff] }
 0x293   :  { %2994 = vmatpush.bf16.msra.mxu2 %v8152_v39 }
 0x295   :  { %v1816_v16 = vpop.f32.mrf.mxu1 }
 0x296   :  { %v9541_v0 = vadd.f32 %v1816_v16, %v9432_v18  ;;  %v8150_v16 = vld [vmem:[#allocation7 + $0xc8] sm:$0xff] }
 0x297   :  { %2864 = vmatpush.bf16.msrb.mxu1 %v8150_v16  ;;  %2995 = vmatpush.bf16.msra.mxu2 %v8151_v6 }
 0x298   :  { %7543 = vmatmul.msk.bf16.gmra.mxu1 %vm117_vm2, %v9225_v25 }
 0x29d   :  { %v1818_v29 = vpop.f32.mrf.mxu1 }
 0x29e   :  { %v9546_v40 = vadd.f32 %v1818_v29, %v9442_v58 }
 0x2a5   :  { %v1821_v36 = vpop.f32.mrf.mxu1 }
 0x2a6   :  { %v9549_v35 = vadd.f32 %v1821_v36, %v9447_v52  ;;  %v9563_v52 = vpop.f32.mrf.mxu2  ;;  %v8149_v36 = vld [vmem:[#allocation7 + $0xc0] sm:$0xff] }
 0x2a7   :  { %2865 = vmatpush.bf16.msrb.mxu1 %v8149_v36 }
 0x2a8   :  { %7544 = vmatmul.msk.bf16.gmra.mxu1 %vm117_vm2, %v2272_v34 }
 0x2ad   :  { %v1823_v18 = vpop.f32.mrf.mxu1 }
 0x2ae   :  { %v9554_v1 = vadd.f32 %v1823_v18, %v9454_v11  ;;  %v1936_v11 = vpop.f32.mrf.mxu2 }
 0x2af   :  { %v1976_v34 = vadd.f32 %v1936_v11, %v9525_v7 }
 0x2b5   :  { %v1826_v25 = vpop.f32.mrf.mxu1 }
 0x2b6   :  { %v9557_v4 = vadd.f32 %v1826_v25, %v9462_v20 }
 0x2b8   :  { %7545 = vmatmul.msk.bf16.gmra.mxu1 %vm117_vm2, %v9301_v63  ;;  %v1938_v63 = vpop.f32.mrf.mxu2 }
 0x2bd   :  { %v9561_v58 = vpop.f32.mrf.mxu1 }
 0x2c0   :  { %v1941_v10 = vpop.f32.mrf.mxu2 }
 0x2c5   :  { %v1831_v61 = vpop.f32.mrf.mxu1 }
 0x2c6   :  { %v9566_v59 = vadd.f32 %v1831_v61, %v9482_v57  ;;  %v2069_v57 = vpop.f32.mrf.mxu3  ;;  %v2107_v61 = vadd.f32 %v2067_v60, %v1976_v34 }
 0x2c8   :  { %7546 = vmatmul.msk.bf16.gmra.mxu1 %vm117_vm2, %v9345_v5  ;;  %v8144_v5 = vld [vmem:[#allocation7 + $0x98] sm:$0xff]  ;;  %v1943_v29 = vpop.f32.mrf.mxu2 }
 0x2c9   :  { %2620 = vmatpush.bf16.msrb.mxu3 %v8144_v5  ;;  %v2237_v5 = vadd.f32 %v2197_v27, %v2107_v61  ;;  %v2435_v61 = vld [vmem:[#allocation2] sm:$0xff] }
 0x2cd   :  { %v9574_v20 = vpop.f32.mrf.mxu1  ;;  %2621 = vmatpush.bf16.msrb.mxu3 %v8143_v8 }
 0x2ce   :  { %v2072_v26 = vpop.f32.mrf.mxu3 }
 0x2d5   :  { %v1836_v53 = vpop.f32.mrf.mxu1 }
 0x2d6   :  { %v9577_v50 = vadd.f32 %v1836_v53, %v9502_v12  ;;  %v2074_v25 = vpop.f32.mrf.mxu3  ;;  %v2204_v53 = vpop.f32.mrf.mxu0 }
 0x2d8   :  { %7547 = vmatmul.msk.bf16.gmra.mxu1 %vm117_vm2, %v9384_v31  ;;  %v2276_v31 = vpack.c.bf16 %v2268_v30, %v9508_v3  ;;  %v1977_v3 = vadd.f32 %v1938_v63, %v9530_v14  ;;  %v2464_v63 = vld [vmem:[#allocation2 + $0x1] sm:$0xff] }
 0x2da   :  { %v2108_v30 = vadd.f32 %v2069_v57, %v1977_v3 }
 0x2dc   :  { %v2238_v16 = vadd.f32 %v2199_v2, %v2108_v30 }
 0x2dd   :  { %v9581_v21 = vpop.f32.mrf.mxu1 }
 0x2de   :  { %v2077_v7 = vpop.f32.mrf.mxu3  ;;  %v2207_v60 = vpop.f32.mrf.mxu0 }
 0x2e5   :  { %v1841_v12 = vpop.f32.mrf.mxu1 }
 0x2e6   :  { %v9583_v56 = vadd.f32 %v1841_v12, %v1730_v47  ;;  %v1946_v47 = vpop.f32.mrf.mxu2 }
 0x2e8   :  { %7548 = vmatmul.msk.bf16.gmra.mxu1 %vm117_vm2, %v2276_v31  ;;  %v1978_v31 = vadd.f32 %v1941_v10, %v9533_v33  ;;  %v1979_v10 = vadd.f32 %v1943_v29, %v9538_v13 }
 0x2ea   :  { %v2109_v39 = vadd.f32 %v2072_v26, %v1978_v31 }
 0x2ec   :  { %v2239_v3 = vadd.f32 %v2202_v46, %v2109_v39  ;;  %v2209_v46 = vpop.f32.mrf.mxu0 }
 0x2ed   :  { %v9588_v18 = vpop.f32.mrf.mxu1 }
 0x2ee   :  { %v1948_v36 = vpop.f32.mrf.mxu2 }
 0x2f5   :  { %v2327_v8 = vpop.f32.mrf.mxu1 }
 0x2f6   :  { %v2367_v55 = vadd.f32 %v2327_v8, %v2237_v5  ;;  %v2663_v5 = vld [vmem:[#allocation2 + $0x2] sm:$0xff]  ;;  %v2079_v8 = vpop.f32.mrf.mxu3  ;;  %v1951_v31 = vpop.f32.mrf.mxu2 }
 0x2f8   :  { %v2387_v12 = vadd.f32 %v9591_v49, %v2367_v55 }
 0x2fa   :  { %v2403_v11 = vmax.f32 %v2387_v12, 0.0 }
 0x2fc   :  { %2419 = vst.msk [vmem:[#allocation2 + $0x11] sm:$0xff] %vm117_vm2, %v2403_v11 }
 0x2fd   :  { %v2329_v34 = vpop.f32.mrf.mxu1 }
 0x2fe   :  { %v2368_v27 = vadd.f32 %v2329_v34, %v2238_v16  ;;  %v2110_v34 = vadd.f32 %v2074_v25, %v1979_v10  ;;  %v2212_v25 = vpop.f32.mrf.mxu0 }
 0x300   :  { %v2388_v14 = vadd.f32 %v9591_v49, %v2368_v27  ;;  %v1980_v27 = vadd.f32 %v1946_v47, %v9541_v0 }
 0x302   :  { %v2404_v57 = vmax.f32 %v2388_v14, 0.0  ;;  %v2240_v14 = vadd.f32 %v2204_v53, %v2110_v34 }
 0x303   :  { %v9597_v55 = vld [vmem:[#allocation2 + $0x11] sm:$0xff] }
 0x304   :  { %v2436_v12 = vld [vmem:[#allocation2 + $0x10] sm:$0xff]  ;;  %2420 = vst.msk [vmem:[#allocation2 + $0x21] sm:$0xff] %vm117_vm2, %v2404_v57  ;;  %v2480_v2 = vpack.c.bf16 %v9597_v55, %v2464_v63 }
 0x305   :  { %v9599_v33 = vld [vmem:[#allocation2 + $0x12] sm:$0xff]  ;;  %v2451_v26 = vpack.c.bf16 %v2436_v12, %v2435_v61  ;;  %v2332_v11 = vpop.f32.mrf.mxu1  ;;  %v2082_v61 = vpop.f32.mrf.mxu3 }
 0x306   :  { %v2679_v30 = vpack.c.bf16 %v9599_v33, %v2663_v5  ;;  %v2369_v16 = vadd.f32 %v2332_v11, %v2239_v3  ;;  %7557 = vmatmul.msk.bf16.vlgmr.msrb.gmra.mxu2 %vm117_vm2, %v2480_v2  ;;  %v2111_v3 = vadd.f32 %v2077_v7, %v1980_v27  ;;  %v1953_v2 = vpop.f32.mrf.mxu2 }
 0x307   :  { %7573 = vmatmul.msk.bf16.vlgmr.msrb.gmra.mxu3 %vm117_vm2, %v2451_v26 }
 0x308   :  { %7589 = vmatmul.msk.bf16.vlgmr.msrb.gmra.mxu0 %vm117_vm2, %v2679_v30  ;;  %v2389_v13 = vadd.f32 %v9591_v49, %v2369_v16  ;;  %v2241_v0 = vadd.f32 %v2207_v60, %v2111_v3  ;;  %v1981_v16 = vadd.f32 %v1948_v36, %v9546_v40 }
 0x30a   :  { %v2405_v29 = vmax.f32 %v2389_v13, 0.0  ;;  %v2112_v36 = vadd.f32 %v2079_v8, %v1981_v16 }
 0x30b   :  { %v2794_v39 = vld [vmem:[#allocation2 + $0x20] sm:$0xff] }
 0x30c   :  { %2421 = vst.msk [vmem:[#allocation2 + $0x31] sm:$0xff] %vm117_vm2, %v2405_v29  ;;  %v2809_v63 = vpack.c.bf16 %v2794_v39, %v2436_v12  ;;  %v9613_v30 = vld [vmem:[#allocation2 + $0x21] sm:$0xff]  ;;  %v2242_v3 = vadd.f32 %v2209_v46, %v2112_v36 }
 0x30d   :  { %v2334_v5 = vpop.f32.mrf.mxu1  ;;  %v9615_v11 = vld [vmem:[#allocation2 + $0x22] sm:$0xff]  ;;  %v2084_v40 = vpop.f32.mrf.mxu3 }
 0x30e   :  { %v2370_v57 = vadd.f32 %v2334_v5, %v2240_v14  ;;  %7605 = vmatmul.msk.bf16.vlgmr.msrb.gmra.mxu1 %vm117_vm2, %v2809_v63  ;;  %v1982_v63 = vadd.f32 %v1951_v31, %v9549_v35  ;;  %v2214_v5 = vpop.f32.mrf.mxu0 }
 0x310   :  { %v2390_v26 = vadd.f32 %v9591_v49, %v2370_v57 }
 0x312   :  { %v2406_v10 = vmax.f32 %v2390_v26, 0.0 }
 0x313   :  { %v9617_v47 = vld [vmem:[#allocation2 + $0x31] sm:$0xff] }
 0x314   :  { %v2438_v53 = vld [vmem:[#allocation2 + $0x30] sm:$0xff]  ;;  %2422 = vst.msk [vmem:[#allocation2 + $0x41] sm:$0xff] %vm117_vm2, %v2406_v10  ;;  %v9625_v7 = vpack.c.bf16 %v9617_v47, %v9613_v30 }
 0x315   :  { %v9619_v12 = vld [vmem:[#allocation2 + $0x32] sm:$0xff]  ;;  %v9627_v34 = vpack.c.bf16 %v2438_v53, %v2794_v39  ;;  %v2337_v60 = vpop.f32.mrf.mxu1  ;;  %v1956_v39 = vpop.f32.mrf.mxu2 }
 0x316   :  { %v9631_v13 = vpack.c.bf16 %v9619_v12, %v9615_v11  ;;  %v2371_v29 = vadd.f32 %v2337_v60, %v2241_v0  ;;  %7558 = vmatmul.msk.bf16.gmra.mxu2 %vm117_vm2, %v9625_v7  ;;  %v2113_v60 = vadd.f32 %v2082_v61, %v1982_v63  ;;  %v2087_v8 = vpop.f32.mrf.mxu3 }
 0x317   :  { %7574 = vmatmul.msk.bf16.gmra.mxu3 %vm117_vm2, %v9627_v34 }
 0x318   :  { %7590 = vmatmul.msk.bf16.gmra.mxu0 %vm117_vm2, %v9631_v13  ;;  %v2391_v27 = vadd.f32 %v9591_v49, %v2371_v29  ;;  %v2243_v35 = vadd.f32 %v2212_v25, %v2113_v60  ;;  %v2217_v25 = vpop.f32.mrf.mxu0 }
 0x31a   :  { %v2407_v14 = vmax.f32 %v2391_v27, 0.0 }
 0x31b   :  { %v2796_v57 = vld [vmem:[#allocation2 + $0x40] sm:$0xff] }
 0x31c   :  { %2423 = vst.msk [vmem:[#allocation2 + $0x51] sm:$0xff] %vm117_vm2, %v2407_v14  ;;  %v2810_v26 = vpack.c.bf16 %v2796_v57, %v2438_v53  ;;  %v9644_v29 = vld [vmem:[#allocation2 + $0x41] sm:$0xff]  ;;  %v1983_v53 = vadd.f32 %v1953_v2, %v9554_v1  ;;  %v1455_v1 = vadd.f32 %v9466_v41, %v9460_v15 }
 0x31d   :  { %v2339_v10 = vpop.f32.mrf.mxu1  ;;  %v9646_v27 = vld [vmem:[#allocation2 + $0x42] sm:$0xff]  ;;  %v1958_v14 = vpop.f32.mrf.mxu2 }
 0x31e   :  { %v2372_v0 = vadd.f32 %v2339_v10, %v2242_v3  ;;  %7606 = vmatmul.msk.bf16.gmra.mxu1 %vm117_vm2, %v2810_v26  ;;  %v2114_v2 = vadd.f32 %v2084_v40, %v1983_v53  ;;  %v2089_v60 = vpop.f32.mrf.mxu3 }
 0x320   :  { %v2392_v32 = vadd.f32 %v9591_v49, %v2372_v0  ;;  %v1984_v0 = vadd.f32 %v1956_v39, %v9557_v4  ;;  %v2219_v41 = vpop.f32.mrf.mxu0 }
 0x322   :  { %v2408_v16 = vmax.f32 %v2392_v32, 0.0  ;;  %v2115_v15 = vadd.f32 %v2087_v8, %v1984_v0 }
 0x323   :  { %v9648_v31 = vld [vmem:[#allocation2 + $0x51] sm:$0xff] }
 0x324   :  { %v2440_v46 = vld [vmem:[#allocation2 + $0x50] sm:$0xff]  ;;  %2424 = vst.msk [vmem:[#allocation2 + $0x61] sm:$0xff] %vm117_vm2, %v2408_v16  ;;  %v9656_v61 = vpack.c.bf16 %v9648_v31, %v9644_v29 }
 0x325   :  { %v9650_v36 = vld [vmem:[#allocation2 + $0x52] sm:$0xff]  ;;  %v9658_v32 = vpack.c.bf16 %v2440_v46, %v2796_v57  ;;  %v2342_v3 = vpop.f32.mrf.mxu1  ;;  %v1961_v48 = vpop.f32.mrf.mxu2 }
 0x326   :  { %v9662_v63 = vpack.c.bf16 %v9650_v36, %v9646_v27  ;;  %v2373_v26 = vadd.f32 %v2342_v3, %v2243_v35  ;;  %7559 = vmatmul.msk.bf16.gmra.mxu2 %vm117_vm2, %v9656_v61  ;;  %v1595_v35 = vadd.f32 %v9468_v19, %v1455_v1  ;;  %v2244_v3 = vadd.f32 %v2214_v5, %v2114_v2 }
 0x327   :  { %7575 = vmatmul.msk.bf16.gmra.mxu3 %vm117_vm2, %v9658_v32 }
 0x328   :  { %7591 = vmatmul.msk.bf16.gmra.mxu0 %vm117_vm2, %v9662_v63  ;;  %v2393_v57 = vadd.f32 %v9591_v49, %v2373_v26  ;;  %v1725_v40 = vadd.f32 %v9470_v17, %v1595_v35  ;;  %v2222_v0 = vpop.f32.mrf.mxu0  ;;  %v1986_v35 = vadd.f32 %v1961_v48, %v9566_v59  ;;  %v2472_v48 = vld [vmem:[#allocation2 + $0xa1] sm:$0xff] }
 0x329   :  { %v2443_v59 = vld [vmem:[#allocation2 + $0xa0] sm:$0xff] }
 0x32a   :  { %v2409_v10 = vmax.f32 %v2393_v57, 0.0  ;;  %v1855_v39 = vadd.f32 %v9561_v58, %v1725_v40  ;;  %v2092_v58 = vpop.f32.mrf.mxu3 }
 0x32b   :  { %v2798_v16 = vld [vmem:[#allocation2 + $0x60] sm:$0xff] }
 0x32c   :  { %2425 = vst.msk [vmem:[#allocation2 + $0x71] sm:$0xff] %vm117_vm2, %v2409_v10  ;;  %v2811_v44 = vpack.c.bf16 %v2798_v16, %v2440_v46  ;;  %v9680_v5 = vld [vmem:[#allocation2 + $0x61] sm:$0xff]  ;;  %v2245_v46 = vadd.f32 %v2217_v25, %v2115_v15  ;;  %v1985_v6 = vadd.f32 %v1958_v14, %v1855_v39  ;;  %v1460_v14 = vadd.f32 %v9486_v38, %v9480_v62 }
 0x32d   :  { %v2344_v22 = vpop.f32.mrf.mxu1  ;;  %v9682_v53 = vld [vmem:[#allocation2 + $0x62] sm:$0xff]  ;;  %v1963_v57 = vpop.f32.mrf.mxu2  ;;  %v2117_v62 = vadd.f32 %v2092_v58, %v1986_v35 }
 0x32e   :  { %v2374_v42 = vadd.f32 %v2344_v22, %v2244_v3  ;;  %7607 = vmatmul.msk.bf16.gmra.mxu1 %vm117_vm2, %v2811_v44  ;;  %v2116_v2 = vadd.f32 %v2089_v60, %v1985_v6  ;;  %v1597_v15 = vadd.f32 %v9488_v37, %v1460_v14  ;;  %v2671_v6 = vld [vmem:[#allocation2 + $0xa2] sm:$0xff] }
 0x330   :  { %v2394_v4 = vadd.f32 %v9591_v49, %v2374_v42  ;;  %v2246_v40 = vadd.f32 %v2219_v41, %v2116_v2  ;;  %v1727_v60 = vadd.f32 %v9490_v9, %v1597_v15  ;;  %v2224_v14 = vpop.f32.mrf.mxu0 }
 0x332   :  { %v2410_v19 = vmax.f32 %v2394_v4, 0.0  ;;  %v2094_v38 = vpop.f32.mrf.mxu3  ;;  %v1857_v37 = vadd.f32 %v9574_v20, %v1727_v60  ;;  %v1465_v20 = vadd.f32 %v9506_v24, %v9500_v45 }
 0x333   :  { %v9684_v26 = vld [vmem:[#allocation2 + $0x71] sm:$0xff] }
 0x334   :  { %v2442_v22 = vld [vmem:[#allocation2 + $0x70] sm:$0xff]  ;;  %2426 = vst.msk [vmem:[#allocation2 + $0x81] sm:$0xff] %vm117_vm2, %v2410_v19  ;;  %v9691_v44 = vpack.c.bf16 %v9684_v26, %v9680_v5  ;;  %v1987_v58 = vadd.f32 %v1963_v57, %v1857_v37  ;;  %v1599_v60 = vadd.f32 %v9510_v43, %v1465_v20 }
 0x335   :  { %v9686_v1 = vld [vmem:[#allocation2 + $0x72] sm:$0xff]  ;;  %v9693_v42 = vpack.c.bf16 %v2442_v22, %v2798_v16  ;;  %v2347_v8 = vpop.f32.mrf.mxu1  ;;  %v1966_v41 = vpop.f32.mrf.mxu2 }
 0x336   :  { %v9697_v17 = vpack.c.bf16 %v9686_v1, %v9682_v53  ;;  %v2375_v25 = vadd.f32 %v2347_v8, %v2245_v46  ;;  %7560 = vmatmul.msk.bf16.gmra.mxu2 %vm117_vm2, %v9691_v44  ;;  %v1729_v24 = vadd.f32 %v9512_v28, %v1599_v60 }
 0x337   :  { %7576 = vmatmul.msk.bf16.gmra.mxu3 %vm117_vm2, %v9693_v42 }
 0x338   :  { %7592 = vmatmul.msk.bf16.gmra.mxu0 %vm117_vm2, %v9697_v17  ;;  %v2395_v10 = vadd.f32 %v9591_v49, %v2375_v25  ;;  %v2247_v25 = vadd.f32 %v2222_v0, %v2117_v62  ;;  %v2118_v0 = vadd.f32 %v2094_v38, %v1987_v58 }
 0x33a   :  { %v2411_v16 = vmax.f32 %v2395_v10, 0.0 }
 0x33b   :  { %v9709_v3 = vld [vmem:[#allocation2 + $0x80] sm:$0xff] }
 0x33c   :  { %2427 = vst.msk [vmem:[#allocation2 + $0xb1] sm:$0xff] %vm117_vm2, %v2411_v16  ;;  %v2812_v4 = vpack.c.bf16 %v9709_v3, %v2442_v22 }
 0x33d   :  { %v2349_v39 = vpop.f32.mrf.mxu1 }
 0x33e   :  { %v2376_v19 = vadd.f32 %v2349_v39, %v2246_v40  ;;  %7608 = vmatmul.msk.bf16.gmra.mxu1 %vm117_vm2, %v2812_v4  ;;  %v2097_v4 = vpop.f32.mrf.mxu3 }
 0x340   :  { %v2396_v46 = vadd.f32 %v9591_v49, %v2376_v19  ;;  %v1988_v19 = vadd.f32 %v1966_v41, %v9577_v50  ;;  %v1859_v50 = vadd.f32 %v9581_v21, %v1729_v24 }
 0x342   :  { %v2412_v8 = vmax.f32 %v2396_v46, 0.0  ;;  %v2248_v46 = vadd.f32 %v2224_v14, %v2118_v0  ;;  %v2119_v45 = vadd.f32 %v2097_v4, %v1988_v19 }
 0x343   :  { %v9718_v22 = vld [vmem:[#allocation2 + $0xb1] sm:$0xff] }
 0x344   :  { %v2444_v2 = vld [vmem:[#allocation2 + $0xb0] sm:$0xff]  ;;  %2428 = vst.msk [vmem:[#allocation2 + $0xc1] sm:$0xff] %vm117_vm2, %v2412_v8  ;;  %v2484_v9 = vpack.c.bf16 %v9718_v22, %v2472_v48  ;;  %v1968_v48 = vpop.f32.mrf.mxu2 }
 0x345   :  { %v9720_v10 = vld [vmem:[#allocation2 + $0xb2] sm:$0xff]  ;;  %v2455_v16 = vpack.c.bf16 %v2444_v2, %v2443_v59  ;;  %v2352_v15 = vpop.f32.mrf.mxu1 }
 0x346   :  { %v2683_v35 = vpack.c.bf16 %v9720_v10, %v2671_v6  ;;  %v2377_v40 = vadd.f32 %v2352_v15, %v2247_v25  ;;  %7561 = vmatmul.msk.bf16.gmra.mxu2 %vm117_vm2, %v2484_v9  ;;  %v2227_v6 = vpop.f32.mrf.mxu0  ;;  %v2099_v58 = vpop.f32.mrf.mxu3 }
 0x347   :  { %7577 = vmatmul.msk.bf16.gmra.mxu3 %vm117_vm2, %v2455_v16  ;;  %v2249_v14 = vadd.f32 %v2227_v6, %v2119_v45  ;;  %v8156_v45 = vld [vmem:[#allocation7 + $0xf8] sm:$0xff] }
 0x348   :  { %7593 = vmatmul.msk.bf16.gmra.mxu0 %vm117_vm2, %v2683_v35  ;;  %v2397_v57 = vadd.f32 %v9591_v49, %v2377_v40  ;;  %v1989_v35 = vadd.f32 %v1968_v48, %v1859_v50 }
 0x349   :  { %3254 = vmatpush.bf16.msra.mxu0 %v8156_v45 }
 0x34a   :  { %v2413_v39 = vmax.f32 %v2397_v57, 0.0  ;;  %v1470_v57 = vadd.f32 %v9563_v52, %v9521_v23  ;;  %v8154_v52 = vld [vmem:[#allocation7 + $0xe8] sm:$0xff] }
 0x34b   :  { %v2802_v62 = vld [vmem:[#allocation2 + $0xc0] sm:$0xff]  ;;  %3124 = vmatpush.bf16.msra.mxu3 %v8154_v52 }
 0x34c   :  { %2429 = vst.msk [vmem:[#allocation2 + $0xd1] sm:$0xff] %vm117_vm2, %v2413_v39  ;;  %v2813_v59 = vpack.c.bf16 %v2802_v62, %v2444_v2  ;;  %v9738_v25 = vld [vmem:[#allocation2 + $0xc1] sm:$0xff]  ;;  %v1971_v20 = vpop.f32.mrf.mxu2  ;;  %v2120_v39 = vadd.f32 %v2099_v58, %v1989_v35  ;;  %v1601_v60 = vadd.f32 %v9568_v51, %v1470_v57 }
 0x34d   :  { %v2354_v37 = vpop.f32.mrf.mxu1  ;;  %v9740_v43 = vld [vmem:[#allocation2 + $0xc2] sm:$0xff] }
 0x34e   :  { %v2378_v8 = vadd.f32 %v2354_v37, %v2248_v46  ;;  %7609 = vmatmul.msk.bf16.gmra.mxu1 %vm117_vm2, %v2813_v59  ;;  %v2229_v4 = vpop.f32.mrf.mxu0  ;;  %v1990_v46 = vadd.f32 %v1971_v20, %v9583_v56  ;;  %v2102_v37 = vpop.f32.mrf.mxu3  ;;  %v1731_v24 = vadd.f32 %v9572_v54, %v1601_v60  ;;  %v8153_v35 = vld [vmem:[#allocation7 + $0xe0] sm:$0xff] }
 0x34f   :  { %v2250_v59 = vadd.f32 %v2229_v4, %v2120_v39  ;;  %3125 = vmatpush.bf16.msra.mxu3 %v8153_v35 }
 0x350   :  { %v2398_v38 = vadd.f32 %v9591_v49, %v2378_v8  ;;  %v1861_v56 = vadd.f32 %v9588_v18, %v1731_v24 }
 0x352   :  { %v2414_v41 = vmax.f32 %v2398_v38, 0.0  ;;  %v2121_v38 = vadd.f32 %v2102_v37, %v1990_v46  ;;  %v8158_v46 = vld [vmem:[#allocation7 + $0x108] sm:$0xff] }
 0x353   :  { %v9742_v2 = vld [vmem:[#allocation2 + $0xd1] sm:$0xff]  ;;  %3384 = vmatpush.bf16.msra.mxu1 %v8158_v46 }
 0x354   :  { %v2446_v9 = vld [vmem:[#allocation2 + $0xd0] sm:$0xff]  ;;  %2430 = vst.msk [vmem:[#allocation2 + $0xe1] sm:$0xff] %vm117_vm2, %v2414_v41  ;;  %v9749_v28 = vpack.c.bf16 %v9742_v2, %v9738_v25  ;;  %v1973_v50 = vpop.f32.mrf.mxu2 }
 0x355   :  { %v9744_v16 = vld [vmem:[#allocation2 + $0xd2] sm:$0xff]  ;;  %v9751_v21 = vpack.c.bf16 %v2446_v9, %v2802_v62  ;;  %v2357_v40 = vpop.f32.mrf.mxu1 }
 0x356   :  { %v9755_v15 = vpack.c.bf16 %v9744_v16, %v9740_v43  ;;  %v2379_v0 = vadd.f32 %v2357_v40, %v2249_v14  ;;  %7562 = vmatmul.msk.bf16.gmra.mxu2 %vm117_vm2, %v9749_v28  ;;  %v2232_v41 = vpop.f32.mrf.mxu0  ;;  %v8155_v40 = vld [vmem:[#allocation7 + $0xf0] sm:$0xff] }
 0x357   :  { %7578 = vmatmul.msk.bf16.gmra.mxu3 %vm117_vm2, %v9751_v21  ;;  %v2251_v20 = vadd.f32 %v2232_v41, %v2121_v38  ;;  %3255 = vmatpush.bf16.msra.mxu0 %v8155_v40 }
 0x358   :  { %7594 = vmatmul.msk.bf16.gmra.mxu0 %vm117_vm2, %v9755_v15  ;;  %v2399_v19 = vadd.f32 %v9591_v49, %v2379_v0  ;;  %v1991_v0 = vadd.f32 %v1973_v50, %v1861_v56 }
 0x35a   :  { %v2415_v62 = vmax.f32 %v2399_v19, 0.0 }
 0x35b   :  { %v2804_v48 = vld [vmem:[#allocation2 + $0xe0] sm:$0xff] }
 0x35c   :  { %2431 = vst.msk [vmem:[#allocation2 + $0xf1] sm:$0xff] %vm117_vm2, %v2415_v62  ;;  %v2814_v6 = vpack.c.bf16 %v2804_v48, %v2446_v9  ;;  %v9773_v14 = vld [vmem:[#allocation2 + $0xe1] sm:$0xff] }
 0x35d   :  { %v2359_v8 = vpop.f32.mrf.mxu1  ;;  %v9775_v9 = vld [vmem:[#allocation2 + $0xe2] sm:$0xff] }
 0x35e   :  { %v2380_v23 = vadd.f32 %v2359_v8, %v2250_v59  ;;  %7610 = vmatmul.msk.bf16.gmra.mxu1 %vm117_vm2, %v2814_v6  ;;  %v2104_v59 = vpop.f32.mrf.mxu3  ;;  %v2234_v52 = vpop.f32.mrf.mxu0 }
 0x35f   :  { %v2122_v6 = vadd.f32 %v2104_v59, %v1991_v0 }
 0x360   :  { %v2400_v51 = vadd.f32 %v9591_v49, %v2380_v23  ;;  %v8157_v23 = vld [vmem:[#allocation7 + $0x100] sm:$0xff] }
 0x361   :  { %v2252_v24 = vadd.f32 %v2234_v52, %v2122_v6  ;;  %3385 = vmatpush.bf16.msra.mxu1 %v8157_v23  ;;  %v3069_v6 = vpack.c.bf16 %v9615_v11, %v9599_v33 }
 0x362   :  { %v2416_v58 = vmax.f32 %v2400_v51, 0.0 }
 0x363   :  { %v9777_v57 = vld [vmem:[#allocation2 + $0xf1] sm:$0xff] }
 0x364   :  { %v2448_v54 = vld [vmem:[#allocation2 + $0xf0] sm:$0xff]  ;;  %2432 = vst.msk [vmem:[#allocation2 + $0x101] sm:$0xff] %vm117_vm2, %v2416_v58  ;;  %v9784_v18 = vpack.c.bf16 %v9777_v57, %v9773_v14 }
 0x365   :  { %v9779_v4 = vld [vmem:[#allocation2 + $0xf2] sm:$0xff]  ;;  %v9786_v39 = vpack.c.bf16 %v2448_v54, %v2804_v48  ;;  %v2362_v62 = vpop.f32.mrf.mxu1  ;;  %v8160_v48 = vld [vmem:[#allocation7 + $0x118] sm:$0xff] }
 0x366   :  { %v9790_v19 = vpack.c.bf16 %v9779_v4, %v9775_v9  ;;  %v2381_v60 = vadd.f32 %v2362_v62, %v2251_v20  ;;  %7563 = vmatmul.msk.bf16.gmra.mxu2 %vm117_vm2, %v9784_v18 }
 0x367   :  { %7579 = vmatmul.msk.bf16.gmra.mxu3 %vm117_vm2, %v9786_v39  ;;  %3514 = vmatpush.bf16.msrb.mxu2 %v8160_v48  ;;  %v2939_v48 = vpack.c.bf16 %v9613_v30, %v9597_v55 }
 0x368   :  { %7595 = vmatmul.msk.bf16.gmra.mxu0 %vm117_vm2, %v9790_v19  ;;  %v2401_v37 = vadd.f32 %v9591_v49, %v2381_v60 }
 0x36a   :  { %v2417_v8 = vmax.f32 %v2401_v37, 0.0 }
 0x36b   :  { %v2806_v45 = vld [vmem:[#allocation2 + $0x100] sm:$0xff] }
 0x36c   :  { %2433 = vst.msk [vmem:[#allocation2 + $0x111] sm:$0xff] %vm117_vm2, %v2417_v8  ;;  %v2815_v38 = vpack.c.bf16 %v2806_v45, %v2448_v54  ;;  %v9802_v58 = vld [vmem:[#allocation2 + $0x101] sm:$0xff] }
 0x36d   :  { %v2364_v50 = vpop.f32.mrf.mxu1  ;;  %v9804_v35 = vld [vmem:[#allocation2 + $0x102] sm:$0xff] }
 0x36e   :  { %v2382_v51 = vadd.f32 %v2364_v50, %v2252_v24  ;;  %7611 = vmatmul.msk.bf16.gmra.mxu1 %vm117_vm2, %v2815_v38 }
 0x370   :  { %v2402_v56 = vadd.f32 %v9591_v49, %v2382_v51 }
 0x372   :  { %v2418_v41 = vmax.f32 %v2402_v56, 0.0  ;;  %v3070_v56 = vpack.c.bf16 %v9646_v27, %v9619_v12 }
 0x373   :  { %v9806_v40 = vld [vmem:[#allocation2 + $0x111] sm:$0xff] }
 0x374   :  { %v2450_v20 = vld [vmem:[#allocation2 + $0x110] sm:$0xff]  ;;  %2434 = vst.msk [vmem:[#allocation2 + $0x121] sm:$0xff] %vm117_vm2, %v2418_v41  ;;  %v9813_v54 = vpack.c.bf16 %v9806_v40, %v9802_v58 }
 0x375   :  { %v9808_v0 = vld [vmem:[#allocation2 + $0x112] sm:$0xff]  ;;  %v9815_v62 = vpack.c.bf16 %v2450_v20, %v2806_v45 }
 0x376   :  { %v9819_v49 = vpack.c.bf16 %v9808_v0, %v9804_v35  ;;  %7564 = vmatmul.msk.bf16.gmra.mxu2 %vm117_vm2, %v9813_v54 }
 0x377   :  { %7580 = vmatmul.msk.bf16.gmra.mxu3 %vm117_vm2, %v9815_v62 }
 0x378   :  { %7596 = vmatmul.msk.bf16.gmra.mxu0 %vm117_vm2, %v9819_v49 }
 0x37b   :  { %v9827_v60 = vld [vmem:[#allocation2 + $0x120] sm:$0xff] }
 0x37c   :  { %v2816_v46 = vpack.c.bf16 %v9827_v60, %v2450_v20 }
 0x37e   :  { %7612 = vmatmul.msk.bf16.gmra.mxu1 %vm117_vm2, %v2816_v46 }
 0x385   :  { %v2737_v59 = vpop.f32.mrf.mxu0 }
 0x386   :  { %7621 = vmatmul.msk.bf16.vlgmr.msra.gmra.mxu2 %vm117_vm2, %v2939_v48 }
 0x387   :  { %7637 = vmatmul.msk.bf16.vlgmr.msra.gmra.mxu3 %vm117_vm2, %v3069_v6 }
 0x388   :  { %7653 = vmatmul.msk.bf16.vlgmr.msra.gmra.mxu0 %vm117_vm2, %v9627_v34  ;;  %v2940_v34 = vpack.c.bf16 %v9644_v29, %v9617_v47 }
 0x389   :  { %v2538_v37 = vpop.f32.mrf.mxu2 }
 0x38a   :  { %v2623_v8 = vpop.f32.mrf.mxu3 }
 0x38b   :  { %v2624_v23 = vadd.f32 %v2623_v8, %v2538_v37  ;;  %v2867_v52 = vpop.f32.mrf.mxu1 }
 0x38d   :  { %v2739_v45 = vpop.f32.mrf.mxu0  ;;  %v2777_v24 = vadd.f32 %v2737_v59, %v2624_v23 }
 0x38e   :  { %7669 = vmatmul.msk.bf16.vlgmr.msra.gmra.mxu1 %vm117_vm2, %v9625_v7 }
 0x38f   :  { %v9839_v38 = vadd.f32 %v2867_v52, %v2777_v24  ;;  %v3071_v52 = vpack.c.bf16 %v9682_v53, %v9650_v36 }
 0x391   :  { %v2540_v55 = vpop.f32.mrf.mxu2 }
 0x392   :  { %v2625_v33 = vpop.f32.mrf.mxu3 }
 0x393   :  { %v2626_v30 = vadd.f32 %v2625_v33, %v2540_v55  ;;  %v2869_v11 = vpop.f32.mrf.mxu1 }
 0x395   :  { %v2742_v50 = vpop.f32.mrf.mxu0  ;;  %v2778_v51 = vadd.f32 %v2739_v45, %v2626_v30 }
 0x396   :  { %7622 = vmatmul.msk.bf16.gmra.mxu2 %vm117_vm2, %v2940_v34 }
 0x397   :  { %v9847_v41 = vadd.f32 %v2869_v11, %v2778_v51  ;;  %7638 = vmatmul.msk.bf16.gmra.mxu3 %vm117_vm2, %v3070_v56  ;;  %v9871_v51 = vld [vmem:[#allocation2 + $0x82] sm:$0xff] }
 0x398   :  { %7654 = vmatmul.msk.bf16.gmra.mxu0 %vm117_vm2, %v9658_v32  ;;  %v2941_v32 = vpack.c.bf16 %v9680_v5, %v9648_v31 }
 0x399   :  { %v2543_v7 = vpop.f32.mrf.mxu2 }
 0x39a   :  { %v2628_v20 = vpop.f32.mrf.mxu3 }
 0x39b   :  { %v2629_v46 = vadd.f32 %v2628_v20, %v2543_v7  ;;  %v2872_v59 = vpop.f32.mrf.mxu1 }
 0x39d   :  { %v2744_v48 = vpop.f32.mrf.mxu0  ;;  %v2779_v6 = vadd.f32 %v2742_v50, %v2629_v46  ;;  %v2930_v50 = vld [vmem:[#allocation2 + $0x81] sm:$0xff] }
 0x39e   :  { %7670 = vmatmul.msk.bf16.gmra.mxu1 %vm117_vm2, %v9656_v61  ;;  %v8159_v61 = vld [vmem:[#allocation7 + $0x110] sm:$0xff]  ;;  %v2942_v46 = vpack.c.bf16 %v2930_v50, %v9684_v26 }
 0x39f   :  { %v9853_v37 = vadd.f32 %v2872_v59, %v2779_v6  ;;  %3515 = vmatpush.bf16.msrb.mxu2 %v8159_v61  ;;  %v3072_v59 = vpack.c.bf16 %v9871_v51, %v9686_v1 }
 0x3a1   :  { %v2545_v47 = vpop.f32.mrf.mxu2 }
 0x3a2   :  { %v2630_v12 = vpop.f32.mrf.mxu3 }
 0x3a3   :  { %v2631_v29 = vadd.f32 %v2630_v12, %v2545_v47  ;;  %v2874_v27 = vpop.f32.mrf.mxu1  ;;  %v3320_v12 = vld [vmem:[#allocation2 + $0x91] sm:$0xff] }
 0x3a5   :  { %v2747_v8 = vpop.f32.mrf.mxu0  ;;  %v2780_v23 = vadd.f32 %v2744_v48, %v2631_v29 }
 0x3a6   :  { %7623 = vmatmul.msk.bf16.gmra.mxu2 %vm117_vm2, %v2941_v32 }
 0x3a7   :  { %v9861_v45 = vadd.f32 %v2874_v27, %v2780_v23  ;;  %7639 = vmatmul.msk.bf16.gmra.mxu3 %vm117_vm2, %v3071_v52  ;;  %v3332_v23 = vpack.c.bf16 %v3320_v12, %v2930_v50 }
 0x3a8   :  { %7655 = vmatmul.msk.bf16.gmra.mxu0 %vm117_vm2, %v9693_v42  ;;  %v3190_v42 = vld [vmem:[#allocation2 + $0x90] sm:$0xff] }
 0x3a9   :  { %v2548_v24 = vpop.f32.mrf.mxu2  ;;  %v3202_v48 = vpack.c.bf16 %v3190_v42, %v9709_v3 }
 0x3aa   :  { %v2633_v55 = vpop.f32.mrf.mxu3 }
 0x3ab   :  { %v2634_v33 = vadd.f32 %v2633_v55, %v2548_v24  ;;  %v2877_v30 = vpop.f32.mrf.mxu1 }
 0x3ad   :  { %v2749_v11 = vpop.f32.mrf.mxu0  ;;  %v2781_v31 = vadd.f32 %v2747_v8, %v2634_v33  ;;  %v2943_v33 = vpack.c.bf16 %v9738_v25, %v9718_v22 }
 0x3ae   :  { %7671 = vmatmul.msk.bf16.gmra.mxu1 %vm117_vm2, %v9691_v44 }
 0x3af   :  { %v9867_v5 = vadd.f32 %v2877_v30, %v2781_v31  ;;  %v3073_v30 = vpack.c.bf16 %v9740_v43, %v9720_v10 }
 0x3b1   :  { %v2550_v36 = vpop.f32.mrf.mxu2 }
 0x3b2   :  { %v2635_v53 = vpop.f32.mrf.mxu3 }
 0x3b3   :  { %v2636_v34 = vadd.f32 %v2635_v53, %v2550_v36  ;;  %v2879_v56 = vpop.f32.mrf.mxu1 }
 0x3b5   :  { %v2752_v7 = vpop.f32.mrf.mxu0  ;;  %v2782_v20 = vadd.f32 %v2749_v11, %v2636_v34 }
 0x3b6   :  { %7624 = vmatmul.msk.bf16.gmra.mxu2 %vm117_vm2, %v2942_v46 }
 0x3b7   :  { %v9877_v6 = vadd.f32 %v2879_v56, %v2782_v20  ;;  %7640 = vmatmul.msk.bf16.gmra.mxu3 %vm117_vm2, %v3072_v59 }
 0x3b8   :  { %7656 = vmatmul.msk.bf16.gmra.mxu0 %vm117_vm2, %v3202_v48 }
 0x3b9   :  { %v2553_v44 = vpop.f32.mrf.mxu2 }
 0x3ba   :  { %v2638_v47 = vpop.f32.mrf.mxu3 }
 0x3bb   :  { %v2639_v29 = vadd.f32 %v2638_v47, %v2553_v44  ;;  %v2882_v27 = vpop.f32.mrf.mxu1 }
 0x3bd   :  { %v2754_v8 = vpop.f32.mrf.mxu0  ;;  %v2783_v26 = vadd.f32 %v2752_v7, %v2639_v29  ;;  %v3074_v7 = vpack.c.bf16 %v9775_v9, %v9744_v16  ;;  %v2945_v9 = vpack.c.bf16 %v9802_v58, %v9777_v57 }
 0x3be   :  { %7672 = vmatmul.msk.bf16.gmra.mxu1 %vm117_vm2, %v3332_v23 }
 0x3bf   :  { %v9882_v32 = vadd.f32 %v2882_v27, %v2783_v26 }
 0x3c1   :  { %v2555_v1 = vpop.f32.mrf.mxu2 }
 0x3c2   :  { %v2640_v3 = vpop.f32.mrf.mxu3 }
 0x3c3   :  { %v2641_v52 = vadd.f32 %v2640_v3, %v2555_v1  ;;  %v2884_v61 = vpop.f32.mrf.mxu1  ;;  %v9945_v1 = vld [vmem:[#allocation2 + $0x122] sm:$0xff] }
 0x3c5   :  { %v2757_v24 = vpop.f32.mrf.mxu0  ;;  %v2784_v55 = vadd.f32 %v2754_v8, %v2641_v52 }
 0x3c6   :  { %7625 = vmatmul.msk.bf16.gmra.mxu2 %vm117_vm2, %v2943_v33  ;;  %v3328_v33 = vld [vmem:[#allocation2 + $0x131] sm:$0xff] }
 0x3c7   :  { %v9889_v11 = vadd.f32 %v2884_v61, %v2784_v55  ;;  %7641 = vmatmul.msk.bf16.gmra.mxu3 %vm117_vm2, %v3073_v30  ;;  %v3076_v61 = vpack.c.bf16 %v9945_v1, %v9808_v0  ;;  %v8164_v0 = vld [vmem:[#allocation7 + $0x138] sm:$0xff] }
 0x3c8   :  { %7657 = vmatmul.msk.bf16.gmra.mxu0 %vm117_vm2, %v9751_v21  ;;  %v2944_v21 = vpack.c.bf16 %v9773_v14, %v9742_v2  ;;  %3742 = vmatpush.bf16.msrb.mxu3 %v8164_v0 }
 0x3c9   :  { %v2558_v31 = vpop.f32.mrf.mxu2 }
 0x3ca   :  { %v2643_v36 = vpop.f32.mrf.mxu3 }
 0x3cb   :  { %v2644_v53 = vadd.f32 %v2643_v36, %v2558_v31  ;;  %v2887_v50 = vpop.f32.mrf.mxu1 }
 0x3cd   :  { %v9895_v34 = vpop.f32.mrf.mxu0  ;;  %v2785_v42 = vadd.f32 %v2757_v24, %v2644_v53 }
 0x3ce   :  { %7673 = vmatmul.msk.bf16.gmra.mxu1 %vm117_vm2, %v9749_v28 }
 0x3cf   :  { %v9897_v22 = vadd.f32 %v2887_v50, %v2785_v42 }
 0x3d1   :  { %v9901_v10 = vpop.f32.mrf.mxu2 }
 0x3d2   :  { %v9903_v25 = vpop.f32.mrf.mxu3 }
 0x3d3   :  { %v9905_v43 = vpop.f32.mrf.mxu1 }
 0x3d5   :  { %v2762_v56 = vpop.f32.mrf.mxu0 }
 0x3d6   :  { %7626 = vmatmul.msk.bf16.gmra.mxu2 %vm117_vm2, %v2944_v21 }
 0x3d7   :  { %7642 = vmatmul.msk.bf16.gmra.mxu3 %vm117_vm2, %v3074_v7 }
 0x3d8   :  { %7658 = vmatmul.msk.bf16.gmra.mxu0 %vm117_vm2, %v9786_v39  ;;  %v3075_v39 = vpack.c.bf16 %v9804_v35, %v9779_v4  ;;  %v2938_v35 = vld [vmem:[#allocation2 + $0x121] sm:$0xff] }
 0x3d9   :  { %v2563_v28 = vpop.f32.mrf.mxu2  ;;  %v2946_v52 = vpack.c.bf16 %v2938_v35, %v9806_v40  ;;  %v3336_v53 = vpack.c.bf16 %v3328_v33, %v2938_v35  ;;  %v8166_v33 = vld [vmem:[#allocation7 + $0x148] sm:$0xff] }
 0x3da   :  { %v2648_v20 = vpop.f32.mrf.mxu3  ;;  %3941 = vmatpush.bf16.msrb.mxu1 %v8166_v33 }
 0x3db   :  { %v2649_v46 = vadd.f32 %v2648_v20, %v2563_v28  ;;  %v2892_v59 = vpop.f32.mrf.mxu1 }
 0x3dd   :  { %v9915_v48 = vpop.f32.mrf.mxu0  ;;  %v2787_v44 = vadd.f32 %v2762_v56, %v2649_v46 }
 0x3de   :  { %7674 = vmatmul.msk.bf16.gmra.mxu1 %vm117_vm2, %v9784_v18 }
 0x3df   :  { %v9917_v47 = vadd.f32 %v2892_v59, %v2787_v44  ;;  %v3450_v44 = vld [vmem:[#allocation2 + $0x92] sm:$0xff] }
 0x3e1   :  { %v9921_v2 = vpop.f32.mrf.mxu2 }
 0x3e2   :  { %v9923_v16 = vpop.f32.mrf.mxu3 }
 0x3e3   :  { %v9925_v14 = vpop.f32.mrf.mxu1 }
 0x3e5   :  { %v2767_v12 = vpop.f32.mrf.mxu0 }
 0x3e6   :  { %7627 = vmatmul.msk.bf16.gmra.mxu2 %vm117_vm2, %v2945_v9 }
 0x3e7   :  { %7643 = vmatmul.msk.bf16.gmra.mxu3 %vm117_vm2, %v3075_v39  ;;  %v8163_v39 = vld [vmem:[#allocation7 + $0x130] sm:$0xff] }
 0x3e8   :  { %7659 = vmatmul.msk.bf16.gmra.mxu0 %vm117_vm2, %v9815_v62  ;;  %v3198_v62 = vld [vmem:[#allocation2 + $0x130] sm:$0xff]  ;;  %3743 = vmatpush.bf16.msrb.mxu3 %v8163_v39 }
 0x3e9   :  { %v2568_v18 = vpop.f32.mrf.mxu2  ;;  %v3206_v24 = vpack.c.bf16 %v3198_v62, %v9827_v60 }
 0x3ea   :  { %v2653_v29 = vpop.f32.mrf.mxu3 }
 0x3eb   :  { %v2654_v27 = vadd.f32 %v2653_v29, %v2568_v18  ;;  %v2897_v8 = vpop.f32.mrf.mxu1 }
 0x3ed   :  { %v2789_v26 = vadd.f32 %v2767_v12, %v2654_v27  ;;  %v9939_v57 = vpop.f32.mrf.mxu0 }
 0x3ee   :  { %7675 = vmatmul.msk.bf16.gmra.mxu1 %vm117_vm2, %v9813_v54 }
 0x3ef   :  { %v9935_v23 = vadd.f32 %v2897_v8, %v2789_v26 }
 0x3f1   :  { %v9941_v4 = vpop.f32.mrf.mxu2 }
 0x3f2   :  { %v9943_v58 = vpop.f32.mrf.mxu3 }
 0x3f3   :  { %v9947_v3 = vpop.f32.mrf.mxu1 }
 0x3f5   :  { %v2772_v31 = vpop.f32.mrf.mxu0 }
 0x3f6   :  { %7628 = vmatmul.msk.bf16.gmra.mxu2 %vm117_vm2, %v2946_v52 }
 0x3f7   :  { %7644 = vmatmul.msk.bf16.gmra.mxu3 %vm117_vm2, %v3076_v61  ;;  %v3458_v61 = vld [vmem:[#allocation2 + $0x132] sm:$0xff] }
 0x3f8   :  { %7660 = vmatmul.msk.bf16.gmra.mxu0 %vm117_vm2, %v3206_v24 }
 0x3f9   :  { %v2573_v54 = vpop.f32.mrf.mxu2 }
 0x3fa   :  { %v2658_v55 = vpop.f32.mrf.mxu3 }
 0x3fb   :  { %v2659_v30 = vadd.f32 %v2658_v55, %v2573_v54  ;;  %v2902_v50 = vpop.f32.mrf.mxu1  ;;  %v3466_v54 = vpack.c.bf16 %v3458_v61, %v9945_v1  ;;  %v8162_v55 = vld [vmem:[#allocation7 + $0x128] sm:$0xff] }
 0x3fc   :  { %3827 = vmatpush.bf16.msrb.mxu0 %v8162_v55 }
 0x3fd   :  { %v2791_v36 = vadd.f32 %v2772_v31, %v2659_v30  ;;  %v8165_v31 = vld [vmem:[#allocation7 + $0x140] sm:$0xff] }
 0x3fe   :  { %7676 = vmatmul.msk.bf16.gmra.mxu1 %vm117_vm2, %v3336_v53 }
 0x3ff   :  { %v2921_v40 = vadd.f32 %v2902_v50, %v2791_v36  ;;  %3942 = vmatpush.bf16.msrb.mxu1 %v8165_v31  ;;  %v8168_v50 = vld [vmem:[#allocation7 + $0x158] sm:$0xff] }
 0x400   :  { %4071 = vmatpush.bf16.msra.mxu2 %v8168_v50 }
 0x401   :  { %v9957_v42 = vpop.f32.mrf.mxu2 }
 0x403   :  { %v10005_v27 = vpop.f32.mrf.mxu1 }
 0x406   :  { %7685 = vmatmul.msk.bf16.vlgmr.msrb.gmra.mxu2 %vm117_vm2, %v9631_v13 }
 0x409   :  { %v2997_v60 = vpop.f32.mrf.mxu2 }
 0x40a   :  { %v3037_v56 = vadd.f32 %v2997_v60, %v9839_v38 }
 0x40b   :  { %v3387_v26 = vpop.f32.mrf.mxu1 }
 0x411   :  { %v2999_v21 = vpop.f32.mrf.mxu2 }
 0x412   :  { %v9963_v7 = vadd.f32 %v2999_v21, %v9847_v41  ;;  %v8167_v21 = vld [vmem:[#allocation7 + $0x150] sm:$0xff] }
 0x413   :  { %v3389_v24 = vpop.f32.mrf.mxu1  ;;  %4072 = vmatpush.bf16.msra.mxu2 %v8167_v21  ;;  %v3671_v21 = vld [vmem:[#allocation2 + $0x1] sm:$0xff] }
 0x416   :  { %7686 = vmatmul.msk.bf16.gmra.mxu2 %vm117_vm2, %v9662_v63  ;;  %v3462_v63 = vpack.c.bf16 %v3450_v44, %v9871_v51 }
 0x419   :  { %v3002_v28 = vpop.f32.mrf.mxu2 }
 0x41a   :  { %v9968_v20 = vadd.f32 %v3002_v28, %v9853_v37 }
 0x41b   :  { %v3392_v0 = vpop.f32.mrf.mxu1 }
 0x421   :  { %v3004_v46 = vpop.f32.mrf.mxu2 }
 0x422   :  { %v9971_v59 = vadd.f32 %v3004_v46, %v9861_v45  ;;  %v8170_v46 = vld [vmem:[#allocation7 + $0x168] sm:$0xff] }
 0x423   :  { %4201 = vmatpush.bf16.msra.mxu3 %v8170_v46  ;;  %v3394_v44 = vpop.f32.mrf.mxu1 }
 0x426   :  { %7687 = vmatmul.msk.bf16.gmra.mxu2 %vm117_vm2, %v9697_v17 }
 0x429   :  { %v3007_v13 = vpop.f32.mrf.mxu2 }
 0x42a   :  { %v9976_v38 = vadd.f32 %v3007_v13, %v9867_v5 }
 0x42b   :  { %v3397_v33 = vpop.f32.mrf.mxu1 }
 0x431   :  { %v3009_v41 = vpop.f32.mrf.mxu2 }
 0x432   :  { %v9979_v9 = vadd.f32 %v3009_v41, %v9877_v6 }
 0x436   :  { %7688 = vmatmul.msk.bf16.gmra.mxu2 %vm117_vm2, %v3462_v63 }
 0x439   :  { %v3012_v37 = vpop.f32.mrf.mxu2 }
 0x43a   :  { %v9984_v45 = vadd.f32 %v3012_v37, %v9882_v32  ;;  %v9998_v32 = vpop.f32.mrf.mxu3  ;;  %v10023_v37 = vld [vmem:[#allocation8 + $0x1] ss:$0 sm:$0xff] }
 0x441   :  { %v3014_v12 = vpop.f32.mrf.mxu2 }
 0x442   :  { %v9987_v17 = vadd.f32 %v3014_v12, %v9889_v11  ;;  %v10003_v11 = vpop.f32.mrf.mxu0 }
 0x446   :  { %7689 = vmatmul.msk.bf16.gmra.mxu2 %vm117_vm2, %v9755_v15  ;;  %v3127_v15 = vpop.f32.mrf.mxu3 }
 0x447   :  { %v3167_v1 = vadd.f32 %v3127_v15, %v3037_v56 }
 0x449   :  { %v3017_v5 = vpop.f32.mrf.mxu2 }
 0x44a   :  { %v9992_v6 = vadd.f32 %v3017_v5, %v9897_v22  ;;  %v3257_v22 = vpop.f32.mrf.mxu0 }
 0x44b   :  { %v3297_v41 = vadd.f32 %v3257_v22, %v3167_v1 }
 0x44d   :  { %v3427_v63 = vadd.f32 %v3387_v26, %v3297_v41 }
 0x44e   :  { %v3129_v62 = vpop.f32.mrf.mxu3 }
 0x451   :  { %v9994_v51 = vpop.f32.mrf.mxu2 }
 0x452   :  { %v3259_v52 = vpop.f32.mrf.mxu0 }
 0x456   :  { %7690 = vmatmul.msk.bf16.gmra.mxu2 %vm117_vm2, %v9790_v19  ;;  %v3132_v30 = vpop.f32.mrf.mxu3 }
 0x457   :  { %v3169_v22 = vadd.f32 %v3132_v30, %v9968_v20  ;;  %v3642_v20 = vld [vmem:[#allocation2] sm:$0xff] }
 0x458   :  { %v3870_v30 = vld [vmem:[#allocation2 + $0x2] sm:$0xff] }
 0x459   :  { %v3022_v18 = vpop.f32.mrf.mxu2 }
 0x45a   :  { %v10001_v29 = vadd.f32 %v3022_v18, %v9917_v47  ;;  %v3262_v36 = vpop.f32.mrf.mxu0 }
 0x45e   :  { %v3134_v60 = vpop.f32.mrf.mxu3 }
 0x45f   :  { %v3170_v41 = vadd.f32 %v3134_v60, %v9971_v59 }
 0x461   :  { %v10007_v8 = vpop.f32.mrf.mxu2 }
 0x462   :  { %v3264_v13 = vpop.f32.mrf.mxu0 }
 0x463   :  { %v3300_v59 = vadd.f32 %v3264_v13, %v3170_v41 }
 0x466   :  { %7691 = vmatmul.msk.bf16.gmra.mxu2 %vm117_vm2, %v9819_v49  ;;  %v8161_v49 = vld [vmem:[#allocation7 + $0x120] sm:$0xff]  ;;  %v3137_v39 = vpop.f32.mrf.mxu3 }
 0x467   :  { %3828 = vmatpush.bf16.msrb.mxu0 %v8161_v49  ;;  %v3299_v49 = vadd.f32 %v3262_v36, %v3169_v22  ;;  %v11643_v22 = vld [vmem:[#allocation19_spill] sm:$0xff] }
 0x469   :  { %v3027_v35 = vpop.f32.mrf.mxu2  ;;  %v3429_v46 = vadd.f32 %v3392_v0, %v3299_v49  ;;  %v3430_v49 = vadd.f32 %v3394_v44, %v3300_v59  ;;  %v11646_v44 = vld [vmem:[#allocation20_spill] sm:$0xff] }
 0x46a   :  { %v10012_v19 = vadd.f32 %v3027_v35, %v9935_v23  ;;  %v3267_v15 = vpop.f32.mrf.mxu0  ;;  %v11638_v35 = vld [vmem:[#allocation17_spill] sm:$0xff] }
 0x46b   :  { %v11639_v61 = vmax.f32 %v11638_v35, 0.0 }
 0x471   :  { %v10014_v47 = vpop.f32.mrf.mxu2 }
 0x476   :  { %7692 = vmatmul.msk.bf16.gmra.mxu2 %vm117_vm2, %v3466_v54 }
 0x479   :  { %v3032_v23 = vpop.f32.mrf.mxu2 }
 0x47a   :  { %v10018_v53 = vadd.f32 %v3032_v23, %v2921_v40  ;;  %v3168_v40 = vadd.f32 %v3129_v62, %v9963_v7  ;;  %v11640_v23 = vld [vmem:[#allocation18_spill] sm:$0xff] }
 0x47b   :  { %v11641_v50 = vmax.f32 %v11640_v23, 0.0 }
 0x47c   :  { %v3298_v18 = vadd.f32 %v3259_v52, %v3168_v40  ;;  %v3139_v52 = vpop.f32.mrf.mxu3 }
 0x47e   :  { %v3428_v55 = vadd.f32 %v3389_v24, %v3298_v18  ;;  %v3269_v24 = vpop.f32.mrf.mxu0 }
 0x481   :  { %v10020_v28 = vpop.f32.mrf.mxu2 }
 0x489   :  { %v3517_v12 = vpop.f32.mrf.mxu2 }
 0x48a   :  { %v3557_v5 = vadd.f32 %v3517_v12, %v3427_v63 }
 0x48c   :  { %v3578_v56 = vadd.f32 %v10023_v37, %v3557_v5 }
 0x48e   :  { %v10028_v54 = vadd.f32 %v3578_v56, %v11639_v61  ;;  %v3399_v61 = vpop.f32.mrf.mxu1 }
 0x490   :  { %v11593_v26 = vmax.f32 %v10028_v54, 0.0 }
 0x491   :  { %v3519_v7 = vpop.f32.mrf.mxu2 }
 0x492   :  { %3626 = vst.msk [vmem:[#allocation2 + $0x11] sm:$0xff] %vm117_vm2, %v11593_v26  ;;  %v3558_v62 = vadd.f32 %v3519_v7, %v3428_v55  ;;  %v3142_v55 = vpop.f32.mrf.mxu3  ;;  %v11644_v7 = vmax.f32 %v11643_v22, 0.0 }
 0x494   :  { %v3579_v31 = vadd.f32 %v10023_v37, %v3558_v62 }
 0x496   :  { %v10038_v1 = vadd.f32 %v3579_v31, %v11641_v50  ;;  %v3171_v31 = vadd.f32 %v3137_v39, %v9976_v38  ;;  %v3272_v50 = vpop.f32.mrf.mxu0 }
 0x498   :  { %11642 = vst [vmem:[#allocation17_spill] sm:$0xff] %v10038_v1  ;;  %v11592_v63 = vmax.f32 %v10038_v1, 0.0 }
 0x499   :  { %v3522_v40 = vpop.f32.mrf.mxu2  ;;  %v10042_v12 = vld [vmem:[#allocation2 + $0x11] sm:$0xff] }
 0x49a   :  { %v3643_v5 = vld [vmem:[#allocation2 + $0x10] sm:$0xff]  ;;  %3627 = vst.msk [vmem:[#allocation2 + $0x21] sm:$0xff] %vm117_vm2, %v11592_v63  ;;  %v3559_v18 = vadd.f32 %v3522_v40, %v3429_v46  ;;  %v3687_v56 = vpack.c.bf16 %v10042_v12, %v3671_v21  ;;  %v3301_v46 = vadd.f32 %v3267_v15, %v3171_v31  ;;  %v3402_v40 = vpop.f32.mrf.mxu1  ;;  %v3144_v39 = vpop.f32.mrf.mxu3 }
 0x49b   :  { %v10044_v36 = vld [vmem:[#allocation2 + $0x12] sm:$0xff]  ;;  %v3658_v35 = vpack.c.bf16 %v3643_v5, %v3642_v20 }
 0x49c   :  { %v3886_v0 = vpack.c.bf16 %v10044_v36, %v3870_v30  ;;  %v3580_v60 = vadd.f32 %v10023_v37, %v3559_v18  ;;  %7701 = vmatmul.msk.bf16.vlgmr.msrb.gmra.mxu3 %vm117_vm2, %v3687_v56  ;;  %v11647_v18 = vmax.f32 %v11646_v44, 0.0  ;;  %v3431_v56 = vadd.f32 %v3397_v33, %v3301_v46 }
 0x49d   :  { %7717 = vmatmul.msk.bf16.vlgmr.msrb.gmra.mxu0 %vm117_vm2, %v3658_v35  ;;  %v3172_v35 = vadd.f32 %v3139_v52, %v9979_v9 }
 0x49e   :  { %7733 = vmatmul.msk.bf16.vlgmr.msrb.gmra.mxu1 %vm117_vm2, %v3886_v0  ;;  %v10057_v62 = vadd.f32 %v3580_v60, %v11644_v7  ;;  %v3274_v31 = vpop.f32.mrf.mxu0 }
 0x4a0   :  { %11645 = vst [vmem:[#allocation18_spill] sm:$0xff] %v10057_v62  ;;  %v11591_v23 = vmax.f32 %v10057_v62, 0.0 }
 0x4a1   :  { %v3524_v13 = vpop.f32.mrf.mxu2  ;;  %v4001_v21 = vld [vmem:[#allocation2 + $0x20] sm:$0xff] }
 0x4a2   :  { %3628 = vst.msk [vmem:[#allocation2 + $0x31] sm:$0xff] %vm117_vm2, %v11591_v23  ;;  %v3560_v20 = vadd.f32 %v3524_v13, %v3430_v49  ;;  %v4016_v30 = vpack.c.bf16 %v4001_v21, %v3643_v5  ;;  %v10072_v59 = vld [vmem:[#allocation2 + $0x21] sm:$0xff]  ;;  %v3302_v13 = vadd.f32 %v3269_v24, %v3172_v35 }
 0x4a3   :  { %v10074_v60 = vld [vmem:[#allocation2 + $0x22] sm:$0xff] }
 0x4a4   :  { %v3581_v41 = vadd.f32 %v10023_v37, %v3560_v20  ;;  %7749 = vmatmul.msk.bf16.vlgmr.msra.gmra.mxu2 %vm117_vm2, %v4016_v30  ;;  %v11649_v30 = vld [vmem:[#allocation21_spill] sm:$0xff]  ;;  %v3432_v44 = vadd.f32 %v3399_v61, %v3302_v13  ;;  %v11652_v61 = vld [vmem:[#allocation22_spill] sm:$0xff] }
 0x4a5   :  { %v11653_v13 = vmax.f32 %v11652_v61, 0.0 }
 0x4a6   :  { %v10068_v38 = vadd.f32 %v3581_v41, %v11647_v18  ;;  %v3404_v41 = vpop.f32.mrf.mxu1  ;;  %v3173_v18 = vadd.f32 %v3142_v55, %v9984_v45 }
 0x4a8   :  { %11648 = vst [vmem:[#allocation19_spill] sm:$0xff] %v10068_v38  ;;  %v11590_v0 = vmax.f32 %v10068_v38, 0.0  ;;  %v3303_v23 = vadd.f32 %v3272_v50, %v3173_v18  ;;  %v2646_v50 = vadd.f32 %v9903_v25, %v9901_v10 }
 0x4a9   :  { %v3527_v15 = vpop.f32.mrf.mxu2  ;;  %v10076_v5 = vld [vmem:[#allocation2 + $0x31] sm:$0xff] }
 0x4aa   :  { %v3645_v22 = vld [vmem:[#allocation2 + $0x30] sm:$0xff]  ;;  %3629 = vst.msk [vmem:[#allocation2 + $0x41] sm:$0xff] %vm117_vm2, %v11590_v0  ;;  %v3561_v49 = vadd.f32 %v3527_v15, %v3431_v56  ;;  %v10085_v9 = vpack.c.bf16 %v10076_v5, %v10072_v59  ;;  %v3147_v56 = vpop.f32.mrf.mxu3  ;;  %v3433_v55 = vadd.f32 %v3402_v40, %v3303_v23 }
 0x4ab   :  { %v10078_v7 = vld [vmem:[#allocation2 + $0x32] sm:$0xff]  ;;  %v10087_v33 = vpack.c.bf16 %v3645_v22, %v4001_v21  ;;  %v11650_v21 = vmax.f32 %v11649_v30, 0.0 }
 0x4ac   :  { %v10091_v52 = vpack.c.bf16 %v10078_v7, %v10074_v60  ;;  %v3582_v20 = vadd.f32 %v10023_v37, %v3561_v49  ;;  %7702 = vmatmul.msk.bf16.gmra.mxu3 %vm117_vm2, %v10085_v9 }
 0x4ad   :  { %7718 = vmatmul.msk.bf16.gmra.mxu0 %vm117_vm2, %v10087_v33 }
 0x4ae   :  { %7734 = vmatmul.msk.bf16.gmra.mxu1 %vm117_vm2, %v10091_v52  ;;  %v10102_v46 = vadd.f32 %v3582_v20, %v11650_v21  ;;  %v3277_v20 = vpop.f32.mrf.mxu0  ;;  %v3174_v21 = vadd.f32 %v3144_v39, %v9987_v17 }
 0x4b0   :  { %11651 = vst [vmem:[#allocation20_spill] sm:$0xff] %v10102_v46  ;;  %v11594_v24 = vmax.f32 %v10102_v46, 0.0  ;;  %v3304_v39 = vadd.f32 %v3274_v31, %v3174_v21  ;;  %v3175_v31 = vadd.f32 %v3147_v56, %v9992_v6  ;;  %v11658_v56 = vld [vmem:[#allocation24_spill] sm:$0xff] }
 0x4b1   :  { %v3529_v35 = vpop.f32.mrf.mxu2  ;;  %v4003_v15 = vld [vmem:[#allocation2 + $0x40] sm:$0xff] }
 0x4b2   :  { %3630 = vst.msk [vmem:[#allocation2 + $0x51] sm:$0xff] %vm117_vm2, %v11594_v24  ;;  %v3562_v49 = vadd.f32 %v3529_v35, %v3432_v44  ;;  %v4017_v0 = vpack.c.bf16 %v4003_v15, %v3645_v22  ;;  %v10117_v26 = vld [vmem:[#allocation2 + $0x41] sm:$0xff]  ;;  %v3407_v22 = vpop.f32.mrf.mxu1  ;;  %v3149_v25 = vpop.f32.mrf.mxu3 }
 0x4b3   :  { %v10119_v24 = vld [vmem:[#allocation2 + $0x42] sm:$0xff] }
 0x4b4   :  { %v3583_v30 = vadd.f32 %v10023_v37, %v3562_v49  ;;  %7750 = vmatmul.msk.bf16.gmra.mxu2 %vm117_vm2, %v4017_v0 }
 0x4b6   :  { %v10113_v45 = vadd.f32 %v3583_v30, %v11653_v13  ;;  %v11655_v30 = vld [vmem:[#allocation23_spill] sm:$0xff] }
 0x4b7   :  { %v11656_v61 = vmax.f32 %v11655_v30, 0.0 }
 0x4b8   :  { %11654 = vst [vmem:[#allocation21_spill] sm:$0xff] %v10113_v45  ;;  %v11595_v63 = vmax.f32 %v10113_v45, 0.0 }
 0x4b9   :  { %v3532_v44 = vpop.f32.mrf.mxu2  ;;  %v10123_v0 = vld [vmem:[#allocation2 + $0x51] sm:$0xff] }
 0x4ba   :  { %v3647_v18 = vld [vmem:[#allocation2 + $0x50] sm:$0xff]  ;;  %3631 = vst.msk [vmem:[#allocation2 + $0x61] sm:$0xff] %vm117_vm2, %v11595_v63  ;;  %v3563_v17 = vadd.f32 %v3532_v44, %v3433_v55  ;;  %v10132_v23 = vpack.c.bf16 %v10123_v0, %v10117_v26  ;;  %v3279_v55 = vpop.f32.mrf.mxu0  ;;  %v3434_v44 = vadd.f32 %v3404_v41, %v3304_v39  ;;  %v3409_v30 = vpop.f32.mrf.mxu1  ;;  %v11659_v39 = vmax.f32 %v11658_v56, 0.0 }
 0x4bb   :  { %v10125_v35 = vld [vmem:[#allocation2 + $0x52] sm:$0xff]  ;;  %v10134_v40 = vpack.c.bf16 %v3647_v18, %v4003_v15  ;;  %v2786_v15 = vadd.f32 %v9895_v34, %v2646_v50  ;;  %v8169_v50 = vld [vmem:[#allocation7 + $0x160] sm:$0xff]  ;;  %v3152_v6 = vpop.f32.mrf.mxu3 }
 0x4bc   :  { %v10138_v10 = vpack.c.bf16 %v10125_v35, %v10119_v24  ;;  %v3584_v49 = vadd.f32 %v10023_v37, %v3563_v17  ;;  %7703 = vmatmul.msk.bf16.gmra.mxu3 %vm117_vm2, %v10132_v23 }
 0x4bd   :  { %7719 = vmatmul.msk.bf16.gmra.mxu0 %vm117_vm2, %v10134_v40  ;;  %v2916_v45 = vadd.f32 %v9905_v43, %v2786_v15  ;;  %4202 = vmatpush.bf16.msra.mxu3 %v8169_v50 }
 0x4be   :  { %7735 = vmatmul.msk.bf16.gmra.mxu1 %vm117_vm2, %v10138_v10  ;;  %v10150_v13 = vadd.f32 %v3584_v49, %v11656_v61  ;;  %v3305_v49 = vadd.f32 %v3277_v20, %v3175_v31 }
 0x4bf   :  { %v3046_v61 = vadd.f32 %v9994_v51, %v2916_v45  ;;  %v2651_v51 = vadd.f32 %v9923_v16, %v9921_v2 }
 0x4c0   :  { %11657 = vst [vmem:[#allocation22_spill] sm:$0xff] %v10150_v13  ;;  %v11600_v21 = vmax.f32 %v10150_v13, 0.0  ;;  %v3435_v15 = vadd.f32 %v3407_v22, %v3305_v49 }
 0x4c1   :  { %v3534_v17 = vpop.f32.mrf.mxu2  ;;  %v4005_v63 = vld [vmem:[#allocation2 + $0x60] sm:$0xff]  ;;  %v3176_v13 = vadd.f32 %v3149_v25, %v3046_v61 }
 0x4c2   :  { %3632 = vst.msk [vmem:[#allocation2 + $0x71] sm:$0xff] %vm117_vm2, %v11600_v21  ;;  %v3564_v46 = vadd.f32 %v3534_v17, %v3434_v44  ;;  %v4018_v34 = vpack.c.bf16 %v4005_v63, %v3647_v18  ;;  %v10166_v18 = vld [vmem:[#allocation2 + $0x61] sm:$0xff]  ;;  %v3412_v61 = vpop.f32.mrf.mxu1 }
 0x4c3   :  { %v10168_v17 = vld [vmem:[#allocation2 + $0x62] sm:$0xff]  ;;  %v3306_v16 = vadd.f32 %v3279_v55, %v3176_v13  ;;  %v3177_v55 = vadd.f32 %v3152_v6, %v10001_v29 }
 0x4c4   :  { %v3585_v41 = vadd.f32 %v10023_v37, %v3564_v46  ;;  %7751 = vmatmul.msk.bf16.gmra.mxu2 %vm117_vm2, %v4018_v34  ;;  %v3282_v46 = vpop.f32.mrf.mxu0  ;;  %v11664_v6 = vld [vmem:[#allocation26_spill] sm:$0xff] }
 0x4c5   :  { %v3436_v13 = vadd.f32 %v3409_v30, %v3306_v16  ;;  %v11665_v16 = vmax.f32 %v11664_v6, 0.0  ;;  %v11667_v6 = vld [vmem:[#allocation27_spill] sm:$0xff] }
 0x4c6   :  { %v10163_v43 = vadd.f32 %v3585_v41, %v11659_v39  ;;  %v11661_v41 = vld [vmem:[#allocation25_spill] sm:$0xff] }
 0x4c7   :  { %v11662_v56 = vmax.f32 %v11661_v41, 0.0  ;;  %v3307_v41 = vadd.f32 %v3282_v46, %v3177_v55  ;;  %v2656_v46 = vadd.f32 %v9943_v58, %v9941_v4 }
 0x4c8   :  { %11660 = vst [vmem:[#allocation23_spill] sm:$0xff] %v10163_v43  ;;  %v11599_v44 = vmax.f32 %v10163_v43, 0.0  ;;  %v3878_v43 = vld [vmem:[#allocation2 + $0xa2] sm:$0xff] }
 0x4c9   :  { %v3537_v20 = vpop.f32.mrf.mxu2  ;;  %v10172_v45 = vld [vmem:[#allocation2 + $0x71] sm:$0xff] }
 0x4ca   :  { %v3649_v31 = vld [vmem:[#allocation2 + $0x70] sm:$0xff]  ;;  %3633 = vst.msk [vmem:[#allocation2 + $0x81] sm:$0xff] %vm117_vm2, %v11599_v44  ;;  %v3565_v22 = vadd.f32 %v3537_v20, %v3435_v15  ;;  %v10181_v25 = vpack.c.bf16 %v10172_v45, %v10166_v18  ;;  %v3154_v15 = vpop.f32.mrf.mxu3 }
 0x4cb   :  { %v10174_v34 = vld [vmem:[#allocation2 + $0x72] sm:$0xff]  ;;  %v10183_v50 = vpack.c.bf16 %v3649_v31, %v4005_v63  ;;  %v2788_v63 = vadd.f32 %v9915_v48, %v2651_v51 }
 0x4cc   :  { %v10187_v2 = vpack.c.bf16 %v10174_v34, %v10168_v17  ;;  %v3586_v49 = vadd.f32 %v10023_v37, %v3565_v22  ;;  %7704 = vmatmul.msk.bf16.gmra.mxu3 %vm117_vm2, %v10181_v25 }
 0x4cd   :  { %7720 = vmatmul.msk.bf16.gmra.mxu0 %vm117_vm2, %v10183_v50  ;;  %v2918_v21 = vadd.f32 %v9925_v14, %v2788_v63  ;;  %v3414_v14 = vpop.f32.mrf.mxu1  ;;  %v3679_v63 = vld [vmem:[#allocation2 + $0xa1] sm:$0xff] }
 0x4ce   :  { %7736 = vmatmul.msk.bf16.gmra.mxu1 %vm117_vm2, %v10187_v2  ;;  %v10199_v39 = vadd.f32 %v3586_v49, %v11662_v56  ;;  %v3284_v49 = vpop.f32.mrf.mxu0 }
 0x4cf   :  { %v3048_v30 = vadd.f32 %v10007_v8, %v2918_v21 }
 0x4d0   :  { %11663 = vst [vmem:[#allocation24_spill] sm:$0xff] %v10199_v39  ;;  %v11603_v20 = vmax.f32 %v10199_v39, 0.0  ;;  %v3650_v39 = vld [vmem:[#allocation2 + $0xa0] sm:$0xff] }
 0x4d1   :  { %v3539_v22 = vpop.f32.mrf.mxu2  ;;  %v10203_v44 = vld [vmem:[#allocation2 + $0x80] sm:$0xff] }
 0x4d2   :  { %3634 = vst.msk [vmem:[#allocation2 + $0xb1] sm:$0xff] %vm117_vm2, %v11603_v20  ;;  %v3566_v48 = vadd.f32 %v3539_v22, %v3436_v13  ;;  %v4019_v51 = vpack.c.bf16 %v10203_v44, %v3649_v31  ;;  %v3437_v20 = vadd.f32 %v3412_v61, %v3307_v41  ;;  %v3178_v13 = vadd.f32 %v3154_v15, %v3048_v30  ;;  %v3157_v8 = vpop.f32.mrf.mxu3 }
 0x4d4   :  { %v3587_v29 = vadd.f32 %v10023_v37, %v3566_v48  ;;  %7752 = vmatmul.msk.bf16.gmra.mxu2 %vm117_vm2, %v4019_v51  ;;  %v3308_v30 = vadd.f32 %v3284_v49, %v3178_v13 }
 0x4d5   :  { %v3417_v49 = vpop.f32.mrf.mxu1 }
 0x4d6   :  { %v10215_v56 = vadd.f32 %v3587_v29, %v11665_v16  ;;  %v3287_v58 = vpop.f32.mrf.mxu0  ;;  %v2790_v29 = vadd.f32 %v9939_v57, %v2656_v46  ;;  %v11668_v16 = vmax.f32 %v11667_v6, 0.0 }
 0x4d8   :  { %11666 = vst [vmem:[#allocation25_spill] sm:$0xff] %v10215_v56  ;;  %v11606_v31 = vmax.f32 %v10215_v56, 0.0 }
 0x4d9   :  { %v3542_v21 = vpop.f32.mrf.mxu2  ;;  %v10220_v55 = vld [vmem:[#allocation2 + $0xb1] sm:$0xff] }
 0x4da   :  { %v3651_v22 = vld [vmem:[#allocation2 + $0xb0] sm:$0xff]  ;;  %3635 = vst.msk [vmem:[#allocation2 + $0xc1] sm:$0xff] %vm117_vm2, %v11606_v31  ;;  %v3567_v51 = vadd.f32 %v3542_v21, %v3437_v20  ;;  %v3691_v61 = vpack.c.bf16 %v10220_v55, %v3679_v63  ;;  %v3438_v63 = vadd.f32 %v3414_v14, %v3308_v30  ;;  %v3159_v46 = vpop.f32.mrf.mxu3 }
 0x4db   :  { %v10222_v48 = vld [vmem:[#allocation2 + $0xb2] sm:$0xff]  ;;  %v3662_v15 = vpack.c.bf16 %v3651_v22, %v3650_v39  ;;  %v3179_v39 = vadd.f32 %v3157_v8, %v10012_v19 }
 0x4dc   :  { %v3890_v41 = vpack.c.bf16 %v10222_v48, %v3878_v43  ;;  %v3588_v4 = vadd.f32 %v10023_v37, %v3567_v51  ;;  %7705 = vmatmul.msk.bf16.gmra.mxu3 %vm117_vm2, %v3691_v61  ;;  %v2920_v51 = vadd.f32 %v9947_v3, %v2790_v29  ;;  %v11670_v19 = vld [vmem:[#allocation28_spill] sm:$0xff] }
 0x4dd   :  { %7721 = vmatmul.msk.bf16.gmra.mxu0 %vm117_vm2, %v3662_v15  ;;  %v3309_v15 = vadd.f32 %v3287_v58, %v3179_v39  ;;  %v11671_v8 = vmax.f32 %v11670_v19, 0.0 }
 0x4de   :  { %7737 = vmatmul.msk.bf16.gmra.mxu1 %vm117_vm2, %v3890_v41  ;;  %v10236_v20 = vadd.f32 %v3588_v4, %v11668_v16  ;;  %v3050_v41 = vadd.f32 %v10014_v47, %v2920_v51  ;;  %v3289_v4 = vpop.f32.mrf.mxu0  ;;  %v2661_v47 = vadd.f32 %v9998_v32, %v9957_v42  ;;  %v3419_v32 = vpop.f32.mrf.mxu1 }
 0x4df   :  { %v3439_v3 = vadd.f32 %v3417_v49, %v3309_v15 }
 0x4e0   :  { %11669 = vst [vmem:[#allocation26_spill] sm:$0xff] %v10236_v20  ;;  %v11605_v43 = vmax.f32 %v10236_v20, 0.0  ;;  %v3180_v29 = vadd.f32 %v3159_v46, %v3050_v41  ;;  %v11673_v41 = vld [vmem:[#allocation29_spill] sm:$0xff] }
 0x4e1   :  { %v3544_v13 = vpop.f32.mrf.mxu2  ;;  %v4009_v21 = vld [vmem:[#allocation2 + $0xc0] sm:$0xff] }
 0x4e2   :  { %3636 = vst.msk [vmem:[#allocation2 + $0xd1] sm:$0xff] %vm117_vm2, %v11605_v43  ;;  %v3568_v61 = vadd.f32 %v3544_v13, %v3438_v63  ;;  %v4020_v57 = vpack.c.bf16 %v4009_v21, %v3651_v22  ;;  %v10252_v16 = vld [vmem:[#allocation2 + $0xc1] sm:$0xff]  ;;  %v3162_v15 = vpop.f32.mrf.mxu3 }
 0x4e3   :  { %v10254_v22 = vld [vmem:[#allocation2 + $0xc2] sm:$0xff] }
 0x4e4   :  { %v3589_v14 = vadd.f32 %v10023_v37, %v3568_v61  ;;  %7753 = vmatmul.msk.bf16.gmra.mxu2 %vm117_vm2, %v4020_v57  ;;  %v3310_v57 = vadd.f32 %v3289_v4, %v3180_v29  ;;  %v3181_v4 = vadd.f32 %v3162_v15, %v10018_v53  ;;  %v8172_v53 = vld [vmem:[#allocation7 + $0x178] sm:$0xff] }
 0x4e5   :  { %4331 = vmatpush.bf16.msra.mxu0 %v8172_v53 }
 0x4e6   :  { %v10249_v30 = vadd.f32 %v3589_v14, %v11671_v8  ;;  %v11674_v14 = vmax.f32 %v11673_v41, 0.0  ;;  %v3440_v8 = vadd.f32 %v3419_v32, %v3310_v57  ;;  %v3292_v29 = vpop.f32.mrf.mxu0  ;;  %v8174_v57 = vld [vmem:[#allocation7 + $0x188] sm:$0xff]  ;;  %v3422_v15 = vpop.f32.mrf.mxu1  ;;  %v11676_v41 = vld [vmem:[#allocation30_spill] sm:$0xff] }
 0x4e7   :  { %4461 = vmatpush.bf16.msra.mxu1 %v8174_v57  ;;  %v8176_v57 = vld [vmem:[#allocation7 + $0x198] sm:$0xff] }
 0x4e8   :  { %11672 = vst [vmem:[#allocation27_spill] sm:$0xff] %v10249_v30  ;;  %v11604_v6 = vmax.f32 %v10249_v30, 0.0  ;;  %4591 = vmatpush.bf16.msrb.mxu2 %v8176_v57 }
 0x4e9   :  { %v3547_v58 = vpop.f32.mrf.mxu2  ;;  %v10258_v63 = vld [vmem:[#allocation2 + $0xd1] sm:$0xff] }
 0x4ea   :  { %v3653_v39 = vld [vmem:[#allocation2 + $0xd0] sm:$0xff]  ;;  %3637 = vst.msk [vmem:[#allocation2 + $0xe1] sm:$0xff] %vm117_vm2, %v11604_v6  ;;  %v3569_v49 = vadd.f32 %v3547_v58, %v3439_v3  ;;  %v10267_v51 = vpack.c.bf16 %v10258_v63, %v10252_v16 }
 0x4eb   :  { %v10260_v13 = vld [vmem:[#allocation2 + $0xd2] sm:$0xff]  ;;  %v10269_v61 = vpack.c.bf16 %v3653_v39, %v4009_v21  ;;  %v2792_v21 = vadd.f32 %v10003_v11, %v2661_v47  ;;  %v3311_v47 = vadd.f32 %v3292_v29, %v3181_v4  ;;  %v8173_v4 = vld [vmem:[#allocation7 + $0x180] sm:$0xff] }
 0x4ec   :  { %v10273_v42 = vpack.c.bf16 %v10260_v13, %v10254_v22  ;;  %v3590_v46 = vadd.f32 %v10023_v37, %v3569_v49  ;;  %7706 = vmatmul.msk.bf16.gmra.mxu3 %vm117_vm2, %v10267_v51  ;;  %4462 = vmatpush.bf16.msra.mxu1 %v8173_v4 }
 0x4ed   :  { %7722 = vmatmul.msk.bf16.gmra.mxu0 %vm117_vm2, %v10269_v61  ;;  %v2922_v6 = vadd.f32 %v10005_v27, %v2792_v21  ;;  %v3164_v27 = vpop.f32.mrf.mxu3 }
 0x4ee   :  { %7738 = vmatmul.msk.bf16.gmra.mxu1 %vm117_vm2, %v10273_v42  ;;  %v10285_v19 = vadd.f32 %v3590_v46, %v11674_v14  ;;  %v11677_v14 = vmax.f32 %v11676_v41, 0.0 }
 0x4ef   :  { %v3052_v46 = vadd.f32 %v10020_v28, %v2922_v6 }
 0x4f0   :  { %11675 = vst [vmem:[#allocation28_spill] sm:$0xff] %v10285_v19  ;;  %v11608_v3 = vmax.f32 %v10285_v19, 0.0 }
 0x4f1   :  { %v3549_v58 = vpop.f32.mrf.mxu2  ;;  %v4011_v49 = vld [vmem:[#allocation2 + $0xe0] sm:$0xff] }
 0x4f2   :  { %3638 = vst.msk [vmem:[#allocation2 + $0xf1] sm:$0xff] %vm117_vm2, %v11608_v3  ;;  %v3570_v43 = vadd.f32 %v3549_v58, %v3440_v8  ;;  %v4021_v11 = vpack.c.bf16 %v4011_v49, %v3653_v39  ;;  %v10300_v21 = vld [vmem:[#allocation2 + $0xe1] sm:$0xff]  ;;  %v3441_v39 = vadd.f32 %v3422_v15, %v3311_v47  ;;  %v3182_v8 = vadd.f32 %v3164_v27, %v3052_v46  ;;  %v3294_v15 = vpop.f32.mrf.mxu0 }
 0x4f3   :  { %v10303_v6 = vld [vmem:[#allocation2 + $0xe2] sm:$0xff] }
 0x4f4   :  { %v3591_v32 = vadd.f32 %v10023_v37, %v3570_v43  ;;  %7754 = vmatmul.msk.bf16.gmra.mxu2 %vm117_vm2, %v4021_v11  ;;  %v8171_v43 = vld [vmem:[#allocation7 + $0x170] sm:$0xff] }
 0x4f5   :  { %4332 = vmatpush.bf16.msra.mxu0 %v8171_v43  ;;  %v3424_v43 = vpop.f32.mrf.mxu1 }
 0x4f6   :  { %v10298_v31 = vadd.f32 %v3591_v32, %v11677_v14  ;;  %v3312_v14 = vadd.f32 %v3294_v15, %v3182_v8 }
 0x4f8   :  { %11678 = vst [vmem:[#allocation29_spill] sm:$0xff] %v10298_v31  ;;  %v11607_v28 = vmax.f32 %v10298_v31, 0.0  ;;  %v3442_v8 = vadd.f32 %v3424_v43, %v3312_v14 }
 0x4f9   :  { %v3552_v29 = vpop.f32.mrf.mxu2  ;;  %v10305_v58 = vld [vmem:[#allocation2 + $0xf1] sm:$0xff] }
 0x4fa   :  { %v3655_v11 = vld [vmem:[#allocation2 + $0xf0] sm:$0xff]  ;;  %3639 = vst.msk [vmem:[#allocation2 + $0x101] sm:$0xff] %vm117_vm2, %v11607_v28  ;;  %v3571_v32 = vadd.f32 %v3552_v29, %v3441_v39  ;;  %v10314_v47 = vpack.c.bf16 %v10305_v58, %v10300_v21 }
 0x4fb   :  { %v10307_v41 = vld [vmem:[#allocation2 + $0xf2] sm:$0xff]  ;;  %v10316_v46 = vpack.c.bf16 %v3655_v11, %v4011_v49 }
 0x4fc   :  { %v10320_v53 = vpack.c.bf16 %v10307_v41, %v10303_v6  ;;  %v3592_v27 = vadd.f32 %v10023_v37, %v3571_v32  ;;  %7707 = vmatmul.msk.bf16.gmra.mxu3 %vm117_vm2, %v10314_v47  ;;  %v8178_v49 = vld [vmem:[#allocation7 + $0x1a8] sm:$0xff]  ;;  %v8175_v32 = vld [vmem:[#allocation7 + $0x190] sm:$0xff] }
 0x4fd   :  { %7723 = vmatmul.msk.bf16.gmra.mxu0 %vm117_vm2, %v10316_v46  ;;  %v11679_v39 = vld [vmem:[#allocation31_spill] sm:$0xff]  ;;  %4721 = vmatpush.bf16.msrb.mxu3 %v8178_v49 }
 0x4fe   :  { %7739 = vmatmul.msk.bf16.gmra.mxu1 %vm117_vm2, %v10320_v53  ;;  %v11680_v29 = vmax.f32 %v11679_v39, 0.0  ;;  %4592 = vmatpush.bf16.msrb.mxu2 %v8175_v32 }
 0x500   :  { %v10331_v28 = vadd.f32 %v3592_v27, %v11680_v29  ;;  %v11682_v27 = vld [vmem:[#allocation32_spill] sm:$0xff] }
 0x501   :  { %v3554_v15 = vpop.f32.mrf.mxu2  ;;  %v4013_v3 = vld [vmem:[#allocation2 + $0x100] sm:$0xff]  ;;  %v11683_v39 = vmax.f32 %v11682_v27, 0.0  ;;  %v4276_v27 = vpack.c.bf16 %v10074_v60, %v10044_v36 }
 0x502   :  { %11681 = vst [vmem:[#allocation30_spill] sm:$0xff] %v10331_v28  ;;  %v11612_v4 = vmax.f32 %v10331_v28, 0.0  ;;  %v3572_v31 = vadd.f32 %v3554_v15, %v3442_v8  ;;  %v4022_v19 = vpack.c.bf16 %v4013_v3, %v3655_v11  ;;  %v10344_v29 = vld [vmem:[#allocation2 + $0x101] sm:$0xff] }
 0x503   :  { %v10346_v43 = vld [vmem:[#allocation2 + $0x102] sm:$0xff] }
 0x504   :  { %3640 = vst.msk [vmem:[#allocation2 + $0x111] sm:$0xff] %vm117_vm2, %v11612_v4  ;;  %v3593_v57 = vadd.f32 %v10023_v37, %v3572_v31  ;;  %7755 = vmatmul.msk.bf16.gmra.mxu2 %vm117_vm2, %v4022_v19 }
 0x506   :  { %v10341_v49 = vadd.f32 %v3593_v57, %v11683_v39  ;;  %v4146_v57 = vpack.c.bf16 %v10072_v59, %v10042_v12 }
 0x508   :  { %11684 = vst [vmem:[#allocation31_spill] sm:$0xff] %v10341_v49  ;;  %v11613_v14 = vmax.f32 %v10341_v49, 0.0 }
 0x50a   :  { %3641 = vst.msk [vmem:[#allocation2 + $0x121] sm:$0xff] %vm117_vm2, %v11613_v14 }
 0x50b   :  { %v10348_v28 = vld [vmem:[#allocation2 + $0x111] sm:$0xff] }
 0x50c   :  { %v3657_v4 = vld [vmem:[#allocation2 + $0x110] sm:$0xff]  ;;  %v10357_v37 = vpack.c.bf16 %v10348_v28, %v10344_v29 }
 0x50d   :  { %v10350_v8 = vld [vmem:[#allocation2 + $0x112] sm:$0xff]  ;;  %v10359_v31 = vpack.c.bf16 %v3657_v4, %v4013_v3 }
 0x50e   :  { %v10363_v19 = vpack.c.bf16 %v10350_v8, %v10346_v43  ;;  %7708 = vmatmul.msk.bf16.gmra.mxu3 %vm117_vm2, %v10357_v37 }
 0x50f   :  { %7724 = vmatmul.msk.bf16.gmra.mxu0 %vm117_vm2, %v10359_v31 }
 0x510   :  { %7740 = vmatmul.msk.bf16.gmra.mxu1 %vm117_vm2, %v10363_v19 }
 0x511   :  { %v10371_v11 = vld [vmem:[#allocation2 + $0x120] sm:$0xff] }
 0x512   :  { %v4023_v32 = vpack.c.bf16 %v10371_v11, %v3657_v4 }
 0x514   :  { %7756 = vmatmul.msk.bf16.gmra.mxu2 %vm117_vm2, %v4023_v32 }
 0x51a   :  { %v3830_v3 = vpop.f32.mrf.mxu0 }
 0x51b   :  { %v3944_v15 = vpop.f32.mrf.mxu1 }
 0x51e   :  { %7765 = vmatmul.msk.bf16.vlgmr.msra.gmra.mxu3 %vm117_vm2, %v4146_v57  ;;  %v4147_v57 = vpack.c.bf16 %v10117_v26, %v10076_v5 }
 0x51f   :  { %7781 = vmatmul.msk.bf16.vlgmr.msra.gmra.mxu0 %vm117_vm2, %v4276_v27  ;;  %v3745_v39 = vpop.f32.mrf.mxu3 }
 0x520   :  { %7797 = vmatmul.msk.bf16.vlgmr.msra.gmra.mxu1 %vm117_vm2, %v10087_v33  ;;  %v3831_v14 = vadd.f32 %v3830_v3, %v3745_v39  ;;  %v4277_v33 = vpack.c.bf16 %v10119_v24, %v10078_v7 }
 0x522   :  { %v3832_v4 = vpop.f32.mrf.mxu0  ;;  %v3984_v32 = vadd.f32 %v3944_v15, %v3831_v14 }
 0x523   :  { %v3946_v49 = vpop.f32.mrf.mxu1 }
 0x524   :  { %7813 = vmatmul.msk.bf16.vlgmr.msrb.gmra.mxu2 %vm117_vm2, %v10085_v9 }
 0x527   :  { %v3747_v30 = vpop.f32.mrf.mxu3  ;;  %v4074_v12 = vpop.f32.mrf.mxu2 }
 0x528   :  { %v3833_v59 = vadd.f32 %v3832_v4, %v3747_v30  ;;  %v10385_v20 = vadd.f32 %v4074_v12, %v3984_v32  ;;  %v4278_v12 = vpack.c.bf16 %v10168_v17, %v10125_v35 }
 0x52a   :  { %v3835_v36 = vpop.f32.mrf.mxu0  ;;  %v3985_v3 = vadd.f32 %v3946_v49, %v3833_v59 }
 0x52b   :  { %v3949_v60 = vpop.f32.mrf.mxu1 }
 0x52e   :  { %7766 = vmatmul.msk.bf16.gmra.mxu3 %vm117_vm2, %v4147_v57 }
 0x52f   :  { %7782 = vmatmul.msk.bf16.gmra.mxu0 %vm117_vm2, %v4277_v33  ;;  %v3750_v9 = vpop.f32.mrf.mxu3  ;;  %v4076_v30 = vpop.f32.mrf.mxu2 }
 0x530   :  { %7798 = vmatmul.msk.bf16.gmra.mxu1 %vm117_vm2, %v10134_v40  ;;  %v3836_v14 = vadd.f32 %v3835_v36, %v3750_v9  ;;  %v10395_v15 = vadd.f32 %v4076_v30, %v3985_v3  ;;  %v4148_v40 = vpack.c.bf16 %v10166_v18, %v10123_v0  ;;  %v4137_v9 = vld [vmem:[#allocation2 + $0x81] sm:$0xff] }
 0x531   :  { %v10413_v30 = vld [vmem:[#allocation2 + $0x82] sm:$0xff] }
 0x532   :  { %v3837_v27 = vpop.f32.mrf.mxu0  ;;  %v3986_v4 = vadd.f32 %v3949_v60, %v3836_v14 }
 0x533   :  { %v3951_v39 = vpop.f32.mrf.mxu1 }
 0x534   :  { %7814 = vmatmul.msk.bf16.gmra.mxu2 %vm117_vm2, %v10132_v23  ;;  %v8177_v23 = vld [vmem:[#allocation7 + $0x1a0] sm:$0xff] }
 0x535   :  { %4722 = vmatpush.bf16.msrb.mxu3 %v8177_v23 }
 0x537   :  { %v3752_v26 = vpop.f32.mrf.mxu3  ;;  %v4079_v5 = vpop.f32.mrf.mxu2 }
 0x538   :  { %v3838_v7 = vadd.f32 %v3837_v27, %v3752_v26  ;;  %v10399_v24 = vadd.f32 %v4079_v5, %v3986_v4  ;;  %v4397_v27 = vld [vmem:[#allocation2 + $0x90] sm:$0xff]  ;;  %v4149_v26 = vpack.c.bf16 %v4137_v9, %v10172_v45  ;;  %v4279_v5 = vpack.c.bf16 %v10413_v30, %v10174_v34 }
 0x53a   :  { %v3840_v49 = vpop.f32.mrf.mxu0  ;;  %v3987_v59 = vadd.f32 %v3951_v39, %v3838_v7 }
 0x53b   :  { %v3954_v32 = vpop.f32.mrf.mxu1 }
 0x53e   :  { %7767 = vmatmul.msk.bf16.gmra.mxu3 %vm117_vm2, %v4148_v40  ;;  %v4527_v40 = vld [vmem:[#allocation2 + $0x91] sm:$0xff] }
 0x53f   :  { %7783 = vmatmul.msk.bf16.gmra.mxu0 %vm117_vm2, %v4278_v12  ;;  %v3755_v36 = vpop.f32.mrf.mxu3  ;;  %v4081_v60 = vpop.f32.mrf.mxu2 }
 0x540   :  { %7799 = vmatmul.msk.bf16.gmra.mxu1 %vm117_vm2, %v10183_v50  ;;  %v3841_v57 = vadd.f32 %v3840_v49, %v3755_v36  ;;  %v10409_v33 = vadd.f32 %v4081_v60, %v3987_v59  ;;  %v4409_v49 = vpack.c.bf16 %v4397_v27, %v10203_v44  ;;  %v4539_v36 = vpack.c.bf16 %v4527_v40, %v4137_v9 }
 0x542   :  { %v3842_v3 = vpop.f32.mrf.mxu0  ;;  %v3988_v18 = vadd.f32 %v3954_v32, %v3841_v57 }
 0x543   :  { %v3956_v0 = vpop.f32.mrf.mxu1 }
 0x544   :  { %7815 = vmatmul.msk.bf16.gmra.mxu2 %vm117_vm2, %v10181_v25 }
 0x547   :  { %v3757_v35 = vpop.f32.mrf.mxu3  ;;  %v4084_v17 = vpop.f32.mrf.mxu2 }
 0x548   :  { %v3843_v14 = vadd.f32 %v3842_v3, %v3757_v35  ;;  %v10415_v50 = vadd.f32 %v4084_v17, %v3988_v18  ;;  %v4150_v35 = vpack.c.bf16 %v10252_v16, %v10220_v55  ;;  %v4280_v17 = vpack.c.bf16 %v10254_v22, %v10222_v48 }
 0x54a   :  { %v3845_v39 = vpop.f32.mrf.mxu0  ;;  %v3989_v7 = vadd.f32 %v3956_v0, %v3843_v14 }
 0x54b   :  { %v3959_v4 = vpop.f32.mrf.mxu1 }
 0x54e   :  { %7768 = vmatmul.msk.bf16.gmra.mxu3 %vm117_vm2, %v4149_v26 }
 0x54f   :  { %7784 = vmatmul.msk.bf16.gmra.mxu0 %vm117_vm2, %v4279_v5  ;;  %v3760_v25 = vpop.f32.mrf.mxu3  ;;  %v4086_v32 = vpop.f32.mrf.mxu2 }
 0x550   :  { %7800 = vmatmul.msk.bf16.gmra.mxu1 %vm117_vm2, %v4409_v49  ;;  %v3846_v12 = vadd.f32 %v3845_v39, %v3760_v25  ;;  %v10424_v59 = vadd.f32 %v4086_v32, %v3989_v7  ;;  %v4151_v49 = vpack.c.bf16 %v10300_v21, %v10258_v63  ;;  %v4281_v25 = vpack.c.bf16 %v10303_v6, %v10260_v13 }
 0x552   :  { %v3847_v23 = vpop.f32.mrf.mxu0  ;;  %v3990_v60 = vadd.f32 %v3959_v4, %v3846_v12 }
 0x553   :  { %v3961_v45 = vpop.f32.mrf.mxu1 }
 0x554   :  { %7816 = vmatmul.msk.bf16.gmra.mxu2 %vm117_vm2, %v4539_v36  ;;  %v4282_v36 = vpack.c.bf16 %v10346_v43, %v10307_v41  ;;  %v4145_v43 = vld [vmem:[#allocation2 + $0x121] sm:$0xff] }
 0x557   :  { %v3762_v34 = vpop.f32.mrf.mxu3  ;;  %v4089_v44 = vpop.f32.mrf.mxu2 }
 0x558   :  { %v3848_v57 = vadd.f32 %v3847_v23, %v3762_v34  ;;  %v10427_v3 = vadd.f32 %v4089_v44, %v3990_v60 }
 0x55a   :  { %v3850_v0 = vpop.f32.mrf.mxu0  ;;  %v3991_v14 = vadd.f32 %v3961_v45, %v3848_v57 }
 0x55b   :  { %v3964_v18 = vpop.f32.mrf.mxu1 }
 0x55e   :  { %7769 = vmatmul.msk.bf16.gmra.mxu3 %vm117_vm2, %v4150_v35 }
 0x55f   :  { %7785 = vmatmul.msk.bf16.gmra.mxu0 %vm117_vm2, %v4280_v17  ;;  %v3765_v9 = vpop.f32.mrf.mxu3  ;;  %v4091_v27 = vpop.f32.mrf.mxu2  ;;  %v4153_v17 = vpack.c.bf16 %v4145_v43, %v10348_v28 }
 0x560   :  { %7801 = vmatmul.msk.bf16.gmra.mxu1 %vm117_vm2, %v10269_v61  ;;  %v3851_v39 = vadd.f32 %v3850_v0, %v3765_v9  ;;  %v10437_v4 = vadd.f32 %v4091_v27, %v3991_v14 }
 0x562   :  { %v10439_v26 = vpop.f32.mrf.mxu0  ;;  %v3992_v55 = vadd.f32 %v3964_v18, %v3851_v39  ;;  %v10487_v18 = vld [vmem:[#allocation2 + $0x122] sm:$0xff] }
 0x563   :  { %v10441_v5 = vpop.f32.mrf.mxu1  ;;  %v4283_v14 = vpack.c.bf16 %v10487_v18, %v10350_v8 }
 0x564   :  { %7817 = vmatmul.msk.bf16.gmra.mxu2 %vm117_vm2, %v10267_v51 }
 0x567   :  { %v10445_v48 = vpop.f32.mrf.mxu3  ;;  %v4094_v16 = vpop.f32.mrf.mxu2 }
 0x568   :  { %v10447_v22 = vadd.f32 %v4094_v16, %v3992_v55  ;;  %v4535_v55 = vld [vmem:[#allocation2 + $0x131] sm:$0xff] }
 0x56a   :  { %v3855_v7 = vpop.f32.mrf.mxu0 }
 0x56b   :  { %v3969_v61 = vpop.f32.mrf.mxu1 }
 0x56e   :  { %7770 = vmatmul.msk.bf16.gmra.mxu3 %vm117_vm2, %v4151_v49  ;;  %v8182_v49 = vld [vmem:[#allocation7 + $0x1c8] sm:$0xff] }
 0x56f   :  { %7786 = vmatmul.msk.bf16.gmra.mxu0 %vm117_vm2, %v4281_v25  ;;  %v3770_v51 = vpop.f32.mrf.mxu3  ;;  %v10457_v32 = vpop.f32.mrf.mxu2 }
 0x570   :  { %7802 = vmatmul.msk.bf16.gmra.mxu1 %vm117_vm2, %v10316_v46  ;;  %v3856_v40 = vadd.f32 %v3855_v7, %v3770_v51  ;;  %v4152_v46 = vpack.c.bf16 %v10344_v29, %v10305_v58  ;;  %4933 = vmatpush.bf16.msrb.mxu0 %v8182_v49 }
 0x572   :  { %v10459_v12 = vpop.f32.mrf.mxu0  ;;  %v3994_v45 = vadd.f32 %v3969_v61, %v3856_v40  ;;  %v4543_v61 = vpack.c.bf16 %v4535_v55, %v4145_v43 }
 0x573   :  { %v10461_v23 = vpop.f32.mrf.mxu1 }
 0x574   :  { %7818 = vmatmul.msk.bf16.gmra.mxu2 %vm117_vm2, %v10314_v47 }
 0x577   :  { %v10465_v63 = vpop.f32.mrf.mxu3  ;;  %v4099_v13 = vpop.f32.mrf.mxu2 }
 0x578   :  { %v10467_v21 = vadd.f32 %v4099_v13, %v3994_v45 }
 0x57a   :  { %v3860_v6 = vpop.f32.mrf.mxu0 }
 0x57b   :  { %v3974_v60 = vpop.f32.mrf.mxu1 }
 0x57e   :  { %7771 = vmatmul.msk.bf16.gmra.mxu3 %vm117_vm2, %v4152_v46 }
 0x57f   :  { %7787 = vmatmul.msk.bf16.gmra.mxu0 %vm117_vm2, %v4282_v36  ;;  %v3775_v47 = vpop.f32.mrf.mxu3  ;;  %v10477_v34 = vpop.f32.mrf.mxu2 }
 0x580   :  { %7803 = vmatmul.msk.bf16.gmra.mxu1 %vm117_vm2, %v10359_v31  ;;  %v3861_v44 = vadd.f32 %v3860_v6, %v3775_v47  ;;  %v4405_v31 = vld [vmem:[#allocation2 + $0x130] sm:$0xff] }
 0x581   :  { %v4413_v9 = vpack.c.bf16 %v4405_v31, %v10371_v11  ;;  %v4657_v47 = vld [vmem:[#allocation2 + $0x92] sm:$0xff] }
 0x582   :  { %v3996_v57 = vadd.f32 %v3974_v60, %v3861_v44  ;;  %v10479_v0 = vpop.f32.mrf.mxu0 }
 0x583   :  { %v10483_v58 = vpop.f32.mrf.mxu1 }
 0x584   :  { %7819 = vmatmul.msk.bf16.gmra.mxu2 %vm117_vm2, %v10357_v37 }
 0x587   :  { %v10485_v41 = vpop.f32.mrf.mxu3  ;;  %v4104_v29 = vpop.f32.mrf.mxu2 }
 0x588   :  { %v4126_v35 = vadd.f32 %v4104_v29, %v3996_v57  ;;  %v8181_v57 = vld [vmem:[#allocation7 + $0x1c0] sm:$0xff] }
 0x589   :  { %4934 = vmatpush.bf16.msrb.mxu0 %v8181_v57 }
 0x58c   :  { %v3865_v37 = vpop.f32.mrf.mxu0 }
 0x58d   :  { %v3979_v7 = vpop.f32.mrf.mxu1 }
 0x58e   :  { %7772 = vmatmul.msk.bf16.gmra.mxu3 %vm117_vm2, %v4153_v17 }
 0x58f   :  { %7788 = vmatmul.msk.bf16.gmra.mxu0 %vm117_vm2, %v4283_v14  ;;  %v10496_v39 = vpop.f32.mrf.mxu2 }
 0x590   :  { %7804 = vmatmul.msk.bf16.gmra.mxu1 %vm117_vm2, %v4413_v9 }
 0x591   :  { %v3780_v27 = vpop.f32.mrf.mxu3 }
 0x592   :  { %v3866_v16 = vadd.f32 %v3865_v37, %v3780_v27 }
 0x594   :  { %v3998_v28 = vadd.f32 %v3979_v7, %v3866_v16  ;;  %7820 = vmatmul.msk.bf16.gmra.mxu2 %vm117_vm2, %v4543_v61  ;;  %v8184_v16 = vld [vmem:[#allocation7 + $0x1d8] sm:$0xff]  ;;  %v4665_v61 = vld [vmem:[#allocation2 + $0x132] sm:$0xff] }
 0x595   :  { %5132 = vmatpush.bf16.msra.mxu2 %v8184_v16  ;;  %v4673_v49 = vpack.c.bf16 %v4665_v61, %v10487_v18 }
 0x597   :  { %v4109_v11 = vpop.f32.mrf.mxu2 }
 0x598   :  { %v4128_v25 = vadd.f32 %v4109_v11, %v3998_v28  ;;  %v8180_v28 = vld [vmem:[#allocation7 + $0x1b8] sm:$0xff]  ;;  %v8179_v11 = vld [vmem:[#allocation7 + $0x1b0] sm:$0xff] }
 0x599   :  { %v10499_v8 = vpop.f32.mrf.mxu3  ;;  %5018 = vmatpush.bf16.msrb.mxu1 %v8180_v28 }
 0x59d   :  { %5019 = vmatpush.bf16.msrb.mxu1 %v8179_v11 }
 0x59e   :  { %7829 = vmatmul.msk.bf16.vlgmr.msrb.gmra.mxu3 %vm117_vm2, %v10091_v52 }
 0x59f   :  { %v10549_v17 = vpop.f32.mrf.mxu2 }
 0x5a1   :  { %v4204_v51 = vpop.f32.mrf.mxu3 }
 0x5a2   :  { %v10504_v40 = vadd.f32 %v4204_v51, %v10385_v20 }
 0x5a7   :  { %v4594_v9 = vpop.f32.mrf.mxu2 }
 0x5a9   :  { %v4206_v45 = vpop.f32.mrf.mxu3 }
 0x5aa   :  { %v10507_v13 = vadd.f32 %v4206_v45, %v10395_v15  ;;  %v8186_v45 = vld [vmem:[#allocation7 + $0x1e8] sm:$0xff] }
 0x5ab   :  { %5262 = vmatpush.bf16.msra.mxu3 %v8186_v45 }
 0x5ae   :  { %7830 = vmatmul.msk.bf16.gmra.mxu3 %vm117_vm2, %v10138_v10  ;;  %v4669_v10 = vpack.c.bf16 %v4657_v47, %v10413_v30  ;;  %v8188_v47 = vld [vmem:[#allocation7 + $0x1f8] sm:$0xff] }
 0x5af   :  { %5392 = vmatpush.bf16.msra.mxu0 %v8188_v47 }
 0x5b1   :  { %v4209_v6 = vpop.f32.mrf.mxu3 }
 0x5b2   :  { %v10512_v46 = vadd.f32 %v4209_v6, %v10399_v24 }
 0x5b9   :  { %v4211_v36 = vpop.f32.mrf.mxu3 }
 0x5ba   :  { %v10515_v60 = vadd.f32 %v4211_v36, %v10409_v33 }
 0x5be   :  { %7831 = vmatmul.msk.bf16.gmra.mxu3 %vm117_vm2, %v10187_v2 }
 0x5c1   :  { %v4214_v52 = vpop.f32.mrf.mxu3 }
 0x5c2   :  { %v10520_v20 = vadd.f32 %v4214_v52, %v10415_v50 }
 0x5c9   :  { %v4216_v15 = vpop.f32.mrf.mxu3 }
 0x5ca   :  { %v10523_v44 = vadd.f32 %v4216_v15, %v10424_v59  ;;  %v8185_v15 = vld [vmem:[#allocation7 + $0x1e0] sm:$0xff] }
 0x5cb   :  { %5263 = vmatpush.bf16.msra.mxu3 %v8185_v15 }
 0x5ce   :  { %7832 = vmatmul.msk.bf16.gmra.mxu3 %vm117_vm2, %v4669_v10 }
 0x5d1   :  { %v4219_v24 = vpop.f32.mrf.mxu3 }
 0x5d2   :  { %v10528_v33 = vadd.f32 %v4219_v24, %v10427_v3  ;;  %v10542_v3 = vpop.f32.mrf.mxu0 }
 0x5d9   :  { %v4221_v2 = vpop.f32.mrf.mxu3 }
 0x5da   :  { %v10531_v29 = vadd.f32 %v4221_v2, %v10437_v4  ;;  %v10547_v4 = vpop.f32.mrf.mxu1  ;;  %v4334_v14 = vpop.f32.mrf.mxu0 }
 0x5db   :  { %v4374_v24 = vadd.f32 %v4334_v14, %v10504_v40 }
 0x5de   :  { %7833 = vmatmul.msk.bf16.gmra.mxu3 %vm117_vm2, %v10273_v42 }
 0x5e1   :  { %v4224_v50 = vpop.f32.mrf.mxu3 }
 0x5e2   :  { %v10536_v59 = vadd.f32 %v4224_v50, %v10447_v22  ;;  %v4464_v22 = vpop.f32.mrf.mxu1  ;;  %v4336_v27 = vpop.f32.mrf.mxu0 }
 0x5e3   :  { %v4504_v50 = vadd.f32 %v4464_v22, %v4374_v24  ;;  %v4862_v24 = vld [vmem:[#allocation2 + $0x1] sm:$0xff] }
 0x5e9   :  { %v10538_v30 = vpop.f32.mrf.mxu3 }
 0x5ea   :  { %v4466_v55 = vpop.f32.mrf.mxu1  ;;  %v4339_v51 = vpop.f32.mrf.mxu0 }
 0x5eb   :  { %v4376_v14 = vadd.f32 %v4339_v51, %v10512_v46 }
 0x5ee   :  { %7834 = vmatmul.msk.bf16.gmra.mxu3 %vm117_vm2, %v10320_v53 }
 0x5f1   :  { %v4229_v43 = vpop.f32.mrf.mxu3 }
 0x5f2   :  { %v10545_v31 = vadd.f32 %v4229_v43, %v10467_v21  ;;  %v4596_v21 = vpop.f32.mrf.mxu2  ;;  %v4469_v6 = vpop.f32.mrf.mxu1  ;;  %v4634_v43 = vadd.f32 %v4594_v9, %v4504_v50 }
 0x5f3   :  { %v4341_v10 = vpop.f32.mrf.mxu0  ;;  %v4506_v50 = vadd.f32 %v4469_v6, %v4376_v14 }
 0x5f9   :  { %v10551_v42 = vpop.f32.mrf.mxu3 }
 0x5fa   :  { %v4599_v52 = vpop.f32.mrf.mxu2  ;;  %v4471_v57 = vpop.f32.mrf.mxu1 }
 0x5fb   :  { %v4344_v28 = vpop.f32.mrf.mxu0 }
 0x5fe   :  { %7835 = vmatmul.msk.bf16.gmra.mxu3 %vm117_vm2, %v10363_v19  ;;  %v8183_v19 = vld [vmem:[#allocation7 + $0x1d0] sm:$0xff] }
 0x5ff   :  { %5133 = vmatpush.bf16.msra.mxu2 %v8183_v19 }
 0x601   :  { %v4234_v37 = vpop.f32.mrf.mxu3 }
 0x602   :  { %v10555_v53 = vadd.f32 %v4234_v37, %v4126_v35  ;;  %v4601_v2 = vpop.f32.mrf.mxu2  ;;  %v10566_v37 = vld [vmem:[#allocation8 + $0x2] ss:$0 sm:$0xff]  ;;  %v4474_v19 = vpop.f32.mrf.mxu1 }
 0x603   :  { %v4346_v47 = vpop.f32.mrf.mxu0 }
 0x609   :  { %v10557_v7 = vpop.f32.mrf.mxu3 }
 0x60e   :  { %7836 = vmatmul.msk.bf16.gmra.mxu3 %vm117_vm2, %v4673_v49 }
 0x611   :  { %v4239_v35 = vpop.f32.mrf.mxu3 }
 0x612   :  { %v10561_v36 = vadd.f32 %v4239_v35, %v4128_v25  ;;  %v4375_v25 = vadd.f32 %v4336_v27, %v10507_v13  ;;  %v4604_v35 = vpop.f32.mrf.mxu2  ;;  %v4833_v13 = vld [vmem:[#allocation2] sm:$0xff] }
 0x613   :  { %v5061_v27 = vld [vmem:[#allocation2 + $0x2] sm:$0xff] }
 0x614   :  { %v4505_v11 = vadd.f32 %v4466_v55, %v4375_v25 }
 0x616   :  { %v4635_v15 = vadd.f32 %v4596_v21, %v4505_v11  ;;  %v4636_v21 = vadd.f32 %v4599_v52, %v4506_v50 }
 0x619   :  { %v10563_v18 = vpop.f32.mrf.mxu3 }
 0x61a   :  { %v4606_v11 = vpop.f32.mrf.mxu2 }
 0x621   :  { %v4724_v16 = vpop.f32.mrf.mxu3 }
 0x622   :  { %v4764_v61 = vadd.f32 %v4724_v16, %v4634_v43 }
 0x624   :  { %v4785_v49 = vadd.f32 %v10566_v37, %v4764_v61  ;;  %v4476_v61 = vpop.f32.mrf.mxu1 }
 0x626   :  { %v4801_v45 = vmax.f32 %v4785_v49, 0.0 }
 0x628   :  { %4817 = vst.msk [vmem:[#allocation2 + $0x11] sm:$0xff] %vm117_vm2, %v4801_v45 }
 0x629   :  { %v4726_v40 = vpop.f32.mrf.mxu3 }
 0x62a   :  { %v4765_v22 = vadd.f32 %v4726_v40, %v4635_v15  ;;  %v4377_v15 = vadd.f32 %v4341_v10, %v10515_v60  ;;  %v4378_v60 = vadd.f32 %v4344_v28, %v10520_v20 }
 0x62c   :  { %v4786_v9 = vadd.f32 %v10566_v37, %v4765_v22  ;;  %v4507_v40 = vadd.f32 %v4471_v57, %v4377_v15  ;;  %v4349_v22 = vpop.f32.mrf.mxu0  ;;  %v4479_v10 = vpop.f32.mrf.mxu1 }
 0x62e   :  { %v4802_v43 = vmax.f32 %v4786_v9, 0.0 }
 0x62f   :  { %v10573_v16 = vld [vmem:[#allocation2 + $0x11] sm:$0xff] }
 0x630   :  { %v4834_v55 = vld [vmem:[#allocation2 + $0x10] sm:$0xff]  ;;  %4818 = vst.msk [vmem:[#allocation2 + $0x21] sm:$0xff] %vm117_vm2, %v4802_v43  ;;  %v4878_v46 = vpack.c.bf16 %v10573_v16, %v4862_v24  ;;  %v4637_v24 = vadd.f32 %v4601_v2, %v4507_v40  ;;  %v4609_v43 = vpop.f32.mrf.mxu2  ;;  %v4379_v40 = vadd.f32 %v4346_v47, %v10523_v44 }
 0x631   :  { %v10575_v25 = vld [vmem:[#allocation2 + $0x12] sm:$0xff]  ;;  %v4849_v51 = vpack.c.bf16 %v4834_v55, %v4833_v13  ;;  %v4729_v45 = vpop.f32.mrf.mxu3 }
 0x632   :  { %v5077_v49 = vpack.c.bf16 %v10575_v25, %v5061_v27  ;;  %v4766_v6 = vadd.f32 %v4729_v45, %v4636_v21  ;;  %7845 = vmatmul.msk.bf16.vlgmr.msrb.gmra.mxu0 %vm117_vm2, %v4878_v46  ;;  %v4508_v46 = vadd.f32 %v4474_v19, %v4378_v60 }
 0x633   :  { %7861 = vmatmul.msk.bf16.vlgmr.msrb.gmra.mxu1 %vm117_vm2, %v4849_v51 }
 0x634   :  { %7877 = vmatmul.msk.bf16.vlgmr.msra.gmra.mxu2 %vm117_vm2, %v5077_v49  ;;  %v4787_v52 = vadd.f32 %v10566_v37, %v4766_v6  ;;  %v4638_v15 = vadd.f32 %v4604_v35, %v4508_v46  ;;  %v4351_v6 = vpop.f32.mrf.mxu0  ;;  %v4481_v35 = vpop.f32.mrf.mxu1 }
 0x636   :  { %v4803_v14 = vmax.f32 %v4787_v52, 0.0 }
 0x637   :  { %v5192_v9 = vld [vmem:[#allocation2 + $0x20] sm:$0xff] }
 0x638   :  { %4819 = vst.msk [vmem:[#allocation2 + $0x31] sm:$0xff] %vm117_vm2, %v4803_v14  ;;  %v5207_v13 = vpack.c.bf16 %v5192_v9, %v4834_v55  ;;  %v10589_v57 = vld [vmem:[#allocation2 + $0x21] sm:$0xff] }
 0x639   :  { %v4731_v27 = vpop.f32.mrf.mxu3  ;;  %v10591_v49 = vld [vmem:[#allocation2 + $0x22] sm:$0xff] }
 0x63a   :  { %v4767_v50 = vadd.f32 %v4731_v27, %v4637_v24  ;;  %7893 = vmatmul.msk.bf16.vlgmr.msra.gmra.mxu3 %vm117_vm2, %v5207_v13  ;;  %v4611_v24 = vpop.f32.mrf.mxu2  ;;  %v4509_v13 = vadd.f32 %v4476_v61, %v4379_v40 }
 0x63c   :  { %v4788_v21 = vadd.f32 %v10566_v37, %v4767_v50  ;;  %v4639_v50 = vadd.f32 %v4606_v11, %v4509_v13  ;;  %v4484_v56 = vpop.f32.mrf.mxu1 }
 0x63e   :  { %v4804_v51 = vmax.f32 %v4788_v21, 0.0  ;;  %v4380_v21 = vadd.f32 %v4349_v22, %v10528_v33 }
 0x63f   :  { %v10593_v2 = vld [vmem:[#allocation2 + $0x31] sm:$0xff] }
 0x640   :  { %v4836_v45 = vld [vmem:[#allocation2 + $0x30] sm:$0xff]  ;;  %4820 = vst.msk [vmem:[#allocation2 + $0x41] sm:$0xff] %vm117_vm2, %v4804_v51  ;;  %v10600_v20 = vpack.c.bf16 %v10593_v2, %v10589_v57  ;;  %v4354_v51 = vpop.f32.mrf.mxu0 }
 0x641   :  { %v10595_v55 = vld [vmem:[#allocation2 + $0x32] sm:$0xff]  ;;  %v10602_v28 = vpack.c.bf16 %v4836_v45, %v5192_v9  ;;  %v4734_v52 = vpop.f32.mrf.mxu3  ;;  %v4382_v1 = vadd.f32 %v4354_v51, %v10536_v59 }
 0x642   :  { %v10606_v19 = vpack.c.bf16 %v10595_v55, %v10591_v49  ;;  %v4768_v14 = vadd.f32 %v4734_v52, %v4638_v15  ;;  %7846 = vmatmul.msk.bf16.gmra.mxu0 %vm117_vm2, %v10600_v20  ;;  %v4510_v52 = vadd.f32 %v4479_v10, %v4380_v21  ;;  %v4614_v11 = vpop.f32.mrf.mxu2 }
 0x643   :  { %7862 = vmatmul.msk.bf16.gmra.mxu1 %vm117_vm2, %v10602_v28 }
 0x644   :  { %7878 = vmatmul.msk.bf16.gmra.mxu2 %vm117_vm2, %v10606_v19  ;;  %v4789_v9 = vadd.f32 %v10566_v37, %v4768_v14  ;;  %v4640_v33 = vadd.f32 %v4609_v43, %v4510_v52 }
 0x646   :  { %v4805_v27 = vmax.f32 %v4789_v9, 0.0 }
 0x647   :  { %v5194_v60 = vld [vmem:[#allocation2 + $0x40] sm:$0xff] }
 0x648   :  { %4821 = vst.msk [vmem:[#allocation2 + $0x51] sm:$0xff] %vm117_vm2, %v4805_v27  ;;  %v5208_v44 = vpack.c.bf16 %v5194_v60, %v4836_v45  ;;  %v10620_v38 = vld [vmem:[#allocation2 + $0x41] sm:$0xff] }
 0x649   :  { %v4736_v47 = vpop.f32.mrf.mxu3  ;;  %v10622_v61 = vld [vmem:[#allocation2 + $0x42] sm:$0xff] }
 0x64a   :  { %v4769_v46 = vadd.f32 %v4736_v47, %v4639_v50  ;;  %7894 = vmatmul.msk.bf16.gmra.mxu3 %vm117_vm2, %v5208_v44  ;;  %v4381_v50 = vadd.f32 %v4351_v6, %v10531_v29  ;;  %v3853_v47 = vadd.f32 %v10439_v26, %v10445_v48  ;;  %v4486_v6 = vpop.f32.mrf.mxu1 }
 0x64c   :  { %v4790_v15 = vadd.f32 %v10566_v37, %v4769_v46  ;;  %v4511_v21 = vadd.f32 %v4481_v35, %v4381_v50  ;;  %v3993_v62 = vadd.f32 %v10441_v5, %v3853_v47 }
 0x64e   :  { %v4806_v14 = vmax.f32 %v4790_v15, 0.0  ;;  %v4641_v29 = vadd.f32 %v4611_v24, %v4511_v21  ;;  %v4123_v26 = vadd.f32 %v10457_v32, %v3993_v62  ;;  %v4512_v24 = vadd.f32 %v4484_v56, %v4382_v1 }
 0x64f   :  { %v10624_v40 = vld [vmem:[#allocation2 + $0x51] sm:$0xff] }
 0x650   :  { %v4838_v45 = vld [vmem:[#allocation2 + $0x50] sm:$0xff]  ;;  %4822 = vst.msk [vmem:[#allocation2 + $0x61] sm:$0xff] %vm117_vm2, %v4806_v14  ;;  %v10631_v22 = vpack.c.bf16 %v10624_v40, %v10620_v38  ;;  %v4253_v35 = vadd.f32 %v10538_v30, %v4123_v26  ;;  %v4642_v47 = vadd.f32 %v4614_v11, %v4512_v24 }
 0x651   :  { %v10626_v9 = vld [vmem:[#allocation2 + $0x52] sm:$0xff]  ;;  %v10633_v10 = vpack.c.bf16 %v4838_v45, %v5194_v60  ;;  %v4739_v27 = vpop.f32.mrf.mxu3  ;;  %v4356_v60 = vpop.f32.mrf.mxu0 }
 0x652   :  { %v10637_v13 = vpack.c.bf16 %v10626_v9, %v10622_v61  ;;  %v4770_v44 = vadd.f32 %v4739_v27, %v4640_v33  ;;  %7847 = vmatmul.msk.bf16.gmra.mxu0 %vm117_vm2, %v10631_v22  ;;  %v8187_v14 = vld [vmem:[#allocation7 + $0x1f0] sm:$0xff]  ;;  %v4616_v33 = vpop.f32.mrf.mxu2  ;;  %v4383_v30 = vadd.f32 %v4356_v60, %v4253_v35 }
 0x653   :  { %7863 = vmatmul.msk.bf16.gmra.mxu1 %vm117_vm2, %v10633_v10  ;;  %5393 = vmatpush.bf16.msra.mxu0 %v8187_v14 }
 0x654   :  { %7879 = vmatmul.msk.bf16.gmra.mxu2 %vm117_vm2, %v10637_v13  ;;  %v4791_v43 = vadd.f32 %v10566_v37, %v4770_v44  ;;  %v4513_v14 = vadd.f32 %v4486_v6, %v4383_v30  ;;  %v4841_v30 = vld [vmem:[#allocation2 + $0xa0] sm:$0xff] }
 0x656   :  { %v4807_v46 = vmax.f32 %v4791_v43, 0.0 }
 0x657   :  { %v5196_v15 = vld [vmem:[#allocation2 + $0x60] sm:$0xff] }
 0x658   :  { %4823 = vst.msk [vmem:[#allocation2 + $0x71] sm:$0xff] %vm117_vm2, %v4807_v46  ;;  %v5209_v52 = vpack.c.bf16 %v5196_v15, %v4838_v45  ;;  %v10656_v45 = vld [vmem:[#allocation2 + $0x61] sm:$0xff]  ;;  %v4489_v46 = vpop.f32.mrf.mxu1 }
 0x659   :  { %v4741_v27 = vpop.f32.mrf.mxu3  ;;  %v10658_v43 = vld [vmem:[#allocation2 + $0x62] sm:$0xff]  ;;  %v4359_v21 = vpop.f32.mrf.mxu0 }
 0x65a   :  { %v4771_v44 = vadd.f32 %v4741_v27, %v4641_v29  ;;  %7895 = vmatmul.msk.bf16.gmra.mxu3 %vm117_vm2, %v5209_v52  ;;  %v4619_v11 = vpop.f32.mrf.mxu2  ;;  %v3858_v52 = vadd.f32 %v10459_v12, %v10465_v63 }
 0x65c   :  { %v4792_v48 = vadd.f32 %v10566_v37, %v4771_v44  ;;  %v4643_v44 = vadd.f32 %v4616_v33, %v4513_v14  ;;  %v3995_v24 = vadd.f32 %v10461_v23, %v3858_v52  ;;  %v4870_v33 = vld [vmem:[#allocation2 + $0xa1] sm:$0xff] }
 0x65e   :  { %v4808_v50 = vmax.f32 %v4792_v48, 0.0  ;;  %v4125_v12 = vadd.f32 %v10477_v34, %v3995_v24 }
 0x65f   :  { %v10660_v5 = vld [vmem:[#allocation2 + $0x71] sm:$0xff] }
 0x660   :  { %v4840_v59 = vld [vmem:[#allocation2 + $0x70] sm:$0xff]  ;;  %4824 = vst.msk [vmem:[#allocation2 + $0x81] sm:$0xff] %vm117_vm2, %v4808_v50  ;;  %v10667_v62 = vpack.c.bf16 %v10660_v5, %v10656_v45  ;;  %v4384_v50 = vadd.f32 %v4359_v21, %v10545_v31  ;;  %v4491_v63 = vpop.f32.mrf.mxu1 }
 0x661   :  { %v10662_v51 = vld [vmem:[#allocation2 + $0x72] sm:$0xff]  ;;  %v10669_v32 = vpack.c.bf16 %v4840_v59, %v5196_v15  ;;  %v4744_v56 = vpop.f32.mrf.mxu3  ;;  %v4361_v48 = vpop.f32.mrf.mxu0 }
 0x662   :  { %v10673_v1 = vpack.c.bf16 %v10662_v51, %v10658_v43  ;;  %v4772_v29 = vadd.f32 %v4744_v56, %v4642_v47  ;;  %7848 = vmatmul.msk.bf16.gmra.mxu0 %vm117_vm2, %v10667_v62  ;;  %v4621_v56 = vpop.f32.mrf.mxu2 }
 0x663   :  { %7864 = vmatmul.msk.bf16.gmra.mxu1 %vm117_vm2, %v10669_v32 }
 0x664   :  { %7880 = vmatmul.msk.bf16.gmra.mxu2 %vm117_vm2, %v10673_v1  ;;  %v4793_v15 = vadd.f32 %v10566_v37, %v4772_v29  ;;  %v5069_v29 = vld [vmem:[#allocation2 + $0xa2] sm:$0xff] }
 0x666   :  { %v4809_v27 = vmax.f32 %v4793_v15, 0.0  ;;  %v4514_v15 = vadd.f32 %v4489_v46, %v4384_v50 }
 0x667   :  { %v10684_v60 = vld [vmem:[#allocation2 + $0x80] sm:$0xff] }
 0x668   :  { %4825 = vst.msk [vmem:[#allocation2 + $0xb1] sm:$0xff] %vm117_vm2, %v4809_v27  ;;  %v5210_v26 = vpack.c.bf16 %v10684_v60, %v4840_v59  ;;  %v4255_v59 = vadd.f32 %v10551_v42, %v4125_v12  ;;  %v4644_v21 = vadd.f32 %v4619_v11, %v4514_v15  ;;  %v3863_v11 = vadd.f32 %v10479_v0, %v10485_v41  ;;  %v4494_v50 = vpop.f32.mrf.mxu1 }
 0x669   :  { %v4746_v35 = vpop.f32.mrf.mxu3  ;;  %v4364_v42 = vpop.f32.mrf.mxu0 }
 0x66a   :  { %v4773_v47 = vadd.f32 %v4746_v35, %v4643_v44  ;;  %7896 = vmatmul.msk.bf16.gmra.mxu3 %vm117_vm2, %v5210_v26  ;;  %v4385_v35 = vadd.f32 %v4361_v48, %v4255_v59  ;;  %v3997_v59 = vadd.f32 %v10483_v58, %v3863_v11  ;;  %v4386_v15 = vadd.f32 %v4364_v42, %v10555_v53 }
 0x66c   :  { %v4794_v6 = vadd.f32 %v10566_v37, %v4773_v47  ;;  %v4515_v47 = vadd.f32 %v4491_v63, %v4385_v35 }
 0x66e   :  { %v4810_v14 = vmax.f32 %v4794_v6, 0.0  ;;  %v4624_v6 = vpop.f32.mrf.mxu2 }
 0x66f   :  { %v10694_v27 = vld [vmem:[#allocation2 + $0xb1] sm:$0xff] }
 0x670   :  { %v4842_v23 = vld [vmem:[#allocation2 + $0xb0] sm:$0xff]  ;;  %4826 = vst.msk [vmem:[#allocation2 + $0xc1] sm:$0xff] %vm117_vm2, %v4810_v14  ;;  %v4882_v34 = vpack.c.bf16 %v10694_v27, %v4870_v33 }
 0x671   :  { %v10696_v31 = vld [vmem:[#allocation2 + $0xb2] sm:$0xff]  ;;  %v4853_v52 = vpack.c.bf16 %v4842_v23, %v4841_v30  ;;  %v4749_v26 = vpop.f32.mrf.mxu3  ;;  %v4645_v30 = vadd.f32 %v4621_v56, %v4515_v47  ;;  %v4366_v41 = vpop.f32.mrf.mxu0  ;;  %v8192_v47 = vld [vmem:[#allocation7 + $0x218] sm:$0xff] }
 0x672   :  { %v5081_v44 = vpack.c.bf16 %v10696_v31, %v5069_v29  ;;  %v4774_v24 = vadd.f32 %v4749_v26, %v4644_v21  ;;  %7849 = vmatmul.msk.bf16.gmra.mxu0 %vm117_vm2, %v4882_v34  ;;  %v4127_v21 = vadd.f32 %v10496_v39, %v3997_v59  ;;  %v4516_v34 = vadd.f32 %v4494_v50, %v4386_v15  ;;  %v4496_v26 = vpop.f32.mrf.mxu1 }
 0x673   :  { %7865 = vmatmul.msk.bf16.gmra.mxu1 %vm117_vm2, %v4853_v52  ;;  %5652 = vmatpush.bf16.msrb.mxu2 %v8192_v47 }
 0x674   :  { %7881 = vmatmul.msk.bf16.gmra.mxu2 %vm117_vm2, %v5081_v44  ;;  %v4795_v46 = vadd.f32 %v10566_v37, %v4774_v24  ;;  %v4257_v63 = vadd.f32 %v10557_v7, %v4127_v21  ;;  %v4646_v35 = vadd.f32 %v4624_v6, %v4516_v34  ;;  %v3868_v6 = vadd.f32 %v10542_v3, %v10499_v8  ;;  %v8190_v34 = vld [vmem:[#allocation7 + $0x208] sm:$0xff] }
 0x675   :  { %5522 = vmatpush.bf16.msra.mxu1 %v8190_v34  ;;  %v8193_v34 = vld [vmem:[#allocation7 + $0x220] sm:$0xff] }
 0x676   :  { %v4811_v12 = vmax.f32 %v4795_v46, 0.0  ;;  %v4626_v42 = vpop.f32.mrf.mxu2  ;;  %v4387_v11 = vadd.f32 %v4366_v41, %v4257_v63  ;;  %v8194_v63 = vld [vmem:[#allocation7 + $0x228] sm:$0xff] }
 0x677   :  { %v5200_v33 = vld [vmem:[#allocation2 + $0xc0] sm:$0xff]  ;;  %5782 = vmatpush.bf16.msrb.mxu3 %v8194_v63 }
 0x678   :  { %4827 = vst.msk [vmem:[#allocation2 + $0xd1] sm:$0xff] %vm117_vm2, %v4811_v12  ;;  %v5211_v48 = vpack.c.bf16 %v5200_v33, %v4842_v23  ;;  %v10714_v52 = vld [vmem:[#allocation2 + $0xc1] sm:$0xff] }
 0x679   :  { %v4751_v29 = vpop.f32.mrf.mxu3  ;;  %v10716_v23 = vld [vmem:[#allocation2 + $0xc2] sm:$0xff] }
 0x67a   :  { %v4775_v14 = vadd.f32 %v4751_v29, %v4645_v30  ;;  %7897 = vmatmul.msk.bf16.gmra.mxu3 %vm117_vm2, %v5211_v48  ;;  %v4369_v48 = vpop.f32.mrf.mxu0 }
 0x67b   :  { %5783 = vmatpush.bf16.msrb.mxu3 %v8193_v34 }
 0x67c   :  { %v4796_v0 = vadd.f32 %v10566_v37, %v4775_v14  ;;  %v4388_v14 = vadd.f32 %v4369_v48, %v10561_v36 }
 0x67e   :  { %v4812_v56 = vmax.f32 %v4796_v0, 0.0  ;;  %v3999_v0 = vadd.f32 %v10547_v4, %v3868_v6  ;;  %v4629_v8 = vpop.f32.mrf.mxu2 }
 0x67f   :  { %v10718_v44 = vld [vmem:[#allocation2 + $0xd1] sm:$0xff] }
 0x680   :  { %v4844_v58 = vld [vmem:[#allocation2 + $0xd0] sm:$0xff]  ;;  %4828 = vst.msk [vmem:[#allocation2 + $0xe1] sm:$0xff] %vm117_vm2, %v4812_v56  ;;  %v10725_v39 = vpack.c.bf16 %v10718_v44, %v10714_v52  ;;  %v4499_v56 = vpop.f32.mrf.mxu1  ;;  %v4129_v3 = vadd.f32 %v10549_v17, %v3999_v0 }
 0x681   :  { %v10720_v53 = vld [vmem:[#allocation2 + $0xd2] sm:$0xff]  ;;  %v10727_v7 = vpack.c.bf16 %v4844_v58, %v5200_v33  ;;  %v4754_v46 = vpop.f32.mrf.mxu3  ;;  %v4517_v33 = vadd.f32 %v4496_v26, %v4387_v11 }
 0x682   :  { %v10731_v24 = vpack.c.bf16 %v10720_v53, %v10716_v23  ;;  %v4776_v50 = vadd.f32 %v4754_v46, %v4646_v35  ;;  %7850 = vmatmul.msk.bf16.gmra.mxu0 %vm117_vm2, %v10725_v39  ;;  %v4518_v35 = vadd.f32 %v4499_v56, %v4388_v14  ;;  %v4259_v36 = vadd.f32 %v10563_v18, %v4129_v3  ;;  %v8189_v46 = vld [vmem:[#allocation7 + $0x200] sm:$0xff]  ;;  %v8191_v11 = vld [vmem:[#allocation7 + $0x210] sm:$0xff] }
 0x683   :  { %7866 = vmatmul.msk.bf16.gmra.mxu1 %vm117_vm2, %v10727_v7  ;;  %v4647_v59 = vadd.f32 %v4626_v42, %v4517_v33  ;;  %5653 = vmatpush.bf16.msrb.mxu2 %v8191_v11 }
 0x684   :  { %7882 = vmatmul.msk.bf16.gmra.mxu2 %vm117_vm2, %v10731_v24  ;;  %v4797_v12 = vadd.f32 %v10566_v37, %v4776_v50  ;;  %v4648_v50 = vadd.f32 %v4629_v8, %v4518_v35  ;;  %5523 = vmatpush.bf16.msra.mxu1 %v8189_v46 }
 0x686   :  { %v4813_v30 = vmax.f32 %v4797_v12, 0.0  ;;  %v4631_v0 = vpop.f32.mrf.mxu2 }
 0x687   :  { %v5202_v29 = vld [vmem:[#allocation2 + $0xe0] sm:$0xff] }
 0x688   :  { %4829 = vst.msk [vmem:[#allocation2 + $0xf1] sm:$0xff] %vm117_vm2, %v4813_v30  ;;  %v5212_v15 = vpack.c.bf16 %v5202_v29, %v4844_v58  ;;  %v10748_v58 = vld [vmem:[#allocation2 + $0xe1] sm:$0xff]  ;;  %v4371_v30 = vpop.f32.mrf.mxu0 }
 0x689   :  { %v4756_v21 = vpop.f32.mrf.mxu3  ;;  %v10751_v4 = vld [vmem:[#allocation2 + $0xe2] sm:$0xff] }
 0x68a   :  { %v4777_v41 = vadd.f32 %v4756_v21, %v4647_v59  ;;  %7898 = vmatmul.msk.bf16.gmra.mxu3 %vm117_vm2, %v5212_v15  ;;  %v4389_v59 = vadd.f32 %v4371_v30, %v4259_v36  ;;  %v4501_v21 = vpop.f32.mrf.mxu1 }
 0x68c   :  { %v4798_v26 = vadd.f32 %v10566_v37, %v4777_v41  ;;  %v4519_v41 = vadd.f32 %v4501_v21, %v4389_v59 }
 0x68e   :  { %v4814_v42 = vmax.f32 %v4798_v26, 0.0  ;;  %v4649_v8 = vadd.f32 %v4631_v0, %v4519_v41  ;;  %v5337_v41 = vpack.c.bf16 %v10589_v57, %v10573_v16 }
 0x68f   :  { %v10753_v47 = vld [vmem:[#allocation2 + $0xf1] sm:$0xff] }
 0x690   :  { %v4846_v12 = vld [vmem:[#allocation2 + $0xf0] sm:$0xff]  ;;  %4830 = vst.msk [vmem:[#allocation2 + $0x101] sm:$0xff] %vm117_vm2, %v4814_v42  ;;  %v10760_v17 = vpack.c.bf16 %v10753_v47, %v10748_v58 }
 0x691   :  { %v10755_v6 = vld [vmem:[#allocation2 + $0xf2] sm:$0xff]  ;;  %v10762_v33 = vpack.c.bf16 %v4846_v12, %v5202_v29  ;;  %v4759_v48 = vpop.f32.mrf.mxu3  ;;  %v8196_v29 = vld [vmem:[#allocation7 + $0x238] sm:$0xff] }
 0x692   :  { %v10766_v18 = vpack.c.bf16 %v10755_v6, %v10751_v4  ;;  %v4778_v15 = vadd.f32 %v4759_v48, %v4648_v50  ;;  %7851 = vmatmul.msk.bf16.gmra.mxu0 %vm117_vm2, %v10760_v17 }
 0x693   :  { %7867 = vmatmul.msk.bf16.gmra.mxu1 %vm117_vm2, %v10762_v33  ;;  %5912 = vmatpush.bf16.msrb.mxu0 %v8196_v29 }
 0x694   :  { %7883 = vmatmul.msk.bf16.gmra.mxu2 %vm117_vm2, %v10766_v18  ;;  %v4799_v14 = vadd.f32 %v10566_v37, %v4778_v15 }
 0x696   :  { %v4815_v63 = vmax.f32 %v4799_v14, 0.0 }
 0x697   :  { %v5204_v56 = vld [vmem:[#allocation2 + $0x100] sm:$0xff] }
 0x698   :  { %4831 = vst.msk [vmem:[#allocation2 + $0x111] sm:$0xff] %vm117_vm2, %v4815_v63  ;;  %v5213_v3 = vpack.c.bf16 %v5204_v56, %v4846_v12  ;;  %v10778_v46 = vld [vmem:[#allocation2 + $0x101] sm:$0xff]  ;;  %v5467_v63 = vpack.c.bf16 %v10591_v49, %v10575_v25 }
 0x699   :  { %v4761_v26 = vpop.f32.mrf.mxu3  ;;  %v10780_v11 = vld [vmem:[#allocation2 + $0x102] sm:$0xff] }
 0x69a   :  { %v4779_v35 = vadd.f32 %v4761_v26, %v4649_v8  ;;  %7899 = vmatmul.msk.bf16.gmra.mxu3 %vm117_vm2, %v5213_v3 }
 0x69c   :  { %v4800_v36 = vadd.f32 %v10566_v37, %v4779_v35 }
 0x69e   :  { %v4816_v42 = vmax.f32 %v4800_v36, 0.0 }
 0x69f   :  { %v10782_v50 = vld [vmem:[#allocation2 + $0x111] sm:$0xff] }
 0x6a0   :  { %v4848_v30 = vld [vmem:[#allocation2 + $0x110] sm:$0xff]  ;;  %4832 = vst.msk [vmem:[#allocation2 + $0x121] sm:$0xff] %vm117_vm2, %v4816_v42  ;;  %v10789_v12 = vpack.c.bf16 %v10782_v50, %v10778_v46 }
 0x6a1   :  { %v10784_v48 = vld [vmem:[#allocation2 + $0x112] sm:$0xff]  ;;  %v10791_v59 = vpack.c.bf16 %v4848_v30, %v5204_v56 }
 0x6a2   :  { %v10795_v37 = vpack.c.bf16 %v10784_v48, %v10780_v11  ;;  %7852 = vmatmul.msk.bf16.gmra.mxu0 %vm117_vm2, %v10789_v12 }
 0x6a3   :  { %7868 = vmatmul.msk.bf16.gmra.mxu1 %vm117_vm2, %v10791_v59 }
 0x6a4   :  { %7884 = vmatmul.msk.bf16.gmra.mxu2 %vm117_vm2, %v10795_v37 }
 0x6a7   :  { %v10803_v15 = vld [vmem:[#allocation2 + $0x120] sm:$0xff] }
 0x6a8   :  { %v5214_v29 = vpack.c.bf16 %v10803_v15, %v4848_v30  ;;  %v5338_v30 = vpack.c.bf16 %v10620_v38, %v10593_v2 }
 0x6aa   :  { %7900 = vmatmul.msk.bf16.gmra.mxu3 %vm117_vm2, %v5214_v29 }
 0x6af   :  { %v4936_v14 = vpop.f32.mrf.mxu0 }
 0x6b0   :  { %v5021_v21 = vpop.f32.mrf.mxu1 }
 0x6b1   :  { %v5022_v0 = vadd.f32 %v5021_v21, %v4936_v14 }
 0x6b2   :  { %7909 = vmatmul.msk.bf16.vlgmr.msra.gmra.mxu0 %vm117_vm2, %v5337_v41 }
 0x6b3   :  { %7925 = vmatmul.msk.bf16.vlgmr.msra.gmra.mxu1 %vm117_vm2, %v5467_v63 }
 0x6b4   :  { %7941 = vmatmul.msk.bf16.vlgmr.msrb.gmra.mxu2 %vm117_vm2, %v10602_v28  ;;  %v5468_v28 = vpack.c.bf16 %v10622_v61, %v10595_v55 }
 0x6b7   :  { %v5135_v34 = vpop.f32.mrf.mxu2  ;;  %v4938_v8 = vpop.f32.mrf.mxu0 }
 0x6b8   :  { %v5175_v56 = vadd.f32 %v5135_v34, %v5022_v0  ;;  %v5023_v3 = vpop.f32.mrf.mxu1 }
 0x6b9   :  { %v5024_v26 = vadd.f32 %v5023_v3, %v4938_v8  ;;  %v5469_v3 = vpack.c.bf16 %v10658_v43, %v10626_v9  ;;  %v10845_v43 = vld [vmem:[#allocation2 + $0x82] sm:$0xff] }
 0x6ba   :  { %7957 = vmatmul.msk.bf16.vlgmr.msrb.gmra.mxu3 %vm117_vm2, %v10600_v20 }
 0x6bd   :  { %v5265_v35 = vpop.f32.mrf.mxu3 }
 0x6be   :  { %v10817_v57 = vadd.f32 %v5265_v35, %v5175_v56 }
 0x6bf   :  { %v5137_v16 = vpop.f32.mrf.mxu2  ;;  %v4941_v49 = vpop.f32.mrf.mxu0 }
 0x6c0   :  { %v5176_v25 = vadd.f32 %v5137_v16, %v5024_v26  ;;  %v5026_v36 = vpop.f32.mrf.mxu1 }
 0x6c1   :  { %v5027_v42 = vadd.f32 %v5026_v36, %v4941_v49 }
 0x6c2   :  { %7910 = vmatmul.msk.bf16.gmra.mxu0 %vm117_vm2, %v5338_v30 }
 0x6c3   :  { %7926 = vmatmul.msk.bf16.gmra.mxu1 %vm117_vm2, %v5468_v28 }
 0x6c4   :  { %7942 = vmatmul.msk.bf16.gmra.mxu2 %vm117_vm2, %v10633_v10  ;;  %v5339_v10 = vpack.c.bf16 %v10656_v45, %v10624_v40  ;;  %v5328_v45 = vld [vmem:[#allocation2 + $0x81] sm:$0xff] }
 0x6c5   :  { %v5267_v20 = vpop.f32.mrf.mxu3 }
 0x6c6   :  { %v10827_v14 = vadd.f32 %v5267_v20, %v5176_v25 }
 0x6c7   :  { %v5140_v29 = vpop.f32.mrf.mxu2  ;;  %v4943_v0 = vpop.f32.mrf.mxu0 }
 0x6c8   :  { %v5177_v21 = vadd.f32 %v5140_v29, %v5027_v42  ;;  %v5028_v41 = vpop.f32.mrf.mxu1 }
 0x6c9   :  { %v5029_v63 = vadd.f32 %v5028_v41, %v4943_v0  ;;  %v5340_v0 = vpack.c.bf16 %v5328_v45, %v10660_v5  ;;  %v5470_v41 = vpack.c.bf16 %v10845_v43, %v10662_v51 }
 0x6ca   :  { %7958 = vmatmul.msk.bf16.gmra.mxu3 %vm117_vm2, %v10631_v22  ;;  %v8195_v22 = vld [vmem:[#allocation7 + $0x230] sm:$0xff] }
 0x6cb   :  { %5913 = vmatpush.bf16.msrb.mxu0 %v8195_v22 }
 0x6cd   :  { %v5270_v38 = vpop.f32.mrf.mxu3 }
 0x6ce   :  { %v10831_v55 = vadd.f32 %v5270_v38, %v5177_v21  ;;  %v5718_v38 = vld [vmem:[#allocation2 + $0x91] sm:$0xff] }
 0x6cf   :  { %v5142_v2 = vpop.f32.mrf.mxu2  ;;  %v4946_v34 = vpop.f32.mrf.mxu0 }
 0x6d0   :  { %v5178_v61 = vadd.f32 %v5142_v2, %v5029_v63  ;;  %v5031_v56 = vpop.f32.mrf.mxu1 }
 0x6d1   :  { %v5032_v8 = vadd.f32 %v5031_v56, %v4946_v34 }
 0x6d2   :  { %7911 = vmatmul.msk.bf16.gmra.mxu0 %vm117_vm2, %v5339_v10  ;;  %v5730_v10 = vpack.c.bf16 %v5718_v38, %v5328_v45 }
 0x6d3   :  { %7927 = vmatmul.msk.bf16.gmra.mxu1 %vm117_vm2, %v5469_v3 }
 0x6d4   :  { %7943 = vmatmul.msk.bf16.gmra.mxu2 %vm117_vm2, %v10669_v32  ;;  %v5588_v32 = vld [vmem:[#allocation2 + $0x90] sm:$0xff] }
 0x6d5   :  { %v5272_v26 = vpop.f32.mrf.mxu3  ;;  %v5600_v63 = vpack.c.bf16 %v5588_v32, %v10684_v60 }
 0x6d6   :  { %v10841_v16 = vadd.f32 %v5272_v26, %v5178_v61 }
 0x6d7   :  { %v5145_v35 = vpop.f32.mrf.mxu2  ;;  %v4948_v49 = vpop.f32.mrf.mxu0 }
 0x6d8   :  { %v5179_v25 = vadd.f32 %v5145_v35, %v5032_v8  ;;  %v5033_v36 = vpop.f32.mrf.mxu1 }
 0x6d9   :  { %v5034_v40 = vadd.f32 %v5033_v36, %v4948_v49  ;;  %v5341_v49 = vpack.c.bf16 %v10714_v52, %v10694_v27  ;;  %v5471_v36 = vpack.c.bf16 %v10716_v23, %v10696_v31 }
 0x6da   :  { %7959 = vmatmul.msk.bf16.gmra.mxu3 %vm117_vm2, %v10667_v62 }
 0x6dd   :  { %v5275_v9 = vpop.f32.mrf.mxu3 }
 0x6de   :  { %v10847_v30 = vadd.f32 %v5275_v9, %v5179_v25 }
 0x6df   :  { %v5147_v42 = vpop.f32.mrf.mxu2  ;;  %v4951_v20 = vpop.f32.mrf.mxu0 }
 0x6e0   :  { %v5180_v28 = vadd.f32 %v5147_v42, %v5034_v40  ;;  %v5036_v29 = vpop.f32.mrf.mxu1 }
 0x6e1   :  { %v5037_v21 = vadd.f32 %v5036_v29, %v4951_v20  ;;  %v5342_v29 = vpack.c.bf16 %v10748_v58, %v10718_v44 }
 0x6e2   :  { %7912 = vmatmul.msk.bf16.gmra.mxu0 %vm117_vm2, %v5340_v0 }
 0x6e3   :  { %7928 = vmatmul.msk.bf16.gmra.mxu1 %vm117_vm2, %v5470_v41 }
 0x6e4   :  { %7944 = vmatmul.msk.bf16.gmra.mxu2 %vm117_vm2, %v5600_v63 }
 0x6e5   :  { %v5277_v62 = vpop.f32.mrf.mxu3 }
 0x6e6   :  { %v10856_v61 = vadd.f32 %v5277_v62, %v5180_v28 }
 0x6e7   :  { %v5150_v2 = vpop.f32.mrf.mxu2  ;;  %v4953_v56 = vpop.f32.mrf.mxu0 }
 0x6e8   :  { %v5181_v34 = vadd.f32 %v5150_v2, %v5037_v21  ;;  %v5038_v8 = vpop.f32.mrf.mxu1  ;;  %v5472_v21 = vpack.c.bf16 %v10751_v4, %v10720_v53 }
 0x6e9   :  { %v5039_v5 = vadd.f32 %v5038_v8, %v4953_v56 }
 0x6ea   :  { %7960 = vmatmul.msk.bf16.gmra.mxu3 %vm117_vm2, %v5730_v10 }
 0x6ed   :  { %v5280_v51 = vpop.f32.mrf.mxu3 }
 0x6ee   :  { %v10859_v3 = vadd.f32 %v5280_v51, %v5181_v34  ;;  %v5473_v34 = vpack.c.bf16 %v10780_v11, %v10755_v6  ;;  %v5336_v6 = vld [vmem:[#allocation2 + $0x121] sm:$0xff] }
 0x6ef   :  { %v5152_v60 = vpop.f32.mrf.mxu2  ;;  %v4956_v26 = vpop.f32.mrf.mxu0 }
 0x6f0   :  { %v5182_v22 = vadd.f32 %v5152_v60, %v5039_v5  ;;  %v5041_v35 = vpop.f32.mrf.mxu1  ;;  %v5596_v60 = vld [vmem:[#allocation2 + $0x130] sm:$0xff] }
 0x6f1   :  { %v5042_v25 = vadd.f32 %v5041_v35, %v4956_v26  ;;  %v5344_v35 = vpack.c.bf16 %v5336_v6, %v10782_v50 }
 0x6f2   :  { %7913 = vmatmul.msk.bf16.gmra.mxu0 %vm117_vm2, %v5341_v49  ;;  %v5604_v49 = vpack.c.bf16 %v5596_v60, %v10803_v15 }
 0x6f3   :  { %7929 = vmatmul.msk.bf16.gmra.mxu1 %vm117_vm2, %v5471_v36 }
 0x6f4   :  { %7945 = vmatmul.msk.bf16.gmra.mxu2 %vm117_vm2, %v10727_v7 }
 0x6f5   :  { %v5282_v40 = vpop.f32.mrf.mxu3 }
 0x6f6   :  { %v10869_v45 = vadd.f32 %v5282_v40, %v5182_v22  ;;  %v5726_v40 = vld [vmem:[#allocation2 + $0x131] sm:$0xff] }
 0x6f7   :  { %v5155_v9 = vpop.f32.mrf.mxu2  ;;  %v10871_v32 = vpop.f32.mrf.mxu0  ;;  %v5734_v50 = vpack.c.bf16 %v5726_v40, %v5336_v6  ;;  %v8197_v40 = vld [vmem:[#allocation10] sm:$0xff] }
 0x6f8   :  { %v5183_v42 = vadd.f32 %v5155_v9, %v5042_v25  ;;  %v10873_v28 = vpop.f32.mrf.mxu1 }
 0x6fa   :  { %7961 = vmatmul.msk.bf16.gmra.mxu3 %vm117_vm2, %v10725_v39 }
 0x6fd   :  { %v5285_v27 = vpop.f32.mrf.mxu3 }
 0x6fe   :  { %v10879_v52 = vadd.f32 %v5285_v27, %v5183_v42 }
 0x6ff   :  { %v10877_v31 = vpop.f32.mrf.mxu2  ;;  %v4961_v23 = vpop.f32.mrf.mxu0 }
 0x700   :  { %v5046_v20 = vpop.f32.mrf.mxu1 }
 0x701   :  { %v5047_v7 = vadd.f32 %v5046_v20, %v4961_v23 }
 0x702   :  { %7914 = vmatmul.msk.bf16.gmra.mxu0 %vm117_vm2, %v5342_v29 }
 0x703   :  { %7930 = vmatmul.msk.bf16.gmra.mxu1 %vm117_vm2, %v5472_v21 }
 0x704   :  { %7946 = vmatmul.msk.bf16.gmra.mxu2 %vm117_vm2, %v10762_v33  ;;  %v5343_v33 = vpack.c.bf16 %v10778_v46, %v10753_v47  ;;  %v10917_v46 = vld [vmem:[#allocation2 + $0x122] sm:$0xff] }
 0x705   :  { %v10889_v39 = vpop.f32.mrf.mxu3  ;;  %v5474_v25 = vpack.c.bf16 %v10917_v46, %v10784_v48 }
 0x707   :  { %v5160_v0 = vpop.f32.mrf.mxu2  ;;  %v10891_v63 = vpop.f32.mrf.mxu0 }
 0x708   :  { %v5185_v41 = vadd.f32 %v5160_v0, %v5047_v7  ;;  %v10893_v62 = vpop.f32.mrf.mxu1 }
 0x70a   :  { %7962 = vmatmul.msk.bf16.gmra.mxu3 %vm117_vm2, %v10760_v17 }
 0x70d   :  { %v5290_v44 = vpop.f32.mrf.mxu3 }
 0x70e   :  { %v10899_v58 = vadd.f32 %v5290_v44, %v5185_v41 }
 0x70f   :  { %v10897_v53 = vpop.f32.mrf.mxu2  ;;  %v4966_v4 = vpop.f32.mrf.mxu0 }
 0x710   :  { %v5051_v38 = vpop.f32.mrf.mxu1 }
 0x711   :  { %v5052_v2 = vadd.f32 %v5051_v38, %v4966_v4 }
 0x712   :  { %7915 = vmatmul.msk.bf16.gmra.mxu0 %vm117_vm2, %v5343_v33 }
 0x713   :  { %7931 = vmatmul.msk.bf16.gmra.mxu1 %vm117_vm2, %v5473_v34 }
 0x714   :  { %7947 = vmatmul.msk.bf16.gmra.mxu2 %vm117_vm2, %v10791_v59 }
 0x715   :  { %v10909_v17 = vpop.f32.mrf.mxu3 }
 0x717   :  { %v5165_v56 = vpop.f32.mrf.mxu2  ;;  %v10911_v5 = vpop.f32.mrf.mxu0 }
 0x718   :  { %v5187_v8 = vadd.f32 %v5165_v56, %v5052_v2  ;;  %v10913_v10 = vpop.f32.mrf.mxu1 }
 0x71a   :  { %7963 = vmatmul.msk.bf16.gmra.mxu3 %vm117_vm2, %v10789_v12  ;;  %v8200_v12 = vld [vmem:[#allocation10 + $0x18] sm:$0xff] }
 0x71b   :  { %6139 = vmatpush.bf16.msrb.mxu1 %v8200_v12 }
 0x71d   :  { %v5295_v47 = vpop.f32.mrf.mxu3 }
 0x71e   :  { %v5317_v51 = vadd.f32 %v5295_v47, %v5187_v8 }
 0x71f   :  { %v10919_v11 = vpop.f32.mrf.mxu2  ;;  %v4971_v59 = vpop.f32.mrf.mxu0 }
 0x720   :  { %v5056_v22 = vpop.f32.mrf.mxu1 }
 0x721   :  { %v5057_v26 = vadd.f32 %v5056_v22, %v4971_v59 }
 0x722   :  { %7916 = vmatmul.msk.bf16.gmra.mxu0 %vm117_vm2, %v5344_v35 }
 0x723   :  { %7932 = vmatmul.msk.bf16.gmra.mxu1 %vm117_vm2, %v5474_v25  ;;  %v8198_v25 = vld [vmem:[#allocation10 + $0x8] sm:$0xff] }
 0x724   :  { %7948 = vmatmul.msk.bf16.gmra.mxu2 %vm117_vm2, %v5604_v49  ;;  %v5856_v49 = vld [vmem:[#allocation2 + $0x132] sm:$0xff] }
 0x725   :  { %v10928_v36 = vpop.f32.mrf.mxu3  ;;  %6224 = vmatpush.bf16.msra.mxu2 %v8198_v25 }
 0x727   :  { %v5170_v9 = vpop.f32.mrf.mxu2  ;;  %v10930_v27 = vpop.f32.mrf.mxu0 }
 0x728   :  { %v5189_v42 = vadd.f32 %v5170_v9, %v5057_v26  ;;  %v10972_v56 = vpop.f32.mrf.mxu1  ;;  %v8201_v9 = vld [vmem:[#allocation10 + $0x20] sm:$0xff] }
 0x729   :  { %6225 = vmatpush.bf16.msra.mxu2 %v8197_v40 }
 0x72a   :  { %7964 = vmatmul.msk.bf16.gmra.mxu3 %vm117_vm2, %v5734_v50 }
 0x72d   :  { %v5300_v48 = vpop.f32.mrf.mxu3 }
 0x72e   :  { %v5319_v15 = vadd.f32 %v5300_v48, %v5189_v42  ;;  %v5864_v48 = vpack.c.bf16 %v5856_v49, %v10917_v46  ;;  %v11685_v49 = vmax.f32 %v10028_v54, 0.0  ;;  %v6040_v54 = vld [vmem:[#allocation2] sm:$0xff] }
 0x72f   :  { %v5395_v23 = vpop.f32.mrf.mxu0  ;;  %v10977_v8 = vpop.f32.mrf.mxu2 }
 0x730   :  { %v10934_v20 = vadd.f32 %v5395_v23, %v10817_v57  ;;  %v5525_v47 = vpop.f32.mrf.mxu1  ;;  %v8204_v23 = vld [vmem:[#allocation10 + $0x38] sm:$0xff] }
 0x731   :  { %6468 = vmatpush.bf16.msra.mxu0 %v8204_v23  ;;  %v11686_v23 = vld [vmem:[#allocation17_spill] sm:$0xff] }
 0x732   :  { %7973 = vmatmul.msk.bf16.vlgmr.msrb.gmra.mxu0 %vm117_vm2, %v10606_v19 }
 0x737   :  { %v5397_v7 = vpop.f32.mrf.mxu0  ;;  %v5655_v6 = vpop.f32.mrf.mxu2 }
 0x738   :  { %v10939_v29 = vadd.f32 %v5397_v7, %v10827_v14  ;;  %v8203_v7 = vld [vmem:[#allocation10 + $0x30] sm:$0xff] }
 0x739   :  { %6469 = vmatpush.bf16.msra.mxu0 %v8203_v7  ;;  %v11687_v7 = vmax.f32 %v11686_v23, 0.0 }
 0x73f   :  { %v5400_v21 = vpop.f32.mrf.mxu0  ;;  %v5657_v22 = vpop.f32.mrf.mxu2 }
 0x740   :  { %v10942_v0 = vadd.f32 %v5400_v21, %v10831_v55  ;;  %v5848_v55 = vld [vmem:[#allocation2 + $0x92] sm:$0xff] }
 0x742   :  { %7974 = vmatmul.msk.bf16.gmra.mxu0 %vm117_vm2, %v10637_v13  ;;  %v5860_v13 = vpack.c.bf16 %v5848_v55, %v10845_v43  ;;  %v5565_v55 = vadd.f32 %v5525_v47, %v10934_v20 }
 0x747   :  { %v5402_v41 = vpop.f32.mrf.mxu0  ;;  %v5660_v42 = vpop.f32.mrf.mxu2 }
 0x748   :  { %v10947_v44 = vadd.f32 %v5402_v41, %v10841_v16  ;;  %v8199_v16 = vld [vmem:[#allocation10 + $0x10] sm:$0xff] }
 0x749   :  { %6140 = vmatpush.bf16.msrb.mxu1 %v8199_v16 }
 0x74f   :  { %v5405_v57 = vpop.f32.mrf.mxu0 }
 0x750   :  { %v10950_v4 = vadd.f32 %v5405_v57, %v10847_v30  ;;  %v8206_v57 = vld [vmem:[#allocation10 + $0x48] sm:$0xff] }
 0x751   :  { %6598 = vmatpush.bf16.msra.mxu1 %v8206_v57 }
 0x752   :  { %7975 = vmatmul.msk.bf16.gmra.mxu0 %vm117_vm2, %v10673_v1 }
 0x757   :  { %v5407_v19 = vpop.f32.mrf.mxu0 }
 0x758   :  { %v10955_v14 = vadd.f32 %v5407_v19, %v10856_v61  ;;  %v5662_v19 = vpop.f32.mrf.mxu2 }
 0x75f   :  { %v5410_v38 = vpop.f32.mrf.mxu0 }
 0x760   :  { %v10958_v2 = vadd.f32 %v5410_v38, %v10859_v3  ;;  %v5695_v38 = vadd.f32 %v5655_v6, %v5565_v55  ;;  %v5665_v25 = vpop.f32.mrf.mxu2  ;;  %v6068_v55 = vld [vmem:[#allocation2 + $0x1] sm:$0xff] }
 0x762   :  { %7976 = vmatmul.msk.bf16.gmra.mxu0 %vm117_vm2, %v5860_v13  ;;  %v10998_v13 = vld [vmem:[#allocation8 + $0x3] ss:$0 sm:$0xff] }
 0x767   :  { %v5412_v30 = vpop.f32.mrf.mxu0 }
 0x768   :  { %v10963_v33 = vadd.f32 %v5412_v30, %v10869_v45  ;;  %v10981_v45 = vpop.f32.mrf.mxu3 }
 0x76f   :  { %v5415_v1 = vpop.f32.mrf.mxu0 }
 0x770   :  { %v10966_v34 = vadd.f32 %v5415_v1, %v10879_v52 }
 0x772   :  { %7977 = vmatmul.msk.bf16.gmra.mxu0 %vm117_vm2, %v10731_v24  ;;  %v5785_v24 = vpop.f32.mrf.mxu3 }
 0x773   :  { %v5825_v46 = vadd.f32 %v5785_v24, %v5695_v38  ;;  %v6267_v38 = vld [vmem:[#allocation2 + $0x2] sm:$0xff] }
 0x777   :  { %v10970_v61 = vpop.f32.mrf.mxu0 }
 0x77a   :  { %v5787_v26 = vpop.f32.mrf.mxu3 }
 0x77f   :  { %v5420_v3 = vpop.f32.mrf.mxu0 }
 0x780   :  { %v10975_v43 = vadd.f32 %v5420_v3, %v10899_v58  ;;  %v5527_v58 = vpop.f32.mrf.mxu1 }
 0x781   :  { %v5566_v1 = vadd.f32 %v5527_v58, %v10939_v29 }
 0x782   :  { %7978 = vmatmul.msk.bf16.gmra.mxu0 %vm117_vm2, %v10766_v18  ;;  %v8202_v18 = vld [vmem:[#allocation10 + $0x28] sm:$0xff] }
 0x783   :  { %6338 = vmatpush.bf16.msra.mxu3 %v8202_v18  ;;  %v5696_v18 = vadd.f32 %v5657_v22, %v5566_v1  ;;  %v5667_v22 = vpop.f32.mrf.mxu2 }
 0x785   :  { %v5826_v20 = vadd.f32 %v5787_v26, %v5696_v18 }
 0x787   :  { %v10983_v52 = vpop.f32.mrf.mxu0  ;;  %6339 = vmatpush.bf16.msra.mxu3 %v8201_v9 }
 0x788   :  { %v5530_v12 = vpop.f32.mrf.mxu1 }
 0x789   :  { %v5567_v24 = vadd.f32 %v5530_v12, %v10942_v0 }
 0x78b   :  { %v5697_v29 = vadd.f32 %v5660_v42, %v5567_v24  ;;  %v5670_v23 = vpop.f32.mrf.mxu2 }
 0x78f   :  { %v5425_v60 = vpop.f32.mrf.mxu0 }
 0x790   :  { %v10985_v59 = vadd.f32 %v5425_v60, %v5317_v51  ;;  %v5532_v41 = vpop.f32.mrf.mxu1 }
 0x792   :  { %7979 = vmatmul.msk.bf16.gmra.mxu0 %vm117_vm2, %v10795_v37  ;;  %v5790_v37 = vpop.f32.mrf.mxu3 }
 0x797   :  { %v10989_v35 = vpop.f32.mrf.mxu0 }
 0x798   :  { %v5535_v3 = vpop.f32.mrf.mxu1 }
 0x79f   :  { %v5430_v50 = vpop.f32.mrf.mxu0 }
 0x7a0   :  { %v10991_v51 = vadd.f32 %v5430_v50, %v5319_v15  ;;  %v5792_v15 = vpop.f32.mrf.mxu3  ;;  %v5537_v58 = vpop.f32.mrf.mxu1 }
 0x7a2   :  { %7980 = vmatmul.msk.bf16.gmra.mxu0 %vm117_vm2, %v5864_v48 }
 0x7a7   :  { %v10995_v21 = vpop.f32.mrf.mxu0 }
 0x7a8   :  { %v5795_v9 = vpop.f32.mrf.mxu3 }
 0x7af   :  { %v5915_v16 = vpop.f32.mrf.mxu0 }
 0x7b0   :  { %v5955_v30 = vadd.f32 %v5915_v16, %v5825_v46  ;;  %v5827_v46 = vadd.f32 %v5790_v37, %v5697_v29  ;;  %v5797_v16 = vpop.f32.mrf.mxu3 }
 0x7b2   :  { %v5976_v60 = vadd.f32 %v10998_v13, %v5955_v30 }
 0x7b4   :  { %v5992_v40 = vadd.f32 %v5976_v60, %v11685_v49 }
 0x7b6   :  { %v6008_v47 = vmax.f32 %v5992_v40, 0.0  ;;  %v5568_v40 = vadd.f32 %v5532_v41, %v10947_v44 }
 0x7b7   :  { %v5917_v50 = vpop.f32.mrf.mxu0 }
 0x7b8   :  { %6024 = vst.msk [vmem:[#allocation2 + $0x11] sm:$0xff] %vm117_vm2, %v6008_v47  ;;  %v5956_v6 = vadd.f32 %v5917_v50, %v5826_v20  ;;  %v5698_v20 = vadd.f32 %v5662_v19, %v5568_v40  ;;  %v11688_v47 = vld [vmem:[#allocation18_spill] sm:$0xff] }
 0x7b9   :  { %v11689_v50 = vmax.f32 %v11688_v47, 0.0  ;;  %v8205_v19 = vld [vmem:[#allocation10 + $0x40] sm:$0xff] }
 0x7ba   :  { %v5977_v48 = vadd.f32 %v10998_v13, %v5956_v6  ;;  %v5828_v24 = vadd.f32 %v5792_v15, %v5698_v20  ;;  %v5800_v15 = vpop.f32.mrf.mxu3  ;;  %6599 = vmatpush.bf16.msra.mxu1 %v8205_v19 }
 0x7bc   :  { %v5993_v57 = vadd.f32 %v5977_v48, %v11687_v7  ;;  %v5540_v48 = vpop.f32.mrf.mxu1 }
 0x7be   :  { %v6009_v26 = vmax.f32 %v5993_v57, 0.0 }
 0x7bf   :  { %v5920_v30 = vpop.f32.mrf.mxu0  ;;  %v11009_v1 = vld [vmem:[#allocation2 + $0x11] sm:$0xff] }
 0x7c0   :  { %v6041_v60 = vld [vmem:[#allocation2 + $0x10] sm:$0xff]  ;;  %6025 = vst.msk [vmem:[#allocation2 + $0x21] sm:$0xff] %vm117_vm2, %v6009_v26  ;;  %v5957_v0 = vadd.f32 %v5920_v30, %v5827_v46  ;;  %v6084_v12 = vpack.c.bf16 %v11009_v1, %v6068_v55  ;;  %v5569_v46 = vadd.f32 %v5535_v3, %v10950_v4 }
 0x7c1   :  { %v11011_v18 = vld [vmem:[#allocation2 + $0x12] sm:$0xff]  ;;  %v6056_v42 = vpack.c.bf16 %v6041_v60, %v6040_v54 }
 0x7c2   :  { %v6283_v49 = vpack.c.bf16 %v11011_v18, %v6267_v38  ;;  %v5978_v37 = vadd.f32 %v10998_v13, %v5957_v0  ;;  %7989 = vmatmul.msk.bf16.vlgmr.msrb.gmra.mxu1 %vm117_vm2, %v6084_v12  ;;  %v5699_v30 = vadd.f32 %v5665_v25, %v5569_v46  ;;  %v11690_v0 = vld [vmem:[#allocation19_spill] sm:$0xff] }
 0x7c3   :  { %8005 = vmatmul.msk.bf16.vlgmr.msra.gmra.mxu2 %vm117_vm2, %v6056_v42  ;;  %v11691_v12 = vmax.f32 %v11690_v0, 0.0 }
 0x7c4   :  { %8021 = vmatmul.msk.bf16.vlgmr.msra.gmra.mxu3 %vm117_vm2, %v6283_v49  ;;  %v5994_v6 = vadd.f32 %v5978_v37, %v11689_v50  ;;  %v5829_v49 = vadd.f32 %v5795_v9, %v5699_v30  ;;  %v5542_v50 = vpop.f32.mrf.mxu1 }
 0x7c6   :  { %v6010_v29 = vmax.f32 %v5994_v6, 0.0  ;;  %v5672_v6 = vpop.f32.mrf.mxu2 }
 0x7c7   :  { %v5922_v7 = vpop.f32.mrf.mxu0  ;;  %v6398_v57 = vld [vmem:[#allocation2 + $0x20] sm:$0xff] }
 0x7c8   :  { %v11023_v55 = vld [vmem:[#allocation2 + $0x21] sm:$0xff]  ;;  %6026 = vst.msk [vmem:[#allocation2 + $0x31] sm:$0xff] %vm117_vm2, %v6010_v29  ;;  %v5958_v41 = vadd.f32 %v5922_v7, %v5828_v24  ;;  %v6413_v54 = vpack.c.bf16 %v6398_v57, %v6041_v60  ;;  %v5570_v24 = vadd.f32 %v5537_v58, %v10955_v14  ;;  %v5802_v7 = vpop.f32.mrf.mxu3 }
 0x7c9   :  { %v11025_v44 = vld [vmem:[#allocation2 + $0x22] sm:$0xff] }
 0x7ca   :  { %v5979_v26 = vadd.f32 %v10998_v13, %v5958_v41  ;;  %8037 = vmatmul.msk.bf16.vlgmr.msra.gmra.mxu0 %vm117_vm2, %v6413_v54  ;;  %v11692_v41 = vld [vmem:[#allocation20_spill] sm:$0xff] }
 0x7cb   :  { %v11693_v54 = vmax.f32 %v11692_v41, 0.0 }
 0x7cc   :  { %v5995_v42 = vadd.f32 %v5979_v26, %v11691_v12 }
 0x7ce   :  { %v6011_v40 = vmax.f32 %v5995_v42, 0.0 }
 0x7cf   :  { %v5925_v60 = vpop.f32.mrf.mxu0  ;;  %v11037_v37 = vld [vmem:[#allocation2 + $0x31] sm:$0xff] }
 0x7d0   :  { %v6043_v20 = vld [vmem:[#allocation2 + $0x30] sm:$0xff]  ;;  %6027 = vst.msk [vmem:[#allocation2 + $0x41] sm:$0xff] %vm117_vm2, %v6011_v40  ;;  %v5959_v4 = vadd.f32 %v5925_v60, %v5829_v49  ;;  %v11044_v3 = vpack.c.bf16 %v11037_v37, %v11023_v55  ;;  %v5571_v60 = vadd.f32 %v5540_v48, %v10958_v2 }
 0x7d1   :  { %v11039_v47 = vld [vmem:[#allocation2 + $0x32] sm:$0xff]  ;;  %v11046_v25 = vpack.c.bf16 %v6043_v20, %v6398_v57  ;;  %v5700_v57 = vadd.f32 %v5667_v22, %v5570_v24  ;;  %v5675_v24 = vpop.f32.mrf.mxu2 }
 0x7d2   :  { %v11050_v9 = vpack.c.bf16 %v11039_v47, %v11025_v44  ;;  %v5980_v29 = vadd.f32 %v10998_v13, %v5959_v4  ;;  %7990 = vmatmul.msk.bf16.gmra.mxu1 %vm117_vm2, %v11044_v3 }
 0x7d3   :  { %8006 = vmatmul.msk.bf16.gmra.mxu2 %vm117_vm2, %v11046_v25  ;;  %v5830_v26 = vadd.f32 %v5797_v16, %v5700_v57  ;;  %v5545_v16 = vpop.f32.mrf.mxu1  ;;  %v11694_v57 = vld [vmem:[#allocation21_spill] sm:$0xff] }
 0x7d4   :  { %8022 = vmatmul.msk.bf16.gmra.mxu3 %vm117_vm2, %v11050_v9  ;;  %v5996_v46 = vadd.f32 %v5980_v29, %v11693_v54  ;;  %v5701_v29 = vadd.f32 %v5670_v23, %v5571_v60  ;;  %v11695_v41 = vmax.f32 %v11694_v57, 0.0 }
 0x7d6   :  { %v6012_v30 = vmax.f32 %v5996_v46, 0.0  ;;  %v5805_v46 = vpop.f32.mrf.mxu3 }
 0x7d7   :  { %v5927_v0 = vpop.f32.mrf.mxu0  ;;  %v6400_v14 = vld [vmem:[#allocation2 + $0x40] sm:$0xff] }
 0x7d8   :  { %v11062_v58 = vld [vmem:[#allocation2 + $0x41] sm:$0xff]  ;;  %6028 = vst.msk [vmem:[#allocation2 + $0x51] sm:$0xff] %vm117_vm2, %v6012_v30  ;;  %v5960_v42 = vadd.f32 %v5927_v0, %v5830_v26  ;;  %v6414_v49 = vpack.c.bf16 %v6400_v14, %v6043_v20  ;;  %v5831_v20 = vadd.f32 %v5800_v15, %v5701_v29  ;;  %v5572_v15 = vadd.f32 %v5542_v50, %v10963_v33 }
 0x7d9   :  { %v11064_v12 = vld [vmem:[#allocation2 + $0x42] sm:$0xff]  ;;  %v5044_v33 = vadd.f32 %v10873_v28, %v10871_v32  ;;  %v5573_v28 = vadd.f32 %v5545_v16, %v10966_v34 }
 0x7da   :  { %v5981_v4 = vadd.f32 %v10998_v13, %v5960_v42  ;;  %8038 = vmatmul.msk.bf16.gmra.mxu0 %vm117_vm2, %v6414_v49  ;;  %v5702_v60 = vadd.f32 %v5672_v6, %v5572_v15 }
 0x7db   :  { %v5184_v32 = vadd.f32 %v10877_v31, %v5044_v33 }
 0x7dc   :  { %v5997_v54 = vadd.f32 %v5981_v4, %v11695_v41  ;;  %v11697_v4 = vld [vmem:[#allocation22_spill] sm:$0xff]  ;;  %v5677_v41 = vpop.f32.mrf.mxu2 }
 0x7dd   :  { %v11698_v29 = vmax.f32 %v11697_v4, 0.0  ;;  %v5314_v4 = vadd.f32 %v10889_v39, %v5184_v32 }
 0x7de   :  { %v6013_v26 = vmax.f32 %v5997_v54, 0.0  ;;  %v5832_v54 = vadd.f32 %v5802_v7, %v5702_v60  ;;  %v5807_v50 = vpop.f32.mrf.mxu3 }
 0x7df   :  { %v5930_v30 = vpop.f32.mrf.mxu0  ;;  %v11076_v0 = vld [vmem:[#allocation2 + $0x51] sm:$0xff] }
 0x7e0   :  { %v6045_v40 = vld [vmem:[#allocation2 + $0x50] sm:$0xff]  ;;  %6029 = vst.msk [vmem:[#allocation2 + $0x61] sm:$0xff] %vm117_vm2, %v6013_v26  ;;  %v5961_v2 = vadd.f32 %v5930_v30, %v5831_v20  ;;  %v11083_v48 = vpack.c.bf16 %v11076_v0, %v11062_v58 }
 0x7e1   :  { %v11078_v22 = vld [vmem:[#allocation2 + $0x52] sm:$0xff]  ;;  %v11085_v23 = vpack.c.bf16 %v6045_v40, %v6400_v14  ;;  %v5547_v14 = vpop.f32.mrf.mxu1 }
 0x7e2   :  { %v11089_v42 = vpack.c.bf16 %v11078_v22, %v11064_v12  ;;  %v5982_v49 = vadd.f32 %v10998_v13, %v5961_v2  ;;  %7991 = vmatmul.msk.bf16.gmra.mxu1 %vm117_vm2, %v11083_v48 }
 0x7e3   :  { %8007 = vmatmul.msk.bf16.gmra.mxu2 %vm117_vm2, %v11085_v23 }
 0x7e4   :  { %11696 = vst [vmem:[#allocation32_spill] sm:$0xff] %v11089_v42  ;;  %8023 = vmatmul.msk.bf16.gmra.mxu3 %vm117_vm2, %v11089_v42  ;;  %v5998_v57 = vadd.f32 %v5982_v49, %v11698_v29  ;;  %v5703_v29 = vadd.f32 %v5675_v24, %v5573_v28  ;;  %v5680_v42 = vpop.f32.mrf.mxu2 }
 0x7e6   :  { %v6014_v20 = vmax.f32 %v5998_v57, 0.0 }
 0x7e7   :  { %v5932_v26 = vpop.f32.mrf.mxu0  ;;  %v6402_v30 = vld [vmem:[#allocation2 + $0x60] sm:$0xff] }
 0x7e8   :  { %v11103_v2 = vld [vmem:[#allocation2 + $0x61] sm:$0xff]  ;;  %6030 = vst.msk [vmem:[#allocation2 + $0x71] sm:$0xff] %vm117_vm2, %v6014_v20  ;;  %v5962_v6 = vadd.f32 %v5932_v26, %v5832_v54  ;;  %v6415_v15 = vpack.c.bf16 %v6402_v30, %v6045_v40  ;;  %v11699_v40 = vld [vmem:[#allocation23_spill] sm:$0xff]  ;;  %v5444_v20 = vadd.f32 %v10970_v61, %v5314_v4  ;;  %v5833_v26 = vadd.f32 %v5805_v46, %v5703_v29  ;;  %v5810_v46 = vpop.f32.mrf.mxu3 }
 0x7e9   :  { %v11105_v38 = vld [vmem:[#allocation2 + $0x62] sm:$0xff]  ;;  %v11700_v57 = vmax.f32 %v11699_v40, 0.0  ;;  %v5550_v49 = vpop.f32.mrf.mxu1 }
 0x7ea   :  { %v5983_v60 = vadd.f32 %v10998_v13, %v5962_v6  ;;  %8039 = vmatmul.msk.bf16.gmra.mxu0 %vm117_vm2, %v6415_v15  ;;  %v5574_v6 = vadd.f32 %v5547_v14, %v5444_v20  ;;  %v5049_v14 = vadd.f32 %v10893_v62, %v10891_v63  ;;  %v11703_v63 = vld [vmem:[#allocation25_spill] sm:$0xff] }
 0x7eb   :  { %v11704_v62 = vmax.f32 %v11703_v63, 0.0 }
 0x7ec   :  { %v5999_v54 = vadd.f32 %v5983_v60, %v11700_v57 }
 0x7ee   :  { %v6015_v7 = vmax.f32 %v5999_v54, 0.0 }
 0x7ef   :  { %v5935_v31 = vpop.f32.mrf.mxu0  ;;  %v11120_v33 = vld [vmem:[#allocation2 + $0x71] sm:$0xff] }
 0x7f0   :  { %v6047_v34 = vld [vmem:[#allocation2 + $0x70] sm:$0xff]  ;;  %6031 = vst.msk [vmem:[#allocation2 + $0x81] sm:$0xff] %vm117_vm2, %v6015_v7  ;;  %v5963_v19 = vadd.f32 %v5935_v31, %v5833_v26  ;;  %v11127_v39 = vpack.c.bf16 %v11120_v33, %v11103_v2  ;;  %v5704_v7 = vadd.f32 %v5677_v41, %v5574_v6  ;;  %v5682_v26 = vpop.f32.mrf.mxu2  ;;  %v5186_v41 = vadd.f32 %v10897_v53, %v5049_v14 }
 0x7f1   :  { %v11122_v16 = vld [vmem:[#allocation2 + $0x72] sm:$0xff]  ;;  %v11129_v24 = vpack.c.bf16 %v6047_v34, %v6402_v30  ;;  %v5552_v57 = vpop.f32.mrf.mxu1  ;;  %v5575_v31 = vadd.f32 %v5550_v49, %v10975_v43 }
 0x7f2   :  { %v11133_v61 = vpack.c.bf16 %v11122_v16, %v11105_v38  ;;  %v5984_v15 = vadd.f32 %v10998_v13, %v5963_v19  ;;  %7992 = vmatmul.msk.bf16.gmra.mxu1 %vm117_vm2, %v11127_v39  ;;  %v11701_v30 = vld [vmem:[#allocation24_spill] sm:$0xff]  ;;  %v5834_v60 = vadd.f32 %v5807_v50, %v5704_v7  ;;  %v5812_v19 = vpop.f32.mrf.mxu3  ;;  %v5316_v6 = vadd.f32 %v10909_v17, %v5186_v41 }
 0x7f3   :  { %8008 = vmatmul.msk.bf16.gmra.mxu2 %vm117_vm2, %v11129_v24  ;;  %v11702_v32 = vmax.f32 %v11701_v30, 0.0  ;;  %v6076_v30 = vld [vmem:[#allocation2 + $0xa1] sm:$0xff] }
 0x7f4   :  { %8024 = vmatmul.msk.bf16.gmra.mxu3 %vm117_vm2, %v11133_v61 }
 0x7f5   :  { %v6000_v28 = vadd.f32 %v5984_v15, %v11702_v32  ;;  %v5705_v15 = vadd.f32 %v5680_v42, %v5575_v31  ;;  %v6048_v32 = vld [vmem:[#allocation2 + $0xa0] sm:$0xff] }
 0x7f7   :  { %v6016_v4 = vmax.f32 %v6000_v28, 0.0  ;;  %v5937_v29 = vpop.f32.mrf.mxu0  ;;  %v11144_v40 = vld [vmem:[#allocation2 + $0x80] sm:$0xff] }
 0x7f8   :  { %v5964_v54 = vadd.f32 %v5937_v29, %v5834_v60  ;;  %v6416_v20 = vpack.c.bf16 %v11144_v40, %v6047_v34  ;;  %v6275_v28 = vld [vmem:[#allocation2 + $0xa2] sm:$0xff]  ;;  %v5446_v34 = vadd.f32 %v10983_v52, %v5316_v6  ;;  %v5835_v60 = vadd.f32 %v5810_v46, %v5705_v15  ;;  %v5685_v46 = vpop.f32.mrf.mxu2 }
 0x7f9   :  { %6032 = vst.msk [vmem:[#allocation2 + $0xb1] sm:$0xff] %vm117_vm2, %v6016_v4  ;;  %v5555_v41 = vpop.f32.mrf.mxu1 }
 0x7fa   :  { %v5985_v50 = vadd.f32 %v10998_v13, %v5964_v54  ;;  %8040 = vmatmul.msk.bf16.gmra.mxu0 %vm117_vm2, %v6416_v20  ;;  %v5576_v20 = vadd.f32 %v5552_v57, %v5446_v34  ;;  %v5815_v63 = vpop.f32.mrf.mxu3  ;;  %v5054_v57 = vadd.f32 %v10913_v10, %v10911_v5  ;;  %v5577_v5 = vadd.f32 %v5555_v41, %v10985_v59 }
 0x7fc   :  { %v6001_v7 = vadd.f32 %v5985_v50, %v11704_v62  ;;  %v5706_v31 = vadd.f32 %v5682_v26, %v5576_v20  ;;  %v11705_v50 = vld [vmem:[#allocation26_spill] sm:$0xff] }
 0x7fd   :  { %v11706_v6 = vmax.f32 %v11705_v50, 0.0 }
 0x7fe   :  { %v6017_v53 = vmax.f32 %v6001_v7, 0.0  ;;  %v5836_v62 = vadd.f32 %v5812_v19, %v5706_v31 }
 0x7ff   :  { %v5940_v4 = vpop.f32.mrf.mxu0 }
 0x800   :  { %v11158_v43 = vld [vmem:[#allocation2 + $0xb1] sm:$0xff]  ;;  %6033 = vst.msk [vmem:[#allocation2 + $0xc1] sm:$0xff] %vm117_vm2, %v6017_v53  ;;  %v5965_v17 = vadd.f32 %v5940_v4, %v5835_v60  ;;  %v5188_v4 = vadd.f32 %v10919_v11, %v5054_v57 }
 0x801   :  { %v6049_v49 = vld [vmem:[#allocation2 + $0xb0] sm:$0xff]  ;;  %v6088_v42 = vpack.c.bf16 %v11158_v43, %v6076_v30 }
 0x802   :  { %v11160_v29 = vld [vmem:[#allocation2 + $0xb2] sm:$0xff]  ;;  %v6060_v14 = vpack.c.bf16 %v6049_v49, %v6048_v32  ;;  %v5986_v52 = vadd.f32 %v10998_v13, %v5965_v17  ;;  %v5318_v17 = vadd.f32 %v10928_v36, %v5188_v4 }
 0x803   :  { %v6287_v54 = vpack.c.bf16 %v11160_v29, %v6275_v28  ;;  %7993 = vmatmul.msk.bf16.gmra.mxu1 %vm117_vm2, %v6088_v42  ;;  %v5707_v42 = vadd.f32 %v5685_v46, %v5577_v5 }
 0x804   :  { %8009 = vmatmul.msk.bf16.gmra.mxu2 %vm117_vm2, %v6060_v14  ;;  %v6002_v15 = vadd.f32 %v5986_v52, %v11706_v6  ;;  %v5557_v14 = vpop.f32.mrf.mxu1  ;;  %v5687_v52 = vpop.f32.mrf.mxu2  ;;  %v5448_v31 = vadd.f32 %v10989_v35, %v5318_v17 }
 0x805   :  { %8025 = vmatmul.msk.bf16.gmra.mxu3 %vm117_vm2, %v6287_v54  ;;  %v11707_v54 = vld [vmem:[#allocation27_spill] sm:$0xff]  ;;  %v5837_v50 = vadd.f32 %v5815_v63, %v5707_v42 }
 0x806   :  { %v6018_v7 = vmax.f32 %v6002_v15, 0.0  ;;  %v5817_v15 = vpop.f32.mrf.mxu3  ;;  %v5578_v63 = vadd.f32 %v5557_v14, %v5448_v31  ;;  %v5059_v14 = vadd.f32 %v10972_v56, %v10930_v27 }
 0x807   :  { %v5942_v30 = vpop.f32.mrf.mxu0  ;;  %v6406_v32 = vld [vmem:[#allocation2 + $0xc0] sm:$0xff] }
 0x808   :  { %v11173_v28 = vld [vmem:[#allocation2 + $0xc1] sm:$0xff]  ;;  %6034 = vst.msk [vmem:[#allocation2 + $0xd1] sm:$0xff] %vm117_vm2, %v6018_v7  ;;  %v5966_v60 = vadd.f32 %v5942_v30, %v5836_v62  ;;  %v6417_v53 = vpack.c.bf16 %v6406_v32, %v6049_v49  ;;  %v11708_v49 = vmax.f32 %v11707_v54, 0.0  ;;  %v5190_v27 = vadd.f32 %v10977_v8, %v5059_v14 }
 0x809   :  { %v11175_v34 = vld [vmem:[#allocation2 + $0xc2] sm:$0xff]  ;;  %v6547_v26 = vpack.c.bf16 %v11173_v28, %v11158_v43 }
 0x80a   :  { %v6677_v19 = vpack.c.bf16 %v11175_v34, %v11160_v29  ;;  %v5987_v10 = vadd.f32 %v10998_v13, %v5966_v60  ;;  %8041 = vmatmul.msk.bf16.gmra.mxu0 %vm117_vm2, %v6417_v53  ;;  %v8208_v30 = vld [vmem:[#allocation10 + $0x58] sm:$0xff]  ;;  %v8210_v60 = vld [vmem:[#allocation10 + $0x68] sm:$0xff] }
 0x80b   :  { %v11709_v53 = vld [vmem:[#allocation28_spill] sm:$0xff]  ;;  %6728 = vmatpush.bf16.msrb.mxu2 %v8208_v30  ;;  %6858 = vmatpush.bf16.msrb.mxu3 %v8210_v60  ;;  %v11711_v60 = vld [vmem:[#allocation29_spill] sm:$0xff] }
 0x80c   :  { %v6003_v20 = vadd.f32 %v5987_v10, %v11708_v49  ;;  %v11710_v4 = vmax.f32 %v11709_v53, 0.0  ;;  %v5560_v10 = vpop.f32.mrf.mxu1  ;;  %v5690_v54 = vpop.f32.mrf.mxu2 }
 0x80d   :  { %v5579_v56 = vadd.f32 %v5560_v10, %v10991_v51 }
 0x80e   :  { %v6019_v6 = vmax.f32 %v6003_v20, 0.0 }
 0x80f   :  { %v5945_v11 = vpop.f32.mrf.mxu0  ;;  %v11190_v62 = vld [vmem:[#allocation2 + $0xd1] sm:$0xff]  ;;  %v5709_v30 = vadd.f32 %v5690_v54, %v5579_v56 }
 0x810   :  { %v6051_v59 = vld [vmem:[#allocation2 + $0xd0] sm:$0xff]  ;;  %6035 = vst.msk [vmem:[#allocation2 + $0xe1] sm:$0xff] %vm117_vm2, %v6019_v6  ;;  %v5967_v36 = vadd.f32 %v5945_v11, %v5837_v50  ;;  %v11197_v46 = vpack.c.bf16 %v11190_v62, %v11173_v28 }
 0x811   :  { %v11192_v41 = vld [vmem:[#allocation2 + $0xd2] sm:$0xff]  ;;  %v11199_v7 = vpack.c.bf16 %v6051_v59, %v6406_v32  ;;  %v5708_v32 = vadd.f32 %v5687_v52, %v5578_v63 }
 0x812   :  { %v11203_v35 = vpack.c.bf16 %v11192_v41, %v11175_v34  ;;  %v5988_v57 = vadd.f32 %v10998_v13, %v5967_v36  ;;  %v5820_v36 = vpop.f32.mrf.mxu3 }
 0x813   :  { %7994 = vmatmul.msk.bf16.gmra.mxu1 %vm117_vm2, %v11197_v46  ;;  %v5838_v17 = vadd.f32 %v5817_v15, %v5708_v32 }
 0x814   :  { %8010 = vmatmul.msk.bf16.gmra.mxu2 %vm117_vm2, %v11199_v7  ;;  %v6004_v5 = vadd.f32 %v5988_v57, %v11710_v4  ;;  %v5320_v57 = vadd.f32 %v10981_v45, %v5190_v27  ;;  %v5839_v4 = vadd.f32 %v5820_v36, %v5709_v30  ;;  %v5692_v36 = vpop.f32.mrf.mxu2  ;;  %v11713_v30 = vld [vmem:[#allocation30_spill] sm:$0xff] }
 0x815   :  { %8026 = vmatmul.msk.bf16.gmra.mxu3 %vm117_vm2, %v11203_v35 }
 0x816   :  { %v6020_v42 = vmax.f32 %v6004_v5, 0.0  ;;  %v5450_v53 = vadd.f32 %v10995_v21, %v5320_v57 }
 0x817   :  { %v5947_v49 = vpop.f32.mrf.mxu0  ;;  %v6408_v20 = vld [vmem:[#allocation2 + $0xe0] sm:$0xff] }
 0x818   :  { %v11216_v31 = vld [vmem:[#allocation2 + $0xe1] sm:$0xff]  ;;  %6036 = vst.msk [vmem:[#allocation2 + $0xf1] sm:$0xff] %vm117_vm2, %v6020_v42  ;;  %v5968_v52 = vadd.f32 %v5947_v49, %v5838_v17  ;;  %v6418_v6 = vpack.c.bf16 %v6408_v20, %v6051_v59  ;;  %v11712_v59 = vmax.f32 %v11711_v60, 0.0  ;;  %v8209_v42 = vld [vmem:[#allocation10 + $0x60] sm:$0xff]  ;;  %v11714_v60 = vmax.f32 %v11713_v30, 0.0 }
 0x819   :  { %v11218_v50 = vld [vmem:[#allocation2 + $0xe2] sm:$0xff]  ;;  %v6548_v11 = vpack.c.bf16 %v11216_v31, %v11190_v62  ;;  %v8207_v17 = vld [vmem:[#allocation10 + $0x50] sm:$0xff]  ;;  %6859 = vmatpush.bf16.msrb.mxu3 %v8209_v42 }
 0x81a   :  { %v6678_v15 = vpack.c.bf16 %v11218_v50, %v11192_v41  ;;  %v5989_v63 = vadd.f32 %v10998_v13, %v5968_v52  ;;  %8042 = vmatmul.msk.bf16.gmra.mxu0 %vm117_vm2, %v6418_v6  ;;  %v8212_v52 = vld [vmem:[#allocation10 + $0x78] sm:$0xff]  ;;  %v5562_v6 = vpop.f32.mrf.mxu1  ;;  %6729 = vmatpush.bf16.msrb.mxu2 %v8207_v17 }
 0x81b   :  { %v5580_v27 = vadd.f32 %v5562_v6, %v5450_v53  ;;  %6988 = vmatpush.bf16.msrb.mxu0 %v8212_v52 }
 0x81c   :  { %v6005_v32 = vadd.f32 %v5989_v63, %v11712_v59  ;;  %v8214_v63 = vld [vmem:[#allocation10 + $0x88] sm:$0xff] }
 0x81d   :  { %v5710_v57 = vadd.f32 %v5692_v36, %v5580_v27  ;;  %7118 = vmatpush.bf16.msrb.mxu1 %v8214_v63 }
 0x81e   :  { %v6021_v5 = vmax.f32 %v6005_v32, 0.0 }
 0x81f   :  { %v5950_v49 = vpop.f32.mrf.mxu0  ;;  %v11233_v8 = vld [vmem:[#allocation2 + $0xf1] sm:$0xff] }
 0x820   :  { %v6053_v51 = vld [vmem:[#allocation2 + $0xf0] sm:$0xff]  ;;  %6037 = vst.msk [vmem:[#allocation2 + $0x101] sm:$0xff] %vm117_vm2, %v6021_v5  ;;  %v5969_v14 = vadd.f32 %v5950_v49, %v5839_v4  ;;  %v11240_v45 = vpack.c.bf16 %v11233_v8, %v11216_v31  ;;  %v8211_v4 = vld [vmem:[#allocation10 + $0x70] sm:$0xff] }
 0x821   :  { %v11235_v10 = vld [vmem:[#allocation2 + $0xf2] sm:$0xff]  ;;  %v11242_v54 = vpack.c.bf16 %v6053_v51, %v6408_v20  ;;  %v5822_v20 = vpop.f32.mrf.mxu3  ;;  %6989 = vmatpush.bf16.msrb.mxu0 %v8211_v4 }
 0x822   :  { %v11246_v21 = vpack.c.bf16 %v11235_v10, %v11218_v50  ;;  %v5990_v56 = vadd.f32 %v10998_v13, %v5969_v14  ;;  %v5840_v32 = vadd.f32 %v5822_v20, %v5710_v57 }
 0x823   :  { %7995 = vmatmul.msk.bf16.gmra.mxu1 %vm117_vm2, %v11240_v45 }
 0x824   :  { %8011 = vmatmul.msk.bf16.gmra.mxu2 %vm117_vm2, %v11242_v54  ;;  %v6006_v59 = vadd.f32 %v5990_v56, %v11714_v60  ;;  %v11715_v56 = vld [vmem:[#allocation31_spill] sm:$0xff] }
 0x825   :  { %8027 = vmatmul.msk.bf16.gmra.mxu3 %vm117_vm2, %v11246_v21  ;;  %v11716_v20 = vmax.f32 %v11715_v56, 0.0 }
 0x826   :  { %v6022_v53 = vmax.f32 %v6006_v59, 0.0 }
 0x827   :  { %v5952_v5 = vpop.f32.mrf.mxu0  ;;  %v6410_v17 = vld [vmem:[#allocation2 + $0x100] sm:$0xff] }
 0x828   :  { %v11257_v42 = vld [vmem:[#allocation2 + $0x101] sm:$0xff]  ;;  %6038 = vst.msk [vmem:[#allocation2 + $0x111] sm:$0xff] %vm117_vm2, %v6022_v53  ;;  %v5970_v14 = vadd.f32 %v5952_v5, %v5840_v32  ;;  %v6419_v6 = vpack.c.bf16 %v6410_v17, %v6053_v51 }
 0x829   :  { %v11259_v49 = vld [vmem:[#allocation2 + $0x102] sm:$0xff]  ;;  %v6549_v52 = vpack.c.bf16 %v11257_v42, %v11233_v8 }
 0x82a   :  { %v6679_v36 = vpack.c.bf16 %v11259_v49, %v11235_v10  ;;  %v5991_v27 = vadd.f32 %v10998_v13, %v5970_v14  ;;  %8043 = vmatmul.msk.bf16.gmra.mxu0 %vm117_vm2, %v6419_v6  ;;  %v11718_v14 = vpack.c.bf16 %v11025_v44, %v11011_v18 }
 0x82c   :  { %v6007_v63 = vadd.f32 %v5991_v27, %v11716_v20 }
 0x82e   :  { %v6023_v57 = vmax.f32 %v6007_v63, 0.0 }
 0x82f   :  { %v11270_v30 = vld [vmem:[#allocation2 + $0x111] sm:$0xff] }
 0x830   :  { %v6055_v60 = vld [vmem:[#allocation2 + $0x110] sm:$0xff]  ;;  %6039 = vst.msk [vmem:[#allocation2 + $0x121] sm:$0xff] %vm117_vm2, %v6023_v57  ;;  %v11277_v51 = vpack.c.bf16 %v11270_v30, %v11257_v42 }
 0x831   :  { %v11272_v59 = vld [vmem:[#allocation2 + $0x112] sm:$0xff]  ;;  %v11279_v32 = vpack.c.bf16 %v6055_v60, %v6410_v17  ;;  %v11717_v17 = vpack.c.bf16 %v11023_v55, %v11009_v1 }
 0x832   :  { %v11283_v13 = vpack.c.bf16 %v11272_v59, %v11259_v49 }
 0x833   :  { %7996 = vmatmul.msk.bf16.gmra.mxu1 %vm117_vm2, %v11277_v51 }
 0x834   :  { %8012 = vmatmul.msk.bf16.gmra.mxu2 %vm117_vm2, %v11279_v32 }
 0x835   :  { %8028 = vmatmul.msk.bf16.gmra.mxu3 %vm117_vm2, %v11283_v13 }
 0x837   :  { %v11291_v53 = vld [vmem:[#allocation2 + $0x120] sm:$0xff] }
 0x838   :  { %v6420_v4 = vpack.c.bf16 %v11291_v53, %v6055_v60  ;;  %v6542_v42 = vld [vmem:[#allocation2 + $0x121] sm:$0xff] }
 0x83a   :  { %8044 = vmatmul.msk.bf16.gmra.mxu0 %vm117_vm2, %v6420_v4 }
 0x83f   :  { %v6142_v5 = vpop.f32.mrf.mxu1 }
 0x843   :  { %8053 = vmatmul.msk.bf16.vlgmr.msra.gmra.mxu1 %vm117_vm2, %v11717_v17 }
 0x844   :  { %8069 = vmatmul.msk.bf16.vlgmr.msrb.gmra.mxu2 %vm117_vm2, %v11718_v14 }
 0x845   :  { %8085 = vmatmul.msk.bf16.vlgmr.msrb.gmra.mxu3 %vm117_vm2, %v11046_v25  ;;  %v11719_v25 = vpack.c.bf16 %v11062_v58, %v11037_v37 }
 0x846   :  { %v6227_v6 = vpop.f32.mrf.mxu2 }
 0x847   :  { %v6228_v27 = vadd.f32 %v6227_v6, %v6142_v5  ;;  %v6341_v56 = vpop.f32.mrf.mxu3  ;;  %v6144_v20 = vpop.f32.mrf.mxu1  ;;  %v11720_v5 = vpack.c.bf16 %v11064_v12, %v11039_v47 }
 0x848   :  { %v6471_v63 = vpop.f32.mrf.mxu0 }
 0x849   :  { %v6381_v57 = vadd.f32 %v6341_v56, %v6228_v27 }
 0x84a   :  { %8101 = vmatmul.msk.bf16.vlgmr.msrb.gmra.mxu0 %vm117_vm2, %v11044_v3 }
 0x84b   :  { %v11305_v60 = vadd.f32 %v6471_v63, %v6381_v57 }
 0x84e   :  { %v6229_v1 = vpop.f32.mrf.mxu2 }
 0x84f   :  { %v6230_v55 = vadd.f32 %v6229_v1, %v6144_v20  ;;  %v6343_v4 = vpop.f32.mrf.mxu3  ;;  %v6147_v18 = vpop.f32.mrf.mxu1 }
 0x850   :  { %v6473_v44 = vpop.f32.mrf.mxu0 }
 0x851   :  { %v6382_v17 = vadd.f32 %v6343_v4, %v6230_v55 }
 0x853   :  { %v11309_v14 = vadd.f32 %v6473_v44, %v6382_v17  ;;  %8054 = vmatmul.msk.bf16.gmra.mxu1 %vm117_vm2, %v11719_v25 }
 0x854   :  { %8070 = vmatmul.msk.bf16.gmra.mxu2 %vm117_vm2, %v11720_v5 }
 0x855   :  { %8086 = vmatmul.msk.bf16.gmra.mxu3 %vm117_vm2, %v11085_v23  ;;  %v11721_v23 = vpack.c.bf16 %v11103_v2, %v11076_v0 }
 0x856   :  { %v6232_v3 = vpop.f32.mrf.mxu2 }
 0x857   :  { %v6233_v6 = vadd.f32 %v6232_v3, %v6147_v18  ;;  %v6346_v27 = vpop.f32.mrf.mxu3  ;;  %v6149_v56 = vpop.f32.mrf.mxu1  ;;  %v11722_v18 = vpack.c.bf16 %v11105_v38, %v11078_v22  ;;  %v6534_v38 = vld [vmem:[#allocation2 + $0x81] sm:$0xff] }
 0x858   :  { %v6476_v20 = vpop.f32.mrf.mxu0  ;;  %v11341_v22 = vld [vmem:[#allocation2 + $0x82] sm:$0xff] }
 0x859   :  { %v6383_v63 = vadd.f32 %v6346_v27, %v6233_v6 }
 0x85a   :  { %8102 = vmatmul.msk.bf16.gmra.mxu0 %vm117_vm2, %v11083_v48  ;;  %v8213_v48 = vld [vmem:[#allocation10 + $0x80] sm:$0xff] }
 0x85b   :  { %v11321_v57 = vadd.f32 %v6476_v20, %v6383_v63  ;;  %7119 = vmatpush.bf16.msrb.mxu1 %v8213_v48 }
 0x85e   :  { %v6234_v37 = vpop.f32.mrf.mxu2 }
 0x85f   :  { %v6235_v58 = vadd.f32 %v6234_v37, %v6149_v56  ;;  %v6348_v1 = vpop.f32.mrf.mxu3  ;;  %v6152_v47 = vpop.f32.mrf.mxu1 }
 0x860   :  { %v6478_v12 = vpop.f32.mrf.mxu0 }
 0x861   :  { %v6384_v55 = vadd.f32 %v6348_v1, %v6235_v58  ;;  %v6546_v58 = vpack.c.bf16 %v6534_v38, %v11120_v33  ;;  %v6676_v1 = vpack.c.bf16 %v11341_v22, %v11122_v16 }
 0x863   :  { %v11325_v4 = vadd.f32 %v6478_v12, %v6384_v55  ;;  %8055 = vmatmul.msk.bf16.gmra.mxu1 %vm117_vm2, %v11721_v23  ;;  %v6924_v55 = vld [vmem:[#allocation2 + $0x91] sm:$0xff] }
 0x864   :  { %8071 = vmatmul.msk.bf16.gmra.mxu2 %vm117_vm2, %v11722_v18 }
 0x865   :  { %8087 = vmatmul.msk.bf16.gmra.mxu3 %vm117_vm2, %v11129_v24  ;;  %v6794_v24 = vld [vmem:[#allocation2 + $0x90] sm:$0xff] }
 0x866   :  { %v6237_v44 = vpop.f32.mrf.mxu2 }
 0x867   :  { %v6238_v17 = vadd.f32 %v6237_v44, %v6152_v47  ;;  %v6351_v25 = vpop.f32.mrf.mxu3  ;;  %v6154_v5 = vpop.f32.mrf.mxu1  ;;  %v6806_v47 = vpack.c.bf16 %v6794_v24, %v11144_v40 }
 0x868   :  { %v6481_v3 = vpop.f32.mrf.mxu0 }
 0x869   :  { %v6385_v6 = vadd.f32 %v6351_v25, %v6238_v17  ;;  %v6936_v17 = vpack.c.bf16 %v6924_v55, %v6534_v38 }
 0x86a   :  { %8103 = vmatmul.msk.bf16.gmra.mxu0 %vm117_vm2, %v11127_v39 }
 0x86b   :  { %v11337_v27 = vadd.f32 %v6481_v3, %v6385_v6 }
 0x86e   :  { %v6239_v0 = vpop.f32.mrf.mxu2 }
 0x86f   :  { %v6240_v2 = vadd.f32 %v6239_v0, %v6154_v5  ;;  %v6353_v56 = vpop.f32.mrf.mxu3  ;;  %v6157_v20 = vpop.f32.mrf.mxu1 }
 0x870   :  { %v6483_v63 = vpop.f32.mrf.mxu0 }
 0x871   :  { %v6386_v37 = vadd.f32 %v6353_v56, %v6240_v2 }
 0x873   :  { %v11347_v12 = vadd.f32 %v6483_v63, %v6386_v37  ;;  %8056 = vmatmul.msk.bf16.gmra.mxu1 %vm117_vm2, %v6546_v58 }
 0x874   :  { %8072 = vmatmul.msk.bf16.gmra.mxu2 %vm117_vm2, %v6676_v1 }
 0x875   :  { %8088 = vmatmul.msk.bf16.gmra.mxu3 %vm117_vm2, %v6806_v47 }
 0x876   :  { %v6242_v39 = vpop.f32.mrf.mxu2 }
 0x877   :  { %v6243_v23 = vadd.f32 %v6242_v39, %v6157_v20  ;;  %v6356_v18 = vpop.f32.mrf.mxu3  ;;  %v6159_v48 = vpop.f32.mrf.mxu1 }
 0x878   :  { %v6486_v44 = vpop.f32.mrf.mxu0 }
 0x879   :  { %v6387_v33 = vadd.f32 %v6356_v18, %v6243_v23 }
 0x87a   :  { %8104 = vmatmul.msk.bf16.gmra.mxu0 %vm117_vm2, %v6936_v17 }
 0x87b   :  { %v11352_v25 = vadd.f32 %v6486_v44, %v6387_v33 }
 0x87e   :  { %v6244_v16 = vpop.f32.mrf.mxu2 }
 0x87f   :  { %v6245_v40 = vadd.f32 %v6244_v16, %v6159_v48  ;;  %v6358_v5 = vpop.f32.mrf.mxu3 }
 0x880   :  { %v6162_v3 = vpop.f32.mrf.mxu1  ;;  %v6488_v6 = vpop.f32.mrf.mxu0 }
 0x881   :  { %v6388_v0 = vadd.f32 %v6358_v5, %v6245_v40 }
 0x883   :  { %v11355_v2 = vadd.f32 %v6488_v6, %v6388_v0  ;;  %8057 = vmatmul.msk.bf16.gmra.mxu1 %vm117_vm2, %v6547_v26  ;;  %v6550_v6 = vpack.c.bf16 %v6542_v42, %v11270_v30 }
 0x884   :  { %8073 = vmatmul.msk.bf16.gmra.mxu2 %vm117_vm2, %v6677_v19 }
 0x885   :  { %8089 = vmatmul.msk.bf16.gmra.mxu3 %vm117_vm2, %v11199_v7 }
 0x887   :  { %v6247_v38 = vpop.f32.mrf.mxu2 }
 0x888   :  { %v6248_v56 = vadd.f32 %v6247_v38, %v6162_v3  ;;  %v6361_v24 = vpop.f32.mrf.mxu3  ;;  %v6164_v20 = vpop.f32.mrf.mxu1 }
 0x889   :  { %v6491_v63 = vpop.f32.mrf.mxu0 }
 0x88a   :  { %v6389_v37 = vadd.f32 %v6361_v24, %v6248_v56  ;;  %8105 = vmatmul.msk.bf16.gmra.mxu0 %vm117_vm2, %v11197_v46  ;;  %v6932_v24 = vld [vmem:[#allocation2 + $0x131] sm:$0xff] }
 0x88b   :  { %v6940_v30 = vpack.c.bf16 %v6932_v24, %v6542_v42 }
 0x88c   :  { %v11367_v58 = vadd.f32 %v6491_v63, %v6389_v37 }
 0x88f   :  { %v6249_v43 = vpop.f32.mrf.mxu2 }
 0x890   :  { %v6250_v28 = vadd.f32 %v6249_v43, %v6164_v20  ;;  %v6363_v26 = vpop.f32.mrf.mxu3  ;;  %v6167_v29 = vpop.f32.mrf.mxu1 }
 0x891   :  { %v6493_v34 = vpop.f32.mrf.mxu0 }
 0x892   :  { %v6390_v19 = vadd.f32 %v6363_v26, %v6250_v28 }
 0x893   :  { %8058 = vmatmul.msk.bf16.gmra.mxu1 %vm117_vm2, %v6548_v11 }
 0x894   :  { %v11371_v1 = vadd.f32 %v6493_v34, %v6390_v19  ;;  %8074 = vmatmul.msk.bf16.gmra.mxu2 %vm117_vm2, %v6678_v15 }
 0x895   :  { %8090 = vmatmul.msk.bf16.gmra.mxu3 %vm117_vm2, %v11242_v54 }
 0x897   :  { %v6252_v46 = vpop.f32.mrf.mxu2 }
 0x898   :  { %v6253_v7 = vadd.f32 %v6252_v46, %v6167_v29  ;;  %v6366_v47 = vpop.f32.mrf.mxu3  ;;  %v6169_v39 = vpop.f32.mrf.mxu1 }
 0x899   :  { %v6496_v55 = vpop.f32.mrf.mxu0 }
 0x89a   :  { %v6391_v23 = vadd.f32 %v6366_v47, %v6253_v7  ;;  %8106 = vmatmul.msk.bf16.gmra.mxu0 %vm117_vm2, %v11240_v45 }
 0x89c   :  { %v11383_v18 = vadd.f32 %v6496_v55, %v6391_v23 }
 0x89f   :  { %v6254_v62 = vpop.f32.mrf.mxu2 }
 0x8a0   :  { %v6255_v31 = vadd.f32 %v6254_v62, %v6169_v39  ;;  %v6368_v11 = vpop.f32.mrf.mxu3  ;;  %v6172_v41 = vpop.f32.mrf.mxu1 }
 0x8a1   :  { %v6498_v50 = vpop.f32.mrf.mxu0 }
 0x8a2   :  { %v6392_v15 = vadd.f32 %v6368_v11, %v6255_v31  ;;  %v11723_v31 = vld [vmem:[#allocation32_spill] sm:$0xff] }
 0x8a3   :  { %8059 = vmatmul.msk.bf16.gmra.mxu1 %vm117_vm2, %v6549_v52  ;;  %v11403_v52 = vld [vmem:[#allocation2 + $0x122] sm:$0xff] }
 0x8a4   :  { %v11387_v48 = vadd.f32 %v6498_v50, %v6392_v15  ;;  %8075 = vmatmul.msk.bf16.gmra.mxu2 %vm117_vm2, %v6679_v36  ;;  %v6802_v36 = vld [vmem:[#allocation2 + $0x130] sm:$0xff]  ;;  %v6680_v0 = vpack.c.bf16 %v11403_v52, %v11272_v59 }
 0x8a5   :  { %8091 = vmatmul.msk.bf16.gmra.mxu3 %vm117_vm2, %v11279_v32  ;;  %v6810_v38 = vpack.c.bf16 %v6802_v36, %v11291_v53 }
 0x8a7   :  { %v6257_v45 = vpop.f32.mrf.mxu2 }
 0x8a8   :  { %v6258_v54 = vadd.f32 %v6257_v45, %v6172_v41  ;;  %v6371_v44 = vpop.f32.mrf.mxu3  ;;  %v6174_v33 = vpop.f32.mrf.mxu1 }
 0x8a9   :  { %v6501_v17 = vpop.f32.mrf.mxu0 }
 0x8aa   :  { %v6393_v16 = vadd.f32 %v6371_v44, %v6258_v54  ;;  %8107 = vmatmul.msk.bf16.gmra.mxu0 %vm117_vm2, %v11277_v51 }
 0x8ac   :  { %v11399_v40 = vadd.f32 %v6501_v17, %v6393_v16 }
 0x8af   :  { %v6259_v8 = vpop.f32.mrf.mxu2 }
 0x8b0   :  { %v6260_v10 = vadd.f32 %v6259_v8, %v6174_v33  ;;  %v6373_v49 = vpop.f32.mrf.mxu3  ;;  %v6177_v5 = vpop.f32.mrf.mxu1 }
 0x8b1   :  { %v6503_v32 = vpop.f32.mrf.mxu0 }
 0x8b2   :  { %v6394_v3 = vadd.f32 %v6373_v49, %v6260_v10 }
 0x8b3   :  { %8060 = vmatmul.msk.bf16.gmra.mxu1 %vm117_vm2, %v6550_v6 }
 0x8b4   :  { %v6524_v56 = vadd.f32 %v6503_v32, %v6394_v3  ;;  %8076 = vmatmul.msk.bf16.gmra.mxu2 %vm117_vm2, %v6680_v0 }
 0x8b5   :  { %8092 = vmatmul.msk.bf16.gmra.mxu3 %vm117_vm2, %v6810_v38 }
 0x8b7   :  { %v6262_v51 = vpop.f32.mrf.mxu2 }
 0x8b8   :  { %v6263_v20 = vadd.f32 %v6262_v51, %v6177_v5  ;;  %v6376_v63 = vpop.f32.mrf.mxu3  ;;  %v6179_v37 = vpop.f32.mrf.mxu1  ;;  %v7062_v5 = vld [vmem:[#allocation2 + $0x132] sm:$0xff] }
 0x8b9   :  { %v6506_v43 = vpop.f32.mrf.mxu0  ;;  %v7070_v6 = vpack.c.bf16 %v7062_v5, %v11403_v52 }
 0x8ba   :  { %v6395_v28 = vadd.f32 %v6376_v63, %v6263_v20  ;;  %8108 = vmatmul.msk.bf16.gmra.mxu0 %vm117_vm2, %v6940_v30 }
 0x8bc   :  { %v6525_v26 = vadd.f32 %v6506_v43, %v6395_v28  ;;  %v11470_v28 = vld [vmem:[#allocation11] ss:$0 sm:$0xff] }
 0x8bf   :  { %v6264_v59 = vpop.f32.mrf.mxu2 }
 0x8c0   :  { %v6265_v53 = vadd.f32 %v6264_v59, %v6179_v37  ;;  %v6378_v29 = vpop.f32.mrf.mxu3  ;;  %v6601_v34 = vpop.f32.mrf.mxu1 }
 0x8c1   :  { %v6641_v46 = vadd.f32 %v6601_v34, %v11305_v60  ;;  %v6508_v7 = vpop.f32.mrf.mxu0 }
 0x8c2   :  { %v6396_v19 = vadd.f32 %v6378_v29, %v6265_v53 }
 0x8c3   :  { %8117 = vmatmul.msk.bf16.vlgmr.msrb.gmra.mxu1 %vm117_vm2, %v11050_v9 }
 0x8c4   :  { %v6526_v47 = vadd.f32 %v6508_v7, %v6396_v19 }
 0x8c8   :  { %v6603_v39 = vpop.f32.mrf.mxu1 }
 0x8c9   :  { %v6642_v55 = vadd.f32 %v6603_v39, %v11309_v14  ;;  %v6991_v8 = vpop.f32.mrf.mxu0 }
 0x8d0   :  { %v6606_v23 = vpop.f32.mrf.mxu1 }
 0x8d1   :  { %v11418_v62 = vadd.f32 %v6606_v23, %v11321_v57  ;;  %v7054_v57 = vld [vmem:[#allocation2 + $0x92] sm:$0xff]  ;;  %v6993_v49 = vpop.f32.mrf.mxu0 }
 0x8d2   :  { %v7066_v54 = vpack.c.bf16 %v7054_v57, %v11341_v22 }
 0x8d3   :  { %8118 = vmatmul.msk.bf16.gmra.mxu1 %vm117_vm2, %v11723_v31 }
 0x8d8   :  { %v6608_v11 = vpop.f32.mrf.mxu1 }
 0x8d9   :  { %v11423_v41 = vadd.f32 %v6608_v11, %v11325_v4  ;;  %v6996_v0 = vpop.f32.mrf.mxu0 }
 0x8e0   :  { %v6611_v60 = vpop.f32.mrf.mxu1 }
 0x8e1   :  { %v11426_v50 = vadd.f32 %v6611_v60, %v11337_v27 }
 0x8e3   :  { %8119 = vmatmul.msk.bf16.gmra.mxu1 %vm117_vm2, %v11133_v61 }
 0x8e8   :  { %v6613_v9 = vpop.f32.mrf.mxu1 }
 0x8e9   :  { %v11431_v14 = vadd.f32 %v6613_v9, %v11347_v12 }
 0x8f0   :  { %v6616_v15 = vpop.f32.mrf.mxu1 }
 0x8f1   :  { %v11434_v45 = vadd.f32 %v6616_v15, %v11352_v25 }
 0x8f3   :  { %8120 = vmatmul.msk.bf16.gmra.mxu1 %vm117_vm2, %v7066_v54 }
 0x8f8   :  { %v6618_v4 = vpop.f32.mrf.mxu1 }
 0x8f9   :  { %v11439_v27 = vadd.f32 %v6618_v4, %v11355_v2  ;;  %v6731_v2 = vpop.f32.mrf.mxu2 }
 0x8fa   :  { %v6771_v38 = vadd.f32 %v6731_v2, %v6641_v46 }
 0x900   :  { %v6621_v44 = vpop.f32.mrf.mxu1 }
 0x901   :  { %v11442_v61 = vadd.f32 %v6621_v44, %v11367_v58  ;;  %v6861_v58 = vpop.f32.mrf.mxu3  ;;  %v6733_v42 = vpop.f32.mrf.mxu2 }
 0x902   :  { %v6901_v20 = vadd.f32 %v6861_v58, %v6771_v38  ;;  %v6772_v43 = vadd.f32 %v6733_v42, %v6642_v55 }
 0x903   :  { %8121 = vmatmul.msk.bf16.gmra.mxu1 %vm117_vm2, %v11203_v35 }
 0x904   :  { %v7031_v37 = vadd.f32 %v6991_v8, %v6901_v20 }
 0x908   :  { %v6623_v12 = vpop.f32.mrf.mxu1 }
 0x909   :  { %v11447_v33 = vadd.f32 %v6623_v12, %v11371_v1  ;;  %v6863_v1 = vpop.f32.mrf.mxu3 }
 0x90a   :  { %v6902_v59 = vadd.f32 %v6863_v1, %v6772_v43 }
 0x90c   :  { %v7032_v34 = vadd.f32 %v6993_v49, %v6902_v59 }
 0x910   :  { %v6626_v25 = vpop.f32.mrf.mxu1 }
 0x911   :  { %v11450_v22 = vadd.f32 %v6626_v25, %v11383_v18  ;;  %v6866_v32 = vpop.f32.mrf.mxu3 }
 0x913   :  { %8122 = vmatmul.msk.bf16.gmra.mxu1 %vm117_vm2, %v11246_v21  ;;  %v6736_v21 = vpop.f32.mrf.mxu2 }
 0x914   :  { %v6773_v19 = vadd.f32 %v6736_v21, %v11418_v62 }
 0x916   :  { %v6903_v55 = vadd.f32 %v6866_v32, %v6773_v19 }
 0x918   :  { %v6628_v17 = vpop.f32.mrf.mxu1  ;;  %v7033_v60 = vadd.f32 %v6996_v0, %v6903_v55 }
 0x919   :  { %v11455_v16 = vadd.f32 %v6628_v17, %v11387_v48  ;;  %v6868_v24 = vpop.f32.mrf.mxu3 }
 0x920   :  { %v6631_v35 = vpop.f32.mrf.mxu1 }
 0x921   :  { %v11458_v10 = vadd.f32 %v6631_v35, %v11399_v40  ;;  %v6738_v40 = vpop.f32.mrf.mxu2  ;;  %v6871_v53 = vpop.f32.mrf.mxu3 }
 0x922   :  { %v6774_v9 = vadd.f32 %v6738_v40, %v11423_v41 }
 0x923   :  { %8123 = vmatmul.msk.bf16.gmra.mxu1 %vm117_vm2, %v11283_v13 }
 0x924   :  { %v6904_v4 = vadd.f32 %v6868_v24, %v6774_v9 }
 0x928   :  { %v6633_v18 = vpop.f32.mrf.mxu1 }
 0x929   :  { %v11462_v36 = vadd.f32 %v6633_v18, %v6524_v56  ;;  %v6998_v56 = vpop.f32.mrf.mxu0  ;;  %v6741_v63 = vpop.f32.mrf.mxu2 }
 0x92a   :  { %v6873_v11 = vpop.f32.mrf.mxu3  ;;  %v7034_v25 = vadd.f32 %v6998_v56, %v6904_v4  ;;  %v6775_v2 = vadd.f32 %v6741_v63, %v11426_v50 }
 0x92c   :  { %v6905_v8 = vadd.f32 %v6871_v53, %v6775_v2 }
 0x930   :  { %v6636_v48 = vpop.f32.mrf.mxu1 }
 0x931   :  { %v11464_v3 = vadd.f32 %v6636_v48, %v6525_v26  ;;  %v7001_v46 = vpop.f32.mrf.mxu0  ;;  %v6743_v7 = vpop.f32.mrf.mxu2 }
 0x932   :  { %v6876_v41 = vpop.f32.mrf.mxu3  ;;  %v7035_v49 = vadd.f32 %v7001_v46, %v6905_v8  ;;  %v6776_v21 = vadd.f32 %v6743_v7, %v11431_v14 }
 0x933   :  { %8124 = vmatmul.msk.bf16.gmra.mxu1 %vm117_vm2, %v7070_v6 }
 0x934   :  { %v6906_v48 = vadd.f32 %v6873_v11, %v6776_v21 }
 0x938   :  { %v6638_v51 = vpop.f32.mrf.mxu1 }
 0x939   :  { %v11468_v13 = vadd.f32 %v6638_v51, %v6526_v47  ;;  %v7003_v57 = vpop.f32.mrf.mxu0  ;;  %v6746_v54 = vpop.f32.mrf.mxu2 }
 0x93a   :  { %v6878_v32 = vpop.f32.mrf.mxu3  ;;  %v7036_v51 = vadd.f32 %v7003_v57, %v6906_v48  ;;  %v6777_v24 = vadd.f32 %v6746_v54, %v11434_v45 }
 0x93c   :  { %v6907_v56 = vadd.f32 %v6876_v41, %v6777_v24 }
 0x940   :  { %v7121_v30 = vpop.f32.mrf.mxu1 }
 0x941   :  { %v7161_v26 = vadd.f32 %v7121_v30, %v7031_v37  ;;  %v7006_v42 = vpop.f32.mrf.mxu0  ;;  %v6748_v1 = vpop.f32.mrf.mxu2 }
 0x942   :  { %v6881_v37 = vpop.f32.mrf.mxu3  ;;  %v7037_v30 = vadd.f32 %v7006_v42, %v6907_v56 }
 0x943   :  { %v7181_v52 = vadd.f32 %v11470_v28, %v7161_v26  ;;  %v6778_v26 = vadd.f32 %v6748_v1, %v11439_v27 }
 0x945   :  { %v7197_v29 = vmax.f32 %v7181_v52, 0.0 }
 0x947   :  { %7213 = vst [vmem:[%s11557_s7] sm:$0xff] %v7197_v29  ;;  %v6908_v29 = vadd.f32 %v6878_v32, %v6778_v26 }
 0x948   :  { %v7123_v47 = vpop.f32.mrf.mxu1 }
 0x949   :  { %v7162_v39 = vadd.f32 %v7123_v47, %v7032_v34  ;;  %v7008_v0 = vpop.f32.mrf.mxu0  ;;  %v6751_v38 = vpop.f32.mrf.mxu2 }
 0x94a   :  { %v6883_v46 = vpop.f32.mrf.mxu3  ;;  %v7038_v7 = vadd.f32 %v7008_v0, %v6908_v29  ;;  %v6779_v47 = vadd.f32 %v6751_v38, %v11442_v61 }
 0x94b   :  { %v7182_v23 = vadd.f32 %v11470_v28, %v7162_v39 }
 0x94d   :  { %v7198_v31 = vmax.f32 %v7182_v23, 0.0 }
 0x94f   :  { %7214 = vst [vmem:[%s11557_s7 + $0x8] sm:$0xff] %v7198_v31  ;;  %v6909_v31 = vadd.f32 %v6881_v37, %v6779_v47 }
 0x950   :  { %v7126_v62 = vpop.f32.mrf.mxu1 }
 0x951   :  { %v7163_v15 = vadd.f32 %v7126_v62, %v7033_v60  ;;  %v7011_v59 = vpop.f32.mrf.mxu0  ;;  %v6753_v45 = vpop.f32.mrf.mxu2 }
 0x952   :  { %v7039_v9 = vadd.f32 %v7011_v59, %v6909_v31  ;;  %v6780_v62 = vadd.f32 %v6753_v45, %v11447_v33  ;;  %v6886_v61 = vpop.f32.mrf.mxu3 }
 0x953   :  { %v7183_v44 = vadd.f32 %v11470_v28, %v7163_v15 }
 0x954   :  { %v6910_v54 = vadd.f32 %v6883_v46, %v6780_v62 }
 0x955   :  { %v7199_v12 = vmax.f32 %v7183_v44, 0.0 }
 0x957   :  { %7215 = vst [vmem:[%s11557_s7 + $0x10] sm:$0xff] %v7199_v12 }
 0x958   :  { %v7128_v17 = vpop.f32.mrf.mxu1 }
 0x959   :  { %v7164_v58 = vadd.f32 %v7128_v17, %v7034_v25  ;;  %v7013_v39 = vpop.f32.mrf.mxu0  ;;  %v6756_v23 = vpop.f32.mrf.mxu2 }
 0x95a   :  { %v7040_v2 = vadd.f32 %v7013_v39, %v6910_v54  ;;  %v6781_v41 = vadd.f32 %v6756_v23, %v11450_v22 }
 0x95b   :  { %v7184_v35 = vadd.f32 %v11470_v28, %v7164_v58  ;;  %v6888_v58 = vpop.f32.mrf.mxu3 }
 0x95c   :  { %v6911_v8 = vadd.f32 %v6886_v61, %v6781_v41 }
 0x95d   :  { %v7200_v18 = vmax.f32 %v7184_v35, 0.0 }
 0x95f   :  { %7216 = vst [vmem:[%s11557_s7 + $0x18] sm:$0xff] %v7200_v18 }
 0x960   :  { %v7131_v50 = vpop.f32.mrf.mxu1 }
 0x961   :  { %v7165_v5 = vadd.f32 %v7131_v50, %v7035_v49  ;;  %v7016_v4 = vpop.f32.mrf.mxu0  ;;  %v6758_v12 = vpop.f32.mrf.mxu2 }
 0x962   :  { %v7041_v49 = vadd.f32 %v7016_v4, %v6911_v8  ;;  %v6782_v21 = vadd.f32 %v6758_v12, %v11455_v16 }
 0x963   :  { %v7185_v6 = vadd.f32 %v11470_v28, %v7165_v5  ;;  %v6891_v48 = vpop.f32.mrf.mxu3 }
 0x964   :  { %v6912_v5 = vadd.f32 %v6888_v58, %v6782_v21 }
 0x965   :  { %v7201_v40 = vmax.f32 %v7185_v6, 0.0 }
 0x967   :  { %7217 = vst [vmem:[%s11557_s7 + $0x20] sm:$0xff] %v7201_v40 }
 0x968   :  { %v7133_v14 = vpop.f32.mrf.mxu1 }
 0x969   :  { %v7166_v20 = vadd.f32 %v7133_v14, %v7036_v51  ;;  %v7018_v35 = vpop.f32.mrf.mxu0  ;;  %v6761_v18 = vpop.f32.mrf.mxu2 }
 0x96a   :  { %v7042_v0 = vadd.f32 %v7018_v35, %v6912_v5  ;;  %v6783_v40 = vadd.f32 %v6761_v18, %v11458_v10 }
 0x96b   :  { %v7186_v63 = vadd.f32 %v11470_v28, %v7166_v20 }
 0x96c   :  { %v6913_v14 = vadd.f32 %v6891_v48, %v6783_v40 }
 0x96d   :  { %v7202_v43 = vmax.f32 %v7186_v63, 0.0  ;;  %v6893_v63 = vpop.f32.mrf.mxu3 }
 0x96f   :  { %7218 = vst [vmem:[%s11557_s7 + $0x28] sm:$0xff] %v7202_v43 }
 0x970   :  { %v7136_v52 = vpop.f32.mrf.mxu1 }
 0x971   :  { %v7167_v53 = vadd.f32 %v7136_v52, %v7037_v30  ;;  %v7021_v38 = vpop.f32.mrf.mxu0  ;;  %v6763_v16 = vpop.f32.mrf.mxu2 }
 0x972   :  { %v7043_v37 = vadd.f32 %v7021_v38, %v6913_v14  ;;  %v6784_v43 = vadd.f32 %v6763_v16, %v11462_v36 }
 0x973   :  { %v7187_v34 = vadd.f32 %v11470_v28, %v7167_v53 }
 0x974   :  { %v6914_v45 = vadd.f32 %v6893_v63, %v6784_v43 }
 0x975   :  { %v7203_v19 = vmax.f32 %v7187_v34, 0.0  ;;  %v6896_v36 = vpop.f32.mrf.mxu3 }
 0x977   :  { %7219 = vst [vmem:[%s11557_s7 + $0x30] sm:$0xff] %v7203_v19 }
 0x978   :  { %v7138_v27 = vpop.f32.mrf.mxu1 }
 0x979   :  { %v7168_v55 = vadd.f32 %v7138_v27, %v7038_v7  ;;  %v7023_v26 = vpop.f32.mrf.mxu0  ;;  %v6766_v59 = vpop.f32.mrf.mxu2 }
 0x97a   :  { %v7044_v29 = vadd.f32 %v7023_v26, %v6914_v45  ;;  %v6785_v34 = vadd.f32 %v6766_v59, %v11464_v3 }
 0x97b   :  { %v7188_v11 = vadd.f32 %v11470_v28, %v7168_v55 }
 0x97c   :  { %v6915_v7 = vadd.f32 %v6896_v36, %v6785_v34 }
 0x97d   :  { %v7204_v60 = vmax.f32 %v7188_v11, 0.0 }
 0x97f   :  { %7220 = vst [vmem:[%s11557_s7 + $0x38] sm:$0xff] %v7204_v60  ;;  %v6898_v60 = vpop.f32.mrf.mxu3 }
 0x980   :  { %v7141_v57 = vpop.f32.mrf.mxu1 }
 0x981   :  { %v7169_v15 = vadd.f32 %v7141_v57, %v7039_v9  ;;  %v7026_v27 = vpop.f32.mrf.mxu0  ;;  %v6768_v39 = vpop.f32.mrf.mxu2 }
 0x982   :  { %v7045_v23 = vadd.f32 %v7026_v27, %v6915_v7  ;;  %v6786_v31 = vadd.f32 %v6768_v39, %v11468_v13 }
 0x983   :  { %v7189_v44 = vadd.f32 %v11470_v28, %v7169_v15 }
 0x984   :  { %v6916_v9 = vadd.f32 %v6898_v60, %v6786_v31 }
 0x985   :  { %v7205_v25 = vmax.f32 %v7189_v44, 0.0 }
 0x987   :  { %7221 = vst [vmem:[%s11557_s7 + $0x40] sm:$0xff] %v7205_v25 }
 0x988   :  { %v7143_v33 = vpop.f32.mrf.mxu1 }
 0x989   :  { %v7170_v17 = vadd.f32 %v7143_v33, %v7040_v2  ;;  %v7028_v57 = vpop.f32.mrf.mxu0 }
 0x98a   :  { %v7046_v15 = vadd.f32 %v7028_v57, %v6916_v9 }
 0x98b   :  { %v7190_v42 = vadd.f32 %v11470_v28, %v7170_v17 }
 0x98d   :  { %v7206_v1 = vmax.f32 %v7190_v42, 0.0 }
 0x98f   :  { %7222 = vst [vmem:[%s11557_s7 + $0x48] sm:$0xff] %v7206_v1 }
 0x990   :  { %v7146_v22 = vpop.f32.mrf.mxu1 }
 0x991   :  { %v7171_v50 = vadd.f32 %v7146_v22, %v7041_v49 }
 0x993   :  { %v7191_v32 = vadd.f32 %v11470_v28, %v7171_v50 }
 0x995   :  { %v7207_v6 = vmax.f32 %v7191_v32, 0.0 }
 0x997   :  { %7223 = vst [vmem:[%s11557_s7 + $0x50] sm:$0xff] %v7207_v6 }
 0x998   :  { %v7148_v51 = vpop.f32.mrf.mxu1 }
 0x999   :  { %v7172_v24 = vadd.f32 %v7148_v51, %v7042_v0 }
 0x99b   :  { %v7192_v20 = vadd.f32 %v11470_v28, %v7172_v24 }
 0x99d   :  { %v7208_v56 = vmax.f32 %v7192_v20, 0.0 }
 0x99f   :  { %7224 = vst [vmem:[%s11557_s7 + $0x58] sm:$0xff] %v7208_v56 }
 0x9a0   :  { %v7151_v10 = vpop.f32.mrf.mxu1 }
 0x9a1   :  { %v7173_v30 = vadd.f32 %v7151_v10, %v7043_v37 }
 0x9a3   :  { %v7193_v52 = vadd.f32 %v11470_v28, %v7173_v30 }
 0x9a5   :  { %v7209_v53 = vmax.f32 %v7193_v52, 0.0 }
 0x9a7   :  { %7225 = vst [vmem:[%s11557_s7 + $0x60] sm:$0xff] %v7209_v53 }
 0x9a8   :  { %v7153_v19 = vpop.f32.mrf.mxu1 }
 0x9a9   :  { %v7174_v46 = vadd.f32 %v7153_v19, %v7044_v29 }
 0x9ab   :  { %v7194_v47 = vadd.f32 %v11470_v28, %v7174_v46 }
 0x9ad   :  { %v7210_v55 = vmax.f32 %v7194_v47, 0.0 }
 0x9af   :  { %7226 = vst [vmem:[%s11557_s7 + $0x68] sm:$0xff] %v7210_v55 }
 0x9b0   :  { %v7156_v3 = vpop.f32.mrf.mxu1 }
 0x9b1   :  { %v7175_v11 = vadd.f32 %v7156_v3, %v7045_v23 }
 0x9b3   :  { %v7195_v62 = vadd.f32 %v11470_v28, %v7175_v11 }
 0x9b5   :  { %v7211_v61 = vmax.f32 %v7195_v62, 0.0 }
 0x9b7   :  { %7227 = vst [vmem:[%s11557_s7 + $0x70] sm:$0xff] %v7211_v61 }
 0x9b8   :  { %v7158_v54 = vpop.f32.mrf.mxu1 }
 0x9b9   :  { %v7176_v4 = vadd.f32 %v7158_v54, %v7046_v15 }
 0x9bb   :  { %v7196_v13 = vadd.f32 %v11470_v28, %v7176_v4 }
 0x9bd   :  { %v7212_v44 = vmax.f32 %v7196_v13, 0.0 }
 0x9bf   :  { %7228 = vst [vmem:[%s11557_s7 + $0x78] sm:$0xff] %v7212_v44 }
 0x9c0   :  { %7233 = vsyncpa [#allocation4], 1 }
 0x9c1   :  { %7234 = vsyncpa [#allocation6], 1 }
 0x9c2   :  { %7235 = vsyncpa [#allocation9], 1 }
 0x9c3   :  { %7236 = vsyncpa [#allocation12], 1 }

</bundles_post_ra>
